<compile_context>
chip_gen: v6e
topology: v6e:2x2x1
jax: 0.10.0
libtpu: 0.0.40
codegen_flags: <defaults>
</compile_context>

<pallas_src>
import numpy as np
import jax
import jax.numpy as jnp
from jax import lax
from jax.experimental import pallas as pl
from jax.experimental.pallas import tpu as pltpu

_VMEM_LIMIT = 56 * 1024 * 1024   # > scoped defaults everywhere, < v7x physical


def _round_up(x, m):
    return ((x + m - 1) // m) * m


# ----------------------------------------------------------------------------
# Kernels
# ----------------------------------------------------------------------------

def _fused_pw_kernel(x_ref, w_ref, b_ref, o01_ref, o2_ref):
    """Fused 1x1x1 projections for branches 0 / 1a / 2a.

    x_ref  : (tm, 256)      bf16
    w_ref  : (256, 288)     bf16   [branch0 | branch1a | branch2a], BN folded
    b_ref  : (1, 288)       f32
    o01_ref: (tm, 256)      bf16   [branch0 | branch1a]  (lane-dense store)
    o2_ref : (tm, 32)       bf16   branch2a
    """
    c01 = o01_ref.shape[1]
    y = jnp.dot(x_ref[...], w_ref[...], preferred_element_type=jnp.float32)
    y = jnp.maximum(y + b_ref[...], 0.0)
    o01_ref[...] = y[:, :c01].astype(o01_ref.dtype)
    o2_ref[...] = y[:, c01:].astype(o2_ref.dtype)


def _sepconv_kernel(x_ref, ws_ref, bs_ref, wt_ref, bt_ref, o_ref,
                    xp_ref, col_ref, sp_ref):
    """Fused SepConv3d: 3x3 spatial conv -> BN/ReLU -> 3x1x1 temporal -> BN/ReLU.

    x_ref  : (T, H, W, Cin)      bf16   (branch-a 1x1x1 output, channel slice)
    ws_ref : (9*Cin, Cs)         bf16   im2col spatial weights, BN folded
    bs_ref : (1, Cs)             f32
    wt_ref : (3, Cs, Cs)         bf16   temporal weights, BN folded
    bt_ref : (1, Cs)             f32
    o_ref  : (T, H*W, Cs)        bf16
    xp_ref : (H+2, W+2, Cin)     bf16   zero-padded frame scratch
    col_ref: (H*W, 9*Cin)        bf16   im2col scratch
    sp_ref : (3, H*W, Cs)        bf16   rolling spatial-stage buffer
    """
    T, H, W, Cin = x_ref.shape
    Cs = o_ref.shape[-1]
    HW = H * W

    # Zero the spatial halo once (interior rewritten per frame) and the t=-1
    # temporal halo frame (slot 0 == slot of frame -1, since slot(s)=(s+1)%3).
    xp_ref[...] = jnp.zeros(xp_ref.shape, xp_ref.dtype)
    sp_ref[0] = jnp.zeros((HW, Cs), sp_ref.dtype)
    bs = bs_ref[...]
    bt = bt_ref[...]

    def spatial_frame(s):
        xp_ref[1:H + 1, 1:W + 1, :] = x_ref[s]
        # im2col: pack the 9 shifted taps, then one K = 9*Cin matmul.
        for k in range(9):
            ky, kx = k // 3, k % 3
            col_ref[:, k * Cin:(k + 1) * Cin] = (
                xp_ref[ky:ky + H, kx:kx + W, :].reshape(HW, Cin))
        acc = jnp.dot(col_ref[...], ws_ref[...],
                      preferred_element_type=jnp.float32)
        sp_ref[(s + 1) % 3] = jnp.maximum(acc + bs, 0.0).astype(sp_ref.dtype)

    def temporal_frame(t):
        # spatial frames t-1, t, t+1 live in slots t%3, (t+1)%3, (t+2)%3
        acc = jnp.dot(sp_ref[t % 3], wt_ref[0],
                      preferred_element_type=jnp.float32)
        acc = acc + jnp.dot(sp_ref[(t + 1) % 3], wt_ref[1],
                            preferred_element_type=jnp.float32)
        acc = acc + jnp.dot(sp_ref[(t + 2) % 3], wt_ref[2],
                            preferred_element_type=jnp.float32)
        o_ref[t] = jnp.maximum(acc + bt, 0.0).astype(o_ref.dtype)

    def body(s, carry):
        spatial_frame(s)

        @pl.when(s >= 1)
        def _():
            temporal_frame(s - 1)
        return carry

    lax.fori_loop(0, T, body, 0)
    # Tail: output frame T-1 needs the (zero) spatial frame T.
    sp_ref[(T + 1) % 3] = jnp.zeros((HW, Cs), sp_ref.dtype)
    temporal_frame(T - 1)


def _maxpool_pw_kernel(x_ref, w_ref, b_ref, o_ref, xp_ref, sp_ref):
    """Fused 3x3x3 max-pool (stride 1, pad 1) + 1x1x1 conv + BN + ReLU.

    x_ref : (T, H, W, C)     bf16    w_ref: (C, Co) bf16 (BN folded)
    b_ref : (1, Co)          f32     o_ref: (T, H*W, Co) bf16
    xp_ref: (H+2, W+2, C)    bf16    -inf padded frame scratch
    sp_ref: (3, H*W, C)      bf16    rolling per-frame spatial-max buffer
    """
    T, H, W, C = x_ref.shape
    HW = H * W

    xp_ref[...] = jnp.full(xp_ref.shape, -jnp.inf, xp_ref.dtype)
    sp_ref[0] = jnp.full((HW, C), -jnp.inf, sp_ref.dtype)
    b = b_ref[...]

    def spatial_frame(s):
        xp_ref[1:H + 1, 1:W + 1, :] = x_ref[s]
        # separable 3x3 max: over kx first, then over ky
        rows = jnp.maximum(
            jnp.maximum(xp_ref[:, 0:W, :], xp_ref[:, 1:W + 1, :]),
            xp_ref[:, 2:W + 2, :])                      # (H+2, W, C)
        m = jnp.maximum(jnp.maximum(rows[0:H], rows[1:H + 1]), rows[2:H + 2])
        sp_ref[(s + 1) % 3] = m.reshape(HW, C)

    def temporal_frame(t):
        m = jnp.maximum(jnp.maximum(sp_ref[t % 3], sp_ref[(t + 1) % 3]),
                        sp_ref[(t + 2) % 3])
        acc = jnp.dot(m, w_ref[...], preferred_element_type=jnp.float32)
        o_ref[t] = jnp.maximum(acc + b, 0.0).astype(o_ref.dtype)

    def body(s, carry):
        spatial_frame(s)

        @pl.when(s >= 1)
        def _():
            temporal_frame(s - 1)
        return carry

    lax.fori_loop(0, T, body, 0)
    sp_ref[(T + 1) % 3] = jnp.full((HW, C), -jnp.inf, sp_ref.dtype)
    temporal_frame(T - 1)


# ----------------------------------------------------------------------------
# Pallas wrappers
# ----------------------------------------------------------------------------

def fused_pointwise(x2d, w_cat, b_cat, c01, c2, tm=2048):
    M, Cin = x2d.shape
    Ctot = w_cat.shape[1]
    tm = min(tm, _round_up(M, 8))
    Mp = _round_up(M, tm)
    x_in = x2d if Mp == M else jnp.pad(x2d, ((0, Mp - M), (0, 0)))
    o01, o2 = pl.pallas_call(
        _fused_pw_kernel,
        out_shape=(jax.ShapeDtypeStruct((Mp, c01), jnp.bfloat16),
                   jax.ShapeDtypeStruct((Mp, c2), jnp.bfloat16)),
        grid_spec=pltpu.PrefetchScalarGridSpec(
            num_scalar_prefetch=0, grid=(Mp // tm,),
            in_specs=[pl.BlockSpec((tm, Cin), lambda i: (i, 0)),
                      pl.BlockSpec((Cin, Ctot), lambda i: (0, 0)),
                      pl.BlockSpec((1, Ctot), lambda i: (0, 0))],
            out_specs=(pl.BlockSpec((tm, c01), lambda i: (i, 0)),
                       pl.BlockSpec((tm, c2), lambda i: (i, 0)))),
        compiler_params=pltpu.CompilerParams(
            dimension_semantics=("parallel",), vmem_limit_bytes=_VMEM_LIMIT),
    )(x_in, w_cat, b_cat)
    if Mp != M:
        o01, o2 = o01[:M], o2[:M]
    return o01, o2


def sepconv_fused(x5d, ch_block, cin, ws, bs, wt, bt):
    # x5d: (N, T, H, W, Ctot) bf16; the branch input is channel block
    # `ch_block` of width `cin`, read via a channel-offset BlockSpec.
    N, T, H, W, _ = x5d.shape
    Cs = ws.shape[-1]
    HW = H * W
    return pl.pallas_call(
        _sepconv_kernel,
        out_shape=jax.ShapeDtypeStruct((N, T, HW, Cs), jnp.bfloat16),
        grid_spec=pltpu.PrefetchScalarGridSpec(
            num_scalar_prefetch=0, grid=(N,),
            in_specs=[pl.BlockSpec((None, T, H, W, cin),
                                   lambda n: (n, 0, 0, 0, ch_block)),
                      pl.BlockSpec((9 * cin, Cs), lambda n: (0, 0)),
                      pl.BlockSpec((1, Cs), lambda n: (0, 0)),
                      pl.BlockSpec((3, Cs, Cs), lambda n: (0, 0, 0)),
                      pl.BlockSpec((1, Cs), lambda n: (0, 0))],
            out_specs=pl.BlockSpec((None, T, HW, Cs), lambda n: (n, 0, 0, 0)),
            scratch_shapes=[pltpu.VMEM((H + 2, W + 2, cin), jnp.bfloat16),
                            pltpu.VMEM((HW, 9 * cin), jnp.bfloat16),
                            pltpu.VMEM((3, HW, Cs), jnp.bfloat16)]),
        compiler_params=pltpu.CompilerParams(
            dimension_semantics=("parallel",), vmem_limit_bytes=_VMEM_LIMIT),
    )(x5d, ws, bs, wt, bt)


def maxpool_pw_fused(x, w, b):
    # x: (N, T, H, W, C) bf16 ; w: (C, Co) bf16 ; b: (1, Co) f32
    N, T, H, W, C = x.shape
    Co = w.shape[-1]
    HW = H * W
    return pl.pallas_call(
        _maxpool_pw_kernel,
        out_shape=jax.ShapeDtypeStruct((N, T, HW, Co), jnp.bfloat16),
        grid_spec=pltpu.PrefetchScalarGridSpec(
            num_scalar_prefetch=0, grid=(N,),
            in_specs=[pl.BlockSpec((None, T, H, W, C),
                                   lambda n: (n, 0, 0, 0, 0)),
                      pl.BlockSpec((C, Co), lambda n: (0, 0)),
                      pl.BlockSpec((1, Co), lambda n: (0, 0))],
            out_specs=pl.BlockSpec((None, T, HW, Co), lambda n: (n, 0, 0, 0)),
            scratch_shapes=[pltpu.VMEM((H + 2, W + 2, C), jnp.bfloat16),
                            pltpu.VMEM((3, HW, C), jnp.bfloat16)]),
        compiler_params=pltpu.CompilerParams(
            dimension_semantics=("parallel",), vmem_limit_bytes=_VMEM_LIMIT),
    )(x, w, b)


# ----------------------------------------------------------------------------
# Module assembly
# ----------------------------------------------------------------------------

def _fold(w, bn):
    """Fold BN scale into the conv weight (output channels = last dim)."""
    scale, bias = bn
    return (w * scale).astype(jnp.bfloat16), bias.reshape(1, -1).astype(jnp.float32)


def mixed_3c(x_ncdhw, p):
    N, Cin, T, H, W = x_ncdhw.shape
    # Cast to bf16 once (fused into the layout transpose by XLA); this is the
    # single HBM copy of x read by both the pointwise and max-pool kernels.
    x = jnp.transpose(x_ncdhw, (0, 2, 3, 4, 1)).astype(jnp.bfloat16)
    M = N * T * H * W

    # fold BN scale into weights, cast matmul operands to bf16
    w0, b0 = _fold(p['w0'], p['bn0'])
    w1a, b1a = _fold(p['w1a'], p['bn1a'])
    w2a, b2a = _fold(p['w2a'], p['bn2a'])
    w_cat = jnp.concatenate([w0, w1a, w2a], axis=1)      # (256, 288) bf16
    b_cat = jnp.concatenate([b0, b1a, b2a], axis=1)      # (1, 288) f32

    w1s, b1s = _fold(p['w1s'], p['bn1s'])
    w1s = w1s.reshape(-1, w1s.shape[-1])                 # (9*128, 192)
    w1t, b1t = _fold(p['w1t'], p['bn1t'])
    w2s, b2s = _fold(p['w2s'], p['bn2s'])
    w2s = w2s.reshape(-1, w2s.shape[-1])                 # (9*32, 96)
    w2t, b2t = _fold(p['w2t'], p['bn2t'])
    w3, b3 = _fold(p['w3'], p['bn3'])

    c0 = p['w0'].shape[1]
    c1a = p['w1a'].shape[1]
    c2a = p['w2a'].shape[1]

    # branches 0 / 1a / 2a : one fused 1x1x1 projection over all voxels
    o01, o2a = fused_pointwise(x.reshape(M, Cin), w_cat, b_cat, c0 + c1a, c2a)
    y01 = o01.reshape(N, T, H, W, c0 + c1a)
    y2a = o2a.reshape(N, T, H, W, c2a)

    # branches 1 / 2 : fused SepConv3d (im2col spatial + rolling temporal)
    y1 = sepconv_fused(y01, 1, c1a, w1s, b1s, w1t, b1t)   # (N,T,HW,192) bf16
    y2 = sepconv_fused(y2a, 0, c2a, w2s, b2s, w2t, b2t)   # (N,T,HW, 96) bf16

    # branch 3 : fused separable 3x3x3 max-pool + 1x1x1 conv
    y3 = maxpool_pw_fused(x, w3, b3)                      # (N,T,HW, 64) bf16

    y0 = o01[:, :c0].reshape(N, T, H * W, c0)             # branch0 slice, bf16
    out = jnp.concatenate([y0, y1, y2, y3], axis=-1)      # (N,T,HW,480) bf16
    out = out.reshape(N, T, H, W, -1)
    return jnp.transpose(out, (0, 4, 1, 2, 3)).astype(jnp.float32)


# ----------------------------------------------------------------------------
# Deterministic parameter construction (synthetic, no checkpoint)
# ----------------------------------------------------------------------------

def _bn_fold(key, c, eps=0.001):
    k1, k2, k3, k4 = jax.random.split(key, 4)
    gamma = 1.0 + 0.1 * jax.random.normal(k1, (c,), jnp.float32)
    beta = 0.1 * jax.random.normal(k2, (c,), jnp.float32)
    mean = 0.05 * jax.random.normal(k3, (c,), jnp.float32)
    var = 1.0 + 0.2 * jax.random.uniform(k4, (c,), jnp.float32)
    scale = gamma * lax.rsqrt(var + eps)
    bias = beta - mean * scale
    return scale, bias


def make_params(key):
    ks = jax.random.split(key, 16)
    w = lambda k, shp: 0.05 * jax.random.normal(k, shp, jnp.float32)
    return {
        'w0':  w(ks[0], (256, 128)),        'bn0':  _bn_fold(ks[1], 128),
        'w1a': w(ks[2], (256, 128)),        'bn1a': _bn_fold(ks[3], 128),
        'w1s': w(ks[4], (3, 3, 128, 192)),  'bn1s': _bn_fold(ks[5], 192),
        'w1t': w(ks[6], (3, 192, 192)),     'bn1t': _bn_fold(ks[7], 192),
        'w2a': w(ks[8], (256, 32)),         'bn2a': _bn_fold(ks[9], 32),
        'w2s': w(ks[10], (3, 3, 32, 96)),   'bn2s': _bn_fold(ks[11], 96),
        'w2t': w(ks[12], (3, 96, 96)),      'bn2t': _bn_fold(ks[13], 96),
        'w3':  w(ks[14], (256, 64)),        'bn3':  _bn_fold(ks[15], 64),
    }


# ----------------------------------------------------------------------------
# Pure-JAX f32 reference (for correctness check)
# ----------------------------------------------------------------------------

def reference(x_ncdhw, p):
    x = jnp.transpose(x_ncdhw, (0, 2, 3, 4, 1))

    def pw(z, w, sb):
        return jax.nn.relu(jnp.einsum('ndhwc,co->ndhwo', z, w) * sb[0] + sb[1])

    def sconv(z, w, sb):
        y = lax.conv_general_dilated(z, w[None], (1, 1, 1),
                                     [(0, 0), (1, 1), (1, 1)],
                                     dimension_numbers=('NDHWC', 'DHWIO', 'NDHWC'))
        return jax.nn.relu(y * sb[0] + sb[1])

    def tconv(z, w, sb):
        y = lax.conv_general_dilated(z, w[:, None, None], (1, 1, 1),
                                     [(1, 1), (0, 0), (0, 0)],
                                     dimension_numbers=('NDHWC', 'DHWIO', 'NDHWC'))
        return jax.nn.relu(y * sb[0] + sb[1])

    y0 = pw(x, p['w0'], p['bn0'])
    y1 = tconv(sconv(pw(x, p['w1a'], p['bn1a']), p['w1s'], p['bn1s']),
               p['w1t'], p['bn1t'])
    y2 = tconv(sconv(pw(x, p['w2a'], p['bn2a']), p['w2s'], p['bn2s']),
               p['w2t'], p['bn2t'])
    mp = lax.reduce_window(x, -jnp.inf, lax.max, (1, 3, 3, 3, 1),
                           (1, 1, 1, 1, 1),
                           [(0, 0), (1, 1), (1, 1), (1, 1), (0, 0)])
    y3 = pw(mp, p['w3'], p['bn3'])
    out = jnp.concatenate([y0, y1, y2, y3], axis=-1)
    return jnp.transpose(out, (0, 4, 1, 2, 3))


# ----------------------------------------------------------------------------

if __name__ == "__main__":
    key = jax.random.PRNGKey(0)
    kx, kp = jax.random.split(key)
    N, C, T, H, W = 2, 256, 4, 8, 8          # module requires 256 input channels
    x = jax.random.normal(kx, (N, C, T, H, W), jnp.float32)
    params = make_params(kp)

    fwd = jax.jit(lambda xx: mixed_3c(xx, params))
    out = jax.block_until_ready(fwd(x))
    assert out.shape == (N, 480, T, H, W), out.shape

    ref = jax.block_until_ready(reference(x, params))
    # tolerance reflects bf16 matmul operands, bf16 intermediates and bf16
    # output storage (f32 accumulation everywhere)
    np.testing.assert_allclose(np.asarray(out), np.asarray(ref),
                               atol=4e-2, rtol=4e-2)
    print("KERNEL_OK")
</pallas_src>

<mosaic_0001>
module attributes {stable_mosaic.version = 11 : i64} {
  func.func @_fused_pw_kernel(%arg0: i32, %arg1: memref<512x256xbf16, #tpu.memory_space<vmem>>, %arg2: memref<256x288xbf16, #tpu.memory_space<vmem>>, %arg3: memref<1x288xf32, #tpu.memory_space<vmem>>, %arg4: memref<512x256xbf16, #tpu.memory_space<vmem>>, %arg5: memref<512x32xbf16, #tpu.memory_space<vmem>>) attributes {dimension_semantics = [#tpu.dimension_semantics<parallel>], iteration_bounds = array<i64: 1>, scalar_prefetch = 0 : i64, scratch_operands = 0 : i64, tpu.core_type = #tpu.core_type<tc>, window_params = [{transform_indices = @transform_0, window_bounds = array<i64: 512, 256>}, {pipeline_mode = #tpu.pipeline_mode<synchronous>, transform_indices = @transform_1, window_bounds = array<i64: 256, 288>}, {pipeline_mode = #tpu.pipeline_mode<synchronous>, transform_indices = @transform_2, window_bounds = array<i64: 1, 288>}, {transform_indices = @transform_3, window_bounds = array<i64: 512, 256>}, {transform_indices = @transform_4, window_bounds = array<i64: 512, 32>}]} {
    %c0 = arith.constant 0 : index
    %c0_0 = arith.constant 0 : index
    %0 = vector.load %arg1[%c0, %c0_0] : memref<512x256xbf16, #tpu.memory_space<vmem>>, vector<512x256xbf16>
    %c0_1 = arith.constant 0 : index
    %c0_2 = arith.constant 0 : index
    %1 = vector.load %arg2[%c0_1, %c0_2] : memref<256x288xbf16, #tpu.memory_space<vmem>>, vector<256x288xbf16>
    %cst = arith.constant dense<0.000000e+00> : vector<512x288xf32>
    %2 = tpu.matmul %0, %1, %cst {dimension_numbers = #tpu.dot_dimension_numbers<[1], [0], [0], [1], [0, 0, 1, 1], [], []>} : vector<512x256xbf16>, vector<256x288xbf16>, vector<512x288xf32> -> vector<512x288xf32>
    %c0_3 = arith.constant 0 : index
    %c0_4 = arith.constant 0 : index
    %3 = vector.load %arg3[%c0_3, %c0_4] : memref<1x288xf32, #tpu.memory_space<vmem>>, vector<1x288xf32>
    %4 = vector.broadcast %3 : vector<1x288xf32> to vector<512x288xf32>
    %5 = arith.addf %2, %4 : vector<512x288xf32>
    %cst_5 = arith.constant 0.000000e+00 : f32
    %6 = vector.broadcast %cst_5 : f32 to vector<512x288xf32>
    %7 = arith.maximumf %5, %6 : vector<512x288xf32>
    %8 = vector.extract_strided_slice %7 {offsets = [0, 0], sizes = [512, 256], strides = [1, 1]} : vector<512x288xf32> to vector<512x256xf32>
    %9 = arith.truncf %8 : vector<512x256xf32> to vector<512x256xbf16>
    %c0_6 = arith.constant 0 : index
    %c0_7 = arith.constant 0 : index
    %10 = vector.load %arg4[%c0_6, %c0_7] : memref<512x256xbf16, #tpu.memory_space<vmem>>, vector<512x256xbf16>
    tpu.vector_store %arg4[%c0_6, %c0_7], %9 {strides = array<i32>} : memref<512x256xbf16, #tpu.memory_space<vmem>>, vector<512x256xbf16>,
    %11 = vector.extract_strided_slice %7 {offsets = [0, 256], sizes = [512, 32], strides = [1, 1]} : vector<512x288xf32> to vector<512x32xf32>
    %12 = arith.truncf %11 : vector<512x32xf32> to vector<512x32xbf16>
    %c0_8 = arith.constant 0 : index
    %c0_9 = arith.constant 0 : index
    %13 = vector.load %arg5[%c0_8, %c0_9] : memref<512x32xbf16, #tpu.memory_space<vmem>>, vector<512x32xbf16>
    tpu.vector_store %arg5[%c0_8, %c0_9], %12 {strides = array<i32>} : memref<512x32xbf16, #tpu.memory_space<vmem>>, vector<512x32xbf16>,
    return
  }
  func.func @transform_0(%arg0: i32) -> (i32, i32) {
    %c0_i32 = arith.constant 0 : i32
    %c0_i32_0 = arith.constant 0 : i32
    return %arg0, %c0_i32 : i32, i32
  }
  func.func @transform_1(%arg0: i32) -> (i32, i32) {
    %c0_i32 = arith.constant 0 : i32
    %c0_i32_0 = arith.constant 0 : i32
    %c0_i32_1 = arith.constant 0 : i32
    return %c0_i32, %c0_i32_0 : i32, i32
  }
  func.func @transform_2(%arg0: i32) -> (i32, i32) {
    %c0_i32 = arith.constant 0 : i32
    %c0_i32_0 = arith.constant 0 : i32
    %c0_i32_1 = arith.constant 0 : i32
    return %c0_i32, %c0_i32_0 : i32, i32
  }
  func.func @transform_3(%arg0: i32) -> (i32, i32) {
    %c0_i32 = arith.constant 0 : i32
    %c0_i32_0 = arith.constant 0 : i32
    return %arg0, %c0_i32 : i32, i32
  }
  func.func @transform_4(%arg0: i32) -> (i32, i32) {
    %c0_i32 = arith.constant 0 : i32
    %c0_i32_0 = arith.constant 0 : i32
    return %arg0, %c0_i32 : i32, i32
  }
}

module attributes {stable_mosaic.version = 11 : i64} {
  func.func @_maxpool_pw_kernel(%arg0: i32, %arg1: memref<1x4x8x8x256xbf16, #tpu.memory_space<vmem>>, %arg2: memref<256x64xbf16, #tpu.memory_space<vmem>>, %arg3: memref<1x64xf32, #tpu.memory_space<vmem>>, %arg4: memref<1x4x64x64xbf16, #tpu.memory_space<vmem>>, %arg5: memref<10x10x256xbf16, #tpu.memory_space<vmem>>, %arg6: memref<3x64x256xbf16, #tpu.memory_space<vmem>>) attributes {dimension_semantics = [#tpu.dimension_semantics<parallel>], iteration_bounds = array<i64: 2>, scalar_prefetch = 0 : i64, scratch_operands = 2 : i64, tpu.core_type = #tpu.core_type<tc>, window_params = [{transform_indices = @transform_0, window_bounds = array<i64: 1, 4, 8, 8, 256>}, {pipeline_mode = #tpu.pipeline_mode<synchronous>, transform_indices = @transform_1, window_bounds = array<i64: 256, 64>}, {pipeline_mode = #tpu.pipeline_mode<synchronous>, transform_indices = @transform_2, window_bounds = array<i64: 1, 64>}, {transform_indices = @transform_3, window_bounds = array<i64: 1, 4, 64, 64>}]} {
    %cst = arith.constant 0xFF80 : bf16
    %0 = vector.broadcast %cst : bf16 to vector<10x10x256xbf16>
    %c0 = arith.constant 0 : index
    %c0_0 = arith.constant 0 : index
    %c0_1 = arith.constant 0 : index
    %1 = vector.load %arg5[%c0, %c0_0, %c0_1] : memref<10x10x256xbf16, #tpu.memory_space<vmem>>, vector<10x10x256xbf16>
    tpu.vector_store %arg5[%c0, %c0_0, %c0_1], %0 {strides = array<i32>} : memref<10x10x256xbf16, #tpu.memory_space<vmem>>, vector<10x10x256xbf16>,
    %cst_2 = arith.constant 0xFF80 : bf16
    %2 = vector.broadcast %cst_2 : bf16 to vector<64x256xbf16>
    %c0_3 = arith.constant 0 : index
    %c0_4 = arith.constant 0 : index
    %c0_5 = arith.constant 0 : index
    %3 = vector.load %arg6[%c0_3, %c0_4, %c0_5] : memref<3x64x256xbf16, #tpu.memory_space<vmem>>, vector<1x64x256xbf16>
    %4 = vector.shape_cast %3 : vector<1x64x256xbf16> to vector<64x256xbf16>
    %5 = vector.shape_cast %2 : vector<64x256xbf16> to vector<1x64x256xbf16>
    tpu.vector_store %arg6[%c0_3, %c0_4, %c0_5], %5 {strides = array<i32>} : memref<3x64x256xbf16, #tpu.memory_space<vmem>>, vector<1x64x256xbf16>,
    %c0_6 = arith.constant 0 : index
    %c0_7 = arith.constant 0 : index
    %6 = vector.load %arg3[%c0_6, %c0_7] : memref<1x64xf32, #tpu.memory_space<vmem>>, vector<1x64xf32>
    %c0_i32 = arith.constant 0 : i32
    %c4_i32 = arith.constant 4 : i32
    %7 = arith.addi %c0_i32, %c4_i32 : i32
    %c1_i32 = arith.constant 1 : i32
    scf.for %arg7 = %c0_i32 to %7 step %c1_i32  : i32 {
      %c0_27 = arith.constant 0 : index
      %30 = arith.index_cast %arg7 : i32 to index
      %c0_28 = arith.constant 0 : index
      %c0_29 = arith.constant 0 : index
      %c0_30 = arith.constant 0 : index
      %31 = vector.load %arg1[%c0_27, %30, %c0_28, %c0_29, %c0_30] : memref<1x4x8x8x256xbf16, #tpu.memory_space<vmem>>, vector<1x1x8x8x256xbf16>
      %32 = vector.shape_cast %31 : vector<1x1x8x8x256xbf16> to vector<8x8x256xbf16>
      %c1_31 = arith.constant 1 : index
      %c1_32 = arith.constant 1 : index
      %c0_33 = arith.constant 0 : index
      %33 = vector.load %arg5[%c1_31, %c1_32, %c0_33] : memref<10x10x256xbf16, #tpu.memory_space<vmem>>, vector<8x8x256xbf16>
      tpu.vector_store %arg5[%c1_31, %c1_32, %c0_33], %32 {strides = array<i32>} : memref<10x10x256xbf16, #tpu.memory_space<vmem>>, vector<8x8x256xbf16>,
      %c0_34 = arith.constant 0 : index
      %c0_35 = arith.constant 0 : index
      %c0_36 = arith.constant 0 : index
      %34 = vector.load %arg5[%c0_34, %c0_35, %c0_36] : memref<10x10x256xbf16, #tpu.memory_space<vmem>>, vector<10x8x256xbf16>
      %c0_37 = arith.constant 0 : index
      %c1_38 = arith.constant 1 : index
      %c0_39 = arith.constant 0 : index
      %35 = vector.load %arg5[%c0_37, %c1_38, %c0_39] : memref<10x10x256xbf16, #tpu.memory_space<vmem>>, vector<10x8x256xbf16>
      %36 = arith.maximumf %34, %35 : vector<10x8x256xbf16>
      %c0_40 = arith.constant 0 : index
      %c2_41 = arith.constant 2 : index
      %c0_42 = arith.constant 0 : index
      %37 = vector.load %arg5[%c0_40, %c2_41, %c0_42] : memref<10x10x256xbf16, #tpu.memory_space<vmem>>, vector<10x8x256xbf16>
      %38 = arith.maximumf %36, %37 : vector<10x8x256xbf16>
      %39 = vector.extract_strided_slice %38 {offsets = [0, 0, 0], sizes = [8, 8, 256], strides = [1, 1, 1]} : vector<10x8x256xbf16> to vector<8x8x256xbf16>
      %40 = vector.extract_strided_slice %38 {offsets = [1, 0, 0], sizes = [8, 8, 256], strides = [1, 1, 1]} : vector<10x8x256xbf16> to vector<8x8x256xbf16>
      %41 = arith.maximumf %39, %40 : vector<8x8x256xbf16>
      %42 = vector.extract_strided_slice %38 {offsets = [2, 0, 0], sizes = [8, 8, 256], strides = [1, 1, 1]} : vector<10x8x256xbf16> to vector<8x8x256xbf16>
      %43 = arith.maximumf %41, %42 : vector<8x8x256xbf16>
      %44 = vector.shape_cast %43 : vector<8x8x256xbf16> to vector<64x256xbf16>
      %c1_i32_43 = arith.constant 1 : i32
      %45 = arith.addi %arg7, %c1_i32_43 : i32
      %c3_i32 = arith.constant 3 : i32
      %c0_i32_44 = arith.constant 0 : i32
      %46 = arith.cmpi eq, %c3_i32, %c0_i32_44 : i32
      %c1_i32_45 = arith.constant 1 : i32
      %47 = arith.select %46, %c1_i32_45, %c3_i32 : i32
      %48 = arith.remsi %45, %47 : i32
      %c0_i32_46 = arith.constant 0 : i32
      %49 = arith.cmpi ne, %48, %c0_i32_46 : i32
      %c0_i32_47 = arith.constant 0 : i32
      %50 = arith.cmpi slt, %48, %c0_i32_47 : i32
      %c0_i32_48 = arith.constant 0 : i32
      %51 = arith.cmpi slt, %47, %c0_i32_48 : i32
      %52 = arith.xori %50, %51 : i1
      %53 = arith.andi %52, %49 : i1
      %54 = arith.addi %48, %47 : i32
      %55 = arith.select %53, %54, %48 : i32
      %56 = arith.index_cast %55 : i32 to index
      %c0_49 = arith.constant 0 : index
      %c0_50 = arith.constant 0 : index
      %57 = vector.load %arg6[%56, %c0_49, %c0_50] : memref<3x64x256xbf16, #tpu.memory_space<vmem>>, vector<1x64x256xbf16>
      %58 = vector.shape_cast %57 : vector<1x64x256xbf16> to vector<64x256xbf16>
      %59 = vector.shape_cast %44 : vector<64x256xbf16> to vector<1x64x256xbf16>
      tpu.vector_store %arg6[%56, %c0_49, %c0_50], %59 {strides = array<i32>} : memref<3x64x256xbf16, #tpu.memory_space<vmem>>, vector<1x64x256xbf16>,
      %c1_i32_51 = arith.constant 1 : i32
      %60 = arith.cmpi sge, %arg7, %c1_i32_51 : i32
      %61 = arith.extui %60 : i1 to i32
      %c0_i32_52 = arith.constant 0 : i32
      %62 = arith.cmpi ne, %61, %c0_i32_52 : i32
      scf.if %62 {
        %c1_i32_53 = arith.constant 1 : i32
        %63 = arith.subi %arg7, %c1_i32_53 : i32
        %c3_i32_54 = arith.constant 3 : i32
        %c0_i32_55 = arith.constant 0 : i32
        %64 = arith.cmpi eq, %c3_i32_54, %c0_i32_55 : i32
        %c1_i32_56 = arith.constant 1 : i32
        %65 = arith.select %64, %c1_i32_56, %c3_i32_54 : i32
        %66 = arith.remsi %63, %65 : i32
        %c0_i32_57 = arith.constant 0 : i32
        %67 = arith.cmpi ne, %66, %c0_i32_57 : i32
        %c0_i32_58 = arith.constant 0 : i32
        %68 = arith.cmpi slt, %66, %c0_i32_58 : i32
        %c0_i32_59 = arith.constant 0 : i32
        %69 = arith.cmpi slt, %65, %c0_i32_59 : i32
        %70 = arith.xori %68, %69 : i1
        %71 = arith.andi %70, %67 : i1
        %72 = arith.addi %66, %65 : i32
        %73 = arith.select %71, %72, %66 : i32
        %74 = arith.index_cast %73 : i32 to index
        %c0_60 = arith.constant 0 : index
        %c0_61 = arith.constant 0 : index
        %75 = vector.load %arg6[%74, %c0_60, %c0_61] : memref<3x64x256xbf16, #tpu.memory_space<vmem>>, vector<1x64x256xbf16>
        %76 = vector.shape_cast %75 : vector<1x64x256xbf16> to vector<64x256xbf16>
        %c1_i32_62 = arith.constant 1 : i32
        %77 = arith.addi %63, %c1_i32_62 : i32
        %c3_i32_63 = arith.constant 3 : i32
        %c0_i32_64 = arith.constant 0 : i32
        %78 = arith.cmpi eq, %c3_i32_63, %c0_i32_64 : i32
        %c1_i32_65 = arith.constant 1 : i32
        %79 = arith.select %78, %c1_i32_65, %c3_i32_63 : i32
        %80 = arith.remsi %77, %79 : i32
        %c0_i32_66 = arith.constant 0 : i32
        %81 = arith.cmpi ne, %80, %c0_i32_66 : i32
        %c0_i32_67 = arith.constant 0 : i32
        %82 = arith.cmpi slt, %80, %c0_i32_67 : i32
        %c0_i32_68 = arith.constant 0 : i32
        %83 = arith.cmpi slt, %79, %c0_i32_68 : i32
        %84 = arith.xori %82, %83 : i1
        %85 = arith.andi %84, %81 : i1
        %86 = arith.addi %80, %79 : i32
        %87 = arith.select %85, %86, %80 : i32
        %88 = arith.index_cast %87 : i32 to index
        %c0_69 = arith.constant 0 : index
        %c0_70 = arith.constant 0 : index
        %89 = vector.load %arg6[%88, %c0_69, %c0_70] : memref<3x64x256xbf16, #tpu.memory_space<vmem>>, vector<1x64x256xbf16>
        %90 = vector.shape_cast %89 : vector<1x64x256xbf16> to vector<64x256xbf16>
        %91 = arith.maximumf %76, %90 : vector<64x256xbf16>
        %c2_i32 = arith.constant 2 : i32
        %92 = arith.addi %63, %c2_i32 : i32
        %c3_i32_71 = arith.constant 3 : i32
        %c0_i32_72 = arith.constant 0 : i32
        %93 = arith.cmpi eq, %c3_i32_71, %c0_i32_72 : i32
        %c1_i32_73 = arith.constant 1 : i32
        %94 = arith.select %93, %c1_i32_73, %c3_i32_71 : i32
        %95 = arith.remsi %92, %94 : i32
        %c0_i32_74 = arith.constant 0 : i32
        %96 = arith.cmpi ne, %95, %c0_i32_74 : i32
        %c0_i32_75 = arith.constant 0 : i32
        %97 = arith.cmpi slt, %95, %c0_i32_75 : i32
        %c0_i32_76 = arith.constant 0 : i32
        %98 = arith.cmpi slt, %94, %c0_i32_76 : i32
        %99 = arith.xori %97, %98 : i1
        %100 = arith.andi %99, %96 : i1
        %101 = arith.addi %95, %94 : i32
        %102 = arith.select %100, %101, %95 : i32
        %103 = arith.index_cast %102 : i32 to index
        %c0_77 = arith.constant 0 : index
        %c0_78 = arith.constant 0 : index
        %104 = vector.load %arg6[%103, %c0_77, %c0_78] : memref<3x64x256xbf16, #tpu.memory_space<vmem>>, vector<1x64x256xbf16>
        %105 = vector.shape_cast %104 : vector<1x64x256xbf16> to vector<64x256xbf16>
        %106 = arith.maximumf %91, %105 : vector<64x256xbf16>
        %c0_79 = arith.constant 0 : index
        %c0_80 = arith.constant 0 : index
        %107 = vector.load %arg2[%c0_79, %c0_80] : memref<256x64xbf16, #tpu.memory_space<vmem>>, vector<256x64xbf16>
        %cst_81 = arith.constant dense<0.000000e+00> : vector<64x64xf32>
        %108 = tpu.matmul %106, %107, %cst_81 {dimension_numbers = #tpu.dot_dimension_numbers<[1], [0], [0], [1], [0, 0, 1, 1], [], []>} : vector<64x256xbf16>, vector<256x64xbf16>, vector<64x64xf32> -> vector<64x64xf32>
        %109 = vector.broadcast %6 : vector<1x64xf32> to vector<64x64xf32>
        %110 = arith.addf %108, %109 : vector<64x64xf32>
        %cst_82 = arith.constant 0.000000e+00 : f32
        %111 = vector.broadcast %cst_82 : f32 to vector<64x64xf32>
        %112 = arith.maximumf %110, %111 : vector<64x64xf32>
        %113 = arith.truncf %112 : vector<64x64xf32> to vector<64x64xbf16>
        %c0_83 = arith.constant 0 : index
        %114 = arith.index_cast %63 : i32 to index
        %c0_84 = arith.constant 0 : index
        %c0_85 = arith.constant 0 : index
        %115 = vector.load %arg4[%c0_83, %114, %c0_84, %c0_85] : memref<1x4x64x64xbf16, #tpu.memory_space<vmem>>, vector<1x1x64x64xbf16>
        %116 = vector.shape_cast %115 : vector<1x1x64x64xbf16> to vector<64x64xbf16>
        %117 = vector.shape_cast %113 : vector<64x64xbf16> to vector<1x1x64x64xbf16>
        tpu.vector_store %arg4[%c0_83, %114, %c0_84, %c0_85], %117 {strides = array<i32>} : memref<1x4x64x64xbf16, #tpu.memory_space<vmem>>, vector<1x1x64x64xbf16>,
      } else {
      }
    }
    %c4_i32_8 = arith.constant 4 : i32
    %cst_9 = arith.constant 0xFF80 : bf16
    %8 = vector.broadcast %cst_9 : bf16 to vector<64x256xbf16>
    %c2 = arith.constant 2 : index
    %c0_10 = arith.constant 0 : index
    %c0_11 = arith.constant 0 : index
    %9 = vector.load %arg6[%c2, %c0_10, %c0_11] : memref<3x64x256xbf16, #tpu.memory_space<vmem>>, vector<1x64x256xbf16>
    %10 = vector.shape_cast %9 : vector<1x64x256xbf16> to vector<64x256xbf16>
    %11 = vector.shape_cast %8 : vector<64x256xbf16> to vector<1x64x256xbf16>
    tpu.vector_store %arg6[%c2, %c0_10, %c0_11], %11 {strides = array<i32>} : memref<3x64x256xbf16, #tpu.memory_space<vmem>>, vector<1x64x256xbf16>,
    %c0_12 = arith.constant 0 : index
    %c0_13 = arith.constant 0 : index
    %c0_14 = arith.constant 0 : index
    %12 = vector.load %arg6[%c0_12, %c0_13, %c0_14] : memref<3x64x256xbf16, #tpu.memory_space<vmem>>, vector<1x64x256xbf16>
    %13 = vector.shape_cast %12 : vector<1x64x256xbf16> to vector<64x256xbf16>
    %c1 = arith.constant 1 : index
    %c0_15 = arith.constant 0 : index
    %c0_16 = arith.constant 0 : index
    %14 = vector.load %arg6[%c1, %c0_15, %c0_16] : memref<3x64x256xbf16, #tpu.memory_space<vmem>>, vector<1x64x256xbf16>
    %15 = vector.shape_cast %14 : vector<1x64x256xbf16> to vector<64x256xbf16>
    %16 = arith.maximumf %13, %15 : vector<64x256xbf16>
    %c2_17 = arith.constant 2 : index
    %c0_18 = arith.constant 0 : index
    %c0_19 = arith.constant 0 : index
    %17 = vector.load %arg6[%c2_17, %c0_18, %c0_19] : memref<3x64x256xbf16, #tpu.memory_space<vmem>>, vector<1x64x256xbf16>
    %18 = vector.shape_cast %17 : vector<1x64x256xbf16> to vector<64x256xbf16>
    %19 = arith.maximumf %16, %18 : vector<64x256xbf16>
    %c0_20 = arith.constant 0 : index
    %c0_21 = arith.constant 0 : index
    %20 = vector.load %arg2[%c0_20, %c0_21] : memref<256x64xbf16, #tpu.memory_space<vmem>>, vector<256x64xbf16>
    %cst_22 = arith.constant dense<0.000000e+00> : vector<64x64xf32>
    %21 = tpu.matmul %19, %20, %cst_22 {dimension_numbers = #tpu.dot_dimension_numbers<[1], [0], [0], [1], [0, 0, 1, 1], [], []>} : vector<64x256xbf16>, vector<256x64xbf16>, vector<64x64xf32> -> vector<64x64xf32>
    %22 = vector.broadcast %6 : vector<1x64xf32> to vector<64x64xf32>
    %23 = arith.addf %21, %22 : vector<64x64xf32>
    %cst_23 = arith.constant 0.000000e+00 : f32
    %24 = vector.broadcast %cst_23 : f32 to vector<64x64xf32>
    %25 = arith.maximumf %23, %24 : vector<64x64xf32>
    %26 = arith.truncf %25 : vector<64x64xf32> to vector<64x64xbf16>
    %c0_24 = arith.constant 0 : index
    %c3 = arith.constant 3 : index
    %c0_25 = arith.constant 0 : index
    %c0_26 = arith.constant 0 : index
    %27 = vector.load %arg4[%c0_24, %c3, %c0_25, %c0_26] : memref<1x4x64x64xbf16, #tpu.memory_space<vmem>>, vector<1x1x64x64xbf16>
    %28 = vector.shape_cast %27 : vector<1x1x64x64xbf16> to vector<64x64xbf16>
    %29 = vector.shape_cast %26 : vector<64x64xbf16> to vector<1x1x64x64xbf16>
    tpu.vector_store %arg4[%c0_24, %c3, %c0_25, %c0_26], %29 {strides = array<i32>} : memref<1x4x64x64xbf16, #tpu.memory_space<vmem>>, vector<1x1x64x64xbf16>,
    return
  }
  func.func @transform_0(%arg0: i32) -> (i32, i32, i32, i32, i32) {
    %c0_i32 = arith.constant 0 : i32
    %c0_i32_0 = arith.constant 0 : i32
    %c0_i32_1 = arith.constant 0 : i32
    %c0_i32_2 = arith.constant 0 : i32
    %c0_i32_3 = arith.constant 0 : i32
    return %arg0, %c0_i32, %c0_i32_0, %c0_i32_1, %c0_i32_2 : i32, i32, i32, i32, i32
  }
  func.func @transform_1(%arg0: i32) -> (i32, i32) {
    %c0_i32 = arith.constant 0 : i32
    %c0_i32_0 = arith.constant 0 : i32
    %c0_i32_1 = arith.constant 0 : i32
    return %c0_i32, %c0_i32_0 : i32, i32
  }
  func.func @transform_2(%arg0: i32) -> (i32, i32) {
    %c0_i32 = arith.constant 0 : i32
    %c0_i32_0 = arith.constant 0 : i32
    %c0_i32_1 = arith.constant 0 : i32
    return %c0_i32, %c0_i32_0 : i32, i32
  }
  func.func @transform_3(%arg0: i32) -> (i32, i32, i32, i32) {
    %c0_i32 = arith.constant 0 : i32
    %c0_i32_0 = arith.constant 0 : i32
    %c0_i32_1 = arith.constant 0 : i32
    %c0_i32_2 = arith.constant 0 : i32
    return %arg0, %c0_i32, %c0_i32_0, %c0_i32_1 : i32, i32, i32, i32
  }
}

module attributes {stable_mosaic.version = 11 : i64} {
  func.func @_sepconv_kernel(%arg0: i32, %arg1: memref<1x4x8x8x32xbf16, #tpu.memory_space<vmem>>, %arg2: memref<288x96xbf16, #tpu.memory_space<vmem>>, %arg3: memref<1x96xf32, #tpu.memory_space<vmem>>, %arg4: memref<3x96x96xbf16, #tpu.memory_space<vmem>>, %arg5: memref<1x96xf32, #tpu.memory_space<vmem>>, %arg6: memref<1x4x64x96xbf16, #tpu.memory_space<vmem>>, %arg7: memref<10x10x32xbf16, #tpu.memory_space<vmem>>, %arg8: memref<64x288xbf16, #tpu.memory_space<vmem>>, %arg9: memref<3x64x96xbf16, #tpu.memory_space<vmem>>) attributes {dimension_semantics = [#tpu.dimension_semantics<parallel>], iteration_bounds = array<i64: 2>, scalar_prefetch = 0 : i64, scratch_operands = 3 : i64, tpu.core_type = #tpu.core_type<tc>, window_params = [{transform_indices = @transform_0, window_bounds = array<i64: 1, 4, 8, 8, 32>}, {pipeline_mode = #tpu.pipeline_mode<synchronous>, transform_indices = @transform_1, window_bounds = array<i64: 288, 96>}, {pipeline_mode = #tpu.pipeline_mode<synchronous>, transform_indices = @transform_2, window_bounds = array<i64: 1, 96>}, {pipeline_mode = #tpu.pipeline_mode<synchronous>, transform_indices = @transform_3, window_bounds = array<i64: 3, 96, 96>}, {pipeline_mode = #tpu.pipeline_mode<synchronous>, transform_indices = @transform_4, window_bounds = array<i64: 1, 96>}, {transform_indices = @transform_5, window_bounds = array<i64: 1, 4, 64, 96>}]} {
    %cst = arith.constant 0.000000e+00 : bf16
    %0 = vector.broadcast %cst : bf16 to vector<10x10x32xbf16>
    %c0 = arith.constant 0 : index
    %c0_0 = arith.constant 0 : index
    %c0_1 = arith.constant 0 : index
    %1 = vector.load %arg7[%c0, %c0_0, %c0_1] : memref<10x10x32xbf16, #tpu.memory_space<vmem>>, vector<10x10x32xbf16>
    tpu.vector_store %arg7[%c0, %c0_0, %c0_1], %0 {strides = array<i32>} : memref<10x10x32xbf16, #tpu.memory_space<vmem>>, vector<10x10x32xbf16>,
    %cst_2 = arith.constant 0.000000e+00 : bf16
    %2 = vector.broadcast %cst_2 : bf16 to vector<64x96xbf16>
    %c0_3 = arith.constant 0 : index
    %c0_4 = arith.constant 0 : index
    %c0_5 = arith.constant 0 : index
    %3 = vector.load %arg9[%c0_3, %c0_4, %c0_5] : memref<3x64x96xbf16, #tpu.memory_space<vmem>>, vector<1x64x96xbf16>
    %4 = vector.shape_cast %3 : vector<1x64x96xbf16> to vector<64x96xbf16>
    %5 = vector.shape_cast %2 : vector<64x96xbf16> to vector<1x64x96xbf16>
    tpu.vector_store %arg9[%c0_3, %c0_4, %c0_5], %5 {strides = array<i32>} : memref<3x64x96xbf16, #tpu.memory_space<vmem>>, vector<1x64x96xbf16>,
    %c0_6 = arith.constant 0 : index
    %c0_7 = arith.constant 0 : index
    %6 = vector.load %arg3[%c0_6, %c0_7] : memref<1x96xf32, #tpu.memory_space<vmem>>, vector<1x96xf32>
    %c0_8 = arith.constant 0 : index
    %c0_9 = arith.constant 0 : index
    %7 = vector.load %arg5[%c0_8, %c0_9] : memref<1x96xf32, #tpu.memory_space<vmem>>, vector<1x96xf32>
    %c0_i32 = arith.constant 0 : i32
    %c4_i32 = arith.constant 4 : i32
    %8 = arith.addi %c0_i32, %c4_i32 : i32
    %c1_i32 = arith.constant 1 : i32
    scf.for %arg10 = %c0_i32 to %8 step %c1_i32  : i32 {
      %c0_38 = arith.constant 0 : index
      %38 = arith.index_cast %arg10 : i32 to index
      %c0_39 = arith.constant 0 : index
      %c0_40 = arith.constant 0 : index
      %c0_41 = arith.constant 0 : index
      %39 = vector.load %arg1[%c0_38, %38, %c0_39, %c0_40, %c0_41] : memref<1x4x8x8x32xbf16, #tpu.memory_space<vmem>>, vector<1x1x8x8x32xbf16>
      %40 = vector.shape_cast %39 : vector<1x1x8x8x32xbf16> to vector<8x8x32xbf16>
      %c1_42 = arith.constant 1 : index
      %c1_43 = arith.constant 1 : index
      %c0_44 = arith.constant 0 : index
      %41 = vector.load %arg7[%c1_42, %c1_43, %c0_44] : memref<10x10x32xbf16, #tpu.memory_space<vmem>>, vector<8x8x32xbf16>
      tpu.vector_store %arg7[%c1_42, %c1_43, %c0_44], %40 {strides = array<i32>} : memref<10x10x32xbf16, #tpu.memory_space<vmem>>, vector<8x8x32xbf16>,
      %c0_45 = arith.constant 0 : index
      %c0_46 = arith.constant 0 : index
      %c0_47 = arith.constant 0 : index
      %42 = vector.load %arg7[%c0_45, %c0_46, %c0_47] : memref<10x10x32xbf16, #tpu.memory_space<vmem>>, vector<8x8x32xbf16>
      %43 = vector.shape_cast %42 : vector<8x8x32xbf16> to vector<64x32xbf16>
      %c0_48 = arith.constant 0 : index
      %c0_49 = arith.constant 0 : index
      %44 = vector.load %arg8[%c0_48, %c0_49] : memref<64x288xbf16, #tpu.memory_space<vmem>>, vector<64x32xbf16>
      tpu.vector_store %arg8[%c0_48, %c0_49], %43 {strides = array<i32>} : memref<64x288xbf16, #tpu.memory_space<vmem>>, vector<64x32xbf16>,
      %c0_50 = arith.constant 0 : index
      %c1_51 = arith.constant 1 : index
      %c0_52 = arith.constant 0 : index
      %45 = vector.load %arg7[%c0_50, %c1_51, %c0_52] : memref<10x10x32xbf16, #tpu.memory_space<vmem>>, vector<8x8x32xbf16>
      %46 = vector.shape_cast %45 : vector<8x8x32xbf16> to vector<64x32xbf16>
      %c0_53 = arith.constant 0 : index
      %c32 = arith.constant 32 : index
      %47 = vector.load %arg8[%c0_53, %c32] : memref<64x288xbf16, #tpu.memory_space<vmem>>, vector<64x32xbf16>
      tpu.vector_store %arg8[%c0_53, %c32], %46 {strides = array<i32>} : memref<64x288xbf16, #tpu.memory_space<vmem>>, vector<64x32xbf16>,
      %c0_54 = arith.constant 0 : index
      %c2_55 = arith.constant 2 : index
      %c0_56 = arith.constant 0 : index
      %48 = vector.load %arg7[%c0_54, %c2_55, %c0_56] : memref<10x10x32xbf16, #tpu.memory_space<vmem>>, vector<8x8x32xbf16>
      %49 = vector.shape_cast %48 : vector<8x8x32xbf16> to vector<64x32xbf16>
      %c0_57 = arith.constant 0 : index
      %c64 = arith.constant 64 : index
      %50 = vector.load %arg8[%c0_57, %c64] : memref<64x288xbf16, #tpu.memory_space<vmem>>, vector<64x32xbf16>
      tpu.vector_store %arg8[%c0_57, %c64], %49 {strides = array<i32>} : memref<64x288xbf16, #tpu.memory_space<vmem>>, vector<64x32xbf16>,
      %c1_58 = arith.constant 1 : index
      %c0_59 = arith.constant 0 : index
      %c0_60 = arith.constant 0 : index
      %51 = vector.load %arg7[%c1_58, %c0_59, %c0_60] : memref<10x10x32xbf16, #tpu.memory_space<vmem>>, vector<8x8x32xbf16>
      %52 = vector.shape_cast %51 : vector<8x8x32xbf16> to vector<64x32xbf16>
      %c0_61 = arith.constant 0 : index
      %c96 = arith.constant 96 : index
      %53 = vector.load %arg8[%c0_61, %c96] : memref<64x288xbf16, #tpu.memory_space<vmem>>, vector<64x32xbf16>
      tpu.vector_store %arg8[%c0_61, %c96], %52 {strides = array<i32>} : memref<64x288xbf16, #tpu.memory_space<vmem>>, vector<64x32xbf16>,
      %c1_62 = arith.constant 1 : index
      %c1_63 = arith.constant 1 : index
      %c0_64 = arith.constant 0 : index
      %54 = vector.load %arg7[%c1_62, %c1_63, %c0_64] : memref<10x10x32xbf16, #tpu.memory_space<vmem>>, vector<8x8x32xbf16>
      %55 = vector.shape_cast %54 : vector<8x8x32xbf16> to vector<64x32xbf16>
      %c0_65 = arith.constant 0 : index
      %c128 = arith.constant 128 : index
      %56 = vector.load %arg8[%c0_65, %c128] : memref<64x288xbf16, #tpu.memory_space<vmem>>, vector<64x32xbf16>
      tpu.vector_store %arg8[%c0_65, %c128], %55 {strides = array<i32>} : memref<64x288xbf16, #tpu.memory_space<vmem>>, vector<64x32xbf16>,
      %c1_66 = arith.constant 1 : index
      %c2_67 = arith.constant 2 : index
      %c0_68 = arith.constant 0 : index
      %57 = vector.load %arg7[%c1_66, %c2_67, %c0_68] : memref<10x10x32xbf16, #tpu.memory_space<vmem>>, vector<8x8x32xbf16>
      %58 = vector.shape_cast %57 : vector<8x8x32xbf16> to vector<64x32xbf16>
      %c0_69 = arith.constant 0 : index
      %c160 = arith.constant 160 : index
      %59 = vector.load %arg8[%c0_69, %c160] : memref<64x288xbf16, #tpu.memory_space<vmem>>, vector<64x32xbf16>
      tpu.vector_store %arg8[%c0_69, %c160], %58 {strides = array<i32>} : memref<64x288xbf16, #tpu.memory_space<vmem>>, vector<64x32xbf16>,
      %c2_70 = arith.constant 2 : index
      %c0_71 = arith.constant 0 : index
      %c0_72 = arith.constant 0 : index
      %60 = vector.load %arg7[%c2_70, %c0_71, %c0_72] : memref<10x10x32xbf16, #tpu.memory_space<vmem>>, vector<8x8x32xbf16>
      %61 = vector.shape_cast %60 : vector<8x8x32xbf16> to vector<64x32xbf16>
      %c0_73 = arith.constant 0 : index
      %c192 = arith.constant 192 : index
      %62 = vector.load %arg8[%c0_73, %c192] : memref<64x288xbf16, #tpu.memory_space<vmem>>, vector<64x32xbf16>
      tpu.vector_store %arg8[%c0_73, %c192], %61 {strides = array<i32>} : memref<64x288xbf16, #tpu.memory_space<vmem>>, vector<64x32xbf16>,
      %c2_74 = arith.constant 2 : index
      %c1_75 = arith.constant 1 : index
      %c0_76 = arith.constant 0 : index
      %63 = vector.load %arg7[%c2_74, %c1_75, %c0_76] : memref<10x10x32xbf16, #tpu.memory_space<vmem>>, vector<8x8x32xbf16>
      %64 = vector.shape_cast %63 : vector<8x8x32xbf16> to vector<64x32xbf16>
      %c0_77 = arith.constant 0 : index
      %c224 = arith.constant 224 : index
      %65 = vector.load %arg8[%c0_77, %c224] : memref<64x288xbf16, #tpu.memory_space<vmem>>, vector<64x32xbf16>
      tpu.vector_store %arg8[%c0_77, %c224], %64 {strides = array<i32>} : memref<64x288xbf16, #tpu.memory_space<vmem>>, vector<64x32xbf16>,
      %c2_78 = arith.constant 2 : index
      %c2_79 = arith.constant 2 : index
      %c0_80 = arith.constant 0 : index
      %66 = vector.load %arg7[%c2_78, %c2_79, %c0_80] : memref<10x10x32xbf16, #tpu.memory_space<vmem>>, vector<8x8x32xbf16>
      %67 = vector.shape_cast %66 : vector<8x8x32xbf16> to vector<64x32xbf16>
      %c0_81 = arith.constant 0 : index
      %c256 = arith.constant 256 : index
      %68 = vector.load %arg8[%c0_81, %c256] : memref<64x288xbf16, #tpu.memory_space<vmem>>, vector<64x32xbf16>
      tpu.vector_store %arg8[%c0_81, %c256], %67 {strides = array<i32>} : memref<64x288xbf16, #tpu.memory_space<vmem>>, vector<64x32xbf16>,
      %c0_82 = arith.constant 0 : index
      %c0_83 = arith.constant 0 : index
      %69 = vector.load %arg8[%c0_82, %c0_83] : memref<64x288xbf16, #tpu.memory_space<vmem>>, vector<64x288xbf16>
      %c0_84 = arith.constant 0 : index
      %c0_85 = arith.constant 0 : index
      %70 = vector.load %arg2[%c0_84, %c0_85] : memref<288x96xbf16, #tpu.memory_space<vmem>>, vector<288x96xbf16>
      %cst_86 = arith.constant dense<0.000000e+00> : vector<64x96xf32>
      %71 = tpu.matmul %69, %70, %cst_86 {dimension_numbers = #tpu.dot_dimension_numbers<[1], [0], [0], [1], [0, 0, 1, 1], [], []>} : vector<64x288xbf16>, vector<288x96xbf16>, vector<64x96xf32> -> vector<64x96xf32>
      %72 = vector.broadcast %6 : vector<1x96xf32> to vector<64x96xf32>
      %73 = arith.addf %71, %72 : vector<64x96xf32>
      %cst_87 = arith.constant 0.000000e+00 : f32
      %74 = vector.broadcast %cst_87 : f32 to vector<64x96xf32>
      %75 = arith.maximumf %73, %74 : vector<64x96xf32>
      %76 = arith.truncf %75 : vector<64x96xf32> to vector<64x96xbf16>
      %c1_i32_88 = arith.constant 1 : i32
      %77 = arith.addi %arg10, %c1_i32_88 : i32
      %c3_i32 = arith.constant 3 : i32
      %c0_i32_89 = arith.constant 0 : i32
      %78 = arith.cmpi eq, %c3_i32, %c0_i32_89 : i32
      %c1_i32_90 = arith.constant 1 : i32
      %79 = arith.select %78, %c1_i32_90, %c3_i32 : i32
      %80 = arith.remsi %77, %79 : i32
      %c0_i32_91 = arith.constant 0 : i32
      %81 = arith.cmpi ne, %80, %c0_i32_91 : i32
      %c0_i32_92 = arith.constant 0 : i32
      %82 = arith.cmpi slt, %80, %c0_i32_92 : i32
      %c0_i32_93 = arith.constant 0 : i32
      %83 = arith.cmpi slt, %79, %c0_i32_93 : i32
      %84 = arith.xori %82, %83 : i1
      %85 = arith.andi %84, %81 : i1
      %86 = arith.addi %80, %79 : i32
      %87 = arith.select %85, %86, %80 : i32
      %88 = arith.index_cast %87 : i32 to index
      %c0_94 = arith.constant 0 : index
      %c0_95 = arith.constant 0 : index
      %89 = vector.load %arg9[%88, %c0_94, %c0_95] : memref<3x64x96xbf16, #tpu.memory_space<vmem>>, vector<1x64x96xbf16>
      %90 = vector.shape_cast %89 : vector<1x64x96xbf16> to vector<64x96xbf16>
      %91 = vector.shape_cast %76 : vector<64x96xbf16> to vector<1x64x96xbf16>
      tpu.vector_store %arg9[%88, %c0_94, %c0_95], %91 {strides = array<i32>} : memref<3x64x96xbf16, #tpu.memory_space<vmem>>, vector<1x64x96xbf16>,
      %c1_i32_96 = arith.constant 1 : i32
      %92 = arith.cmpi sge, %arg10, %c1_i32_96 : i32
      %93 = arith.extui %92 : i1 to i32
      %c0_i32_97 = arith.constant 0 : i32
      %94 = arith.cmpi ne, %93, %c0_i32_97 : i32
      scf.if %94 {
        %c1_i32_98 = arith.constant 1 : i32
        %95 = arith.subi %arg10, %c1_i32_98 : i32
        %c3_i32_99 = arith.constant 3 : i32
        %c0_i32_100 = arith.constant 0 : i32
        %96 = arith.cmpi eq, %c3_i32_99, %c0_i32_100 : i32
        %c1_i32_101 = arith.constant 1 : i32
        %97 = arith.select %96, %c1_i32_101, %c3_i32_99 : i32
        %98 = arith.remsi %95, %97 : i32
        %c0_i32_102 = arith.constant 0 : i32
        %99 = arith.cmpi ne, %98, %c0_i32_102 : i32
        %c0_i32_103 = arith.constant 0 : i32
        %100 = arith.cmpi slt, %98, %c0_i32_103 : i32
        %c0_i32_104 = arith.constant 0 : i32
        %101 = arith.cmpi slt, %97, %c0_i32_104 : i32
        %102 = arith.xori %100, %101 : i1
        %103 = arith.andi %102, %99 : i1
        %104 = arith.addi %98, %97 : i32
        %105 = arith.select %103, %104, %98 : i32
        %106 = arith.index_cast %105 : i32 to index
        %c0_105 = arith.constant 0 : index
        %c0_106 = arith.constant 0 : index
        %107 = vector.load %arg9[%106, %c0_105, %c0_106] : memref<3x64x96xbf16, #tpu.memory_space<vmem>>, vector<1x64x96xbf16>
        %108 = vector.shape_cast %107 : vector<1x64x96xbf16> to vector<64x96xbf16>
        %c0_107 = arith.constant 0 : index
        %c0_108 = arith.constant 0 : index
        %c0_109 = arith.constant 0 : index
        %109 = vector.load %arg4[%c0_107, %c0_108, %c0_109] : memref<3x96x96xbf16, #tpu.memory_space<vmem>>, vector<1x96x96xbf16>
        %110 = vector.shape_cast %109 : vector<1x96x96xbf16> to vector<96x96xbf16>
        %cst_110 = arith.constant dense<0.000000e+00> : vector<64x96xf32>
        %111 = tpu.matmul %108, %110, %cst_110 {dimension_numbers = #tpu.dot_dimension_numbers<[1], [0], [0], [1], [0, 0, 1, 1], [], []>} : vector<64x96xbf16>, vector<96x96xbf16>, vector<64x96xf32> -> vector<64x96xf32>
        %c1_i32_111 = arith.constant 1 : i32
        %112 = arith.addi %95, %c1_i32_111 : i32
        %c3_i32_112 = arith.constant 3 : i32
        %c0_i32_113 = arith.constant 0 : i32
        %113 = arith.cmpi eq, %c3_i32_112, %c0_i32_113 : i32
        %c1_i32_114 = arith.constant 1 : i32
        %114 = arith.select %113, %c1_i32_114, %c3_i32_112 : i32
        %115 = arith.remsi %112, %114 : i32
        %c0_i32_115 = arith.constant 0 : i32
        %116 = arith.cmpi ne, %115, %c0_i32_115 : i32
        %c0_i32_116 = arith.constant 0 : i32
        %117 = arith.cmpi slt, %115, %c0_i32_116 : i32
        %c0_i32_117 = arith.constant 0 : i32
        %118 = arith.cmpi slt, %114, %c0_i32_117 : i32
        %119 = arith.xori %117, %118 : i1
        %120 = arith.andi %119, %116 : i1
        %121 = arith.addi %115, %114 : i32
        %122 = arith.select %120, %121, %115 : i32
        %123 = arith.index_cast %122 : i32 to index
        %c0_118 = arith.constant 0 : index
        %c0_119 = arith.constant 0 : index
        %124 = vector.load %arg9[%123, %c0_118, %c0_119] : memref<3x64x96xbf16, #tpu.memory_space<vmem>>, vector<1x64x96xbf16>
        %125 = vector.shape_cast %124 : vector<1x64x96xbf16> to vector<64x96xbf16>
        %c1_120 = arith.constant 1 : index
        %c0_121 = arith.constant 0 : index
        %c0_122 = arith.constant 0 : index
        %126 = vector.load %arg4[%c1_120, %c0_121, %c0_122] : memref<3x96x96xbf16, #tpu.memory_space<vmem>>, vector<1x96x96xbf16>
        %127 = vector.shape_cast %126 : vector<1x96x96xbf16> to vector<96x96xbf16>
        %cst_123 = arith.constant dense<0.000000e+00> : vector<64x96xf32>
        %128 = tpu.matmul %125, %127, %cst_123 {dimension_numbers = #tpu.dot_dimension_numbers<[1], [0], [0], [1], [0, 0, 1, 1], [], []>} : vector<64x96xbf16>, vector<96x96xbf16>, vector<64x96xf32> -> vector<64x96xf32>
        %129 = arith.addf %111, %128 : vector<64x96xf32>
        %c2_i32 = arith.constant 2 : i32
        %130 = arith.addi %95, %c2_i32 : i32
        %c3_i32_124 = arith.constant 3 : i32
        %c0_i32_125 = arith.constant 0 : i32
        %131 = arith.cmpi eq, %c3_i32_124, %c0_i32_125 : i32
        %c1_i32_126 = arith.constant 1 : i32
        %132 = arith.select %131, %c1_i32_126, %c3_i32_124 : i32
        %133 = arith.remsi %130, %132 : i32
        %c0_i32_127 = arith.constant 0 : i32
        %134 = arith.cmpi ne, %133, %c0_i32_127 : i32
        %c0_i32_128 = arith.constant 0 : i32
        %135 = arith.cmpi slt, %133, %c0_i32_128 : i32
        %c0_i32_129 = arith.constant 0 : i32
        %136 = arith.cmpi slt, %132, %c0_i32_129 : i32
        %137 = arith.xori %135, %136 : i1
        %138 = arith.andi %137, %134 : i1
        %139 = arith.addi %133, %132 : i32
        %140 = arith.select %138, %139, %133 : i32
        %141 = arith.index_cast %140 : i32 to index
        %c0_130 = arith.constant 0 : index
        %c0_131 = arith.constant 0 : index
        %142 = vector.load %arg9[%141, %c0_130, %c0_131] : memref<3x64x96xbf16, #tpu.memory_space<vmem>>, vector<1x64x96xbf16>
        %143 = vector.shape_cast %142 : vector<1x64x96xbf16> to vector<64x96xbf16>
        %c2_132 = arith.constant 2 : index
        %c0_133 = arith.constant 0 : index
        %c0_134 = arith.constant 0 : index
        %144 = vector.load %arg4[%c2_132, %c0_133, %c0_134] : memref<3x96x96xbf16, #tpu.memory_space<vmem>>, vector<1x96x96xbf16>
        %145 = vector.shape_cast %144 : vector<1x96x96xbf16> to vector<96x96xbf16>
        %cst_135 = arith.constant dense<0.000000e+00> : vector<64x96xf32>
        %146 = tpu.matmul %143, %145, %cst_135 {dimension_numbers = #tpu.dot_dimension_numbers<[1], [0], [0], [1], [0, 0, 1, 1], [], []>} : vector<64x96xbf16>, vector<96x96xbf16>, vector<64x96xf32> -> vector<64x96xf32>
        %147 = arith.addf %129, %146 : vector<64x96xf32>
        %148 = vector.broadcast %7 : vector<1x96xf32> to vector<64x96xf32>
        %149 = arith.addf %147, %148 : vector<64x96xf32>
        %cst_136 = arith.constant 0.000000e+00 : f32
        %150 = vector.broadcast %cst_136 : f32 to vector<64x96xf32>
        %151 = arith.maximumf %149, %150 : vector<64x96xf32>
        %152 = arith.truncf %151 : vector<64x96xf32> to vector<64x96xbf16>
        %c0_137 = arith.constant 0 : index
        %153 = arith.index_cast %95 : i32 to index
        %c0_138 = arith.constant 0 : index
        %c0_139 = arith.constant 0 : index
        %154 = vector.load %arg6[%c0_137, %153, %c0_138, %c0_139] : memref<1x4x64x96xbf16, #tpu.memory_space<vmem>>, vector<1x1x64x96xbf16>
        %155 = vector.shape_cast %154 : vector<1x1x64x96xbf16> to vector<64x96xbf16>
        %156 = vector.shape_cast %152 : vector<64x96xbf16> to vector<1x1x64x96xbf16>
        tpu.vector_store %arg6[%c0_137, %153, %c0_138, %c0_139], %156 {strides = array<i32>} : memref<1x4x64x96xbf16, #tpu.memory_space<vmem>>, vector<1x1x64x96xbf16>,
      } else {
      }
    }
    %c4_i32_10 = arith.constant 4 : i32
    %cst_11 = arith.constant 0.000000e+00 : bf16
    %9 = vector.broadcast %cst_11 : bf16 to vector<64x96xbf16>
    %c2 = arith.constant 2 : index
    %c0_12 = arith.constant 0 : index
    %c0_13 = arith.constant 0 : index
    %10 = vector.load %arg9[%c2, %c0_12, %c0_13] : memref<3x64x96xbf16, #tpu.memory_space<vmem>>, vector<1x64x96xbf16>
    %11 = vector.shape_cast %10 : vector<1x64x96xbf16> to vector<64x96xbf16>
    %12 = vector.shape_cast %9 : vector<64x96xbf16> to vector<1x64x96xbf16>
    tpu.vector_store %arg9[%c2, %c0_12, %c0_13], %12 {strides = array<i32>} : memref<3x64x96xbf16, #tpu.memory_space<vmem>>, vector<1x64x96xbf16>,
    %c0_14 = arith.constant 0 : index
    %c0_15 = arith.constant 0 : index
    %c0_16 = arith.constant 0 : index
    %13 = vector.load %arg9[%c0_14, %c0_15, %c0_16] : memref<3x64x96xbf16, #tpu.memory_space<vmem>>, vector<1x64x96xbf16>
    %14 = vector.shape_cast %13 : vector<1x64x96xbf16> to vector<64x96xbf16>
    %c0_17 = arith.constant 0 : index
    %c0_18 = arith.constant 0 : index
    %c0_19 = arith.constant 0 : index
    %15 = vector.load %arg4[%c0_17, %c0_18, %c0_19] : memref<3x96x96xbf16, #tpu.memory_space<vmem>>, vector<1x96x96xbf16>
    %16 = vector.shape_cast %15 : vector<1x96x96xbf16> to vector<96x96xbf16>
    %cst_20 = arith.constant dense<0.000000e+00> : vector<64x96xf32>
    %17 = tpu.matmul %14, %16, %cst_20 {dimension_numbers = #tpu.dot_dimension_numbers<[1], [0], [0], [1], [0, 0, 1, 1], [], []>} : vector<64x96xbf16>, vector<96x96xbf16>, vector<64x96xf32> -> vector<64x96xf32>
    %c1 = arith.constant 1 : index
    %c0_21 = arith.constant 0 : index
    %c0_22 = arith.constant 0 : index
    %18 = vector.load %arg9[%c1, %c0_21, %c0_22] : memref<3x64x96xbf16, #tpu.memory_space<vmem>>, vector<1x64x96xbf16>
    %19 = vector.shape_cast %18 : vector<1x64x96xbf16> to vector<64x96xbf16>
    %c1_23 = arith.constant 1 : index
    %c0_24 = arith.constant 0 : index
    %c0_25 = arith.constant 0 : index
    %20 = vector.load %arg4[%c1_23, %c0_24, %c0_25] : memref<3x96x96xbf16, #tpu.memory_space<vmem>>, vector<1x96x96xbf16>
    %21 = vector.shape_cast %20 : vector<1x96x96xbf16> to vector<96x96xbf16>
    %cst_26 = arith.constant dense<0.000000e+00> : vector<64x96xf32>
    %22 = tpu.matmul %19, %21, %cst_26 {dimension_numbers = #tpu.dot_dimension_numbers<[1], [0], [0], [1], [0, 0, 1, 1], [], []>} : vector<64x96xbf16>, vector<96x96xbf16>, vector<64x96xf32> -> vector<64x96xf32>
    %23 = arith.addf %17, %22 : vector<64x96xf32>
    %c2_27 = arith.constant 2 : index
    %c0_28 = arith.constant 0 : index
    %c0_29 = arith.constant 0 : index
    %24 = vector.load %arg9[%c2_27, %c0_28, %c0_29] : memref<3x64x96xbf16, #tpu.memory_space<vmem>>, vector<1x64x96xbf16>
    %25 = vector.shape_cast %24 : vector<1x64x96xbf16> to vector<64x96xbf16>
    %c2_30 = arith.constant 2 : index
    %c0_31 = arith.constant 0 : index
    %c0_32 = arith.constant 0 : index
    %26 = vector.load %arg4[%c2_30, %c0_31, %c0_32] : memref<3x96x96xbf16, #tpu.memory_space<vmem>>, vector<1x96x96xbf16>
    %27 = vector.shape_cast %26 : vector<1x96x96xbf16> to vector<96x96xbf16>
    %cst_33 = arith.constant dense<0.000000e+00> : vector<64x96xf32>
    %28 = tpu.matmul %25, %27, %cst_33 {dimension_numbers = #tpu.dot_dimension_numbers<[1], [0], [0], [1], [0, 0, 1, 1], [], []>} : vector<64x96xbf16>, vector<96x96xbf16>, vector<64x96xf32> -> vector<64x96xf32>
    %29 = arith.addf %23, %28 : vector<64x96xf32>
    %30 = vector.broadcast %7 : vector<1x96xf32> to vector<64x96xf32>
    %31 = arith.addf %29, %30 : vector<64x96xf32>
    %cst_34 = arith.constant 0.000000e+00 : f32
    %32 = vector.broadcast %cst_34 : f32 to vector<64x96xf32>
    %33 = arith.maximumf %31, %32 : vector<64x96xf32>
    %34 = arith.truncf %33 : vector<64x96xf32> to vector<64x96xbf16>
    %c0_35 = arith.constant 0 : index
    %c3 = arith.constant 3 : index
    %c0_36 = arith.constant 0 : index
    %c0_37 = arith.constant 0 : index
    %35 = vector.load %arg6[%c0_35, %c3, %c0_36, %c0_37] : memref<1x4x64x96xbf16, #tpu.memory_space<vmem>>, vector<1x1x64x96xbf16>
    %36 = vector.shape_cast %35 : vector<1x1x64x96xbf16> to vector<64x96xbf16>
    %37 = vector.shape_cast %34 : vector<64x96xbf16> to vector<1x1x64x96xbf16>
    tpu.vector_store %arg6[%c0_35, %c3, %c0_36, %c0_37], %37 {strides = array<i32>} : memref<1x4x64x96xbf16, #tpu.memory_space<vmem>>, vector<1x1x64x96xbf16>,
    return
  }
  func.func @transform_0(%arg0: i32) -> (i32, i32, i32, i32, i32) {
    %c0_i32 = arith.constant 0 : i32
    %c0_i32_0 = arith.constant 0 : i32
    %c0_i32_1 = arith.constant 0 : i32
    %c0_i32_2 = arith.constant 0 : i32
    %c0_i32_3 = arith.constant 0 : i32
    return %arg0, %c0_i32, %c0_i32_0, %c0_i32_1, %c0_i32_2 : i32, i32, i32, i32, i32
  }
  func.func @transform_1(%arg0: i32) -> (i32, i32) {
    %c0_i32 = arith.constant 0 : i32
    %c0_i32_0 = arith.constant 0 : i32
    %c0_i32_1 = arith.constant 0 : i32
    return %c0_i32, %c0_i32_0 : i32, i32
  }
  func.func @transform_2(%arg0: i32) -> (i32, i32) {
    %c0_i32 = arith.constant 0 : i32
    %c0_i32_0 = arith.constant 0 : i32
    %c0_i32_1 = arith.constant 0 : i32
    return %c0_i32, %c0_i32_0 : i32, i32
  }
  func.func @transform_3(%arg0: i32) -> (i32, i32, i32) {
    %c0_i32 = arith.constant 0 : i32
    %c0_i32_0 = arith.constant 0 : i32
    %c0_i32_1 = arith.constant 0 : i32
    %c0_i32_2 = arith.constant 0 : i32
    return %c0_i32, %c0_i32_0, %c0_i32_1 : i32, i32, i32
  }
  func.func @transform_4(%arg0: i32) -> (i32, i32) {
    %c0_i32 = arith.constant 0 : i32
    %c0_i32_0 = arith.constant 0 : i32
    %c0_i32_1 = arith.constant 0 : i32
    return %c0_i32, %c0_i32_0 : i32, i32
  }
  func.func @transform_5(%arg0: i32) -> (i32, i32, i32, i32) {
    %c0_i32 = arith.constant 0 : i32
    %c0_i32_0 = arith.constant 0 : i32
    %c0_i32_1 = arith.constant 0 : i32
    %c0_i32_2 = arith.constant 0 : i32
    return %arg0, %c0_i32, %c0_i32_0, %c0_i32_1 : i32, i32, i32, i32
  }
}

module attributes {stable_mosaic.version = 11 : i64} {
  func.func @_sepconv_kernel(%arg0: i32, %arg1: memref<1x4x8x8x128xbf16, #tpu.memory_space<vmem>>, %arg2: memref<1152x192xbf16, #tpu.memory_space<vmem>>, %arg3: memref<1x192xf32, #tpu.memory_space<vmem>>, %arg4: memref<3x192x192xbf16, #tpu.memory_space<vmem>>, %arg5: memref<1x192xf32, #tpu.memory_space<vmem>>, %arg6: memref<1x4x64x192xbf16, #tpu.memory_space<vmem>>, %arg7: memref<10x10x128xbf16, #tpu.memory_space<vmem>>, %arg8: memref<64x1152xbf16, #tpu.memory_space<vmem>>, %arg9: memref<3x64x192xbf16, #tpu.memory_space<vmem>>) attributes {dimension_semantics = [#tpu.dimension_semantics<parallel>], iteration_bounds = array<i64: 2>, scalar_prefetch = 0 : i64, scratch_operands = 3 : i64, tpu.core_type = #tpu.core_type<tc>, window_params = [{transform_indices = @transform_0, window_bounds = array<i64: 1, 4, 8, 8, 128>}, {pipeline_mode = #tpu.pipeline_mode<synchronous>, transform_indices = @transform_1, window_bounds = array<i64: 1152, 192>}, {pipeline_mode = #tpu.pipeline_mode<synchronous>, transform_indices = @transform_2, window_bounds = array<i64: 1, 192>}, {pipeline_mode = #tpu.pipeline_mode<synchronous>, transform_indices = @transform_3, window_bounds = array<i64: 3, 192, 192>}, {pipeline_mode = #tpu.pipeline_mode<synchronous>, transform_indices = @transform_4, window_bounds = array<i64: 1, 192>}, {transform_indices = @transform_5, window_bounds = array<i64: 1, 4, 64, 192>}]} {
    %cst = arith.constant 0.000000e+00 : bf16
    %0 = vector.broadcast %cst : bf16 to vector<10x10x128xbf16>
    %c0 = arith.constant 0 : index
    %c0_0 = arith.constant 0 : index
    %c0_1 = arith.constant 0 : index
    %1 = vector.load %arg7[%c0, %c0_0, %c0_1] : memref<10x10x128xbf16, #tpu.memory_space<vmem>>, vector<10x10x128xbf16>
    tpu.vector_store %arg7[%c0, %c0_0, %c0_1], %0 {strides = array<i32>} : memref<10x10x128xbf16, #tpu.memory_space<vmem>>, vector<10x10x128xbf16>,
    %cst_2 = arith.constant 0.000000e+00 : bf16
    %2 = vector.broadcast %cst_2 : bf16 to vector<64x192xbf16>
    %c0_3 = arith.constant 0 : index
    %c0_4 = arith.constant 0 : index
    %c0_5 = arith.constant 0 : index
    %3 = vector.load %arg9[%c0_3, %c0_4, %c0_5] : memref<3x64x192xbf16, #tpu.memory_space<vmem>>, vector<1x64x192xbf16>
    %4 = vector.shape_cast %3 : vector<1x64x192xbf16> to vector<64x192xbf16>
    %5 = vector.shape_cast %2 : vector<64x192xbf16> to vector<1x64x192xbf16>
    tpu.vector_store %arg9[%c0_3, %c0_4, %c0_5], %5 {strides = array<i32>} : memref<3x64x192xbf16, #tpu.memory_space<vmem>>, vector<1x64x192xbf16>,
    %c0_6 = arith.constant 0 : index
    %c0_7 = arith.constant 0 : index
    %6 = vector.load %arg3[%c0_6, %c0_7] : memref<1x192xf32, #tpu.memory_space<vmem>>, vector<1x192xf32>
    %c0_8 = arith.constant 0 : index
    %c0_9 = arith.constant 0 : index
    %7 = vector.load %arg5[%c0_8, %c0_9] : memref<1x192xf32, #tpu.memory_space<vmem>>, vector<1x192xf32>
    %c0_i32 = arith.constant 0 : i32
    %c4_i32 = arith.constant 4 : i32
    %8 = arith.addi %c0_i32, %c4_i32 : i32
    %c1_i32 = arith.constant 1 : i32
    scf.for %arg10 = %c0_i32 to %8 step %c1_i32  : i32 {
      %c0_38 = arith.constant 0 : index
      %38 = arith.index_cast %arg10 : i32 to index
      %c0_39 = arith.constant 0 : index
      %c0_40 = arith.constant 0 : index
      %c0_41 = arith.constant 0 : index
      %39 = vector.load %arg1[%c0_38, %38, %c0_39, %c0_40, %c0_41] : memref<1x4x8x8x128xbf16, #tpu.memory_space<vmem>>, vector<1x1x8x8x128xbf16>
      %40 = vector.shape_cast %39 : vector<1x1x8x8x128xbf16> to vector<8x8x128xbf16>
      %c1_42 = arith.constant 1 : index
      %c1_43 = arith.constant 1 : index
      %c0_44 = arith.constant 0 : index
      %41 = vector.load %arg7[%c1_42, %c1_43, %c0_44] : memref<10x10x128xbf16, #tpu.memory_space<vmem>>, vector<8x8x128xbf16>
      tpu.vector_store %arg7[%c1_42, %c1_43, %c0_44], %40 {strides = array<i32>} : memref<10x10x128xbf16, #tpu.memory_space<vmem>>, vector<8x8x128xbf16>,
      %c0_45 = arith.constant 0 : index
      %c0_46 = arith.constant 0 : index
      %c0_47 = arith.constant 0 : index
      %42 = vector.load %arg7[%c0_45, %c0_46, %c0_47] : memref<10x10x128xbf16, #tpu.memory_space<vmem>>, vector<8x8x128xbf16>
      %43 = vector.shape_cast %42 : vector<8x8x128xbf16> to vector<64x128xbf16>
      %c0_48 = arith.constant 0 : index
      %c0_49 = arith.constant 0 : index
      %44 = vector.load %arg8[%c0_48, %c0_49] : memref<64x1152xbf16, #tpu.memory_space<vmem>>, vector<64x128xbf16>
      tpu.vector_store %arg8[%c0_48, %c0_49], %43 {strides = array<i32>} : memref<64x1152xbf16, #tpu.memory_space<vmem>>, vector<64x128xbf16>,
      %c0_50 = arith.constant 0 : index
      %c1_51 = arith.constant 1 : index
      %c0_52 = arith.constant 0 : index
      %45 = vector.load %arg7[%c0_50, %c1_51, %c0_52] : memref<10x10x128xbf16, #tpu.memory_space<vmem>>, vector<8x8x128xbf16>
      %46 = vector.shape_cast %45 : vector<8x8x128xbf16> to vector<64x128xbf16>
      %c0_53 = arith.constant 0 : index
      %c128 = arith.constant 128 : index
      %47 = vector.load %arg8[%c0_53, %c128] : memref<64x1152xbf16, #tpu.memory_space<vmem>>, vector<64x128xbf16>
      tpu.vector_store %arg8[%c0_53, %c128], %46 {strides = array<i32>} : memref<64x1152xbf16, #tpu.memory_space<vmem>>, vector<64x128xbf16>,
      %c0_54 = arith.constant 0 : index
      %c2_55 = arith.constant 2 : index
      %c0_56 = arith.constant 0 : index
      %48 = vector.load %arg7[%c0_54, %c2_55, %c0_56] : memref<10x10x128xbf16, #tpu.memory_space<vmem>>, vector<8x8x128xbf16>
      %49 = vector.shape_cast %48 : vector<8x8x128xbf16> to vector<64x128xbf16>
      %c0_57 = arith.constant 0 : index
      %c256 = arith.constant 256 : index
      %50 = vector.load %arg8[%c0_57, %c256] : memref<64x1152xbf16, #tpu.memory_space<vmem>>, vector<64x128xbf16>
      tpu.vector_store %arg8[%c0_57, %c256], %49 {strides = array<i32>} : memref<64x1152xbf16, #tpu.memory_space<vmem>>, vector<64x128xbf16>,
      %c1_58 = arith.constant 1 : index
      %c0_59 = arith.constant 0 : index
      %c0_60 = arith.constant 0 : index
      %51 = vector.load %arg7[%c1_58, %c0_59, %c0_60] : memref<10x10x128xbf16, #tpu.memory_space<vmem>>, vector<8x8x128xbf16>
      %52 = vector.shape_cast %51 : vector<8x8x128xbf16> to vector<64x128xbf16>
      %c0_61 = arith.constant 0 : index
      %c384 = arith.constant 384 : index
      %53 = vector.load %arg8[%c0_61, %c384] : memref<64x1152xbf16, #tpu.memory_space<vmem>>, vector<64x128xbf16>
      tpu.vector_store %arg8[%c0_61, %c384], %52 {strides = array<i32>} : memref<64x1152xbf16, #tpu.memory_space<vmem>>, vector<64x128xbf16>,
      %c1_62 = arith.constant 1 : index
      %c1_63 = arith.constant 1 : index
      %c0_64 = arith.constant 0 : index
      %54 = vector.load %arg7[%c1_62, %c1_63, %c0_64] : memref<10x10x128xbf16, #tpu.memory_space<vmem>>, vector<8x8x128xbf16>
      %55 = vector.shape_cast %54 : vector<8x8x128xbf16> to vector<64x128xbf16>
      %c0_65 = arith.constant 0 : index
      %c512 = arith.constant 512 : index
      %56 = vector.load %arg8[%c0_65, %c512] : memref<64x1152xbf16, #tpu.memory_space<vmem>>, vector<64x128xbf16>
      tpu.vector_store %arg8[%c0_65, %c512], %55 {strides = array<i32>} : memref<64x1152xbf16, #tpu.memory_space<vmem>>, vector<64x128xbf16>,
      %c1_66 = arith.constant 1 : index
      %c2_67 = arith.constant 2 : index
      %c0_68 = arith.constant 0 : index
      %57 = vector.load %arg7[%c1_66, %c2_67, %c0_68] : memref<10x10x128xbf16, #tpu.memory_space<vmem>>, vector<8x8x128xbf16>
      %58 = vector.shape_cast %57 : vector<8x8x128xbf16> to vector<64x128xbf16>
      %c0_69 = arith.constant 0 : index
      %c640 = arith.constant 640 : index
      %59 = vector.load %arg8[%c0_69, %c640] : memref<64x1152xbf16, #tpu.memory_space<vmem>>, vector<64x128xbf16>
      tpu.vector_store %arg8[%c0_69, %c640], %58 {strides = array<i32>} : memref<64x1152xbf16, #tpu.memory_space<vmem>>, vector<64x128xbf16>,
      %c2_70 = arith.constant 2 : index
      %c0_71 = arith.constant 0 : index
      %c0_72 = arith.constant 0 : index
      %60 = vector.load %arg7[%c2_70, %c0_71, %c0_72] : memref<10x10x128xbf16, #tpu.memory_space<vmem>>, vector<8x8x128xbf16>
      %61 = vector.shape_cast %60 : vector<8x8x128xbf16> to vector<64x128xbf16>
      %c0_73 = arith.constant 0 : index
      %c768 = arith.constant 768 : index
      %62 = vector.load %arg8[%c0_73, %c768] : memref<64x1152xbf16, #tpu.memory_space<vmem>>, vector<64x128xbf16>
      tpu.vector_store %arg8[%c0_73, %c768], %61 {strides = array<i32>} : memref<64x1152xbf16, #tpu.memory_space<vmem>>, vector<64x128xbf16>,
      %c2_74 = arith.constant 2 : index
      %c1_75 = arith.constant 1 : index
      %c0_76 = arith.constant 0 : index
      %63 = vector.load %arg7[%c2_74, %c1_75, %c0_76] : memref<10x10x128xbf16, #tpu.memory_space<vmem>>, vector<8x8x128xbf16>
      %64 = vector.shape_cast %63 : vector<8x8x128xbf16> to vector<64x128xbf16>
      %c0_77 = arith.constant 0 : index
      %c896 = arith.constant 896 : index
      %65 = vector.load %arg8[%c0_77, %c896] : memref<64x1152xbf16, #tpu.memory_space<vmem>>, vector<64x128xbf16>
      tpu.vector_store %arg8[%c0_77, %c896], %64 {strides = array<i32>} : memref<64x1152xbf16, #tpu.memory_space<vmem>>, vector<64x128xbf16>,
      %c2_78 = arith.constant 2 : index
      %c2_79 = arith.constant 2 : index
      %c0_80 = arith.constant 0 : index
      %66 = vector.load %arg7[%c2_78, %c2_79, %c0_80] : memref<10x10x128xbf16, #tpu.memory_space<vmem>>, vector<8x8x128xbf16>
      %67 = vector.shape_cast %66 : vector<8x8x128xbf16> to vector<64x128xbf16>
      %c0_81 = arith.constant 0 : index
      %c1024 = arith.constant 1024 : index
      %68 = vector.load %arg8[%c0_81, %c1024] : memref<64x1152xbf16, #tpu.memory_space<vmem>>, vector<64x128xbf16>
      tpu.vector_store %arg8[%c0_81, %c1024], %67 {strides = array<i32>} : memref<64x1152xbf16, #tpu.memory_space<vmem>>, vector<64x128xbf16>,
      %c0_82 = arith.constant 0 : index
      %c0_83 = arith.constant 0 : index
      %69 = vector.load %arg8[%c0_82, %c0_83] : memref<64x1152xbf16, #tpu.memory_space<vmem>>, vector<64x1152xbf16>
      %c0_84 = arith.constant 0 : index
      %c0_85 = arith.constant 0 : index
      %70 = vector.load %arg2[%c0_84, %c0_85] : memref<1152x192xbf16, #tpu.memory_space<vmem>>, vector<1152x192xbf16>
      %cst_86 = arith.constant dense<0.000000e+00> : vector<64x192xf32>
      %71 = tpu.matmul %69, %70, %cst_86 {dimension_numbers = #tpu.dot_dimension_numbers<[1], [0], [0], [1], [0, 0, 1, 1], [], []>} : vector<64x1152xbf16>, vector<1152x192xbf16>, vector<64x192xf32> -> vector<64x192xf32>
      %72 = vector.broadcast %6 : vector<1x192xf32> to vector<64x192xf32>
      %73 = arith.addf %71, %72 : vector<64x192xf32>
      %cst_87 = arith.constant 0.000000e+00 : f32
      %74 = vector.broadcast %cst_87 : f32 to vector<64x192xf32>
      %75 = arith.maximumf %73, %74 : vector<64x192xf32>
      %76 = arith.truncf %75 : vector<64x192xf32> to vector<64x192xbf16>
      %c1_i32_88 = arith.constant 1 : i32
      %77 = arith.addi %arg10, %c1_i32_88 : i32
      %c3_i32 = arith.constant 3 : i32
      %c0_i32_89 = arith.constant 0 : i32
      %78 = arith.cmpi eq, %c3_i32, %c0_i32_89 : i32
      %c1_i32_90 = arith.constant 1 : i32
      %79 = arith.select %78, %c1_i32_90, %c3_i32 : i32
      %80 = arith.remsi %77, %79 : i32
      %c0_i32_91 = arith.constant 0 : i32
      %81 = arith.cmpi ne, %80, %c0_i32_91 : i32
      %c0_i32_92 = arith.constant 0 : i32
      %82 = arith.cmpi slt, %80, %c0_i32_92 : i32
      %c0_i32_93 = arith.constant 0 : i32
      %83 = arith.cmpi slt, %79, %c0_i32_93 : i32
      %84 = arith.xori %82, %83 : i1
      %85 = arith.andi %84, %81 : i1
      %86 = arith.addi %80, %79 : i32
      %87 = arith.select %85, %86, %80 : i32
      %88 = arith.index_cast %87 : i32 to index
      %c0_94 = arith.constant 0 : index
      %c0_95 = arith.constant 0 : index
      %89 = vector.load %arg9[%88, %c0_94, %c0_95] : memref<3x64x192xbf16, #tpu.memory_space<vmem>>, vector<1x64x192xbf16>
      %90 = vector.shape_cast %89 : vector<1x64x192xbf16> to vector<64x192xbf16>
      %91 = vector.shape_cast %76 : vector<64x192xbf16> to vector<1x64x192xbf16>
      tpu.vector_store %arg9[%88, %c0_94, %c0_95], %91 {strides = array<i32>} : memref<3x64x192xbf16, #tpu.memory_space<vmem>>, vector<1x64x192xbf16>,
      %c1_i32_96 = arith.constant 1 : i32
      %92 = arith.cmpi sge, %arg10, %c1_i32_96 : i32
      %93 = arith.extui %92 : i1 to i32
      %c0_i32_97 = arith.constant 0 : i32
      %94 = arith.cmpi ne, %93, %c0_i32_97 : i32
      scf.if %94 {
        %c1_i32_98 = arith.constant 1 : i32
        %95 = arith.subi %arg10, %c1_i32_98 : i32
        %c3_i32_99 = arith.constant 3 : i32
        %c0_i32_100 = arith.constant 0 : i32
        %96 = arith.cmpi eq, %c3_i32_99, %c0_i32_100 : i32
        %c1_i32_101 = arith.constant 1 : i32
        %97 = arith.select %96, %c1_i32_101, %c3_i32_99 : i32
        %98 = arith.remsi %95, %97 : i32
        %c0_i32_102 = arith.constant 0 : i32
        %99 = arith.cmpi ne, %98, %c0_i32_102 : i32
        %c0_i32_103 = arith.constant 0 : i32
        %100 = arith.cmpi slt, %98, %c0_i32_103 : i32
        %c0_i32_104 = arith.constant 0 : i32
        %101 = arith.cmpi slt, %97, %c0_i32_104 : i32
        %102 = arith.xori %100, %101 : i1
        %103 = arith.andi %102, %99 : i1
        %104 = arith.addi %98, %97 : i32
        %105 = arith.select %103, %104, %98 : i32
        %106 = arith.index_cast %105 : i32 to index
        %c0_105 = arith.constant 0 : index
        %c0_106 = arith.constant 0 : index
        %107 = vector.load %arg9[%106, %c0_105, %c0_106] : memref<3x64x192xbf16, #tpu.memory_space<vmem>>, vector<1x64x192xbf16>
        %108 = vector.shape_cast %107 : vector<1x64x192xbf16> to vector<64x192xbf16>
        %c0_107 = arith.constant 0 : index
        %c0_108 = arith.constant 0 : index
        %c0_109 = arith.constant 0 : index
        %109 = vector.load %arg4[%c0_107, %c0_108, %c0_109] : memref<3x192x192xbf16, #tpu.memory_space<vmem>>, vector<1x192x192xbf16>
        %110 = vector.shape_cast %109 : vector<1x192x192xbf16> to vector<192x192xbf16>
        %cst_110 = arith.constant dense<0.000000e+00> : vector<64x192xf32>
        %111 = tpu.matmul %108, %110, %cst_110 {dimension_numbers = #tpu.dot_dimension_numbers<[1], [0], [0], [1], [0, 0, 1, 1], [], []>} : vector<64x192xbf16>, vector<192x192xbf16>, vector<64x192xf32> -> vector<64x192xf32>
        %c1_i32_111 = arith.constant 1 : i32
        %112 = arith.addi %95, %c1_i32_111 : i32
        %c3_i32_112 = arith.constant 3 : i32
        %c0_i32_113 = arith.constant 0 : i32
        %113 = arith.cmpi eq, %c3_i32_112, %c0_i32_113 : i32
        %c1_i32_114 = arith.constant 1 : i32
        %114 = arith.select %113, %c1_i32_114, %c3_i32_112 : i32
        %115 = arith.remsi %112, %114 : i32
        %c0_i32_115 = arith.constant 0 : i32
        %116 = arith.cmpi ne, %115, %c0_i32_115 : i32
        %c0_i32_116 = arith.constant 0 : i32
        %117 = arith.cmpi slt, %115, %c0_i32_116 : i32
        %c0_i32_117 = arith.constant 0 : i32
        %118 = arith.cmpi slt, %114, %c0_i32_117 : i32
        %119 = arith.xori %117, %118 : i1
        %120 = arith.andi %119, %116 : i1
        %121 = arith.addi %115, %114 : i32
        %122 = arith.select %120, %121, %115 : i32
        %123 = arith.index_cast %122 : i32 to index
        %c0_118 = arith.constant 0 : index
        %c0_119 = arith.constant 0 : index
        %124 = vector.load %arg9[%123, %c0_118, %c0_119] : memref<3x64x192xbf16, #tpu.memory_space<vmem>>, vector<1x64x192xbf16>
        %125 = vector.shape_cast %124 : vector<1x64x192xbf16> to vector<64x192xbf16>
        %c1_120 = arith.constant 1 : index
        %c0_121 = arith.constant 0 : index
        %c0_122 = arith.constant 0 : index
        %126 = vector.load %arg4[%c1_120, %c0_121, %c0_122] : memref<3x192x192xbf16, #tpu.memory_space<vmem>>, vector<1x192x192xbf16>
        %127 = vector.shape_cast %126 : vector<1x192x192xbf16> to vector<192x192xbf16>
        %cst_123 = arith.constant dense<0.000000e+00> : vector<64x192xf32>
        %128 = tpu.matmul %125, %127, %cst_123 {dimension_numbers = #tpu.dot_dimension_numbers<[1], [0], [0], [1], [0, 0, 1, 1], [], []>} : vector<64x192xbf16>, vector<192x192xbf16>, vector<64x192xf32> -> vector<64x192xf32>
        %129 = arith.addf %111, %128 : vector<64x192xf32>
        %c2_i32 = arith.constant 2 : i32
        %130 = arith.addi %95, %c2_i32 : i32
        %c3_i32_124 = arith.constant 3 : i32
        %c0_i32_125 = arith.constant 0 : i32
        %131 = arith.cmpi eq, %c3_i32_124, %c0_i32_125 : i32
        %c1_i32_126 = arith.constant 1 : i32
        %132 = arith.select %131, %c1_i32_126, %c3_i32_124 : i32
        %133 = arith.remsi %130, %132 : i32
        %c0_i32_127 = arith.constant 0 : i32
        %134 = arith.cmpi ne, %133, %c0_i32_127 : i32
        %c0_i32_128 = arith.constant 0 : i32
        %135 = arith.cmpi slt, %133, %c0_i32_128 : i32
        %c0_i32_129 = arith.constant 0 : i32
        %136 = arith.cmpi slt, %132, %c0_i32_129 : i32
        %137 = arith.xori %135, %136 : i1
        %138 = arith.andi %137, %134 : i1
        %139 = arith.addi %133, %132 : i32
        %140 = arith.select %138, %139, %133 : i32
        %141 = arith.index_cast %140 : i32 to index
        %c0_130 = arith.constant 0 : index
        %c0_131 = arith.constant 0 : index
        %142 = vector.load %arg9[%141, %c0_130, %c0_131] : memref<3x64x192xbf16, #tpu.memory_space<vmem>>, vector<1x64x192xbf16>
        %143 = vector.shape_cast %142 : vector<1x64x192xbf16> to vector<64x192xbf16>
        %c2_132 = arith.constant 2 : index
        %c0_133 = arith.constant 0 : index
        %c0_134 = arith.constant 0 : index
        %144 = vector.load %arg4[%c2_132, %c0_133, %c0_134] : memref<3x192x192xbf16, #tpu.memory_space<vmem>>, vector<1x192x192xbf16>
        %145 = vector.shape_cast %144 : vector<1x192x192xbf16> to vector<192x192xbf16>
        %cst_135 = arith.constant dense<0.000000e+00> : vector<64x192xf32>
        %146 = tpu.matmul %143, %145, %cst_135 {dimension_numbers = #tpu.dot_dimension_numbers<[1], [0], [0], [1], [0, 0, 1, 1], [], []>} : vector<64x192xbf16>, vector<192x192xbf16>, vector<64x192xf32> -> vector<64x192xf32>
        %147 = arith.addf %129, %146 : vector<64x192xf32>
        %148 = vector.broadcast %7 : vector<1x192xf32> to vector<64x192xf32>
        %149 = arith.addf %147, %148 : vector<64x192xf32>
        %cst_136 = arith.constant 0.000000e+00 : f32
        %150 = vector.broadcast %cst_136 : f32 to vector<64x192xf32>
        %151 = arith.maximumf %149, %150 : vector<64x192xf32>
        %152 = arith.truncf %151 : vector<64x192xf32> to vector<64x192xbf16>
        %c0_137 = arith.constant 0 : index
        %153 = arith.index_cast %95 : i32 to index
        %c0_138 = arith.constant 0 : index
        %c0_139 = arith.constant 0 : index
        %154 = vector.load %arg6[%c0_137, %153, %c0_138, %c0_139] : memref<1x4x64x192xbf16, #tpu.memory_space<vmem>>, vector<1x1x64x192xbf16>
        %155 = vector.shape_cast %154 : vector<1x1x64x192xbf16> to vector<64x192xbf16>
        %156 = vector.shape_cast %152 : vector<64x192xbf16> to vector<1x1x64x192xbf16>
        tpu.vector_store %arg6[%c0_137, %153, %c0_138, %c0_139], %156 {strides = array<i32>} : memref<1x4x64x192xbf16, #tpu.memory_space<vmem>>, vector<1x1x64x192xbf16>,
      } else {
      }
    }
    %c4_i32_10 = arith.constant 4 : i32
    %cst_11 = arith.constant 0.000000e+00 : bf16
    %9 = vector.broadcast %cst_11 : bf16 to vector<64x192xbf16>
    %c2 = arith.constant 2 : index
    %c0_12 = arith.constant 0 : index
    %c0_13 = arith.constant 0 : index
    %10 = vector.load %arg9[%c2, %c0_12, %c0_13] : memref<3x64x192xbf16, #tpu.memory_space<vmem>>, vector<1x64x192xbf16>
    %11 = vector.shape_cast %10 : vector<1x64x192xbf16> to vector<64x192xbf16>
    %12 = vector.shape_cast %9 : vector<64x192xbf16> to vector<1x64x192xbf16>
    tpu.vector_store %arg9[%c2, %c0_12, %c0_13], %12 {strides = array<i32>} : memref<3x64x192xbf16, #tpu.memory_space<vmem>>, vector<1x64x192xbf16>,
    %c0_14 = arith.constant 0 : index
    %c0_15 = arith.constant 0 : index
    %c0_16 = arith.constant 0 : index
    %13 = vector.load %arg9[%c0_14, %c0_15, %c0_16] : memref<3x64x192xbf16, #tpu.memory_space<vmem>>, vector<1x64x192xbf16>
    %14 = vector.shape_cast %13 : vector<1x64x192xbf16> to vector<64x192xbf16>
    %c0_17 = arith.constant 0 : index
    %c0_18 = arith.constant 0 : index
    %c0_19 = arith.constant 0 : index
    %15 = vector.load %arg4[%c0_17, %c0_18, %c0_19] : memref<3x192x192xbf16, #tpu.memory_space<vmem>>, vector<1x192x192xbf16>
    %16 = vector.shape_cast %15 : vector<1x192x192xbf16> to vector<192x192xbf16>
    %cst_20 = arith.constant dense<0.000000e+00> : vector<64x192xf32>
    %17 = tpu.matmul %14, %16, %cst_20 {dimension_numbers = #tpu.dot_dimension_numbers<[1], [0], [0], [1], [0, 0, 1, 1], [], []>} : vector<64x192xbf16>, vector<192x192xbf16>, vector<64x192xf32> -> vector<64x192xf32>
    %c1 = arith.constant 1 : index
    %c0_21 = arith.constant 0 : index
    %c0_22 = arith.constant 0 : index
    %18 = vector.load %arg9[%c1, %c0_21, %c0_22] : memref<3x64x192xbf16, #tpu.memory_space<vmem>>, vector<1x64x192xbf16>
    %19 = vector.shape_cast %18 : vector<1x64x192xbf16> to vector<64x192xbf16>
    %c1_23 = arith.constant 1 : index
    %c0_24 = arith.constant 0 : index
    %c0_25 = arith.constant 0 : index
    %20 = vector.load %arg4[%c1_23, %c0_24, %c0_25] : memref<3x192x192xbf16, #tpu.memory_space<vmem>>, vector<1x192x192xbf16>
    %21 = vector.shape_cast %20 : vector<1x192x192xbf16> to vector<192x192xbf16>
    %cst_26 = arith.constant dense<0.000000e+00> : vector<64x192xf32>
    %22 = tpu.matmul %19, %21, %cst_26 {dimension_numbers = #tpu.dot_dimension_numbers<[1], [0], [0], [1], [0, 0, 1, 1], [], []>} : vector<64x192xbf16>, vector<192x192xbf16>, vector<64x192xf32> -> vector<64x192xf32>
    %23 = arith.addf %17, %22 : vector<64x192xf32>
    %c2_27 = arith.constant 2 : index
    %c0_28 = arith.constant 0 : index
    %c0_29 = arith.constant 0 : index
    %24 = vector.load %arg9[%c2_27, %c0_28, %c0_29] : memref<3x64x192xbf16, #tpu.memory_space<vmem>>, vector<1x64x192xbf16>
    %25 = vector.shape_cast %24 : vector<1x64x192xbf16> to vector<64x192xbf16>
    %c2_30 = arith.constant 2 : index
    %c0_31 = arith.constant 0 : index
    %c0_32 = arith.constant 0 : index
    %26 = vector.load %arg4[%c2_30, %c0_31, %c0_32] : memref<3x192x192xbf16, #tpu.memory_space<vmem>>, vector<1x192x192xbf16>
    %27 = vector.shape_cast %26 : vector<1x192x192xbf16> to vector<192x192xbf16>
    %cst_33 = arith.constant dense<0.000000e+00> : vector<64x192xf32>
    %28 = tpu.matmul %25, %27, %cst_33 {dimension_numbers = #tpu.dot_dimension_numbers<[1], [0], [0], [1], [0, 0, 1, 1], [], []>} : vector<64x192xbf16>, vector<192x192xbf16>, vector<64x192xf32> -> vector<64x192xf32>
    %29 = arith.addf %23, %28 : vector<64x192xf32>
    %30 = vector.broadcast %7 : vector<1x192xf32> to vector<64x192xf32>
    %31 = arith.addf %29, %30 : vector<64x192xf32>
    %cst_34 = arith.constant 0.000000e+00 : f32
    %32 = vector.broadcast %cst_34 : f32 to vector<64x192xf32>
    %33 = arith.maximumf %31, %32 : vector<64x192xf32>
    %34 = arith.truncf %33 : vector<64x192xf32> to vector<64x192xbf16>
    %c0_35 = arith.constant 0 : index
    %c3 = arith.constant 3 : index
    %c0_36 = arith.constant 0 : index
    %c0_37 = arith.constant 0 : index
    %35 = vector.load %arg6[%c0_35, %c3, %c0_36, %c0_37] : memref<1x4x64x192xbf16, #tpu.memory_space<vmem>>, vector<1x1x64x192xbf16>
    %36 = vector.shape_cast %35 : vector<1x1x64x192xbf16> to vector<64x192xbf16>
    %37 = vector.shape_cast %34 : vector<64x192xbf16> to vector<1x1x64x192xbf16>
    tpu.vector_store %arg6[%c0_35, %c3, %c0_36, %c0_37], %37 {strides = array<i32>} : memref<1x4x64x192xbf16, #tpu.memory_space<vmem>>, vector<1x1x64x192xbf16>,
    return
  }
  func.func @transform_0(%arg0: i32) -> (i32, i32, i32, i32, i32) {
    %c0_i32 = arith.constant 0 : i32
    %c0_i32_0 = arith.constant 0 : i32
    %c0_i32_1 = arith.constant 0 : i32
    %c1_i32 = arith.constant 1 : i32
    %c0_i32_2 = arith.constant 0 : i32
    return %arg0, %c0_i32, %c0_i32_0, %c0_i32_1, %c1_i32 : i32, i32, i32, i32, i32
  }
  func.func @transform_1(%arg0: i32) -> (i32, i32) {
    %c0_i32 = arith.constant 0 : i32
    %c0_i32_0 = arith.constant 0 : i32
    %c0_i32_1 = arith.constant 0 : i32
    return %c0_i32, %c0_i32_0 : i32, i32
  }
  func.func @transform_2(%arg0: i32) -> (i32, i32) {
    %c0_i32 = arith.constant 0 : i32
    %c0_i32_0 = arith.constant 0 : i32
    %c0_i32_1 = arith.constant 0 : i32
    return %c0_i32, %c0_i32_0 : i32, i32
  }
  func.func @transform_3(%arg0: i32) -> (i32, i32, i32) {
    %c0_i32 = arith.constant 0 : i32
    %c0_i32_0 = arith.constant 0 : i32
    %c0_i32_1 = arith.constant 0 : i32
    %c0_i32_2 = arith.constant 0 : i32
    return %c0_i32, %c0_i32_0, %c0_i32_1 : i32, i32, i32
  }
  func.func @transform_4(%arg0: i32) -> (i32, i32) {
    %c0_i32 = arith.constant 0 : i32
    %c0_i32_0 = arith.constant 0 : i32
    %c0_i32_1 = arith.constant 0 : i32
    return %c0_i32, %c0_i32_0 : i32, i32
  }
  func.func @transform_5(%arg0: i32) -> (i32, i32, i32, i32) {
    %c0_i32 = arith.constant 0 : i32
    %c0_i32_0 = arith.constant 0 : i32
    %c0_i32_1 = arith.constant 0 : i32
    %c0_i32_2 = arith.constant 0 : i32
    return %arg0, %c0_i32, %c0_i32_0, %c0_i32_1 : i32, i32, i32, i32
  }
}

</mosaic_0001>

<bundles_post_ra>
// kernel: _lambda_.7
= control target key start
LH: loop header
LB: loop body
LE: loop exit
PB: predicated region body
PF: predicated region fallthrough
CT: control target
= control target key end

     0   :  { %s1799_s12 = smov 0   ;;  %s2267_s0 = inlined_call_operand.vmem [shape: bf16[2,4,8,8,256], index: 0, kind: input, shape index: {}]   ;;  %s2268_s1 = inlined_call_operand.vmem [shape: bf16[256,64], index: 1, kind: input, shape index: {}]   ;;  %s2269_s2 = inlined_call_operand.vmem [shape: f32[1,64], index: 2, kind: input, shape index: {}]   ;;  %s2270_s3 = inlined_call_operand.vmem [shape: bf16[2,4,64,64], index: 3, kind: output, shape index: {}]  }
   0x1 LB: > { %s1456_s13 = sadd.s32 4294967295, %s1772_s12   ;;  %p1460_p0 = scmp.ge.s32.totalorder %s1772_s12, 1  ;;  %s1772_s12 = sphi %s1799_s12, %s13_s12  }
   0x2   : > { %p137_p1 = scmp.lt.s32.totalorder %s1772_s12, 3 }
   0x4   : > { %p138_p2 = pnand %p1460_p0, %p137_p1 }
   0x5   : > { %p1809_p3 = scmp.lt.s32.totalorder (!%p138_p2), %s1456_s13, 1  ;;  %s1860_s25 = smov (!%p138_p2), 0  }
   0x6   : > { %141 = sbr.rel (%p138_p2) target bundleno = 592 (0x250), region = 32 }
   0xb   : > { %v1816_v0 = vld [vmem:[%s2269_s2] sm:$0x1]  ;;  %v1778_v1 = vmov 4286644096   ;;  %s2290_s13 = smov (!%p1809_p3, %s1456_s13), 1 }
   0xc   : > { %173 = vst [vmem:[#allocation2] sm:$0xff] %v1778_v1  ;;  %174 = vst [vmem:[#allocation2 + $0x38] sm:$0x11] %v1778_v1  ;;  %s1570_s17 = sshll.u32 %s2290_s13, 8  ;;  %s1571_s18 = sshll.u32 %s2290_s13, 7 }
   0xd   : > { %175 = vst [vmem:[#allocation2 + $0x50] sm:$0xff] %v1778_v1  ;;  %176 = vst [vmem:[#allocation2 + $0x18] sm:$0x11] %v1778_v1  ;;  %s1853_s21 = scalar_lea.vmem %s2267_s0, %s1570_s17  ;;  %s1858_s24 = scalar_lea.vmem %s2270_s3, %s1571_s18 }
   0xe   : > { %177 = vst [vmem:[#allocation2 + $0x30] sm:$0xff] %v1778_v1  ;;  %178 = vst [vmem:[#allocation2 + $0x68] sm:$0x11] %v1778_v1 }
   0xf   : > { %179 = vst [vmem:[#allocation2 + $0x78] sm:$0xff] %v1778_v1  ;;  %180 = vst [vmem:[#allocation2 + $0x80] sm:$0x11] %v1778_v1 }
  0x10   : > { %181 = vst [vmem:[#allocation2 + $0x8] sm:$0xff] %v1778_v1  ;;  %182 = vst [vmem:[#allocation2 + $0x88] sm:$0x11] %v1778_v1 }
  0x11   : > { %183 = vst [vmem:[#allocation2 + $0x28] sm:$0xff] %v1778_v1  ;;  %184 = vst [vmem:[#allocation2 + $0x40] sm:$0x11] %v1778_v1 }
  0x12   : > { %185 = vst [vmem:[#allocation2 + $0x58] sm:$0xff] %v1778_v1  ;;  %186 = vst [vmem:[#allocation2 + $0x10] sm:$0x11] %v1778_v1 }
  0x13   : > { %187 = vst [vmem:[#allocation2 + $0x98] sm:$0xff] %v1778_v1  ;;  %188 = vst [vmem:[#allocation2 + $0x60] sm:$0x11] %v1778_v1 }
  0x14   : > { %189 = vst [vmem:[#allocation2 + $0x20] sm:$0xff] %v1778_v1  ;;  %190 = vst [vmem:[#allocation2 + $0x48] sm:$0x11] %v1778_v1 }
  0x15   : > { %191 = vst [vmem:[#allocation2 + $0x70] sm:$0xff] %v1778_v1  ;;  %192 = vst [vmem:[#allocation2 + $0x90] sm:$0x11] %v1778_v1 }
  0x16   : > { %193 = vst [vmem:[#allocation3] sm:$0xff] %v1778_v1  ;;  %194 = vst [vmem:[#allocation3 + $0x8] sm:$0xff] %v1778_v1 }
  0x17   : > { %195 = vst [vmem:[#allocation3 + $0x10] sm:$0xff] %v1778_v1  ;;  %196 = vst [vmem:[#allocation3 + $0x18] sm:$0xff] %v1778_v1 }
  0x18   : > { %197 = vst [vmem:[#allocation3 + $0x20] sm:$0xff] %v1778_v1  ;;  %198 = vst [vmem:[#allocation3 + $0x28] sm:$0xff] %v1778_v1 }
  0x19   : > { %199 = vst [vmem:[#allocation3 + $0x30] sm:$0xff] %v1778_v1  ;;  %200 = vst [vmem:[#allocation3 + $0x38] sm:$0xff] %v1778_v1 }
  0x1a LB: >> { %vm300_vm0 = vcmask 1043456   ;;  %vm301_vm1 = vsmask.f32 7938  ;;  %vm303_vm2 = vcmask 1047556   ;;  %vm304_vm3 = vsmask.f32 7954  ;;  %s1776_s25 = sphi %s1860_s25, %s2288_s25  }
  0x1b   : >> { %vm310_vm4 = vcmask 1040384   ;;  %vm311_vm5 = vsmask.f32 256  ;;  %s1572_s26 = sshll.u32 %s1776_s25, 6  ;;  %vm1866_vm6 = vmand %vm300_vm0, %vm301_vm1  ;;  %s1871_s27 = sadd.s32 1, %s1776_s25   ;;  %vm313_vm7 = vcmask 1044484  }
  0x1c   : >> { %vm314_vm8 = vsmask.f32 4352  ;;  %s1874_s28 = scalar_lea.vmem %s1853_s21, %s1572_s26  ;;  %vm1876_vm9 = vmand %vm303_vm2, %vm304_vm3  ;;  %s656_s29 = ssub.s32 0, %s1871_s27  ;;  %v307_v13 = vld [vmem:[#allocation2 + $0x50] sm:$0xff]  ;;  %v317_v14 = vld [vmem:[#allocation2 + $0x18] sm:$0x11] }
  0x1d   : >> { %v211_v4 = vld [vmem:[%s1874_s28] sm:$0xff]  ;;  %s1477_s30 = smin.u32 %s656_s29, %s1871_s27  ;;  %vm1883_vm10 = vmand %vm310_vm4, %vm311_vm5  ;;  %v212_v6 = vld [vmem:[%s1874_s28 + $0x8] sm:$0xff]  ;;  %vm382_vm14 = vsmask.f32 3328  ;;  %vm383_vm15 = vsmask.f32 7440 }
  0x1e   : >> { %v220_v7 = vshrl.u32 %v211_v4, 16  ;;  %v223_v8 = vshll.u32 %v211_v4, 16  ;;  %1724 = sdivrem.u32 %s1477_s30, 3  ;;  %vm1888_vm11 = vmand %vm313_vm7, %vm314_vm8  ;;  %v228_v10 = vshrl.u32 %v212_v6, 16  ;;  %v231_v11 = vshll.u32 %v212_v6, 16  ;;  %v213_v12 = vld [vmem:[%s1874_s28 + $0x10] sm:$0xff] }
  0x1f   : >> { %v236_v15 = vshrl.u32 %v213_v12, 16  ;;  %v239_v16 = vshll.u32 %v213_v12, 16  ;;  %v214_v17 = vld [vmem:[%s1874_s28 + $0x18] sm:$0xff]  ;;  %vm1898_vm12 = vmor %vm1876_vm9, %vm1866_vm6  ;;  %v320_v21 = vld [vmem:[#allocation2 + $0x30] sm:$0xff]  ;;  %vm575_vm0 = vcmask 1042432   ;;  %vm576_vm1 = vcmask 1046532  }
  0x20   : >> { %v222_v18 = vrot.slane %v220_v7, 7  ;;  %v230_v20 = vrot.slane %v228_v10, 7  ;;  %v244_v22 = vshrl.u32 %v214_v17, 16  ;;  %v215_v23 = vld [vmem:[%s1874_s28 + $0x20] sm:$0xff]  ;;  %vm1907_vm13 = vmor %vm1888_vm11, %vm1883_vm10  ;;  %v323_v25 = vld [vmem:[#allocation2 + $0x68] sm:$0x11] }
  0x21   : >> { %v238_v26 = vrot.slane %v236_v15, 7  ;;  %v247_v27 = vshll.u32 %v214_v17, 16  ;;  %v252_v28 = vshrl.u32 %v215_v23, 16  ;;  %v255_v29 = vshll.u32 %v215_v23, 16  ;;  %v326_v34 = vld [vmem:[#allocation2 + $0x78] sm:$0xff]  ;;  %v216_v40 = vld [vmem:[%s1874_s28 + $0x28] sm:$0xff]  ;;  %vm1982_vm2 = vmor %vm382_vm14, %vm383_vm15 }
  0x22   : >> { %v225_v30 = vor.u32 %v223_v8, %v222_v18  ;;  %v226_v31 = vrot.slane %v222_v18, 4  ;;  %v233_v32 = vor.u32 %v231_v11, %v230_v20  ;;  %v234_v33 = vrot.slane %v230_v20, 4  ;;  %v329_v35 = vld [vmem:[#allocation2 + $0x80] sm:$0x11]  ;;  %v332_v45 = vld [vmem:[#allocation2 + $0x8] sm:$0xff]  ;;  %v217_v47 = vld [vmem:[%s1874_s28 + $0x30] sm:$0xff] }
  0x23   : >> { %v241_v36 = vor.u32 %v239_v16, %v238_v26  ;;  %v242_v37 = vrot.slane %v238_v26, 4  ;;  %v246_v38 = vrot.slane %v244_v22, 7  ;;  %v254_v39 = vrot.slane %v252_v28, 7  ;;  %v335_v46 = vld [vmem:[#allocation2 + $0x88] sm:$0x11]  ;;  %v218_v54 = vld [vmem:[%s1874_s28 + $0x38] sm:$0xff]  ;;  %vm2000_vm3 = vmor %vm575_vm0, %vm576_vm1 }
  0x24   : >> { %v1914_v41 = vsel %vm1898_vm12, %v225_v30, %v307_v13  ;;  %v318_v42 = vsel %vm1907_vm13, %v226_v31, %v317_v14  ;;  %v1920_v43 = vsel %vm1898_vm12, %v233_v32, %v320_v21  ;;  %v324_v44 = vsel %vm1907_vm13, %v234_v33, %v323_v25  ;;  %v338_v52 = vld [vmem:[#allocation2 + $0x28] sm:$0xff]  ;;  %v341_v53 = vld [vmem:[#allocation2 + $0x40] sm:$0x11]  ;;  %v1943_v2 = vld [vmem:[#allocation2 + $0x38] sm:$0x11]  ;;  %p655_p4 = scmp.lt.s32.totalorder %s1871_s27, 0 }
  0x25   : >> { %309 = vst [vmem:[#allocation2 + $0x50] sm:$0xff] %v1914_v41  ;;  %319 = vst [vmem:[#allocation2 + $0x18] sm:$0x11] %v318_v42  ;;  %v1929_v48 = vsel %vm1898_vm12, %v241_v36, %v326_v34  ;;  %v330_v49 = vsel %vm1907_vm13, %v242_v37, %v329_v35  ;;  %v249_v50 = vor.u32 %v247_v27, %v246_v38  ;;  %v250_v51 = vrot.slane %v246_v38, 4  ;;  %v1935_v59 = vld [vmem:[#allocation2] sm:$0xff]  ;;  %v344_v6 = vld [vmem:[#allocation2 + $0x58] sm:$0xff] }
  0x26   : >> { %322 = vst [vmem:[#allocation2 + $0x30] sm:$0xff] %v1920_v43  ;;  %325 = vst [vmem:[#allocation2 + $0x68] sm:$0x11] %v324_v44  ;;  %v257_v55 = vor.u32 %v255_v29, %v254_v39  ;;  %v258_v56 = vrot.slane %v254_v39, 4  ;;  %v260_v57 = vshrl.u32 %v216_v40, 16  ;;  %v263_v58 = vshll.u32 %v216_v40, 16 }
  0x27   : >> { %328 = vst [vmem:[#allocation2 + $0x78] sm:$0xff] %v1929_v48  ;;  %331 = vst [vmem:[#allocation2 + $0x80] sm:$0x11] %v330_v49  ;;  %v1939_v60 = vsel %vm1898_vm12, %v249_v50, %v332_v45  ;;  %v336_v61 = vsel %vm1907_vm13, %v250_v51, %v335_v46  ;;  %v268_v62 = vshrl.u32 %v217_v47, 16  ;;  %v271_v63 = vshll.u32 %v217_v47, 16  ;;  %s1953_s4 = spop.drf %1724  ;;  %v350_v15 = vld [vmem:[#allocation2 + $0x98] sm:$0xff] }
  0x28   : >> { %334 = vst [vmem:[#allocation2 + $0x8] sm:$0xff] %v1939_v60  ;;  %337 = vst [vmem:[#allocation2 + $0x88] sm:$0x11] %v336_v61  ;;  %v1948_v3 = vsel %vm1898_vm12, %v257_v55, %v338_v52  ;;  %v342_v4 = vsel %vm1907_vm13, %v258_v56, %v341_v53  ;;  %v262_v5 = vrot.slane %v260_v57, 7  ;;  %v276_v7 = vshrl.u32 %v218_v54, 16  ;;  %v356_v22 = vld [vmem:[#allocation2 + $0x20] sm:$0xff] }
  0x29   : >> { %340 = vst [vmem:[#allocation2 + $0x28] sm:$0xff] %v1948_v3  ;;  %343 = vst [vmem:[#allocation2 + $0x40] sm:$0x11] %v342_v4  ;;  %v347_v8 = vld [vmem:[#allocation2 + $0x10] sm:$0x11]  ;;  %v270_v9 = vrot.slane %v268_v62, 7 }
  0x2a   : >> { %v279_v10 = vshll.u32 %v218_v54, 16  ;;  %v386_v11 = vshrl.u32 %v1935_v59, 16  ;;  %v389_v12 = vshll.u32 %v1935_v59, 16  ;;  %v265_v13 = vor.u32 %v263_v58, %v262_v5  ;;  %v353_v16 = vld [vmem:[#allocation2 + $0x60] sm:$0x11]  ;;  %s660_s5 = ssub.s32 0, %s1953_s4 }
  0x2b   : >> { %v266_v14 = vrot.slane %v262_v5, 4  ;;  %v278_v17 = vrot.slane %v276_v7, 7  ;;  %v395_v18 = vshll.u32 %v1943_v2, 16  ;;  %v273_v20 = vor.u32 %v271_v63, %v270_v9  ;;  %v359_v23 = vld [vmem:[#allocation2 + $0x48] sm:$0x11]  ;;  %s2292_s5 = smov (!%p655_p4, %s660_s5), %s1953_s4  ;;  %p1482_p6 = scmp.lt.s32.totalorder %s1776_s25, 1 }
  0x2c   : >> { %v274_v21 = vrot.slane %v270_v9, 4  ;;  %v388_v25 = vrot.slane %v386_v11, 4  ;;  %v391_v26 = vrot.slane %v389_v12, 5  ;;  %v1961_v27 = vsel %vm1898_vm12, %v265_v13, %v344_v6  ;;  %v373_v31 = vld [vmem:[#allocation2 + $0x18] sm:$0x11]  ;;  %p1479_p5 = scmp.lt.s32.totalorder %s2292_s5, 0 }
  0x2d   : >> { %v348_v28 = vsel %vm1907_vm13, %v266_v14, %v347_v8  ;;  %v281_v29 = vor.u32 %v279_v10, %v278_v17  ;;  %v282_v30 = vrot.slane %v278_v17, 4  ;;  %346 = vst [vmem:[#allocation2 + $0x58] sm:$0xff] %v1961_v27  ;;  %v1969_v32 = vsel %vm1898_vm12, %v273_v20, %v350_v15  ;;  %v374_v34 = vld [vmem:[#allocation2 + $0x68] sm:$0x11]  ;;  %v545_v37 = vld [vmem:[#allocation2] sm:$0xee] }
  0x2e   : >> { %349 = vst [vmem:[#allocation2 + $0x10] sm:$0x11] %v348_v28  ;;  %v354_v33 = vsel %vm1907_vm13, %v274_v21, %v353_v16  ;;  %v392_v35 = vor.u32 %v391_v26, %v388_v25  ;;  %v397_v36 = vrot.slane %v395_v18, 5  ;;  %352 = vst [vmem:[#allocation2 + $0x98] sm:$0xff] %v1969_v32  ;;  %v400_v42 = vshrl.u32 %v1914_v41, 16  ;;  %s666_s6 = sadd.s32 3, %s2292_s5 }
  0x2f   : >> { %355 = vst [vmem:[#allocation2 + $0x60] sm:$0x11] %v354_v33  ;;  %v1976_v38 = vsel %vm1898_vm12, %v281_v29, %v356_v22  ;;  %v360_v39 = vsel %vm1907_vm13, %v282_v30, %v359_v23  ;;  %v403_v44 = vshll.u32 %v1914_v41, 16  ;;  %v409_v19 = vshll.u32 %v373_v31, 16  ;;  %v546_v47 = vld [vmem:[#allocation2 + $0x50] sm:$0xee]  ;;  %s2294_s6 = smov (!%p1479_p5, %s666_s6), %s2292_s5 }
  0x30   : >> { %358 = vst [vmem:[#allocation2 + $0x20] sm:$0xff] %v1976_v38  ;;  %361 = vst [vmem:[#allocation2 + $0x48] sm:$0x11] %v360_v39  ;;  %v393_v45 = vrot.slane %v392_v35, 4  ;;  %v414_v46 = vshrl.u32 %v1920_v43, 16  ;;  %v417_v24 = vshll.u32 %v1920_v43, 16 }
  0x31   : >> { %v402_v49 = vrot.slane %v400_v42, 4  ;;  %v405_v50 = vrot.slane %v403_v44, 5  ;;  %v423_v51 = vshll.u32 %v374_v34, 16  ;;  %v547_v52 = vld [vmem:[#allocation2 + $0x30] sm:$0xee]  ;;  %v1467_v53 = vrot.slane %v545_v37, 9 }
  0x32   : >> { %v398_v54 = vsel %vm1982_vm2, %v393_v45, %v397_v36  ;;  %v411_v55 = vrot.slane %v409_v19, 5  ;;  %v416_v56 = vrot.slane %v414_v46, 4  ;;  %v419_v57 = vrot.slane %v417_v24, 5  ;;  %v375_v9 = vld [vmem:[#allocation2 + $0x80] sm:$0x11]  ;;  %s1573_s7 = sshll.u32 %s2294_s6, 6 }
  0x33   : >> { %v406_v61 = vor.u32 %v405_v50, %v402_v49  ;;  %v425_v62 = vrot.slane %v423_v51, 5  ;;  %v535_v63 = vmax.bf16 %v398_v54, %v1935_v59  ;;  %v580_v4 = vrot.slane %v1943_v2, 5  ;;  %v548_v14 = vld [vmem:[#allocation2 + $0x78] sm:$0xee]  ;;  %v376_v22 = vld [vmem:[#allocation2 + $0x88] sm:$0x11] }
  0x34   : >> { %v420_v5 = vor.u32 %v419_v57, %v416_v56  ;;  %v1468_v6 = vrot.slane %v546_v47, 9  ;;  %v584_v7 = vrot.slane %v373_v31, 5  ;;  %v1469_v8 = vrot.slane %v547_v52, 9  ;;  %v377_v45 = vld [vmem:[#allocation2 + $0x40] sm:$0x11]  ;;  %s2037_s8 = scalar_lea.vmem [#allocation3], %s1573_s7 }
  0x35   : >> { %v407_v10 = vrot.slane %v406_v61, 4  ;;  %v581_v11 = vsel %vm2000_vm3, %v1467_v53, %v580_v4  ;;  %v588_v12 = vrot.slane %v374_v34, 5  ;;  %v428_v13 = vshrl.u32 %v1929_v48, 16  ;;  %v549_v34 = vld [vmem:[#allocation2 + $0x8] sm:$0xee]  ;;  %s2087_s11 = sadd.s32 (!%p1482_p6), 4294967295, %s1776_s25 }
  0x36   : >> { %v421_v59 = vrot.slane %v420_v5, 4  ;;  %v585_v2 = vsel %vm2000_vm3, %v1468_v6, %v584_v7  ;;  %v628_v15 = vmax.bf16 %v581_v11, %v535_v63  ;;  %v431_v16 = vshll.u32 %v1929_v48, 16  ;;  %v550_v52 = vld [vmem:[#allocation2 + $0x28] sm:$0xee]  ;;  %v378_v4 = vld [vmem:[#allocation2 + $0x10] sm:$0x11] }
  0x37   : >> { %v412_v17 = vsel %vm1982_vm2, %v407_v10, %v411_v55  ;;  %v589_v18 = vsel %vm2000_vm3, %v1469_v8, %v588_v12  ;;  %v430_v20 = vrot.slane %v428_v13, 4  ;;  %v437_v21 = vshll.u32 %v375_v9, 16  ;;  %s685_s17 = ssub.s32 (!%p1482_p6), 0, %s2087_s11  ;;  %s709_s26 = ssub.s32 (!%p1482_p6), 0, %s1776_s25 }
  0x38   : >> { %v426_v23 = vsel %vm1982_vm2, %v421_v59, %v425_v62  ;;  %v536_v25 = vmax.bf16 %v412_v17, %v1914_v41  ;;  %v433_v26 = vrot.slane %v431_v16, 5  ;;  %v1470_v28 = vrot.slane %v548_v14, 9  ;;  %s1484_s20 = smin.u32 (!%p1482_p6), %s2087_s11, %s685_s17  ;;  %s1489_s28 = smin.u32 (!%p1482_p6), %s1776_s25, %s709_s26 }
  0x39   : >> { %v537_v29 = vmax.bf16 %v426_v23, %v1920_v43  ;;  %v439_v30 = vrot.slane %v437_v21, 5  ;;  %v592_v31 = vrot.slane %v375_v9, 5  ;;  %v442_v33 = vshrl.u32 %v1939_v60, 16  ;;  %1742 = sdivrem.u32 (!%p1482_p6), %s1484_s20, 3  ;;  %p684_p7 = scmp.lt.s32.totalorder (!%p1482_p6), %s2087_s11, 0 }
  0x3a   : >> { %v629_v35 = vmax.bf16 %v585_v2, %v536_v25  ;;  %v434_v36 = vor.u32 %v433_v26, %v430_v20  ;;  %v445_v37 = vshll.u32 %v1939_v60, 16  ;;  %v451_v39 = vshll.u32 %v376_v22, 16  ;;  %v379_v20 = vld [vmem:[#allocation2 + $0x60] sm:$0x11]  ;;  %1744 = sdivrem.u32 (!%p1482_p6), %s1489_s28, 3  ;;  %p708_p8 = scmp.lt.s32.totalorder (!%p1482_p6), %s1776_s25, 0 }
  0x3b   : >> { %v630_v42 = vmax.bf16 %v589_v18, %v537_v29  ;;  %v593_v41 = vsel %vm2000_vm3, %v1470_v28, %v592_v31  ;;  %v444_v44 = vrot.slane %v442_v33, 4  ;;  %v1471_v24 = vrot.slane %v549_v34, 9  ;;  %v552_v31 = vld [vmem:[#allocation2 + $0x98] sm:$0xee] }
  0x3c   : >> { %v638_v19 = vmax.bf16 %v629_v35, %v628_v15  ;;  %v435_v46 = vrot.slane %v434_v36, 4  ;;  %v447_v43 = vrot.slane %v445_v37, 5  ;;  %v453_v47 = vrot.slane %v451_v39, 5 }
  0x3d   : >> { %v596_v49 = vrot.slane %v376_v22, 5  ;;  %v456_v50 = vshrl.u32 %v1948_v3, 16  ;;  %v459_v51 = vshll.u32 %v1948_v3, 16  ;;  %v465_v56 = vshll.u32 %v377_v45, 16 }
  0x3e   : >> { %v646_v53 = vmax.bf16 %v638_v19, %v630_v42  ;;  %v440_v54 = vsel %vm1982_vm2, %v435_v46, %v439_v30  ;;  %v448_v55 = vor.u32 %v447_v43, %v444_v44  ;;  %v639_v61 = vmax.bf16 %v630_v42, %v629_v35 }
  0x3f   : >> { %v538_v57 = vmax.bf16 %v440_v54, %v1929_v48  ;;  %v458_v62 = vrot.slane %v456_v50, 4  ;;  %v461_v63 = vrot.slane %v459_v51, 5  ;;  %v467_v6 = vrot.slane %v465_v56, 5  ;;  %v551_v48 = vld [vmem:[#allocation2 + $0x58] sm:$0xee]  ;;  %v371_v54 = vld [vmem:[#allocation2 + $0x70] sm:$0xff] }
  0x40   : >> { %671 = vst [vmem:[%s2037_s8] sm:$0xff] %v646_v53  ;;  %v449_v5 = vrot.slane %v448_v55, 4  ;;  %v1472_v7 = vrot.slane %v550_v52, 9  ;;  %v600_v8 = vrot.slane %v377_v45, 5  ;;  %v470_v11 = vshrl.u32 %v1961_v27, 16 }
  0x41   : >> { %v631_v9 = vmax.bf16 %v593_v41, %v538_v57  ;;  %v462_v10 = vor.u32 %v461_v63, %v458_v62  ;;  %v473_v12 = vshll.u32 %v1961_v27, 16  ;;  %v597_v14 = vsel %vm2000_vm3, %v1471_v24, %v596_v49  ;;  %v380_v41 = vld [vmem:[#allocation2 + $0x48] sm:$0x11]  ;;  %v553_v49 = vld [vmem:[#allocation2 + $0x20] sm:$0xee] }
  0x42   : >> { %v454_v13 = vsel %vm1982_vm2, %v449_v5, %v453_v47  ;;  %v601_v59 = vsel %vm2000_vm3, %v1472_v7, %v600_v8  ;;  %v479_v2 = vshll.u32 %v378_v4, 16  ;;  %v472_v21 = vrot.slane %v470_v11, 4  ;;  %v381_v62 = vld [vmem:[#allocation2 + $0x90] sm:$0x11]  ;;  %s1743_s13 = spop.drf (!%p1482_p6), %1742 }
  0x43   : >> { %v647_v15 = vmax.bf16 %v639_v61, %v631_v9  ;;  %v539_v16 = vmax.bf16 %v454_v13, %v1939_v60  ;;  %v640_v17 = vmax.bf16 %v631_v9, %v630_v42  ;;  %v463_v18 = vrot.slane %v462_v10, 4  ;;  %v554_v13 = vld [vmem:[#allocation2 + $0x70] sm:$0xee]  ;;  %s689_s14 = ssub.s32 (!%p1482_p6), 0, %s1743_s13  ;;  %s1745_s19 = spop.drf (!%p1482_p6), %1744 }
  0x44   : >> { %v475_v22 = vrot.slane %v473_v12, 5  ;;  %v481_v23 = vrot.slane %v479_v2, 5  ;;  %v1473_v25 = vrot.slane %v551_v48, 9  ;;  %v484_v29 = vshrl.u32 %v1969_v32, 16  ;;  %s713_s22 = ssub.s32 (!%p1482_p6), 0, %s1745_s19 }
  0x45   : >> { %672 = vst [vmem:[%s2037_s8 + $0x8] sm:$0xff] %v647_v15  ;;  %v632_v26 = vmax.bf16 %v597_v14, %v539_v16  ;;  %v468_v28 = vsel %vm1982_vm2, %v463_v18, %v467_v6  ;;  %v487_v30 = vshll.u32 %v1969_v32, 16  ;;  %v604_v34 = vrot.slane %v378_v4, 5 }
  0x46   : >> { %v540_v60 = vmax.bf16 %v468_v28, %v1948_v3  ;;  %v476_v33 = vor.u32 %v475_v22, %v472_v21  ;;  %v493_v35 = vshll.u32 %v379_v20, 16  ;;  %v486_v39 = vrot.slane %v484_v29, 4 }
  0x47   : >> { %v648_v36 = vmax.bf16 %v640_v17, %v632_v26  ;;  %v641_v37 = vmax.bf16 %v632_v26, %v631_v9  ;;  %v489_v42 = vrot.slane %v487_v30, 5  ;;  %v1474_v46 = vrot.slane %v552_v31, 9 }
  0x48   : >> { %v633_v44 = vmax.bf16 %v601_v59, %v540_v60  ;;  %v477_v45 = vrot.slane %v476_v33, 4  ;;  %v495_v19 = vrot.slane %v493_v35, 5  ;;  %v608_v24 = vrot.slane %v379_v20, 5 }
  0x49   : >> { %673 = vst [vmem:[%s2037_s8 + $0x10] sm:$0xff] %v648_v36  ;;  %v490_v43 = vor.u32 %v489_v42, %v486_v39  ;;  %v498_v47 = vshrl.u32 %v1976_v38, 16  ;;  %v501_v3 = vshll.u32 %v1976_v38, 16  ;;  %v605_v52 = vsel %vm2000_vm3, %v1473_v25, %v604_v34 }
  0x4a   : >> { %v649_v50 = vmax.bf16 %v641_v37, %v633_v44  ;;  %v482_v51 = vsel %vm1982_vm2, %v477_v45, %v481_v23  ;;  %v507_v53 = vshll.u32 %v380_v41, 16  ;;  %v642_v56 = vmax.bf16 %v633_v44, %v632_v26 }
  0x4b   : >> { %v541_v55 = vmax.bf16 %v482_v51, %v1961_v27  ;;  %v491_v57 = vrot.slane %v490_v43, 4  ;;  %v500_v61 = vrot.slane %v498_v47, 4  ;;  %v609_v63 = vsel %vm2000_vm3, %v1474_v46, %v608_v24 }
  0x4c   : >> { %674 = vst [vmem:[%s2037_s8 + $0x18] sm:$0xff] %v649_v50  ;;  %v503_v4 = vrot.slane %v501_v3, 5  ;;  %v509_v5 = vrot.slane %v507_v53, 5  ;;  %v1475_v6 = vrot.slane %v553_v49, 9  ;;  %v512_v9 = vshrl.u32 %v371_v54, 16 }
  0x4d   : >> { %v634_v7 = vmax.bf16 %v605_v52, %v541_v55  ;;  %v496_v8 = vsel %vm1982_vm2, %v491_v57, %v495_v19  ;;  %v515_v10 = vshll.u32 %v371_v54, 16  ;;  %v612_v12 = vrot.slane %v380_v41, 5 }
  0x4e   : >> { %v542_v27 = vmax.bf16 %v496_v8, %v1969_v32  ;;  %v504_v11 = vor.u32 %v503_v4, %v500_v61  ;;  %v521_v48 = vshll.u32 %v381_v62, 16  ;;  %v514_v2 = vrot.slane %v512_v9, 4 }
  0x4f   : >> { %v650_v14 = vmax.bf16 %v642_v56, %v634_v7  ;;  %v643_v59 = vmax.bf16 %v634_v7, %v633_v44  ;;  %v517_v15 = vrot.slane %v515_v10, 5  ;;  %v1476_v21 = vrot.slane %v554_v13, 9 }
  0x50   : >> { %v635_v16 = vmax.bf16 %v609_v63, %v542_v27  ;;  %v505_v17 = vrot.slane %v504_v11, 4  ;;  %v523_v20 = vrot.slane %v521_v48, 5  ;;  %v616_v22 = vrot.slane %v381_v62, 5 }
  0x51   : >> { %675 = vst [vmem:[%s2037_s8 + $0x20] sm:$0xff] %v650_v14  ;;  %v518_v18 = vor.u32 %v517_v15, %v514_v2  ;;  %v613_v25 = vsel %vm2000_vm3, %v1475_v6, %v612_v12 }
  0x52   : >> { %v651_v23 = vmax.bf16 %v643_v59, %v635_v16  ;;  %v510_v32 = vsel %vm1982_vm2, %v505_v17, %v509_v5  ;;  %v644_v28 = vmax.bf16 %v635_v16, %v634_v7  ;;  %v617_v60 = vsel %vm2000_vm3, %v1476_v21, %v616_v22 }
  0x53   : >> { %v543_v26 = vmax.bf16 %v510_v32, %v1976_v38  ;;  %v519_v29 = vrot.slane %v518_v18, 4 }
  0x54   : >> { %676 = vst [vmem:[%s2037_s8 + $0x28] sm:$0xff] %v651_v23 }
  0x55   : >> { %v636_v30 = vmax.bf16 %v613_v25, %v543_v26  ;;  %v524_v31 = vsel %vm1982_vm2, %v519_v29, %v523_v20 }
  0x56   : >> { %v544_v33 = vmax.bf16 %v524_v31, %v371_v54 }
  0x57   : >> { %v652_v34 = vmax.bf16 %v644_v28, %v636_v30  ;;  %v645_v35 = vmax.bf16 %v636_v30, %v635_v16 }
  0x58   : >> { %v637_v36 = vmax.bf16 %v617_v60, %v544_v33  ;;  %682 = sbr.rel (%p1482_p6) target bundleno = 342 (0x156), region = 43 }
  0x59   : >> { %677 = vst [vmem:[%s2037_s8 + $0x30] sm:$0xff] %v652_v34 }
  0x5a   : >> { %v653_v37 = vmax.bf16 %v645_v35, %v637_v36 }
  0x5c   : >> { %678 = vst [vmem:[%s2037_s8 + $0x38] sm:$0xff] %v653_v37 }
  0x5d   : >> { %v1726_v38 = vld [vmem:[%s2268_s1 + $0x78] sm:$0xff]   ;;  %v1728_v58 = vld [vmem:[%s2268_s1 + $0x70] sm:$0xff]   ;;  %v1730_v42 = vld [vmem:[%s2268_s1 + $0x68] sm:$0xff]   ;;  %s2296_s14 = smov (!%p684_p7, %s689_s14), %s1743_s13  ;;  %s2300_s22 = smov (!%p708_p8, %s713_s22), %s1745_s19  ;;  %vm1038_vm4 = vcmask 519168  }
  0x5e   : >> { %v1727_v40 = vld [vmem:[%s2268_s1 + $0x38] sm:$0xff]   ;;  %1593 = vmatprep.subr.bf16.mxu0 %v1726_v38  ;;  %1673 = vmatprep.subr.bf16.mxu1 %v1726_v38  ;;  %v1729_v39 = vld [vmem:[%s2268_s1 + $0x30] sm:$0xff]   ;;  %v1731_v41 = vld [vmem:[%s2268_s1 + $0x28] sm:$0xff]   ;;  %p1486_p9 = scmp.lt.s32.totalorder %s2296_s14, 0  ;;  %s695_s20 = sadd.s32 3, %s2296_s14 }
  0x5f   : >> { %1594 = vmatpush3.bf16.msra.mxu0 %v1727_v40  ;;  %1681 = vmatpush3.bf16.msra.mxu1 %v1727_v40  ;;  %v1732_v44 = vld [vmem:[%s2268_s1 + $0x60] sm:$0xff]   ;;  %v1734_v19 = vld [vmem:[%s2268_s1 + $0x58] sm:$0xff]   ;;  %v1736_v43 = vld [vmem:[%s2268_s1 + $0x50] sm:$0xff]   ;;  %p1491_p10 = scmp.lt.s32.totalorder %s2300_s22, 0  ;;  %s719_s5 = sadd.s32 3, %s2300_s22 }
  0x60   : >> { %1595 = vmatprep.subr.bf16.mxu0 %v1728_v58  ;;  %1674 = vmatprep.subr.bf16.mxu1 %v1728_v58  ;;  %v1733_v45 = vld [vmem:[%s2268_s1 + $0x20] sm:$0xff]   ;;  %v1735_v46 = vld [vmem:[%s2268_s1 + $0x18] sm:$0xff]   ;;  %v1737_v24 = vld [vmem:[%s2268_s1 + $0x10] sm:$0xff]   ;;  %s2298_s20 = smov (!%p1486_p9, %s695_s20), %s2296_s14  ;;  %v789_v58 = vlaneseq }
  0x61   : >> { %v1738_v47 = vld [vmem:[%s2268_s1 + $0x48] sm:$0xff]   ;;  %s1574_s25 = sshll.u32 %s2298_s20, 6  ;;  %v1740_v49 = vld [vmem:[%s2268_s1 + $0x40] sm:$0xff]   ;;  %s2302_s5 = smov (!%p1491_p10, %s719_s5), %s2300_s22  ;;  %v742_v4 = vld [vmem:[%s2037_s8 + $0x10] sm:$0xff] }
  0x62   : >> { %v1739_v3 = vld [vmem:[%s2268_s1 + $0x8] sm:$0xff]   ;;  %v1741_v50 = vld [vmem:[%s2268_s1] sm:$0xff]   ;;  %s2140_s13 = scalar_lea.vmem [#allocation3], %s1574_s25  ;;  %s1575_s14 = sshll.u32 %s2302_s5, 6  ;;  %v743_v5 = vld [vmem:[%s2037_s8 + $0x18] sm:$0xff] }
  0x63   : >> { %1596 = vmatpush3.bf16.msra.mxu0 %v1729_v39  ;;  %1682 = vmatpush3.bf16.msra.mxu1 %v1729_v39  ;;  %v700_v51 = vld [vmem:[%s2140_s13] sm:$0xff]  ;;  %v701_v52 = vld [vmem:[%s2140_s13 + $0x8] sm:$0xff]  ;;  %v702_v62 = vld [vmem:[%s2140_s13 + $0x10] sm:$0xff]  ;;  %s723_s15 = scalar_lea.vmem [#allocation3], %s1575_s14  ;;  %v790_v39 = vshrl.u32 %v789_v58, 7 }
  0x64   : >> { %1597 = vmatprep.subr.bf16.mxu0 %v1730_v42  ;;  %1675 = vmatprep.subr.bf16.mxu1 %v1730_v42  ;;  %v740_v53 = vld [vmem:[%s2037_s8] sm:$0xff]  ;;  %v741_v54 = vld [vmem:[%s2037_s8 + $0x8] sm:$0xff]  ;;  %v703_v63 = vld [vmem:[%s2140_s13 + $0x18] sm:$0xff] }
  0x65   : >> { %v704_v55 = vld [vmem:[%s2140_s13 + $0x20] sm:$0xff]  ;;  %v705_v56 = vld [vmem:[%s2140_s13 + $0x28] sm:$0xff]  ;;  %v706_v6 = vld [vmem:[%s2140_s13 + $0x30] sm:$0xff]  ;;  %v791_v42 = vsub.s32 0, %v790_v39 }
  0x66   : >> { %v744_v57 = vld [vmem:[%s2037_s8 + $0x20] sm:$0xff]  ;;  %v745_v61 = vld [vmem:[%s2037_s8 + $0x28] sm:$0xff]  ;;  %v726_v48 = vld [vmem:[%s723_s15 + $0x10] sm:$0xff] }
  0x67   : >> { %1598 = vmatpush3.bf16.msra.mxu0 %v1731_v41  ;;  %1683 = vmatpush3.bf16.msra.mxu1 %v1731_v41  ;;  %v724_v7 = vld [vmem:[%s723_s15] sm:$0xff]  ;;  %v725_v8 = vld [vmem:[%s723_s15 + $0x8] sm:$0xff]  ;;  %v727_v13 = vld [vmem:[%s723_s15 + $0x18] sm:$0xff]  ;;  %v734_v59 = vmax.bf16 %v726_v48, %v702_v62 }
  0x68   : >> { %1599 = vmatprep.subr.bf16.mxu0 %v1732_v44  ;;  %1676 = vmatprep.subr.bf16.mxu1 %v1732_v44  ;;  %v728_v9 = vld [vmem:[%s723_s15 + $0x20] sm:$0xff]  ;;  %v732_v10 = vmax.bf16 %v724_v7, %v700_v51  ;;  %v733_v27 = vmax.bf16 %v725_v8, %v701_v52  ;;  %v729_v11 = vld [vmem:[%s723_s15 + $0x28] sm:$0xff]  ;;  %v735_v2 = vmax.bf16 %v727_v13, %v703_v63  ;;  %v707_v15 = vld [vmem:[%s2140_s13 + $0x38] sm:$0xff] }
  0x69   : >> { %v736_v12 = vmax.bf16 %v728_v9, %v704_v55  ;;  %v737_v14 = vmax.bf16 %v729_v11, %v705_v56  ;;  %v730_v16 = vld [vmem:[%s723_s15 + $0x30] sm:$0xff]  ;;  %v731_v17 = vld [vmem:[%s723_s15 + $0x38] sm:$0xff]  ;;  %v750_v32 = vmax.bf16 %v742_v4, %v734_v59 }
  0x6a   : >> { %v748_v18 = vmax.bf16 %v740_v53, %v732_v10  ;;  %v749_v20 = vmax.bf16 %v741_v54, %v733_v27  ;;  %v746_v22 = vld [vmem:[%s2037_s8 + $0x30] sm:$0xff]  ;;  %v751_v25 = vmax.bf16 %v743_v5, %v735_v2  ;;  %v738_v26 = vmax.bf16 %v730_v16, %v706_v6  ;;  %v747_v28 = vld [vmem:[%s2037_s8 + $0x38] sm:$0xff]  ;;  %s1584_s8 = sshll.u32 %s2087_s11, 5 }
  0x6b   : >> { %1600 = vmatpush3.bf16.msra.mxu0 %v1733_v45  ;;  %1684 = vmatpush3.bf16.msra.mxu1 %v1733_v45  ;;  %v752_v21 = vmax.bf16 %v744_v57, %v736_v12  ;;  %v753_v23 = vmax.bf16 %v745_v61, %v737_v14  ;;  %v739_v30 = vmax.bf16 %v731_v17, %v707_v15  ;;  %s2161_s16 = scalar_lea.vmem %s1858_s24, %s1584_s8 }
  0x6c   : >> { %1601 = vmatprep.subr.bf16.mxu0 %v1734_v19  ;;  %1677 = vmatprep.subr.bf16.mxu1 %v1734_v19  ;;  %v1495_v29 = vcombine.high %v748_v18, %v749_v20  ;;  %v1494_v60 = vcombine.low %v748_v18, %v749_v20  ;;  %v754_v33 = vmax.bf16 %v746_v22, %v738_v26 }
  0x6d   : >> { %v1499_v31 = vcombine.high %v752_v21, %v753_v23  ;;  %v1498_v34 = vcombine.low %v752_v21, %v753_v23  ;;  %v1497_v35 = vcombine.high %v750_v32, %v751_v25  ;;  %v755_v36 = vmax.bf16 %v747_v28, %v739_v30 }
  0x6e   : >> { %962 = vmatprep.mubr.bf16.mxu0 %v1495_v29  ;;  %v1496_v38 = vcombine.low %v750_v32, %v751_v25  ;;  %v792_v45 = vrot.slane %v1816_v0, %v791_v42 }
  0x6f   : >> { %1602 = vmatpush3.bf16.msra.mxu0 %v1735_v46  ;;  %1685 = vmatpush3.bf16.msra.mxu1 %v1735_v46  ;;  %v1501_v37 = vcombine.high %v754_v33, %v755_v36  ;;  %v1500_v40 = vcombine.low %v754_v33, %v755_v36 }
  0x70   : >> { %1603 = vmatprep.subr.bf16.mxu0 %v1736_v43  ;;  %1678 = vmatprep.subr.bf16.mxu1 %v1736_v43 }
  0x71   : >> { %978 = vmatprep.mubr.bf16.mxu1 %v1499_v31 }
  0x73   : >> { %1604 = vmatpush3.bf16.msra.mxu0 %v1737_v24  ;;  %1686 = vmatpush3.bf16.msra.mxu1 %v1737_v24 }
  0x74   : >> { %1605 = vmatprep.subr.bf16.mxu0 %v1738_v47  ;;  %1679 = vmatprep.subr.bf16.mxu1 %v1738_v47 }
  0x77   : >> { %1606 = vmatpush3.bf16.msra.mxu0 %v1739_v3  ;;  %1687 = vmatpush3.bf16.msra.mxu1 %v1739_v3 }
  0x78   : >> { %1607 = vmatprep.subr.bf16.mxu0 %v1740_v49  ;;  %1680 = vmatprep.subr.bf16.mxu1 %v1740_v49 }
  0x7b   : >> { %1608 = vmatpush3.bf16.msra.mxu0 %v1741_v50  ;;  %1688 = vmatpush3.bf16.msra.mxu1 %v1741_v50 }
  0x7e   : >> { %963 = vmatmul.mubr.bf16.vlgmr.msra.gmra.mxu0 %v1494_v60  ;;  %979 = vmatmul.mubr.bf16.vlgmr.msra.gmra.mxu1 %v1498_v34 }
  0x7f   : >> { %970 = vmatprep.mubr.bf16.mxu0 %v1497_v35  ;;  %986 = vmatprep.mubr.bf16.mxu1 %v1501_v37 }
  0x86   : >> { %971 = vmatmul.mubr.bf16.gmra.mxu0 %v1496_v38  ;;  %987 = vmatmul.mubr.bf16.gmra.mxu1 %v1500_v40 }
 0x13e   : >> { %v1609_v41 = vpop.f32.mrf.mxu0  ;;  %v1621_v44 = vpop.f32.mrf.mxu1 }
 0x140   : >> { %v1610_v19 = vpop.f32.mrf.mxu0  ;;  %v1622_v43 = vpop.f32.mrf.mxu1 }
 0x141   : >> { %v1611_v46 = vadd.f32 %v1610_v19, %v1609_v41  ;;  %v1623_v24 = vadd.f32 %v1622_v43, %v1621_v44 }
 0x142   : >> { %v1612_v47 = vpop.f32.mrf.mxu0  ;;  %v1624_v49 = vpop.f32.mrf.mxu1 }
 0x143   : >> { %v965_v3 = vadd.f32 %v1611_v46, %v792_v45  ;;  %v981_v50 = vadd.f32 %v1623_v24, %v792_v45 }
 0x144   : >> { %v1613_v51 = vpop.f32.mrf.mxu0  ;;  %v1625_v54 = vpop.f32.mrf.mxu1 }
 0x145   : >> { %v995_v52 = vmax.f32 %v965_v3, 0.0  ;;  %v1614_v53 = vadd.f32 %v1613_v51, %v1612_v47  ;;  %v999_v55 = vmax.f32 %v981_v50, 0.0  ;;  %v1626_v56 = vadd.f32 %v1625_v54, %v1624_v49 }
 0x146   : >> { %v1615_v57 = vpop.f32.mrf.mxu0  ;;  %v1627_v63 = vpop.f32.mrf.mxu1 }
 0x147   : >> { %v1576_v61 = vpack.c.bf16 %v995_v52, %v995_v52  ;;  %v968_v62 = vadd.f32 %v1614_v53, %v792_v45  ;;  %v1580_v4 = vpack.c.bf16 %v999_v55, %v999_v55  ;;  %v984_v5 = vadd.f32 %v1626_v56, %v792_v45 }
 0x148   : >> { %v1616_v6 = vpop.f32.mrf.mxu0  ;;  %v1628_v9 = vpop.f32.mrf.mxu1 }
 0x149   : >> { %1039 = vst.msk [vmem:[%s2161_s16] sm:$0xf] %vm1038_vm4, %v1576_v61  ;;  %v996_v7 = vmax.f32 %v968_v62, 0.0  ;;  %v1617_v8 = vadd.f32 %v1616_v6, %v1615_v57  ;;  %1043 = vst.msk [vmem:[%s2161_s16 + $0x10] sm:$0xf] %vm1038_vm4, %v1580_v4  ;;  %v1000_v10 = vmax.f32 %v984_v5, 0.0  ;;  %v1629_v27 = vadd.f32 %v1628_v9, %v1627_v63 }
 0x14a   : >> { %v1618_v11 = vpop.f32.mrf.mxu0  ;;  %v1630_v13 = vpop.f32.mrf.mxu1 }
 0x14b   : >> { %v1577_v12 = vpack.c.bf16 %v996_v7, %v996_v7  ;;  %v973_v48 = vadd.f32 %v1617_v8, %v792_v45  ;;  %v1581_v14 = vpack.c.bf16 %v1000_v10, %v1000_v10  ;;  %v989_v59 = vadd.f32 %v1629_v27, %v792_v45 }
 0x14c   : >> { %v1619_v2 = vpop.f32.mrf.mxu0  ;;  %v1631_v17 = vpop.f32.mrf.mxu1 }
 0x14d   : >> { %1040 = vst.msk [vmem:[%s2161_s16 + $0x4] sm:$0xf] %vm1038_vm4, %v1577_v12  ;;  %v997_v15 = vmax.f32 %v973_v48, 0.0  ;;  %v1620_v16 = vadd.f32 %v1619_v2, %v1618_v11  ;;  %1044 = vst.msk [vmem:[%s2161_s16 + $0x14] sm:$0xf] %vm1038_vm4, %v1581_v14  ;;  %v1001_v18 = vmax.f32 %v989_v59, 0.0  ;;  %v1632_v20 = vadd.f32 %v1631_v17, %v1630_v13 }
 0x14f   : >> { %v1578_v21 = vpack.c.bf16 %v997_v15, %v997_v15  ;;  %v976_v22 = vadd.f32 %v1620_v16, %v792_v45  ;;  %v1582_v23 = vpack.c.bf16 %v1001_v18, %v1001_v18  ;;  %v992_v32 = vadd.f32 %v1632_v20, %v792_v45 }
 0x151   : >> { %1041 = vst.msk [vmem:[%s2161_s16 + $0x8] sm:$0xf] %vm1038_vm4, %v1578_v21  ;;  %v998_v25 = vmax.f32 %v976_v22, 0.0  ;;  %1045 = vst.msk [vmem:[%s2161_s16 + $0x18] sm:$0xf] %vm1038_vm4, %v1582_v23  ;;  %v1002_v26 = vmax.f32 %v992_v32, 0.0 }
 0x153   : >> { %v1579_v28 = vpack.c.bf16 %v998_v25, %v998_v25  ;;  %v1583_v29 = vpack.c.bf16 %v1002_v26, %v1002_v26 }
 0x155   : >> { %1042 = vst.msk [vmem:[%s2161_s16 + $0xc] sm:$0xf] %vm1038_vm4, %v1579_v28  ;;  %1046 = vst.msk [vmem:[%s2161_s16 + $0x1c] sm:$0xf] %vm1038_vm4, %v1583_v29 }
 0x156 PF: >> { %p204_p11 = scmp.ge.s32.totalorder %s1871_s27, 4   ;;  %s2288_s25 = smov %s1871_s27 }
 0x157   : > { %v1746_v30 = vld [vmem:[%s2268_s1 + $0x78] sm:$0xff] (%p204_p11)   ;;  %1048 = vst [vmem:[#allocation3 + $0x80] sm:$0xff] (%p204_p11), %v1778_v1  ;;  %1049 = vst [vmem:[#allocation3 + $0x88] sm:$0xff] (%p204_p11), %v1778_v1  ;;  %v1748_v60 = vld [vmem:[%s2268_s1 + $0x70] sm:$0xff] (%p204_p11)   ;;  %v1130_v23 = vlaneseq (%p204_p11)  ;;  %vm1377_vm5 = vcmask (%p204_p11), 519168  }
 0x158   : > { %206 = sbr.rel (!%p204_p11) target bundleno = 26 (0x1a), region = 82  ;;  %1052 = vst [vmem:[#allocation3 + $0xa0] sm:$0xff] (%p204_p11), %v1778_v1  ;;  %1053 = vst [vmem:[#allocation3 + $0xa8] sm:$0xff] (%p204_p11), %v1778_v1  ;;  %v1747_v31 = vld [vmem:[%s2268_s1 + $0x38] sm:$0xff] (%p204_p11)   ;;  %1633 = vmatprep.subr.bf16.mxu0 (%p204_p11), %v1746_v30  ;;  %1689 = vmatprep.subr.bf16.mxu1 (%p204_p11), %v1746_v30  ;;  %v1749_v33 = vld [vmem:[%s2268_s1 + $0x30] sm:$0xff] (%p204_p11)  }
 0x159   : > { %1050 = vst [vmem:[#allocation3 + $0x90] sm:$0xff] (%p204_p11), %v1778_v1  ;;  %1051 = vst [vmem:[#allocation3 + $0x98] sm:$0xff] (%p204_p11), %v1778_v1  ;;  %1634 = vmatpush3.bf16.msra.mxu0 (%p204_p11), %v1747_v31  ;;  %1697 = vmatpush3.bf16.msra.mxu1 (%p204_p11), %v1747_v31  ;;  %v1750_v34 = vld [vmem:[%s2268_s1 + $0x68] sm:$0xff] (%p204_p11)   ;;  %v1752_v36 = vld [vmem:[%s2268_s1 + $0x60] sm:$0xff] (%p204_p11)   ;;  %v1131_v32 = vshrl.u32 (%p204_p11), %v1130_v23, 7 }
 0x15a   : > { %1054 = vst [vmem:[#allocation3 + $0xb0] sm:$0xff] (%p204_p11), %v1778_v1  ;;  %1055 = vst [vmem:[#allocation3 + $0xb8] sm:$0xff] (%p204_p11), %v1778_v1  ;;  %1635 = vmatprep.subr.bf16.mxu0 (%p204_p11), %v1748_v60  ;;  %1690 = vmatprep.subr.bf16.mxu1 (%p204_p11), %v1748_v60  ;;  %v1751_v35 = vld [vmem:[%s2268_s1 + $0x28] sm:$0xff] (%p204_p11)   ;;  %v1753_v37 = vld [vmem:[%s2268_s1 + $0x20] sm:$0xff] (%p204_p11)  }
 0x15b   : > { %v1754_v38 = vld [vmem:[%s2268_s1 + $0x58] sm:$0xff] (%p204_p11)   ;;  %v1756_v58 = vld [vmem:[%s2268_s1 + $0x50] sm:$0xff] (%p204_p11)   ;;  %v1758_v24 = vld [vmem:[%s2268_s1 + $0x48] sm:$0xff] (%p204_p11)   ;;  %v1132_v25 = vsub.s32 (%p204_p11), 0, %v1131_v32 }
 0x15c   : > { %v1755_v40 = vld [vmem:[%s2268_s1 + $0x18] sm:$0xff] (%p204_p11)   ;;  %v1056_v39 = vld [vmem:[#allocation3] sm:$0xff] (%p204_p11)  ;;  %v1057_v42 = vld [vmem:[#allocation3 + $0x8] sm:$0xff] (%p204_p11) }
 0x15d   : > { %1636 = vmatpush3.bf16.msra.mxu0 %v1749_v33  ;;  %1698 = vmatpush3.bf16.msra.mxu1 %v1749_v33  ;;  %v1065_v41 = vld [vmem:[#allocation3 + $0x40] sm:$0xff]  ;;  %v1757_v44 = vld [vmem:[%s2268_s1 + $0x10] sm:$0xff]   ;;  %v1066_v45 = vld [vmem:[#allocation3 + $0x48] sm:$0xff]  ;;  %v1133_v28 = vrot.slane %v1816_v0, %v1132_v25 }
 0x15e   : > { %1637 = vmatprep.subr.bf16.mxu0 %v1750_v34  ;;  %1691 = vmatprep.subr.bf16.mxu1 %v1750_v34  ;;  %v1073_v19 = vmax.bf16 %v1065_v41, %v1056_v39  ;;  %v1060_v46 = vld [vmem:[#allocation3 + $0x20] sm:$0xff]  ;;  %v1061_v43 = vld [vmem:[#allocation3 + $0x28] sm:$0xff]  ;;  %v1074_v47 = vmax.bf16 %v1066_v45, %v1057_v42  ;;  %v1058_v50 = vld [vmem:[#allocation3 + $0x10] sm:$0xff] }
 0x15f   : > { %v1069_v3 = vld [vmem:[#allocation3 + $0x60] sm:$0xff]  ;;  %v1070_v49 = vld [vmem:[#allocation3 + $0x68] sm:$0xff]  ;;  %v1059_v54 = vld [vmem:[#allocation3 + $0x18] sm:$0xff] }
 0x160   : > { %v1089_v51 = vmax.bf16 %v1778_v1, %v1073_v19  ;;  %v1077_v52 = vmax.bf16 %v1069_v3, %v1060_v46  ;;  %v1078_v53 = vmax.bf16 %v1070_v49, %v1061_v43  ;;  %v1067_v55 = vld [vmem:[#allocation3 + $0x50] sm:$0xff]  ;;  %v1068_v56 = vld [vmem:[#allocation3 + $0x58] sm:$0xff]  ;;  %v1090_v57 = vmax.bf16 %v1778_v1, %v1074_v47  ;;  %v1759_v10 = vld [vmem:[%s2268_s1 + $0x8] sm:$0xff]  }
 0x161   : > { %1638 = vmatpush3.bf16.msra.mxu0 %v1751_v35  ;;  %1699 = vmatpush3.bf16.msra.mxu1 %v1751_v35  ;;  %v1062_v61 = vld [vmem:[#allocation3 + $0x30] sm:$0xff]  ;;  %v1063_v62 = vld [vmem:[#allocation3 + $0x38] sm:$0xff]  ;;  %v1075_v8 = vmax.bf16 %v1067_v55, %v1058_v50  ;;  %v1076_v9 = vmax.bf16 %v1068_v56, %v1059_v54  ;;  %v1760_v48 = vld [vmem:[%s2268_s1 + $0x40] sm:$0xff]  }
 0x162   : > { %1639 = vmatprep.subr.bf16.mxu0 %v1752_v36  ;;  %1692 = vmatprep.subr.bf16.mxu1 %v1752_v36  ;;  %v1071_v63 = vld [vmem:[#allocation3 + $0x70] sm:$0xff]  ;;  %v1093_v4 = vmax.bf16 %v1778_v1, %v1077_v52  ;;  %v1094_v5 = vmax.bf16 %v1778_v1, %v1078_v53  ;;  %v1072_v6 = vld [vmem:[#allocation3 + $0x78] sm:$0xff]  ;;  %v1529_v7 = vcombine.high %v1089_v51, %v1090_v57  ;;  %v1761_v14 = vld [vmem:[%s2268_s1] sm:$0xff]  }
 0x163   : > { %v1079_v11 = vmax.bf16 %v1071_v63, %v1062_v61  ;;  %v1080_v12 = vmax.bf16 %v1072_v6, %v1063_v62  ;;  %v1091_v13 = vmax.bf16 %v1778_v1, %v1075_v8  ;;  %v1092_v59 = vmax.bf16 %v1778_v1, %v1076_v9 }
 0x164   : > { %v1533_v27 = vcombine.high %v1093_v4, %v1094_v5  ;;  %1303 = vmatprep.mubr.bf16.mxu0 %v1529_v7  ;;  %v1528_v16 = vcombine.low %v1089_v51, %v1090_v57  ;;  %v1532_v17 = vcombine.low %v1093_v4, %v1094_v5 }
 0x165   : > { %1640 = vmatpush3.bf16.msra.mxu0 %v1753_v37  ;;  %1700 = vmatpush3.bf16.msra.mxu1 %v1753_v37  ;;  %v1095_v2 = vmax.bf16 %v1778_v1, %v1079_v11  ;;  %v1096_v15 = vmax.bf16 %v1778_v1, %v1080_v12  ;;  %v1531_v18 = vcombine.high %v1091_v13, %v1092_v59 }
 0x166   : > { %1641 = vmatprep.subr.bf16.mxu0 %v1754_v38  ;;  %1693 = vmatprep.subr.bf16.mxu1 %v1754_v38  ;;  %v1530_v21 = vcombine.low %v1091_v13, %v1092_v59 }
 0x167   : > { %1319 = vmatprep.mubr.bf16.mxu1 %v1533_v27  ;;  %v1535_v20 = vcombine.high %v1095_v2, %v1096_v15  ;;  %v1534_v22 = vcombine.low %v1095_v2, %v1096_v15 }
 0x169   : > { %1642 = vmatpush3.bf16.msra.mxu0 %v1755_v40  ;;  %1701 = vmatpush3.bf16.msra.mxu1 %v1755_v40 }
 0x16a   : > { %1643 = vmatprep.subr.bf16.mxu0 %v1756_v58  ;;  %1694 = vmatprep.subr.bf16.mxu1 %v1756_v58 }
 0x16d   : > { %1644 = vmatpush3.bf16.msra.mxu0 %v1757_v44  ;;  %1702 = vmatpush3.bf16.msra.mxu1 %v1757_v44 }
 0x16e   : > { %1645 = vmatprep.subr.bf16.mxu0 %v1758_v24  ;;  %1695 = vmatprep.subr.bf16.mxu1 %v1758_v24 }
 0x171   : > { %1646 = vmatpush3.bf16.msra.mxu0 %v1759_v10  ;;  %1703 = vmatpush3.bf16.msra.mxu1 %v1759_v10 }
 0x172   : > { %1647 = vmatprep.subr.bf16.mxu0 %v1760_v48  ;;  %1696 = vmatprep.subr.bf16.mxu1 %v1760_v48 }
 0x175   : > { %1648 = vmatpush3.bf16.msra.mxu0 %v1761_v14  ;;  %1704 = vmatpush3.bf16.msra.mxu1 %v1761_v14 }
 0x178   : > { %1304 = vmatmul.mubr.bf16.vlgmr.msra.gmra.mxu0 %v1528_v16  ;;  %1320 = vmatmul.mubr.bf16.vlgmr.msra.gmra.mxu1 %v1532_v17 }
 0x179   : > { %1311 = vmatprep.mubr.bf16.mxu0 %v1531_v18  ;;  %1327 = vmatprep.mubr.bf16.mxu1 %v1535_v20 }
 0x180   : > { %1312 = vmatmul.mubr.bf16.gmra.mxu0 %v1530_v21  ;;  %1328 = vmatmul.mubr.bf16.gmra.mxu1 %v1534_v22 }
 0x238   : > { %v1649_v1 = vpop.f32.mrf.mxu0  ;;  %v1661_v26 = vpop.f32.mrf.mxu1 }
 0x23a   : > { %v1650_v29 = vpop.f32.mrf.mxu0  ;;  %v1662_v30 = vpop.f32.mrf.mxu1 }
 0x23b   : > { %v1651_v31 = vadd.f32 %v1650_v29, %v1649_v1  ;;  %v1663_v60 = vadd.f32 %v1662_v30, %v1661_v26 }
 0x23c   : > { %v1652_v33 = vpop.f32.mrf.mxu0  ;;  %v1664_v34 = vpop.f32.mrf.mxu1 }
 0x23d   : > { %v1306_v35 = vadd.f32 %v1651_v31, %v1133_v28  ;;  %v1322_v36 = vadd.f32 %v1663_v60, %v1133_v28 }
 0x23e   : > { %v1653_v37 = vpop.f32.mrf.mxu0  ;;  %v1665_v38 = vpop.f32.mrf.mxu1 }
 0x23f   : > { %v1336_v40 = vmax.f32 %v1306_v35, 0.0  ;;  %v1340_v58 = vmax.f32 %v1322_v36, 0.0  ;;  %v1654_v39 = vadd.f32 %v1653_v37, %v1652_v33  ;;  %v1666_v42 = vadd.f32 %v1665_v38, %v1664_v34 }
 0x240   : > { %v1655_v41 = vpop.f32.mrf.mxu0  ;;  %v1667_v44 = vpop.f32.mrf.mxu1 }
 0x241   : > { %v1585_v0 = vpack.c.bf16 %v1336_v40, %v1336_v40  ;;  %v1589_v45 = vpack.c.bf16 %v1340_v58, %v1340_v58  ;;  %v1309_v19 = vadd.f32 %v1654_v39, %v1133_v28  ;;  %v1325_v46 = vadd.f32 %v1666_v42, %v1133_v28 }
 0x242   : > { %v1656_v43 = vpop.f32.mrf.mxu0  ;;  %v1668_v24 = vpop.f32.mrf.mxu1 }
 0x243   : > { %1560 = vst.msk [vmem:[%s1858_s24 + $0x60] sm:$0xf] %vm1377_vm5, %v1585_v0  ;;  %1564 = vst.msk [vmem:[%s1858_s24 + $0x70] sm:$0xf] %vm1377_vm5, %v1589_v45  ;;  %v1337_v47 = vmax.f32 %v1309_v19, 0.0  ;;  %v1341_v3 = vmax.f32 %v1325_v46, 0.0  ;;  %v1657_v49 = vadd.f32 %v1656_v43, %v1655_v41  ;;  %v1669_v50 = vadd.f32 %v1668_v24, %v1667_v44 }
 0x244   : > { %v1658_v51 = vpop.f32.mrf.mxu0  ;;  %v1670_v52 = vpop.f32.mrf.mxu1 }
 0x245   : > { %v1586_v53 = vpack.c.bf16 %v1337_v47, %v1337_v47  ;;  %v1590_v54 = vpack.c.bf16 %v1341_v3, %v1341_v3  ;;  %v1314_v55 = vadd.f32 %v1657_v49, %v1133_v28  ;;  %v1330_v56 = vadd.f32 %v1669_v50, %v1133_v28 }
 0x246   : > { %v1659_v57 = vpop.f32.mrf.mxu0  ;;  %v1671_v61 = vpop.f32.mrf.mxu1 }
 0x247   : > { %1561 = vst.msk [vmem:[%s1858_s24 + $0x64] sm:$0xf] %vm1377_vm5, %v1586_v53  ;;  %1565 = vst.msk [vmem:[%s1858_s24 + $0x74] sm:$0xf] %vm1377_vm5, %v1590_v54  ;;  %v1338_v62 = vmax.f32 %v1314_v55, 0.0  ;;  %v1342_v63 = vmax.f32 %v1330_v56, 0.0  ;;  %v1660_v4 = vadd.f32 %v1659_v57, %v1658_v51  ;;  %v1672_v5 = vadd.f32 %v1671_v61, %v1670_v52 }
 0x249   : > { %v1587_v6 = vpack.c.bf16 %v1338_v62, %v1338_v62  ;;  %v1591_v7 = vpack.c.bf16 %v1342_v63, %v1342_v63  ;;  %v1317_v8 = vadd.f32 %v1660_v4, %v1133_v28  ;;  %v1333_v9 = vadd.f32 %v1672_v5, %v1133_v28 }
 0x24b   : > { %1562 = vst.msk [vmem:[%s1858_s24 + $0x68] sm:$0xf] %vm1377_vm5, %v1587_v6  ;;  %1566 = vst.msk [vmem:[%s1858_s24 + $0x78] sm:$0xf] %vm1377_vm5, %v1591_v7  ;;  %v1339_v10 = vmax.f32 %v1317_v8, 0.0  ;;  %v1343_v27 = vmax.f32 %v1333_v9, 0.0 }
 0x24d   : > { %v1588_v11 = vpack.c.bf16 %v1339_v10, %v1339_v10  ;;  %v1592_v12 = vpack.c.bf16 %v1343_v27, %v1343_v27 }
 0x24f   : > { %1563 = vst.msk [vmem:[%s1858_s24 + $0x6c] sm:$0xf] %vm1377_vm5, %v1588_v11  ;;  %1567 = vst.msk [vmem:[%s1858_s24 + $0x7c] sm:$0xf] %vm1377_vm5, %v1592_v12 }
 0x250 PF: > { %s13_s12 = sadd.s32 1, %s1772_s12  }
 0x251   : > { %p10_p12 = scmp.ge.s32.totalorder %s13_s12, 4  }
 0x253   :  { %12 = sbr.rel (!%p10_p12) target bundleno = 1 (0x1), region = 93 }

// kernel: _lambda_.4
= control target key start
LH: loop header
LB: loop body
LE: loop exit
PB: predicated region body
PF: predicated region fallthrough
CT: control target
= control target key end

     0   :  { %v2874_v0 = vmov 0   ;;  %vm2276_vm0 = vcmask 257024   ;;  %s3913_s1 = inlined_call_operand.vmem [shape: bf16[256,288], index: 1, kind: input, shape index: {}]   ;;  %s3914_s0 = inlined_call_operand.vmem [shape: bf16[512,256], index: 0, kind: input, shape index: {}]   ;;  %s3915_s2 = inlined_call_operand.vmem [shape: f32[1,288], index: 2, kind: input, shape index: {}]   ;;  %s3916_s4 = inlined_call_operand.vmem [shape: bf16[512,32], index: 4, kind: output, shape index: {1}]   ;;  %s3917_s3 = inlined_call_operand.vmem [shape: bf16[512,256], index: 3, kind: output, shape index: {0}]  }
   0x1   :  { %1091 = vmatprep.subr.bf16.mxu1 %v2874_v0  ;;  %v2718_v1 = vld [vmem:[%s3913_s1 + $0xac] ss:$12 sps:$4 sm:$0xff]   ;;  %v2720_v2 = vld [vmem:[%s3913_s1 + $0xb0] ss:$12 sps:$4 sm:$0xff]   ;;  %v2721_v3 = vld [vmem:[%s3913_s1 + $0xa8] ss:$12 sps:$4 sm:$0xff]  }
   0x2   :  { %738 = vmatprep.subr.bf16.mxu0 %v2718_v1  ;;  %1092 = vmatpush1.bf16.msra.mxu1 %v2720_v2  ;;  %v2722_v4 = vld [vmem:[%s3913_s1 + $0x94] ss:$12 sps:$4 sm:$0xff]   ;;  %v2724_v5 = vld [vmem:[%s3913_s1 + $0x98] ss:$12 sps:$4 sm:$0xff]   ;;  %v2725_v6 = vld [vmem:[%s3913_s1 + $0x90] ss:$12 sps:$4 sm:$0xff]  }
   0x3   :  { %739 = vmatpush1.bf16.msra.mxu0 %v2721_v3  ;;  %1093 = vmatprep.subr.bf16.mxu1 %v2874_v0  ;;  %v2726_v7 = vld [vmem:[%s3913_s1 + $0x7c] ss:$12 sps:$4 sm:$0xff]   ;;  %v2728_v8 = vld [vmem:[%s3913_s1 + $0x80] ss:$12 sps:$4 sm:$0xff]   ;;  %v2729_v9 = vld [vmem:[%s3913_s1 + $0x78] ss:$12 sps:$4 sm:$0xff]  }
   0x4   :  { %740 = vmatprep.subr.bf16.mxu0 %v2722_v4  ;;  %v2730_v10 = vld [vmem:[%s3913_s1 + $0x64] ss:$12 sps:$4 sm:$0xff]   ;;  %v2732_v11 = vld [vmem:[%s3913_s1 + $0x68] ss:$12 sps:$4 sm:$0xff]   ;;  %v2733_v12 = vld [vmem:[%s3913_s1 + $0x60] ss:$12 sps:$4 sm:$0xff]  }
   0x5   :  { %v2734_v13 = vld [vmem:[%s3913_s1 + $0x4c] ss:$12 sps:$4 sm:$0xff]   ;;  %v2736_v14 = vld [vmem:[%s3913_s1 + $0x50] ss:$12 sps:$4 sm:$0xff]   ;;  %v2737_v15 = vld [vmem:[%s3913_s1 + $0x48] ss:$12 sps:$4 sm:$0xff]  }
   0x6   :  { %1094 = vmatpush1.bf16.msra.mxu1 %v2724_v5  ;;  %v2738_v16 = vld [vmem:[%s3913_s1 + $0x34] ss:$12 sps:$4 sm:$0xff]   ;;  %v2740_v17 = vld [vmem:[%s3913_s1 + $0x38] ss:$12 sps:$4 sm:$0xff]   ;;  %v2741_v18 = vld [vmem:[%s3913_s1 + $0x30] ss:$12 sps:$4 sm:$0xff]  }
   0x7   :  { %741 = vmatpush1.bf16.msra.mxu0 %v2725_v6  ;;  %1095 = vmatprep.subr.bf16.mxu1 %v2874_v0  ;;  %v2742_v19 = vld [vmem:[%s3913_s1 + $0x1c] ss:$12 sps:$4 sm:$0xff]   ;;  %v2744_v20 = vld [vmem:[%s3913_s1 + $0x20] ss:$12 sps:$4 sm:$0xff]   ;;  %v2745_v21 = vld [vmem:[%s3913_s1 + $0x18] ss:$12 sps:$4 sm:$0xff]  }
   0x8   :  { %742 = vmatprep.subr.bf16.mxu0 %v2726_v7  ;;  %v2746_v22 = vld [vmem:[%s3913_s1 + $0x4] ss:$12 sps:$4 sm:$0xff]   ;;  %v2748_v23 = vld [vmem:[%s3913_s1 + $0x8] ss:$12 sps:$4 sm:$0xff]   ;;  %v2749_v24 = vld [vmem:[%s3913_s1] ss:$12 sps:$4 sm:$0xff]  }
   0x9   :  { %v2750_v25 = vld [vmem:[%s3913_s1 + $0x16c] ss:$12 sps:$4 sm:$0xff]   ;;  %v2752_v26 = vld [vmem:[%s3913_s1 + $0x170] ss:$12 sps:$4 sm:$0xff]   ;;  %v2753_v27 = vld [vmem:[%s3913_s1 + $0x168] ss:$12 sps:$4 sm:$0xff]  }
   0xa   :  { %1096 = vmatpush1.bf16.msra.mxu1 %v2728_v8  ;;  %v2754_v28 = vld [vmem:[%s3913_s1 + $0x154] ss:$12 sps:$4 sm:$0xff]   ;;  %v2756_v29 = vld [vmem:[%s3913_s1 + $0x158] ss:$12 sps:$4 sm:$0xff]   ;;  %v2757_v30 = vld [vmem:[%s3913_s1 + $0x150] ss:$12 sps:$4 sm:$0xff]  }
   0xb   :  { %743 = vmatpush1.bf16.msra.mxu0 %v2729_v9  ;;  %1097 = vmatprep.subr.bf16.mxu1 %v2874_v0  ;;  %v2758_v31 = vld [vmem:[%s3913_s1 + $0x13c] ss:$12 sps:$4 sm:$0xff]   ;;  %v2784_v32 = vld [vmem:[%s3914_s0 + $0x4] ss:$8 sps:$4 sm:$0xff]   ;;  %v2770_v41 = vld [vmem:[%s3913_s1 + $0xf4] ss:$12 sps:$4 sm:$0xff]  }
   0xc   :  { %744 = vmatprep.subr.bf16.mxu0 %v2730_v10  ;;  %v2760_v33 = vld [vmem:[%s3913_s1 + $0x140] ss:$12 sps:$4 sm:$0xff]   ;;  %v2761_v34 = vld [vmem:[%s3913_s1 + $0x138] ss:$12 sps:$4 sm:$0xff]   ;;  %1123 = vmatprep.mubr.bf16.mxu1 %v2784_v32  ;;  %v2764_v36 = vld [vmem:[%s3913_s1 + $0x128] ss:$12 sps:$4 sm:$0xff]  }
   0xd   :  { %v2762_v35 = vld [vmem:[%s3913_s1 + $0x124] ss:$12 sps:$4 sm:$0xff]   ;;  %770 = vmatprep.mubr.bf16.mxu0 %v2784_v32  ;;  %v2765_v37 = vld [vmem:[%s3913_s1 + $0x120] ss:$12 sps:$4 sm:$0xff]   ;;  %v2769_v40 = vld [vmem:[%s3913_s1 + $0x108] ss:$12 sps:$4 sm:$0xff]   ;;  %v147_v32 = vlaneseq }
   0xe   :  { %1098 = vmatpush1.bf16.msra.mxu1 %v2732_v11  ;;  %v2766_v38 = vld [vmem:[%s3913_s1 + $0x10c] ss:$12 sps:$4 sm:$0xff]   ;;  %v2768_v39 = vld [vmem:[%s3913_s1 + $0x110] ss:$12 sps:$4 sm:$0xff]   ;;  %v2780_v48 = vld [vmem:[%s3913_s1 + $0xc8] ss:$12 sps:$4 sm:$0xff]  }
   0xf   :  { %745 = vmatpush1.bf16.msra.mxu0 %v2733_v12  ;;  %1099 = vmatprep.subr.bf16.mxu1 %v2874_v0  ;;  %v2772_v42 = vld [vmem:[%s3913_s1 + $0xf8] ss:$12 sps:$4 sm:$0xff]   ;;  %v2773_v43 = vld [vmem:[%s3913_s1 + $0xf0] ss:$12 sps:$4 sm:$0xff]   ;;  %v2776_v45 = vld [vmem:[%s3913_s1 + $0xe0] ss:$12 sps:$4 sm:$0xff]  }
  0x10   :  { %746 = vmatprep.subr.bf16.mxu0 %v2734_v13  ;;  %v2774_v44 = vld [vmem:[%s3913_s1 + $0xdc] ss:$12 sps:$4 sm:$0xff]   ;;  %v2777_v46 = vld [vmem:[%s3913_s1 + $0xd8] ss:$12 sps:$4 sm:$0xff]   ;;  %v2781_v49 = vld [vmem:[%s3913_s1 + $0xc0] ss:$12 sps:$4 sm:$0xff]  }
  0x11   :  { %v2778_v47 = vld [vmem:[%s3913_s1 + $0xc4] ss:$12 sps:$4 sm:$0xff]   ;;  %v2782_v50 = vld [vmem:[%s3914_s0] ss:$8 sps:$4 sm:$0xff]   ;;  %v2785_v51 = vld [vmem:[%s3914_s0 + $0x14] ss:$8 sps:$4 sm:$0xff]  }
  0x12   :  { %1100 = vmatpush1.bf16.msra.mxu1 %v2736_v14  ;;  %v2787_v52 = vld [vmem:[%s3914_s0 + $0x10] ss:$8 sps:$4 sm:$0xff]   ;;  %v2788_v53 = vld [vmem:[%s3914_s0 + $0x24] ss:$8 sps:$4 sm:$0xff]   ;;  %v2790_v54 = vld [vmem:[%s3914_s0 + $0x20] ss:$8 sps:$4 sm:$0xff]  }
  0x13   :  { %747 = vmatpush1.bf16.msra.mxu0 %v2737_v15  ;;  %1101 = vmatprep.subr.bf16.mxu1 %v2874_v0  ;;  %v2791_v55 = vld [vmem:[%s3914_s0 + $0x34] ss:$8 sps:$4 sm:$0xff]   ;;  %v2793_v56 = vld [vmem:[%s3914_s0 + $0x30] ss:$8 sps:$4 sm:$0xff]   ;;  %v2794_v57 = vld [vmem:[%s3914_s0 + $0x44] ss:$8 sps:$4 sm:$0xff]  }
  0x14   :  { %748 = vmatprep.subr.bf16.mxu0 %v2738_v16  ;;  %v2796_v58 = vld [vmem:[%s3914_s0 + $0x40] ss:$8 sps:$4 sm:$0xff]   ;;  %v2797_v59 = vld [vmem:[%s3914_s0 + $0x54] ss:$8 sps:$4 sm:$0xff]   ;;  %v2799_v60 = vld [vmem:[%s3914_s0 + $0x50] ss:$8 sps:$4 sm:$0xff]  }
  0x15   :  { %v2800_v61 = vld [vmem:[%s3914_s0 + $0x64] ss:$8 sps:$4 sm:$0xff]   ;;  %v2802_v62 = vld [vmem:[%s3914_s0 + $0x60] ss:$8 sps:$4 sm:$0xff]   ;;  %v2803_v63 = vld [vmem:[%s3914_s0 + $0x74] ss:$8 sps:$4 sm:$0xff]  }
  0x16   :  { %1102 = vmatpush1.bf16.msra.mxu1 %v2740_v17  ;;  %v2806_v1 = vld [vmem:[%s3914_s0 + $0x84] ss:$8 sps:$4 sm:$0xff]   ;;  %v2808_v2 = vld [vmem:[%s3914_s0 + $0x80] ss:$8 sps:$4 sm:$0xff]   ;;  %v2809_v3 = vld [vmem:[%s3914_s0 + $0x94] ss:$8 sps:$4 sm:$0xff]  }
  0x17   :  { %749 = vmatpush1.bf16.msra.mxu0 %v2741_v18  ;;  %1103 = vmatprep.subr.bf16.mxu1 %v2874_v0  ;;  %v2811_v4 = vld [vmem:[%s3914_s0 + $0x90] ss:$8 sps:$4 sm:$0xff]   ;;  %v2812_v5 = vld [vmem:[%s3914_s0 + $0xa4] ss:$8 sps:$4 sm:$0xff]   ;;  %v2814_v6 = vld [vmem:[%s3914_s0 + $0xa0] ss:$8 sps:$4 sm:$0xff]  }
  0x18   :  { %750 = vmatprep.subr.bf16.mxu0 %v2742_v19  ;;  %v2815_v7 = vld [vmem:[%s3914_s0 + $0xb4] ss:$8 sps:$4 sm:$0xff]   ;;  %v2817_v8 = vld [vmem:[%s3914_s0 + $0xb0] ss:$8 sps:$4 sm:$0xff]   ;;  %v2818_v9 = vld [vmem:[%s3914_s0 + $0xc4] ss:$8 sps:$4 sm:$0xff]  }
  0x19   :  { %v2820_v10 = vld [vmem:[%s3914_s0 + $0xc0] ss:$8 sps:$4 sm:$0xff]   ;;  %v2821_v11 = vld [vmem:[%s3914_s0 + $0xd4] ss:$8 sps:$4 sm:$0xff]   ;;  %v2823_v12 = vld [vmem:[%s3914_s0 + $0xd0] ss:$8 sps:$4 sm:$0xff]  }
  0x1a   :  { %1104 = vmatpush1.bf16.msra.mxu1 %v2744_v20  ;;  %v2824_v13 = vld [vmem:[%s3914_s0 + $0xe4] ss:$8 sps:$4 sm:$0xff]   ;;  %v2826_v14 = vld [vmem:[%s3914_s0 + $0xe0] ss:$8 sps:$4 sm:$0xff]   ;;  %v2827_v15 = vld [vmem:[%s3914_s0 + $0xf4] ss:$8 sps:$4 sm:$0xff]  }
  0x1b   :  { %751 = vmatpush1.bf16.msra.mxu0 %v2745_v21  ;;  %1105 = vmatprep.subr.bf16.mxu1 %v2874_v0  ;;  %v2829_v16 = vld [vmem:[%s3914_s0 + $0xf0] ss:$8 sps:$4 sm:$0xff]   ;;  %v2830_v17 = vld [vmem:[%s3914_s0 + $0x104] ss:$8 sps:$4 sm:$0xff]   ;;  %v2832_v18 = vld [vmem:[%s3914_s0 + $0x100] ss:$8 sps:$4 sm:$0xff]  }
  0x1c   :  { %752 = vmatprep.subr.bf16.mxu0 %v2746_v22  ;;  %v2833_v19 = vld [vmem:[%s3914_s0 + $0x114] ss:$8 sps:$4 sm:$0xff]   ;;  %v2835_v20 = vld [vmem:[%s3914_s0 + $0x110] ss:$8 sps:$4 sm:$0xff]   ;;  %v2836_v21 = vld [vmem:[%s3914_s0 + $0x124] ss:$8 sps:$4 sm:$0xff]  }
  0x1d   :  { %v2838_v22 = vld [vmem:[%s3914_s0 + $0x120] ss:$8 sps:$4 sm:$0xff]  }
  0x1e   :  { %1106 = vmatpush1.bf16.msra.mxu1 %v2748_v23  ;;  %v2839_v23 = vld [vmem:[%s3914_s0 + $0x134] ss:$8 sps:$4 sm:$0xff]  }
  0x1f   :  { %753 = vmatpush1.bf16.msra.mxu0 %v2749_v24  ;;  %1107 = vmatprep.subr.bf16.mxu1 %v2874_v0  ;;  %v2841_v24 = vld [vmem:[%s3914_s0 + $0x130] ss:$8 sps:$4 sm:$0xff]  }
  0x20   :  { %754 = vmatprep.subr.bf16.mxu0 %v2750_v25  ;;  %v2842_v25 = vld [vmem:[%s3914_s0 + $0x144] ss:$8 sps:$4 sm:$0xff]  }
  0x22   :  { %1108 = vmatpush2.bf16.msra.mxu1 %v2752_v26  ;;  %v2844_v26 = vld [vmem:[%s3914_s0 + $0x140] ss:$8 sps:$4 sm:$0xff]  }
  0x23   :  { %755 = vmatpush2.bf16.msra.mxu0 %v2753_v27  ;;  %1109 = vmatprep.subr.bf16.mxu1 %v2874_v0  ;;  %v2845_v27 = vld [vmem:[%s3914_s0 + $0x154] ss:$8 sps:$4 sm:$0xff]  }
  0x24   :  { %756 = vmatprep.subr.bf16.mxu0 %v2754_v28  ;;  %v2847_v28 = vld [vmem:[%s3914_s0 + $0x150] ss:$8 sps:$4 sm:$0xff]  }
  0x26   :  { %1110 = vmatpush2.bf16.msra.mxu1 %v2756_v29  ;;  %v2848_v29 = vld [vmem:[%s3914_s0 + $0x164] ss:$8 sps:$4 sm:$0xff]  }
  0x27   :  { %757 = vmatpush2.bf16.msra.mxu0 %v2757_v30  ;;  %1111 = vmatprep.subr.bf16.mxu1 %v2874_v0  ;;  %v2850_v30 = vld [vmem:[%s3914_s0 + $0x160] ss:$8 sps:$4 sm:$0xff]  }
  0x28   :  { %758 = vmatprep.subr.bf16.mxu0 %v2758_v31  ;;  %v2851_v31 = vld [vmem:[%s3914_s0 + $0x174] ss:$8 sps:$4 sm:$0xff]  }
  0x2a   :  { %1112 = vmatpush2.bf16.msra.mxu1 %v2760_v33  ;;  %v2853_v33 = vld [vmem:[%s3914_s0 + $0x170] ss:$8 sps:$4 sm:$0xff]  }
  0x2b   :  { %759 = vmatpush2.bf16.msra.mxu0 %v2761_v34  ;;  %1113 = vmatprep.subr.bf16.mxu1 %v2874_v0  ;;  %v2854_v34 = vld [vmem:[%s3914_s0 + $0x184] ss:$8 sps:$4 sm:$0xff]  }
  0x2c   :  { %760 = vmatprep.subr.bf16.mxu0 %v2762_v35  ;;  %v148_v35 = vshrl.u32 %v147_v32, 7 }
  0x2e   :  { %1114 = vmatpush2.bf16.msra.mxu1 %v2764_v36  ;;  %v65_v36 = vld [vmem:[%s3914_s0 + $0x180] sm:$0xff] }
  0x2f   :  { %761 = vmatpush2.bf16.msra.mxu0 %v2765_v37  ;;  %1115 = vmatprep.subr.bf16.mxu1 %v2874_v0  ;;  %v66_v37 = vld [vmem:[%s3914_s0 + $0x188] sm:$0xff] }
  0x30   :  { %762 = vmatprep.subr.bf16.mxu0 %v2766_v38  ;;  %v157_v38 = vsub.s32 2, %v148_v35 }
  0x32   :  { %1116 = vmatpush2.bf16.msra.mxu1 %v2768_v39  ;;  %v149_v39 = vsub.s32 0, %v148_v35 }
  0x33   :  { %763 = vmatpush2.bf16.msra.mxu0 %v2769_v40  ;;  %1117 = vmatprep.subr.bf16.mxu1 %v2874_v0  ;;  %v145_v40 = vld [vmem:[%s3915_s2] sm:$0x7] }
  0x34   :  { %764 = vmatprep.subr.bf16.mxu0 %v2770_v41  ;;  %v2397_v41 = vcombine.low %v65_v36, %v66_v37 }
  0x36   :  { %1118 = vmatpush2.bf16.msra.mxu1 %v2772_v42  ;;  %v153_v42 = vsub.s32 1, %v148_v35 }
  0x37   :  { %765 = vmatpush2.bf16.msra.mxu0 %v2773_v43  ;;  %1119 = vmatprep.subr.bf16.mxu1 %v2874_v0  ;;  %v3216_v43 = vrot.slane %v145_v40, %v157_v38 }
  0x38   :  { %766 = vmatprep.subr.bf16.mxu0 %v2774_v44  ;;  %v2856_v44 = vld [vmem:[%s3914_s0 + $0x194] ss:$8 sps:$4 sm:$0xff]  }
  0x3a   :  { %1120 = vmatpush2.bf16.msra.mxu1 %v2776_v45  ;;  %v3221_v45 = vrot.slane %v145_v40, %v149_v39  ;;  %v71_v39 = vld [vmem:[%s3914_s0 + $0x1b0] sm:$0xff] }
  0x3b   :  { %767 = vmatpush2.bf16.msra.mxu0 %v2777_v46  ;;  %1121 = vmatprep.subr.bf16.mxu1 %v2874_v0  ;;  %v2805_v0 = vld [vmem:[%s3914_s0 + $0x70] ss:$8 sps:$4 sm:$0xff]  }
  0x3c   :  { %768 = vmatprep.subr.bf16.mxu0 %v2778_v47  ;;  %v3223_v47 = vrot.slane %v145_v40, %v153_v42  ;;  %v72_v40 = vld [vmem:[%s3914_s0 + $0x1b8] sm:$0xff] }
  0x3e   :  { %1122 = vmatpush2.bf16.msra.mxu1 %v2780_v48 }
  0x3f   :  { %769 = vmatpush2.bf16.msra.mxu0 %v2781_v49 }
  0x41   :  { %1124 = vmatmul.mubr.bf16.vlgmr.msra.gmra.mxu1 %v2782_v50 }
  0x42   :  { %771 = vmatmul.mubr.bf16.vlgmr.msra.gmra.mxu0 %v2782_v50  ;;  %1131 = vmatprep.mubr.bf16.mxu1 %v2785_v51  ;;  %v67_v50 = vld [vmem:[%s3914_s0 + $0x190] sm:$0xff] }
  0x43   :  { %780 = vmatprep.mubr.bf16.mxu0 %v2785_v51  ;;  %v68_v51 = vld [vmem:[%s3914_s0 + $0x198] sm:$0xff] }
  0x49   :  { %1132 = vmatmul.mubr.bf16.gmra.mxu1 %v2787_v52 }
  0x4a   :  { %781 = vmatmul.mubr.bf16.gmra.mxu0 %v2787_v52  ;;  %1139 = vmatprep.mubr.bf16.mxu1 %v2788_v53 }
  0x4b   :  { %790 = vmatprep.mubr.bf16.mxu0 %v2788_v53 }
  0x51   :  { %1140 = vmatmul.mubr.bf16.gmra.mxu1 %v2790_v54 }
  0x52   :  { %791 = vmatmul.mubr.bf16.gmra.mxu0 %v2790_v54  ;;  %1147 = vmatprep.mubr.bf16.mxu1 %v2791_v55 }
  0x53   :  { %800 = vmatprep.mubr.bf16.mxu0 %v2791_v55 }
  0x59   :  { %1148 = vmatmul.mubr.bf16.gmra.mxu1 %v2793_v56 }
  0x5a   :  { %801 = vmatmul.mubr.bf16.gmra.mxu0 %v2793_v56  ;;  %1155 = vmatprep.mubr.bf16.mxu1 %v2794_v57 }
  0x5b   :  { %810 = vmatprep.mubr.bf16.mxu0 %v2794_v57 }
  0x61   :  { %1156 = vmatmul.mubr.bf16.gmra.mxu1 %v2796_v58 }
  0x62   :  { %811 = vmatmul.mubr.bf16.gmra.mxu0 %v2796_v58  ;;  %1163 = vmatprep.mubr.bf16.mxu1 %v2797_v59  ;;  %v2399_v58 = vcombine.low %v67_v50, %v68_v51 }
  0x63   :  { %820 = vmatprep.mubr.bf16.mxu0 %v2797_v59 }
  0x69   :  { %1164 = vmatmul.mubr.bf16.gmra.mxu1 %v2799_v60 }
  0x6a   :  { %821 = vmatmul.mubr.bf16.gmra.mxu0 %v2799_v60  ;;  %1171 = vmatprep.mubr.bf16.mxu1 %v2800_v61 }
  0x6b   :  { %830 = vmatprep.mubr.bf16.mxu0 %v2800_v61 }
  0x71   :  { %1172 = vmatmul.mubr.bf16.gmra.mxu1 %v2802_v62 }
  0x72   :  { %831 = vmatmul.mubr.bf16.gmra.mxu0 %v2802_v62  ;;  %1179 = vmatprep.mubr.bf16.mxu1 %v2803_v63  ;;  %v2858_v62 = vld [vmem:[%s3914_s0 + $0x1a4] ss:$8 sps:$4 sm:$0xff]  }
  0x73   :  { %840 = vmatprep.mubr.bf16.mxu0 %v2803_v63 }
  0x79   :  { %1180 = vmatmul.mubr.bf16.gmra.mxu1 %v2805_v0 }
  0x7a   :  { %841 = vmatmul.mubr.bf16.gmra.mxu0 %v2805_v0  ;;  %1187 = vmatprep.mubr.bf16.mxu1 %v2806_v1 }
  0x7b   :  { %850 = vmatprep.mubr.bf16.mxu0 %v2806_v1 }
  0x81   :  { %1188 = vmatmul.mubr.bf16.gmra.mxu1 %v2808_v2 }
  0x82   :  { %851 = vmatmul.mubr.bf16.gmra.mxu0 %v2808_v2  ;;  %1195 = vmatprep.mubr.bf16.mxu1 %v2809_v3 }
  0x83   :  { %860 = vmatprep.mubr.bf16.mxu0 %v2809_v3 }
  0x89   :  { %1196 = vmatmul.mubr.bf16.gmra.mxu1 %v2811_v4 }
  0x8a   :  { %861 = vmatmul.mubr.bf16.gmra.mxu0 %v2811_v4  ;;  %1203 = vmatprep.mubr.bf16.mxu1 %v2812_v5 }
  0x8b   :  { %870 = vmatprep.mubr.bf16.mxu0 %v2812_v5 }
  0x91   :  { %1204 = vmatmul.mubr.bf16.gmra.mxu1 %v2814_v6 }
  0x92   :  { %871 = vmatmul.mubr.bf16.gmra.mxu0 %v2814_v6  ;;  %1211 = vmatprep.mubr.bf16.mxu1 %v2815_v7 }
  0x93   :  { %880 = vmatprep.mubr.bf16.mxu0 %v2815_v7 }
  0x99   :  { %1212 = vmatmul.mubr.bf16.gmra.mxu1 %v2817_v8 }
  0x9a   :  { %881 = vmatmul.mubr.bf16.gmra.mxu0 %v2817_v8  ;;  %1219 = vmatprep.mubr.bf16.mxu1 %v2818_v9 }
  0x9b   :  { %890 = vmatprep.mubr.bf16.mxu0 %v2818_v9 }
  0xa1   :  { %1220 = vmatmul.mubr.bf16.gmra.mxu1 %v2820_v10 }
  0xa2   :  { %891 = vmatmul.mubr.bf16.gmra.mxu0 %v2820_v10  ;;  %1227 = vmatprep.mubr.bf16.mxu1 %v2821_v11 }
  0xa3   :  { %900 = vmatprep.mubr.bf16.mxu0 %v2821_v11  ;;  %v69_v11 = vld [vmem:[%s3914_s0 + $0x1a0] sm:$0xff] }
  0xa9   :  { %1228 = vmatmul.mubr.bf16.gmra.mxu1 %v2823_v12 }
  0xaa   :  { %901 = vmatmul.mubr.bf16.gmra.mxu0 %v2823_v12  ;;  %1235 = vmatprep.mubr.bf16.mxu1 %v2824_v13  ;;  %v70_v12 = vld [vmem:[%s3914_s0 + $0x1a8] sm:$0xff] }
  0xab   :  { %910 = vmatprep.mubr.bf16.mxu0 %v2824_v13 }
  0xb1   :  { %1236 = vmatmul.mubr.bf16.gmra.mxu1 %v2826_v14 }
  0xb2   :  { %911 = vmatmul.mubr.bf16.gmra.mxu0 %v2826_v14  ;;  %1243 = vmatprep.mubr.bf16.mxu1 %v2827_v15 }
  0xb3   :  { %920 = vmatprep.mubr.bf16.mxu0 %v2827_v15 }
  0xb9   :  { %1244 = vmatmul.mubr.bf16.gmra.mxu1 %v2829_v16 }
  0xba   :  { %921 = vmatmul.mubr.bf16.gmra.mxu0 %v2829_v16  ;;  %1251 = vmatprep.mubr.bf16.mxu1 %v2830_v17 }
  0xbb   :  { %930 = vmatprep.mubr.bf16.mxu0 %v2830_v17 }
  0xc1   :  { %1252 = vmatmul.mubr.bf16.gmra.mxu1 %v2832_v18 }
  0xc2   :  { %931 = vmatmul.mubr.bf16.gmra.mxu0 %v2832_v18  ;;  %1259 = vmatprep.mubr.bf16.mxu1 %v2833_v19 }
  0xc3   :  { %940 = vmatprep.mubr.bf16.mxu0 %v2833_v19 }
  0xc9   :  { %1260 = vmatmul.mubr.bf16.gmra.mxu1 %v2835_v20 }
  0xca   :  { %941 = vmatmul.mubr.bf16.gmra.mxu0 %v2835_v20  ;;  %1267 = vmatprep.mubr.bf16.mxu1 %v2836_v21 }
  0xcb   :  { %950 = vmatprep.mubr.bf16.mxu0 %v2836_v21 }
  0xd1   :  { %1268 = vmatmul.mubr.bf16.gmra.mxu1 %v2838_v22 }
  0xd2   :  { %951 = vmatmul.mubr.bf16.gmra.mxu0 %v2838_v22  ;;  %1275 = vmatprep.mubr.bf16.mxu1 %v2839_v23  ;;  %v2401_v22 = vcombine.low %v69_v11, %v70_v12 }
  0xd3   :  { %960 = vmatprep.mubr.bf16.mxu0 %v2839_v23 }
  0xd9   :  { %1276 = vmatmul.mubr.bf16.gmra.mxu1 %v2841_v24 }
  0xda   :  { %961 = vmatmul.mubr.bf16.gmra.mxu0 %v2841_v24  ;;  %1283 = vmatprep.mubr.bf16.mxu1 %v2842_v25 }
  0xdb   :  { %970 = vmatprep.mubr.bf16.mxu0 %v2842_v25 }
  0xe1   :  { %1284 = vmatmul.mubr.bf16.gmra.mxu1 %v2844_v26 }
  0xe2   :  { %971 = vmatmul.mubr.bf16.gmra.mxu0 %v2844_v26  ;;  %1291 = vmatprep.mubr.bf16.mxu1 %v2845_v27  ;;  %v2860_v26 = vld [vmem:[%s3914_s0 + $0x1b4] ss:$8 sps:$4 sm:$0xff]  }
  0xe3   :  { %980 = vmatprep.mubr.bf16.mxu0 %v2845_v27 }
  0xe9   :  { %1292 = vmatmul.mubr.bf16.gmra.mxu1 %v2847_v28 }
  0xea   :  { %981 = vmatmul.mubr.bf16.gmra.mxu0 %v2847_v28  ;;  %1299 = vmatprep.mubr.bf16.mxu1 %v2848_v29 }
  0xeb   :  { %990 = vmatprep.mubr.bf16.mxu0 %v2848_v29 }
  0xf1   :  { %1300 = vmatmul.mubr.bf16.gmra.mxu1 %v2850_v30 }
  0xf2   :  { %991 = vmatmul.mubr.bf16.gmra.mxu0 %v2850_v30  ;;  %1307 = vmatprep.mubr.bf16.mxu1 %v2851_v31 }
  0xf3   :  { %1000 = vmatprep.mubr.bf16.mxu0 %v2851_v31 }
  0xf9   :  { %1308 = vmatmul.mubr.bf16.gmra.mxu1 %v2853_v33 }
  0xfa   :  { %1001 = vmatmul.mubr.bf16.gmra.mxu0 %v2853_v33  ;;  %1315 = vmatprep.mubr.bf16.mxu1 %v2854_v34 }
  0xfb   :  { %1010 = vmatprep.mubr.bf16.mxu0 %v2854_v34 }
 0x101   :  { %v1125_v46 = vpop.f32.mrf.mxu1  ;;  %1316 = vmatmul.mubr.bf16.gmra.mxu1 %v2397_v41 }
 0x102   :  { %v1126_v48 = vadd.f32 %v1125_v46, %v3216_v43  ;;  %v772_v49 = vpop.f32.mrf.mxu0  ;;  %1011 = vmatmul.mubr.bf16.gmra.mxu0 %v2397_v41  ;;  %1323 = vmatprep.mubr.bf16.mxu1 %v2856_v44 }
 0x103   :  { %v773_v52 = vadd.f32 %v772_v49, %v3221_v45  ;;  %v1127_v53 = vpop.f32.mrf.mxu1  ;;  %1020 = vmatprep.mubr.bf16.mxu0 %v2856_v44 }
 0x104   :  { %v1382_v54 = vmax.f32 %v1126_v48, 0.0  ;;  %v774_v55 = vpop.f32.mrf.mxu0  ;;  %v2403_v53 = vcombine.low %v71_v39, %v72_v40 }
 0x105   :  { %v775_v56 = vadd.f32 %v774_v55, %v3223_v47  ;;  %v1128_v57 = vpop.f32.mrf.mxu1  ;;  %v1380_v63 = vmax.f32 %v773_v52, 0.0 }
 0x106   :  { %v2653_v59 = vpack.c.bf16 %v1382_v54, %v1382_v54  ;;  %v1129_v60 = vadd.f32 %v1128_v57, %v3216_v43  ;;  %v776_v61 = vpop.f32.mrf.mxu0  ;;  %v2864_v57 = vld [vmem:[%s3914_s0 + $0x1c4] ss:$8 sps:$4 sm:$0xff]  }
 0x107   :  { %v1381_v0 = vmax.f32 %v775_v56, 0.0  ;;  %v777_v1 = vadd.f32 %v776_v61, %v3221_v45  ;;  %v1130_v2 = vpop.f32.mrf.mxu1 }
 0x108   :  { %2277 = vst.msk [vmem:[%s3916_s4] sm:$0xf] %vm2276_vm0, %v2653_v59  ;;  %v1385_v3 = vmax.f32 %v1129_v60, 0.0  ;;  %v778_v4 = vpop.f32.mrf.mxu0 }
 0x109   :  { %v2589_v5 = vpack.c.bf16 %v1381_v0, %v1380_v63  ;;  %v779_v6 = vadd.f32 %v778_v4, %v3223_v47  ;;  %v1133_v7 = vpop.f32.mrf.mxu1  ;;  %1324 = vmatmul.mubr.bf16.gmra.mxu1 %v2399_v58  ;;  %v1383_v13 = vmax.f32 %v777_v1, 0.0 }
 0x10a   :  { %v2654_v8 = vpack.c.bf16 %v1385_v3, %v1385_v3  ;;  %v1134_v9 = vadd.f32 %v1133_v7, %v3216_v43  ;;  %v782_v10 = vpop.f32.mrf.mxu0  ;;  %1021 = vmatmul.mubr.bf16.gmra.mxu0 %v2399_v58  ;;  %1331 = vmatprep.mubr.bf16.mxu1 %v2858_v62 }
 0x10b   :  { %1956 = vst [vmem:[%s3917_s3] sm:$0xff] %v2589_v5  ;;  %v1384_v14 = vmax.f32 %v779_v6, 0.0  ;;  %v783_v15 = vadd.f32 %v782_v10, %v3221_v45  ;;  %v1135_v16 = vpop.f32.mrf.mxu1  ;;  %1030 = vmatprep.mubr.bf16.mxu0 %v2858_v62 }
 0x10c   :  { %2278 = vst.msk [vmem:[%s3916_s4 + $0x4] sm:$0xf] %vm2276_vm0, %v2654_v8  ;;  %v1388_v17 = vmax.f32 %v1134_v9, 0.0  ;;  %v784_v18 = vpop.f32.mrf.mxu0 }
 0x10d   :  { %v2590_v19 = vpack.c.bf16 %v1384_v14, %v1383_v13  ;;  %v785_v20 = vadd.f32 %v784_v18, %v3223_v47  ;;  %v1136_v21 = vpop.f32.mrf.mxu1  ;;  %v1386_v27 = vmax.f32 %v783_v15, 0.0  ;;  %v2862_v15 = vld [vmem:[%s3914_s0 + $0x1c0] ss:$8 sps:$4 sm:$0xff]  }
 0x10e   :  { %v2655_v23 = vpack.c.bf16 %v1388_v17, %v1388_v17  ;;  %v1137_v24 = vadd.f32 %v1136_v21, %v3216_v43  ;;  %v786_v25 = vpop.f32.mrf.mxu0 }
 0x10f   :  { %1957 = vst [vmem:[%s3917_s3 + $0x8] sm:$0xff] %v2590_v19  ;;  %v1387_v28 = vmax.f32 %v785_v20, 0.0  ;;  %v787_v29 = vadd.f32 %v786_v25, %v3221_v45  ;;  %v1138_v30 = vpop.f32.mrf.mxu1  ;;  %v2867_v19 = vld [vmem:[%s3914_s0 + $0x1d4] ss:$8 sps:$4 sm:$0xff]  }
 0x110   :  { %2279 = vst.msk [vmem:[%s3916_s4 + $0x8] sm:$0xf] %vm2276_vm0, %v2655_v23  ;;  %v1391_v31 = vmax.f32 %v1137_v24, 0.0  ;;  %v788_v32 = vpop.f32.mrf.mxu0 }
 0x111   :  { %v2591_v33 = vpack.c.bf16 %v1387_v28, %v1386_v27  ;;  %v789_v34 = vadd.f32 %v788_v32, %v3223_v47  ;;  %v1141_v35 = vpop.f32.mrf.mxu1  ;;  %1332 = vmatmul.mubr.bf16.gmra.mxu1 %v2401_v22  ;;  %v1389_v41 = vmax.f32 %v787_v29, 0.0 }
 0x112   :  { %v2656_v36 = vpack.c.bf16 %v1391_v31, %v1391_v31  ;;  %v1142_v37 = vadd.f32 %v1141_v35, %v3216_v43  ;;  %v792_v38 = vpop.f32.mrf.mxu0  ;;  %1031 = vmatmul.mubr.bf16.gmra.mxu0 %v2401_v22  ;;  %1339 = vmatprep.mubr.bf16.mxu1 %v2860_v26 }
 0x113   :  { %1958 = vst [vmem:[%s3917_s3 + $0x10] sm:$0xff] %v2591_v33  ;;  %v1390_v42 = vmax.f32 %v789_v34, 0.0  ;;  %v793_v44 = vadd.f32 %v792_v38, %v3221_v45  ;;  %v1143_v46 = vpop.f32.mrf.mxu1  ;;  %1040 = vmatprep.mubr.bf16.mxu0 %v2860_v26 }
 0x114   :  { %2280 = vst.msk [vmem:[%s3916_s4 + $0xc] sm:$0xf] %vm2276_vm0, %v2656_v36  ;;  %v1394_v48 = vmax.f32 %v1142_v37, 0.0  ;;  %v794_v49 = vpop.f32.mrf.mxu0 }
 0x115   :  { %v2592_v50 = vpack.c.bf16 %v1390_v42, %v1389_v41  ;;  %v795_v51 = vadd.f32 %v794_v49, %v3223_v47  ;;  %v1144_v52 = vpop.f32.mrf.mxu1  ;;  %v1392_v58 = vmax.f32 %v793_v44, 0.0  ;;  %v2865_v41 = vld [vmem:[%s3914_s0 + $0x1d0] ss:$8 sps:$4 sm:$0xff]  }
 0x116   :  { %v2657_v54 = vpack.c.bf16 %v1394_v48, %v1394_v48  ;;  %v1145_v55 = vadd.f32 %v1144_v52, %v3216_v43  ;;  %v796_v56 = vpop.f32.mrf.mxu0  ;;  %v2870_v48 = vld [vmem:[%s3914_s0 + $0x1e4] ss:$8 sps:$4 sm:$0xff]  }
 0x117   :  { %1959 = vst [vmem:[%s3917_s3 + $0x18] sm:$0xff] %v2592_v50  ;;  %v1393_v59 = vmax.f32 %v795_v51, 0.0  ;;  %v797_v60 = vadd.f32 %v796_v56, %v3221_v45  ;;  %v1146_v61 = vpop.f32.mrf.mxu1 }
 0x118   :  { %2281 = vst.msk [vmem:[%s3916_s4 + $0x10] sm:$0xf] %vm2276_vm0, %v2657_v54  ;;  %v1397_v62 = vmax.f32 %v1145_v55, 0.0  ;;  %v798_v63 = vpop.f32.mrf.mxu0 }
 0x119   :  { %v2593_v0 = vpack.c.bf16 %v1393_v59, %v1392_v58  ;;  %v799_v1 = vadd.f32 %v798_v63, %v3223_v47  ;;  %v1149_v2 = vpop.f32.mrf.mxu1  ;;  %1340 = vmatmul.mubr.bf16.gmra.mxu1 %v2403_v53  ;;  %v1395_v6 = vmax.f32 %v797_v60, 0.0 }
 0x11a   :  { %v2658_v3 = vpack.c.bf16 %v1397_v62, %v1397_v62  ;;  %v1150_v4 = vadd.f32 %v1149_v2, %v3216_v43  ;;  %v802_v5 = vpop.f32.mrf.mxu0  ;;  %1041 = vmatmul.mubr.bf16.gmra.mxu0 %v2403_v53  ;;  %1347 = vmatprep.mubr.bf16.mxu1 %v2864_v57 }
 0x11b   :  { %1960 = vst [vmem:[%s3917_s3 + $0x20] sm:$0xff] %v2593_v0  ;;  %v1396_v7 = vmax.f32 %v799_v1, 0.0  ;;  %v803_v8 = vadd.f32 %v802_v5, %v3221_v45  ;;  %v1151_v9 = vpop.f32.mrf.mxu1  ;;  %1050 = vmatprep.mubr.bf16.mxu0 %v2864_v57 }
 0x11c   :  { %2282 = vst.msk [vmem:[%s3916_s4 + $0x14] sm:$0xf] %vm2276_vm0, %v2658_v3  ;;  %v1400_v10 = vmax.f32 %v1150_v4, 0.0  ;;  %v804_v11 = vpop.f32.mrf.mxu0 }
 0x11d   :  { %v2594_v12 = vpack.c.bf16 %v1396_v7, %v1395_v6  ;;  %v805_v13 = vadd.f32 %v804_v11, %v3223_v47  ;;  %v1152_v14 = vpop.f32.mrf.mxu1  ;;  %v1398_v20 = vmax.f32 %v803_v8, 0.0  ;;  %v2868_v6 = vld [vmem:[%s3914_s0 + $0x1e0] ss:$8 sps:$4 sm:$0xff]  }
 0x11e   :  { %v2659_v16 = vpack.c.bf16 %v1400_v10, %v1400_v10  ;;  %v1153_v17 = vadd.f32 %v1152_v14, %v3216_v43  ;;  %v806_v18 = vpop.f32.mrf.mxu0  ;;  %v2873_v10 = vld [vmem:[%s3914_s0 + $0x1f4] ss:$8 sps:$4 sm:$0xff]  }
 0x11f   :  { %1961 = vst [vmem:[%s3917_s3 + $0x28] sm:$0xff] %v2594_v12  ;;  %v1399_v21 = vmax.f32 %v805_v13, 0.0  ;;  %v807_v22 = vadd.f32 %v806_v18, %v3221_v45  ;;  %v1154_v23 = vpop.f32.mrf.mxu1 }
 0x120   :  { %2283 = vst.msk [vmem:[%s3916_s4 + $0x18] sm:$0xf] %vm2276_vm0, %v2659_v16  ;;  %v1403_v24 = vmax.f32 %v1153_v17, 0.0  ;;  %v808_v25 = vpop.f32.mrf.mxu0 }
 0x121   :  { %v2595_v26 = vpack.c.bf16 %v1399_v21, %v1398_v20  ;;  %v809_v27 = vadd.f32 %v808_v25, %v3223_v47  ;;  %v1157_v28 = vpop.f32.mrf.mxu1  ;;  %1348 = vmatmul.mubr.bf16.gmra.mxu1 %v2862_v15  ;;  %v1401_v32 = vmax.f32 %v807_v22, 0.0 }
 0x122   :  { %v2660_v29 = vpack.c.bf16 %v1403_v24, %v1403_v24  ;;  %v1158_v30 = vadd.f32 %v1157_v28, %v3216_v43  ;;  %v812_v31 = vpop.f32.mrf.mxu0  ;;  %1051 = vmatmul.mubr.bf16.gmra.mxu0 %v2862_v15  ;;  %1355 = vmatprep.mubr.bf16.mxu1 %v2867_v19 }
 0x123   :  { %1962 = vst [vmem:[%s3917_s3 + $0x30] sm:$0xff] %v2595_v26  ;;  %v1402_v33 = vmax.f32 %v809_v27, 0.0  ;;  %v813_v34 = vadd.f32 %v812_v31, %v3221_v45  ;;  %v1159_v35 = vpop.f32.mrf.mxu1  ;;  %1060 = vmatprep.mubr.bf16.mxu0 %v2867_v19 }
 0x124   :  { %2284 = vst.msk [vmem:[%s3916_s4 + $0x1c] sm:$0xf] %vm2276_vm0, %v2660_v29  ;;  %v1406_v36 = vmax.f32 %v1158_v30, 0.0  ;;  %v814_v37 = vpop.f32.mrf.mxu0 }
 0x125   :  { %v2596_v38 = vpack.c.bf16 %v1402_v33, %v1401_v32  ;;  %v815_v39 = vadd.f32 %v814_v37, %v3223_v47  ;;  %v1160_v40 = vpop.f32.mrf.mxu1  ;;  %v1404_v49 = vmax.f32 %v813_v34, 0.0  ;;  %v2871_v32 = vld [vmem:[%s3914_s0 + $0x1f0] ss:$8 sps:$4 sm:$0xff]  }
 0x126   :  { %v2661_v42 = vpack.c.bf16 %v1406_v36, %v1406_v36  ;;  %v1161_v44 = vadd.f32 %v1160_v40, %v3216_v43  ;;  %v816_v46 = vpop.f32.mrf.mxu0 }
 0x127   :  { %1963 = vst [vmem:[%s3917_s3 + $0x38] sm:$0xff] %v2596_v38  ;;  %v1405_v50 = vmax.f32 %v815_v39, 0.0  ;;  %v817_v51 = vadd.f32 %v816_v46, %v3221_v45  ;;  %v1162_v52 = vpop.f32.mrf.mxu1 }
 0x128   :  { %2285 = vst.msk [vmem:[%s3916_s4 + $0x20] sm:$0xf] %vm2276_vm0, %v2661_v42  ;;  %v1409_v53 = vmax.f32 %v1161_v44, 0.0  ;;  %v818_v54 = vpop.f32.mrf.mxu0 }
 0x129   :  { %v2597_v55 = vpack.c.bf16 %v1405_v50, %v1404_v49  ;;  %v819_v56 = vadd.f32 %v818_v54, %v3223_v47  ;;  %v1165_v57 = vpop.f32.mrf.mxu1  ;;  %1356 = vmatmul.mubr.bf16.gmra.mxu1 %v2865_v41  ;;  %v1407_v61 = vmax.f32 %v817_v51, 0.0 }
 0x12a   :  { %v2662_v58 = vpack.c.bf16 %v1409_v53, %v1409_v53  ;;  %v1166_v59 = vadd.f32 %v1165_v57, %v3216_v43  ;;  %v822_v60 = vpop.f32.mrf.mxu0  ;;  %1061 = vmatmul.mubr.bf16.gmra.mxu0 %v2865_v41  ;;  %1363 = vmatprep.mubr.bf16.mxu1 %v2870_v48 }
 0x12b   :  { %1964 = vst [vmem:[%s3917_s3 + $0x40] sm:$0xff] %v2597_v55  ;;  %v1408_v62 = vmax.f32 %v819_v56, 0.0  ;;  %v823_v63 = vadd.f32 %v822_v60, %v3221_v45  ;;  %v1167_v0 = vpop.f32.mrf.mxu1  ;;  %1070 = vmatprep.mubr.bf16.mxu0 %v2870_v48 }
 0x12c   :  { %2286 = vst.msk [vmem:[%s3916_s4 + $0x24] sm:$0xf] %vm2276_vm0, %v2662_v58  ;;  %v1412_v1 = vmax.f32 %v1166_v59, 0.0  ;;  %v824_v2 = vpop.f32.mrf.mxu0 }
 0x12d   :  { %v2598_v3 = vpack.c.bf16 %v1408_v62, %v1407_v61  ;;  %v825_v4 = vadd.f32 %v824_v2, %v3223_v47  ;;  %v1168_v5 = vpop.f32.mrf.mxu1  ;;  %v1410_v11 = vmax.f32 %v823_v63, 0.0 }
 0x12e   :  { %v2663_v7 = vpack.c.bf16 %v1412_v1, %v1412_v1  ;;  %v1169_v8 = vadd.f32 %v1168_v5, %v3216_v43  ;;  %v826_v9 = vpop.f32.mrf.mxu0 }
 0x12f   :  { %1965 = vst [vmem:[%s3917_s3 + $0x48] sm:$0xff] %v2598_v3  ;;  %v1411_v12 = vmax.f32 %v825_v4, 0.0  ;;  %v827_v13 = vadd.f32 %v826_v9, %v3221_v45  ;;  %v1170_v14 = vpop.f32.mrf.mxu1 }
 0x130   :  { %2287 = vst.msk [vmem:[%s3916_s4 + $0x28] sm:$0xf] %vm2276_vm0, %v2663_v7  ;;  %v1415_v15 = vmax.f32 %v1169_v8, 0.0  ;;  %v828_v16 = vpop.f32.mrf.mxu0 }
 0x131   :  { %v2599_v17 = vpack.c.bf16 %v1411_v12, %v1410_v11  ;;  %v829_v18 = vadd.f32 %v828_v16, %v3223_v47  ;;  %v1173_v19 = vpop.f32.mrf.mxu1  ;;  %1364 = vmatmul.mubr.bf16.gmra.mxu1 %v2868_v6  ;;  %v1413_v23 = vmax.f32 %v827_v13, 0.0 }
 0x132   :  { %v2664_v20 = vpack.c.bf16 %v1415_v15, %v1415_v15  ;;  %v1174_v21 = vadd.f32 %v1173_v19, %v3216_v43  ;;  %v832_v22 = vpop.f32.mrf.mxu0  ;;  %1071 = vmatmul.mubr.bf16.gmra.mxu0 %v2868_v6  ;;  %1371 = vmatprep.mubr.bf16.mxu1 %v2873_v10 }
 0x133   :  { %1966 = vst [vmem:[%s3917_s3 + $0x50] sm:$0xff] %v2599_v17  ;;  %v1414_v24 = vmax.f32 %v829_v18, 0.0  ;;  %v833_v25 = vadd.f32 %v832_v22, %v3221_v45  ;;  %v1175_v26 = vpop.f32.mrf.mxu1  ;;  %1080 = vmatprep.mubr.bf16.mxu0 %v2873_v10 }
 0x134   :  { %2288 = vst.msk [vmem:[%s3916_s4 + $0x2c] sm:$0xf] %vm2276_vm0, %v2664_v20  ;;  %v1418_v27 = vmax.f32 %v1174_v21, 0.0  ;;  %v834_v28 = vpop.f32.mrf.mxu0 }
 0x135   :  { %v2600_v29 = vpack.c.bf16 %v1414_v24, %v1413_v23  ;;  %v835_v30 = vadd.f32 %v834_v28, %v3223_v47  ;;  %v1176_v31 = vpop.f32.mrf.mxu1  ;;  %v1416_v36 = vmax.f32 %v833_v25, 0.0 }
 0x136   :  { %v2665_v33 = vpack.c.bf16 %v1418_v27, %v1418_v27  ;;  %v1177_v34 = vadd.f32 %v1176_v31, %v3216_v43  ;;  %v836_v35 = vpop.f32.mrf.mxu0 }
 0x137   :  { %1967 = vst [vmem:[%s3917_s3 + $0x58] sm:$0xff] %v2600_v29  ;;  %v1417_v37 = vmax.f32 %v835_v30, 0.0  ;;  %v837_v38 = vadd.f32 %v836_v35, %v3221_v45  ;;  %v1178_v39 = vpop.f32.mrf.mxu1 }
 0x138   :  { %2289 = vst.msk [vmem:[%s3916_s4 + $0x30] sm:$0xf] %vm2276_vm0, %v2665_v33  ;;  %v1421_v40 = vmax.f32 %v1177_v34, 0.0  ;;  %v838_v41 = vpop.f32.mrf.mxu0 }
 0x139   :  { %v2601_v42 = vpack.c.bf16 %v1417_v37, %v1416_v36  ;;  %v839_v44 = vadd.f32 %v838_v41, %v3223_v47  ;;  %v1181_v46 = vpop.f32.mrf.mxu1  ;;  %1372 = vmatmul.mubr.bf16.gmra.mxu1 %v2871_v32  ;;  %v1419_v51 = vmax.f32 %v837_v38, 0.0 }
 0x13a   :  { %v2666_v48 = vpack.c.bf16 %v1421_v40, %v1421_v40  ;;  %v1182_v49 = vadd.f32 %v1181_v46, %v3216_v43  ;;  %v842_v50 = vpop.f32.mrf.mxu0  ;;  %1081 = vmatmul.mubr.bf16.gmra.mxu0 %v2871_v32 }
 0x13b   :  { %1968 = vst [vmem:[%s3917_s3 + $0x60] sm:$0xff] %v2601_v42  ;;  %v1420_v52 = vmax.f32 %v839_v44, 0.0  ;;  %v843_v53 = vadd.f32 %v842_v50, %v3221_v45  ;;  %v1183_v54 = vpop.f32.mrf.mxu1 }
 0x13c   :  { %2290 = vst.msk [vmem:[%s3916_s4 + $0x34] sm:$0xf] %vm2276_vm0, %v2666_v48  ;;  %v1424_v55 = vmax.f32 %v1182_v49, 0.0  ;;  %v844_v56 = vpop.f32.mrf.mxu0 }
 0x13d   :  { %v2602_v57 = vpack.c.bf16 %v1420_v52, %v1419_v51  ;;  %v845_v58 = vadd.f32 %v844_v56, %v3223_v47  ;;  %v1184_v59 = vpop.f32.mrf.mxu1  ;;  %v1422_v63 = vmax.f32 %v843_v53, 0.0 }
 0x13e   :  { %v2667_v60 = vpack.c.bf16 %v1424_v55, %v1424_v55  ;;  %v1185_v61 = vadd.f32 %v1184_v59, %v3216_v43  ;;  %v846_v62 = vpop.f32.mrf.mxu0 }
 0x13f   :  { %1969 = vst [vmem:[%s3917_s3 + $0x68] sm:$0xff] %v2602_v57  ;;  %v1423_v0 = vmax.f32 %v845_v58, 0.0  ;;  %v847_v1 = vadd.f32 %v846_v62, %v3221_v45  ;;  %v1186_v2 = vpop.f32.mrf.mxu1 }
 0x140   :  { %2291 = vst.msk [vmem:[%s3916_s4 + $0x38] sm:$0xf] %vm2276_vm0, %v2667_v60  ;;  %v1427_v3 = vmax.f32 %v1185_v61, 0.0  ;;  %v848_v4 = vpop.f32.mrf.mxu0 }
 0x141   :  { %v2603_v5 = vpack.c.bf16 %v1423_v0, %v1422_v63  ;;  %v849_v6 = vadd.f32 %v848_v4, %v3223_v47  ;;  %v1189_v7 = vpop.f32.mrf.mxu1  ;;  %v1425_v11 = vmax.f32 %v847_v1, 0.0 }
 0x142   :  { %v2668_v8 = vpack.c.bf16 %v1427_v3, %v1427_v3  ;;  %v1190_v9 = vadd.f32 %v1189_v7, %v3216_v43  ;;  %v852_v10 = vpop.f32.mrf.mxu0 }
 0x143   :  { %1970 = vst [vmem:[%s3917_s3 + $0x70] sm:$0xff] %v2603_v5  ;;  %v1426_v12 = vmax.f32 %v849_v6, 0.0  ;;  %v853_v13 = vadd.f32 %v852_v10, %v3221_v45  ;;  %v1191_v14 = vpop.f32.mrf.mxu1 }
 0x144   :  { %2292 = vst.msk [vmem:[%s3916_s4 + $0x3c] sm:$0xf] %vm2276_vm0, %v2668_v8  ;;  %v1430_v15 = vmax.f32 %v1190_v9, 0.0  ;;  %v854_v16 = vpop.f32.mrf.mxu0 }
 0x145   :  { %v2604_v17 = vpack.c.bf16 %v1426_v12, %v1425_v11  ;;  %v855_v18 = vadd.f32 %v854_v16, %v3223_v47  ;;  %v1192_v19 = vpop.f32.mrf.mxu1  ;;  %v1428_v23 = vmax.f32 %v853_v13, 0.0 }
 0x146   :  { %v2669_v20 = vpack.c.bf16 %v1430_v15, %v1430_v15  ;;  %v1193_v21 = vadd.f32 %v1192_v19, %v3216_v43  ;;  %v856_v22 = vpop.f32.mrf.mxu0 }
 0x147   :  { %1971 = vst [vmem:[%s3917_s3 + $0x78] sm:$0xff] %v2604_v17  ;;  %v1429_v24 = vmax.f32 %v855_v18, 0.0  ;;  %v857_v25 = vadd.f32 %v856_v22, %v3221_v45  ;;  %v1194_v26 = vpop.f32.mrf.mxu1 }
 0x148   :  { %2293 = vst.msk [vmem:[%s3916_s4 + $0x40] sm:$0xf] %vm2276_vm0, %v2669_v20  ;;  %v1433_v27 = vmax.f32 %v1193_v21, 0.0  ;;  %v858_v28 = vpop.f32.mrf.mxu0 }
 0x149   :  { %v2605_v29 = vpack.c.bf16 %v1429_v24, %v1428_v23  ;;  %v859_v30 = vadd.f32 %v858_v28, %v3223_v47  ;;  %v1197_v31 = vpop.f32.mrf.mxu1  ;;  %v1431_v35 = vmax.f32 %v857_v25, 0.0 }
 0x14a   :  { %v2670_v32 = vpack.c.bf16 %v1433_v27, %v1433_v27  ;;  %v1198_v33 = vadd.f32 %v1197_v31, %v3216_v43  ;;  %v862_v34 = vpop.f32.mrf.mxu0 }
 0x14b   :  { %1972 = vst [vmem:[%s3917_s3 + $0x80] sm:$0xff] %v2605_v29  ;;  %v1432_v36 = vmax.f32 %v859_v30, 0.0  ;;  %v863_v37 = vadd.f32 %v862_v34, %v3221_v45  ;;  %v1199_v38 = vpop.f32.mrf.mxu1 }
 0x14c   :  { %2294 = vst.msk [vmem:[%s3916_s4 + $0x44] sm:$0xf] %vm2276_vm0, %v2670_v32  ;;  %v1436_v39 = vmax.f32 %v1198_v33, 0.0  ;;  %v864_v40 = vpop.f32.mrf.mxu0 }
 0x14d   :  { %v2606_v41 = vpack.c.bf16 %v1432_v36, %v1431_v35  ;;  %v865_v42 = vadd.f32 %v864_v40, %v3223_v47  ;;  %v1200_v44 = vpop.f32.mrf.mxu1  ;;  %v1434_v50 = vmax.f32 %v863_v37, 0.0 }
 0x14e   :  { %v2671_v46 = vpack.c.bf16 %v1436_v39, %v1436_v39  ;;  %v1201_v48 = vadd.f32 %v1200_v44, %v3216_v43  ;;  %v866_v49 = vpop.f32.mrf.mxu0 }
 0x14f   :  { %1973 = vst [vmem:[%s3917_s3 + $0x88] sm:$0xff] %v2606_v41  ;;  %v1435_v51 = vmax.f32 %v865_v42, 0.0  ;;  %v867_v52 = vadd.f32 %v866_v49, %v3221_v45  ;;  %v1202_v53 = vpop.f32.mrf.mxu1 }
 0x150   :  { %2295 = vst.msk [vmem:[%s3916_s4 + $0x48] sm:$0xf] %vm2276_vm0, %v2671_v46  ;;  %v1439_v54 = vmax.f32 %v1201_v48, 0.0  ;;  %v868_v55 = vpop.f32.mrf.mxu0 }
 0x151   :  { %v2607_v56 = vpack.c.bf16 %v1435_v51, %v1434_v50  ;;  %v869_v57 = vadd.f32 %v868_v55, %v3223_v47  ;;  %v1205_v58 = vpop.f32.mrf.mxu1  ;;  %v1437_v62 = vmax.f32 %v867_v52, 0.0 }
 0x152   :  { %v2672_v59 = vpack.c.bf16 %v1439_v54, %v1439_v54  ;;  %v1206_v60 = vadd.f32 %v1205_v58, %v3216_v43  ;;  %v872_v61 = vpop.f32.mrf.mxu0 }
 0x153   :  { %1974 = vst [vmem:[%s3917_s3 + $0x90] sm:$0xff] %v2607_v56  ;;  %v1438_v63 = vmax.f32 %v869_v57, 0.0  ;;  %v873_v0 = vadd.f32 %v872_v61, %v3221_v45  ;;  %v1207_v1 = vpop.f32.mrf.mxu1 }
 0x154   :  { %2296 = vst.msk [vmem:[%s3916_s4 + $0x4c] sm:$0xf] %vm2276_vm0, %v2672_v59  ;;  %v1442_v2 = vmax.f32 %v1206_v60, 0.0  ;;  %v874_v3 = vpop.f32.mrf.mxu0 }
 0x155   :  { %v2608_v4 = vpack.c.bf16 %v1438_v63, %v1437_v62  ;;  %v875_v5 = vadd.f32 %v874_v3, %v3223_v47  ;;  %v1208_v6 = vpop.f32.mrf.mxu1  ;;  %v1440_v10 = vmax.f32 %v873_v0, 0.0 }
 0x156   :  { %v2673_v7 = vpack.c.bf16 %v1442_v2, %v1442_v2  ;;  %v1209_v8 = vadd.f32 %v1208_v6, %v3216_v43  ;;  %v876_v9 = vpop.f32.mrf.mxu0 }
 0x157   :  { %1975 = vst [vmem:[%s3917_s3 + $0x98] sm:$0xff] %v2608_v4  ;;  %v1441_v11 = vmax.f32 %v875_v5, 0.0  ;;  %v877_v12 = vadd.f32 %v876_v9, %v3221_v45  ;;  %v1210_v13 = vpop.f32.mrf.mxu1 }
 0x158   :  { %2297 = vst.msk [vmem:[%s3916_s4 + $0x50] sm:$0xf] %vm2276_vm0, %v2673_v7  ;;  %v1445_v14 = vmax.f32 %v1209_v8, 0.0  ;;  %v878_v15 = vpop.f32.mrf.mxu0 }
 0x159   :  { %v2609_v16 = vpack.c.bf16 %v1441_v11, %v1440_v10  ;;  %v879_v17 = vadd.f32 %v878_v15, %v3223_v47  ;;  %v1213_v18 = vpop.f32.mrf.mxu1  ;;  %v1443_v22 = vmax.f32 %v877_v12, 0.0 }
 0x15a   :  { %v2674_v19 = vpack.c.bf16 %v1445_v14, %v1445_v14  ;;  %v1214_v20 = vadd.f32 %v1213_v18, %v3216_v43  ;;  %v882_v21 = vpop.f32.mrf.mxu0 }
 0x15b   :  { %1976 = vst [vmem:[%s3917_s3 + $0xa0] sm:$0xff] %v2609_v16  ;;  %v1444_v23 = vmax.f32 %v879_v17, 0.0  ;;  %v883_v24 = vadd.f32 %v882_v21, %v3221_v45  ;;  %v1215_v25 = vpop.f32.mrf.mxu1 }
 0x15c   :  { %2298 = vst.msk [vmem:[%s3916_s4 + $0x54] sm:$0xf] %vm2276_vm0, %v2674_v19  ;;  %v1448_v26 = vmax.f32 %v1214_v20, 0.0  ;;  %v884_v27 = vpop.f32.mrf.mxu0 }
 0x15d   :  { %v2610_v28 = vpack.c.bf16 %v1444_v23, %v1443_v22  ;;  %v885_v29 = vadd.f32 %v884_v27, %v3223_v47  ;;  %v1216_v30 = vpop.f32.mrf.mxu1  ;;  %v1446_v34 = vmax.f32 %v883_v24, 0.0 }
 0x15e   :  { %v2675_v31 = vpack.c.bf16 %v1448_v26, %v1448_v26  ;;  %v1217_v32 = vadd.f32 %v1216_v30, %v3216_v43  ;;  %v886_v33 = vpop.f32.mrf.mxu0 }
 0x15f   :  { %1977 = vst [vmem:[%s3917_s3 + $0xa8] sm:$0xff] %v2610_v28  ;;  %v1447_v35 = vmax.f32 %v885_v29, 0.0  ;;  %v887_v36 = vadd.f32 %v886_v33, %v3221_v45  ;;  %v1218_v37 = vpop.f32.mrf.mxu1 }
 0x160   :  { %2299 = vst.msk [vmem:[%s3916_s4 + $0x58] sm:$0xf] %vm2276_vm0, %v2675_v31  ;;  %v1451_v38 = vmax.f32 %v1217_v32, 0.0  ;;  %v888_v39 = vpop.f32.mrf.mxu0 }
 0x161   :  { %v2611_v40 = vpack.c.bf16 %v1447_v35, %v1446_v34  ;;  %v889_v41 = vadd.f32 %v888_v39, %v3223_v47  ;;  %v1221_v42 = vpop.f32.mrf.mxu1  ;;  %v1449_v49 = vmax.f32 %v887_v36, 0.0 }
 0x162   :  { %v2676_v44 = vpack.c.bf16 %v1451_v38, %v1451_v38  ;;  %v1222_v46 = vadd.f32 %v1221_v42, %v3216_v43  ;;  %v892_v48 = vpop.f32.mrf.mxu0 }
 0x163   :  { %1978 = vst [vmem:[%s3917_s3 + $0xb0] sm:$0xff] %v2611_v40  ;;  %v1450_v50 = vmax.f32 %v889_v41, 0.0  ;;  %v893_v51 = vadd.f32 %v892_v48, %v3221_v45  ;;  %v1223_v52 = vpop.f32.mrf.mxu1 }
 0x164   :  { %2300 = vst.msk [vmem:[%s3916_s4 + $0x5c] sm:$0xf] %vm2276_vm0, %v2676_v44  ;;  %v1454_v53 = vmax.f32 %v1222_v46, 0.0  ;;  %v894_v54 = vpop.f32.mrf.mxu0 }
 0x165   :  { %v2612_v55 = vpack.c.bf16 %v1450_v50, %v1449_v49  ;;  %v895_v56 = vadd.f32 %v894_v54, %v3223_v47  ;;  %v1224_v57 = vpop.f32.mrf.mxu1  ;;  %v1452_v61 = vmax.f32 %v893_v51, 0.0 }
 0x166   :  { %v2677_v58 = vpack.c.bf16 %v1454_v53, %v1454_v53  ;;  %v1225_v59 = vadd.f32 %v1224_v57, %v3216_v43  ;;  %v896_v60 = vpop.f32.mrf.mxu0 }
 0x167   :  { %1979 = vst [vmem:[%s3917_s3 + $0xb8] sm:$0xff] %v2612_v55  ;;  %v1453_v62 = vmax.f32 %v895_v56, 0.0  ;;  %v897_v63 = vadd.f32 %v896_v60, %v3221_v45  ;;  %v1226_v0 = vpop.f32.mrf.mxu1 }
 0x168   :  { %2301 = vst.msk [vmem:[%s3916_s4 + $0x60] sm:$0xf] %vm2276_vm0, %v2677_v58  ;;  %v1457_v1 = vmax.f32 %v1225_v59, 0.0  ;;  %v898_v2 = vpop.f32.mrf.mxu0 }
 0x169   :  { %v2613_v3 = vpack.c.bf16 %v1453_v62, %v1452_v61  ;;  %v899_v4 = vadd.f32 %v898_v2, %v3223_v47  ;;  %v1229_v5 = vpop.f32.mrf.mxu1  ;;  %v1455_v9 = vmax.f32 %v897_v63, 0.0 }
 0x16a   :  { %v2678_v6 = vpack.c.bf16 %v1457_v1, %v1457_v1  ;;  %v1230_v7 = vadd.f32 %v1229_v5, %v3216_v43  ;;  %v902_v8 = vpop.f32.mrf.mxu0 }
 0x16b   :  { %1980 = vst [vmem:[%s3917_s3 + $0xc0] sm:$0xff] %v2613_v3  ;;  %v1456_v10 = vmax.f32 %v899_v4, 0.0  ;;  %v903_v11 = vadd.f32 %v902_v8, %v3221_v45  ;;  %v1231_v12 = vpop.f32.mrf.mxu1 }
 0x16c   :  { %2302 = vst.msk [vmem:[%s3916_s4 + $0x64] sm:$0xf] %vm2276_vm0, %v2678_v6  ;;  %v1460_v13 = vmax.f32 %v1230_v7, 0.0  ;;  %v904_v14 = vpop.f32.mrf.mxu0 }
 0x16d   :  { %v2614_v15 = vpack.c.bf16 %v1456_v10, %v1455_v9  ;;  %v905_v16 = vadd.f32 %v904_v14, %v3223_v47  ;;  %v1232_v17 = vpop.f32.mrf.mxu1  ;;  %v1458_v21 = vmax.f32 %v903_v11, 0.0 }
 0x16e   :  { %v2679_v18 = vpack.c.bf16 %v1460_v13, %v1460_v13  ;;  %v1233_v19 = vadd.f32 %v1232_v17, %v3216_v43  ;;  %v906_v20 = vpop.f32.mrf.mxu0 }
 0x16f   :  { %1981 = vst [vmem:[%s3917_s3 + $0xc8] sm:$0xff] %v2614_v15  ;;  %v1459_v22 = vmax.f32 %v905_v16, 0.0  ;;  %v907_v23 = vadd.f32 %v906_v20, %v3221_v45  ;;  %v1234_v24 = vpop.f32.mrf.mxu1 }
 0x170   :  { %2303 = vst.msk [vmem:[%s3916_s4 + $0x68] sm:$0xf] %vm2276_vm0, %v2679_v18  ;;  %v1463_v25 = vmax.f32 %v1233_v19, 0.0  ;;  %v908_v26 = vpop.f32.mrf.mxu0 }
 0x171   :  { %v2615_v27 = vpack.c.bf16 %v1459_v22, %v1458_v21  ;;  %v909_v28 = vadd.f32 %v908_v26, %v3223_v47  ;;  %v1237_v29 = vpop.f32.mrf.mxu1  ;;  %v1461_v33 = vmax.f32 %v907_v23, 0.0 }
 0x172   :  { %v2680_v30 = vpack.c.bf16 %v1463_v25, %v1463_v25  ;;  %v1238_v31 = vadd.f32 %v1237_v29, %v3216_v43  ;;  %v912_v32 = vpop.f32.mrf.mxu0 }
 0x173   :  { %1982 = vst [vmem:[%s3917_s3 + $0xd0] sm:$0xff] %v2615_v27  ;;  %v1462_v34 = vmax.f32 %v909_v28, 0.0  ;;  %v913_v35 = vadd.f32 %v912_v32, %v3221_v45  ;;  %v1239_v36 = vpop.f32.mrf.mxu1 }
 0x174   :  { %2304 = vst.msk [vmem:[%s3916_s4 + $0x6c] sm:$0xf] %vm2276_vm0, %v2680_v30  ;;  %v1466_v37 = vmax.f32 %v1238_v31, 0.0  ;;  %v914_v38 = vpop.f32.mrf.mxu0 }
 0x175   :  { %v2616_v39 = vpack.c.bf16 %v1462_v34, %v1461_v33  ;;  %v915_v40 = vadd.f32 %v914_v38, %v3223_v47  ;;  %v1240_v41 = vpop.f32.mrf.mxu1  ;;  %v1464_v48 = vmax.f32 %v913_v35, 0.0 }
 0x176   :  { %v2681_v42 = vpack.c.bf16 %v1466_v37, %v1466_v37  ;;  %v1241_v44 = vadd.f32 %v1240_v41, %v3216_v43  ;;  %v916_v46 = vpop.f32.mrf.mxu0 }
 0x177   :  { %1983 = vst [vmem:[%s3917_s3 + $0xd8] sm:$0xff] %v2616_v39  ;;  %v1465_v49 = vmax.f32 %v915_v40, 0.0  ;;  %v917_v50 = vadd.f32 %v916_v46, %v3221_v45  ;;  %v1242_v51 = vpop.f32.mrf.mxu1 }
 0x178   :  { %2305 = vst.msk [vmem:[%s3916_s4 + $0x70] sm:$0xf] %vm2276_vm0, %v2681_v42  ;;  %v1469_v52 = vmax.f32 %v1241_v44, 0.0  ;;  %v918_v53 = vpop.f32.mrf.mxu0 }
 0x179   :  { %v2617_v54 = vpack.c.bf16 %v1465_v49, %v1464_v48  ;;  %v919_v55 = vadd.f32 %v918_v53, %v3223_v47  ;;  %v1245_v56 = vpop.f32.mrf.mxu1  ;;  %v1467_v60 = vmax.f32 %v917_v50, 0.0 }
 0x17a   :  { %v2682_v57 = vpack.c.bf16 %v1469_v52, %v1469_v52  ;;  %v1246_v58 = vadd.f32 %v1245_v56, %v3216_v43  ;;  %v922_v59 = vpop.f32.mrf.mxu0 }
 0x17b   :  { %1984 = vst [vmem:[%s3917_s3 + $0xe0] sm:$0xff] %v2617_v54  ;;  %v1468_v61 = vmax.f32 %v919_v55, 0.0  ;;  %v923_v62 = vadd.f32 %v922_v59, %v3221_v45  ;;  %v1247_v63 = vpop.f32.mrf.mxu1 }
 0x17c   :  { %2306 = vst.msk [vmem:[%s3916_s4 + $0x74] sm:$0xf] %vm2276_vm0, %v2682_v57  ;;  %v1472_v0 = vmax.f32 %v1246_v58, 0.0  ;;  %v924_v1 = vpop.f32.mrf.mxu0 }
 0x17d   :  { %v2618_v2 = vpack.c.bf16 %v1468_v61, %v1467_v60  ;;  %v925_v3 = vadd.f32 %v924_v1, %v3223_v47  ;;  %v1248_v4 = vpop.f32.mrf.mxu1  ;;  %v1470_v8 = vmax.f32 %v923_v62, 0.0 }
 0x17e   :  { %v2683_v5 = vpack.c.bf16 %v1472_v0, %v1472_v0  ;;  %v1249_v6 = vadd.f32 %v1248_v4, %v3216_v43  ;;  %v926_v7 = vpop.f32.mrf.mxu0 }
 0x17f   :  { %1985 = vst [vmem:[%s3917_s3 + $0xe8] sm:$0xff] %v2618_v2  ;;  %v1471_v9 = vmax.f32 %v925_v3, 0.0  ;;  %v927_v10 = vadd.f32 %v926_v7, %v3221_v45  ;;  %v1250_v11 = vpop.f32.mrf.mxu1 }
 0x180   :  { %2307 = vst.msk [vmem:[%s3916_s4 + $0x78] sm:$0xf] %vm2276_vm0, %v2683_v5  ;;  %v1475_v12 = vmax.f32 %v1249_v6, 0.0  ;;  %v928_v13 = vpop.f32.mrf.mxu0 }
 0x181   :  { %v2619_v14 = vpack.c.bf16 %v1471_v9, %v1470_v8  ;;  %v929_v15 = vadd.f32 %v928_v13, %v3223_v47  ;;  %v1253_v16 = vpop.f32.mrf.mxu1  ;;  %v1473_v20 = vmax.f32 %v927_v10, 0.0 }
 0x182   :  { %v2684_v17 = vpack.c.bf16 %v1475_v12, %v1475_v12  ;;  %v1254_v18 = vadd.f32 %v1253_v16, %v3216_v43  ;;  %v932_v19 = vpop.f32.mrf.mxu0 }
 0x183   :  { %1986 = vst [vmem:[%s3917_s3 + $0xf0] sm:$0xff] %v2619_v14  ;;  %v1474_v21 = vmax.f32 %v929_v15, 0.0  ;;  %v933_v22 = vadd.f32 %v932_v19, %v3221_v45  ;;  %v1255_v23 = vpop.f32.mrf.mxu1 }
 0x184   :  { %2308 = vst.msk [vmem:[%s3916_s4 + $0x7c] sm:$0xf] %vm2276_vm0, %v2684_v17  ;;  %v1478_v24 = vmax.f32 %v1254_v18, 0.0  ;;  %v934_v25 = vpop.f32.mrf.mxu0 }
 0x185   :  { %v2620_v26 = vpack.c.bf16 %v1474_v21, %v1473_v20  ;;  %v935_v27 = vadd.f32 %v934_v25, %v3223_v47  ;;  %v1256_v28 = vpop.f32.mrf.mxu1  ;;  %v1476_v32 = vmax.f32 %v933_v22, 0.0 }
 0x186   :  { %v2685_v29 = vpack.c.bf16 %v1478_v24, %v1478_v24  ;;  %v1257_v30 = vadd.f32 %v1256_v28, %v3216_v43  ;;  %v936_v31 = vpop.f32.mrf.mxu0 }
 0x187   :  { %1987 = vst [vmem:[%s3917_s3 + $0xf8] sm:$0xff] %v2620_v26  ;;  %v1477_v33 = vmax.f32 %v935_v27, 0.0  ;;  %v937_v34 = vadd.f32 %v936_v31, %v3221_v45  ;;  %v1258_v35 = vpop.f32.mrf.mxu1 }
 0x188   :  { %2309 = vst.msk [vmem:[%s3916_s4 + $0x80] sm:$0xf] %vm2276_vm0, %v2685_v29  ;;  %v1481_v36 = vmax.f32 %v1257_v30, 0.0  ;;  %v938_v37 = vpop.f32.mrf.mxu0 }
 0x189   :  { %v2621_v38 = vpack.c.bf16 %v1477_v33, %v1476_v32  ;;  %v939_v39 = vadd.f32 %v938_v37, %v3223_v47  ;;  %v1261_v40 = vpop.f32.mrf.mxu1  ;;  %v1479_v46 = vmax.f32 %v937_v34, 0.0 }
 0x18a   :  { %v2686_v41 = vpack.c.bf16 %v1481_v36, %v1481_v36  ;;  %v1262_v42 = vadd.f32 %v1261_v40, %v3216_v43  ;;  %v942_v44 = vpop.f32.mrf.mxu0 }
 0x18b   :  { %1988 = vst [vmem:[%s3917_s3 + $0x100] sm:$0xff] %v2621_v38  ;;  %v1480_v48 = vmax.f32 %v939_v39, 0.0  ;;  %v943_v49 = vadd.f32 %v942_v44, %v3221_v45  ;;  %v1263_v50 = vpop.f32.mrf.mxu1 }
 0x18c   :  { %2310 = vst.msk [vmem:[%s3916_s4 + $0x84] sm:$0xf] %vm2276_vm0, %v2686_v41  ;;  %v1484_v51 = vmax.f32 %v1262_v42, 0.0  ;;  %v944_v52 = vpop.f32.mrf.mxu0 }
 0x18d   :  { %v2622_v53 = vpack.c.bf16 %v1480_v48, %v1479_v46  ;;  %v945_v54 = vadd.f32 %v944_v52, %v3223_v47  ;;  %v1264_v55 = vpop.f32.mrf.mxu1  ;;  %v1482_v59 = vmax.f32 %v943_v49, 0.0 }
 0x18e   :  { %v2687_v56 = vpack.c.bf16 %v1484_v51, %v1484_v51  ;;  %v1265_v57 = vadd.f32 %v1264_v55, %v3216_v43  ;;  %v946_v58 = vpop.f32.mrf.mxu0 }
 0x18f   :  { %1989 = vst [vmem:[%s3917_s3 + $0x108] sm:$0xff] %v2622_v53  ;;  %v1483_v60 = vmax.f32 %v945_v54, 0.0  ;;  %v947_v61 = vadd.f32 %v946_v58, %v3221_v45  ;;  %v1266_v62 = vpop.f32.mrf.mxu1 }
 0x190   :  { %2311 = vst.msk [vmem:[%s3916_s4 + $0x88] sm:$0xf] %vm2276_vm0, %v2687_v56  ;;  %v1487_v63 = vmax.f32 %v1265_v57, 0.0  ;;  %v948_v0 = vpop.f32.mrf.mxu0 }
 0x191   :  { %v2623_v1 = vpack.c.bf16 %v1483_v60, %v1482_v59  ;;  %v949_v2 = vadd.f32 %v948_v0, %v3223_v47  ;;  %v1269_v3 = vpop.f32.mrf.mxu1  ;;  %v1485_v7 = vmax.f32 %v947_v61, 0.0 }
 0x192   :  { %v2688_v4 = vpack.c.bf16 %v1487_v63, %v1487_v63  ;;  %v1270_v5 = vadd.f32 %v1269_v3, %v3216_v43  ;;  %v952_v6 = vpop.f32.mrf.mxu0 }
 0x193   :  { %1990 = vst [vmem:[%s3917_s3 + $0x110] sm:$0xff] %v2623_v1  ;;  %v1486_v8 = vmax.f32 %v949_v2, 0.0  ;;  %v953_v9 = vadd.f32 %v952_v6, %v3221_v45  ;;  %v1271_v10 = vpop.f32.mrf.mxu1 }
 0x194   :  { %2312 = vst.msk [vmem:[%s3916_s4 + $0x8c] sm:$0xf] %vm2276_vm0, %v2688_v4  ;;  %v1490_v11 = vmax.f32 %v1270_v5, 0.0  ;;  %v954_v12 = vpop.f32.mrf.mxu0 }
 0x195   :  { %v2624_v13 = vpack.c.bf16 %v1486_v8, %v1485_v7  ;;  %v955_v14 = vadd.f32 %v954_v12, %v3223_v47  ;;  %v1272_v15 = vpop.f32.mrf.mxu1  ;;  %v1488_v19 = vmax.f32 %v953_v9, 0.0 }
 0x196   :  { %v2689_v16 = vpack.c.bf16 %v1490_v11, %v1490_v11  ;;  %v1273_v17 = vadd.f32 %v1272_v15, %v3216_v43  ;;  %v956_v18 = vpop.f32.mrf.mxu0 }
 0x197   :  { %1991 = vst [vmem:[%s3917_s3 + $0x118] sm:$0xff] %v2624_v13  ;;  %v1489_v20 = vmax.f32 %v955_v14, 0.0  ;;  %v957_v21 = vadd.f32 %v956_v18, %v3221_v45  ;;  %v1274_v22 = vpop.f32.mrf.mxu1 }
 0x198   :  { %2313 = vst.msk [vmem:[%s3916_s4 + $0x90] sm:$0xf] %vm2276_vm0, %v2689_v16  ;;  %v1493_v23 = vmax.f32 %v1273_v17, 0.0  ;;  %v958_v24 = vpop.f32.mrf.mxu0 }
 0x199   :  { %v2625_v25 = vpack.c.bf16 %v1489_v20, %v1488_v19  ;;  %v959_v26 = vadd.f32 %v958_v24, %v3223_v47  ;;  %v1277_v27 = vpop.f32.mrf.mxu1  ;;  %v1491_v31 = vmax.f32 %v957_v21, 0.0 }
 0x19a   :  { %v2690_v28 = vpack.c.bf16 %v1493_v23, %v1493_v23  ;;  %v1278_v29 = vadd.f32 %v1277_v27, %v3216_v43  ;;  %v962_v30 = vpop.f32.mrf.mxu0 }
 0x19b   :  { %1992 = vst [vmem:[%s3917_s3 + $0x120] sm:$0xff] %v2625_v25  ;;  %v1492_v32 = vmax.f32 %v959_v26, 0.0  ;;  %v963_v33 = vadd.f32 %v962_v30, %v3221_v45  ;;  %v1279_v34 = vpop.f32.mrf.mxu1 }
 0x19c   :  { %2314 = vst.msk [vmem:[%s3916_s4 + $0x94] sm:$0xf] %vm2276_vm0, %v2690_v28  ;;  %v1496_v35 = vmax.f32 %v1278_v29, 0.0  ;;  %v964_v36 = vpop.f32.mrf.mxu0 }
 0x19d   :  { %v2626_v37 = vpack.c.bf16 %v1492_v32, %v1491_v31  ;;  %v965_v38 = vadd.f32 %v964_v36, %v3223_v47  ;;  %v1280_v39 = vpop.f32.mrf.mxu1  ;;  %v1494_v44 = vmax.f32 %v963_v33, 0.0 }
 0x19e   :  { %v2691_v40 = vpack.c.bf16 %v1496_v35, %v1496_v35  ;;  %v1281_v41 = vadd.f32 %v1280_v39, %v3216_v43  ;;  %v966_v42 = vpop.f32.mrf.mxu0 }
 0x19f   :  { %1993 = vst [vmem:[%s3917_s3 + $0x128] sm:$0xff] %v2626_v37  ;;  %v1495_v46 = vmax.f32 %v965_v38, 0.0  ;;  %v967_v48 = vadd.f32 %v966_v42, %v3221_v45  ;;  %v1282_v49 = vpop.f32.mrf.mxu1 }
 0x1a0   :  { %2315 = vst.msk [vmem:[%s3916_s4 + $0x98] sm:$0xf] %vm2276_vm0, %v2691_v40  ;;  %v1499_v50 = vmax.f32 %v1281_v41, 0.0  ;;  %v968_v51 = vpop.f32.mrf.mxu0 }
 0x1a1   :  { %v2627_v52 = vpack.c.bf16 %v1495_v46, %v1494_v44  ;;  %v969_v53 = vadd.f32 %v968_v51, %v3223_v47  ;;  %v1285_v54 = vpop.f32.mrf.mxu1  ;;  %v1497_v58 = vmax.f32 %v967_v48, 0.0 }
 0x1a2   :  { %v2692_v55 = vpack.c.bf16 %v1499_v50, %v1499_v50  ;;  %v1286_v56 = vadd.f32 %v1285_v54, %v3216_v43  ;;  %v972_v57 = vpop.f32.mrf.mxu0 }
 0x1a3   :  { %1994 = vst [vmem:[%s3917_s3 + $0x130] sm:$0xff] %v2627_v52  ;;  %v1498_v59 = vmax.f32 %v969_v53, 0.0  ;;  %v973_v60 = vadd.f32 %v972_v57, %v3221_v45  ;;  %v1287_v61 = vpop.f32.mrf.mxu1 }
 0x1a4   :  { %2316 = vst.msk [vmem:[%s3916_s4 + $0x9c] sm:$0xf] %vm2276_vm0, %v2692_v55  ;;  %v1502_v62 = vmax.f32 %v1286_v56, 0.0  ;;  %v974_v63 = vpop.f32.mrf.mxu0 }
 0x1a5   :  { %v2628_v0 = vpack.c.bf16 %v1498_v59, %v1497_v58  ;;  %v975_v1 = vadd.f32 %v974_v63, %v3223_v47  ;;  %v1288_v2 = vpop.f32.mrf.mxu1  ;;  %v1500_v6 = vmax.f32 %v973_v60, 0.0 }
 0x1a6   :  { %v2693_v3 = vpack.c.bf16 %v1502_v62, %v1502_v62  ;;  %v1289_v4 = vadd.f32 %v1288_v2, %v3216_v43  ;;  %v976_v5 = vpop.f32.mrf.mxu0 }
 0x1a7   :  { %1995 = vst [vmem:[%s3917_s3 + $0x138] sm:$0xff] %v2628_v0  ;;  %v1501_v7 = vmax.f32 %v975_v1, 0.0  ;;  %v977_v8 = vadd.f32 %v976_v5, %v3221_v45  ;;  %v1290_v9 = vpop.f32.mrf.mxu1 }
 0x1a8   :  { %2317 = vst.msk [vmem:[%s3916_s4 + $0xa0] sm:$0xf] %vm2276_vm0, %v2693_v3  ;;  %v1505_v10 = vmax.f32 %v1289_v4, 0.0  ;;  %v978_v11 = vpop.f32.mrf.mxu0 }
 0x1a9   :  { %v2629_v12 = vpack.c.bf16 %v1501_v7, %v1500_v6  ;;  %v979_v13 = vadd.f32 %v978_v11, %v3223_v47  ;;  %v1293_v14 = vpop.f32.mrf.mxu1  ;;  %v1503_v18 = vmax.f32 %v977_v8, 0.0 }
 0x1aa   :  { %v2694_v15 = vpack.c.bf16 %v1505_v10, %v1505_v10  ;;  %v1294_v16 = vadd.f32 %v1293_v14, %v3216_v43  ;;  %v982_v17 = vpop.f32.mrf.mxu0 }
 0x1ab   :  { %1996 = vst [vmem:[%s3917_s3 + $0x140] sm:$0xff] %v2629_v12  ;;  %v1504_v19 = vmax.f32 %v979_v13, 0.0  ;;  %v983_v20 = vadd.f32 %v982_v17, %v3221_v45  ;;  %v1295_v21 = vpop.f32.mrf.mxu1 }
 0x1ac   :  { %2318 = vst.msk [vmem:[%s3916_s4 + $0xa4] sm:$0xf] %vm2276_vm0, %v2694_v15  ;;  %v1508_v22 = vmax.f32 %v1294_v16, 0.0  ;;  %v984_v23 = vpop.f32.mrf.mxu0 }
 0x1ad   :  { %v2630_v24 = vpack.c.bf16 %v1504_v19, %v1503_v18  ;;  %v985_v25 = vadd.f32 %v984_v23, %v3223_v47  ;;  %v1296_v26 = vpop.f32.mrf.mxu1  ;;  %v1506_v30 = vmax.f32 %v983_v20, 0.0 }
 0x1ae   :  { %v2695_v27 = vpack.c.bf16 %v1508_v22, %v1508_v22  ;;  %v1297_v28 = vadd.f32 %v1296_v26, %v3216_v43  ;;  %v986_v29 = vpop.f32.mrf.mxu0 }
 0x1af   :  { %1997 = vst [vmem:[%s3917_s3 + $0x148] sm:$0xff] %v2630_v24  ;;  %v1507_v31 = vmax.f32 %v985_v25, 0.0  ;;  %v987_v32 = vadd.f32 %v986_v29, %v3221_v45  ;;  %v1298_v33 = vpop.f32.mrf.mxu1 }
 0x1b0   :  { %2319 = vst.msk [vmem:[%s3916_s4 + $0xa8] sm:$0xf] %vm2276_vm0, %v2695_v27  ;;  %v1511_v34 = vmax.f32 %v1297_v28, 0.0  ;;  %v988_v35 = vpop.f32.mrf.mxu0 }
 0x1b1   :  { %v2631_v36 = vpack.c.bf16 %v1507_v31, %v1506_v30  ;;  %v989_v37 = vadd.f32 %v988_v35, %v3223_v47  ;;  %v1301_v38 = vpop.f32.mrf.mxu1  ;;  %v1509_v42 = vmax.f32 %v987_v32, 0.0 }
 0x1b2   :  { %v2696_v39 = vpack.c.bf16 %v1511_v34, %v1511_v34  ;;  %v1302_v40 = vadd.f32 %v1301_v38, %v3216_v43  ;;  %v992_v41 = vpop.f32.mrf.mxu0 }
 0x1b3   :  { %1998 = vst [vmem:[%s3917_s3 + $0x150] sm:$0xff] %v2631_v36  ;;  %v1510_v44 = vmax.f32 %v989_v37, 0.0  ;;  %v993_v46 = vadd.f32 %v992_v41, %v3221_v45  ;;  %v1303_v48 = vpop.f32.mrf.mxu1 }
 0x1b4   :  { %2320 = vst.msk [vmem:[%s3916_s4 + $0xac] sm:$0xf] %vm2276_vm0, %v2696_v39  ;;  %v1514_v49 = vmax.f32 %v1302_v40, 0.0  ;;  %v994_v50 = vpop.f32.mrf.mxu0 }
 0x1b5   :  { %v2632_v51 = vpack.c.bf16 %v1510_v44, %v1509_v42  ;;  %v995_v52 = vadd.f32 %v994_v50, %v3223_v47  ;;  %v1304_v53 = vpop.f32.mrf.mxu1  ;;  %v1512_v57 = vmax.f32 %v993_v46, 0.0 }
 0x1b6   :  { %v2697_v54 = vpack.c.bf16 %v1514_v49, %v1514_v49  ;;  %v1305_v55 = vadd.f32 %v1304_v53, %v3216_v43  ;;  %v996_v56 = vpop.f32.mrf.mxu0 }
 0x1b7   :  { %1999 = vst [vmem:[%s3917_s3 + $0x158] sm:$0xff] %v2632_v51  ;;  %v1513_v58 = vmax.f32 %v995_v52, 0.0  ;;  %v997_v59 = vadd.f32 %v996_v56, %v3221_v45  ;;  %v1306_v60 = vpop.f32.mrf.mxu1 }
 0x1b8   :  { %2321 = vst.msk [vmem:[%s3916_s4 + $0xb0] sm:$0xf] %vm2276_vm0, %v2697_v54  ;;  %v1517_v61 = vmax.f32 %v1305_v55, 0.0  ;;  %v998_v62 = vpop.f32.mrf.mxu0 }
 0x1b9   :  { %v2633_v63 = vpack.c.bf16 %v1513_v58, %v1512_v57  ;;  %v999_v0 = vadd.f32 %v998_v62, %v3223_v47  ;;  %v1309_v1 = vpop.f32.mrf.mxu1  ;;  %v1515_v5 = vmax.f32 %v997_v59, 0.0 }
 0x1ba   :  { %v2698_v2 = vpack.c.bf16 %v1517_v61, %v1517_v61  ;;  %v1310_v3 = vadd.f32 %v1309_v1, %v3216_v43  ;;  %v1002_v4 = vpop.f32.mrf.mxu0 }
 0x1bb   :  { %2000 = vst [vmem:[%s3917_s3 + $0x160] sm:$0xff] %v2633_v63  ;;  %v1516_v6 = vmax.f32 %v999_v0, 0.0  ;;  %v1003_v7 = vadd.f32 %v1002_v4, %v3221_v45  ;;  %v1311_v8 = vpop.f32.mrf.mxu1 }
 0x1bc   :  { %2322 = vst.msk [vmem:[%s3916_s4 + $0xb4] sm:$0xf] %vm2276_vm0, %v2698_v2  ;;  %v1520_v9 = vmax.f32 %v1310_v3, 0.0  ;;  %v1004_v10 = vpop.f32.mrf.mxu0 }
 0x1bd   :  { %v2634_v11 = vpack.c.bf16 %v1516_v6, %v1515_v5  ;;  %v1005_v12 = vadd.f32 %v1004_v10, %v3223_v47  ;;  %v1312_v13 = vpop.f32.mrf.mxu1  ;;  %v1518_v17 = vmax.f32 %v1003_v7, 0.0 }
 0x1be   :  { %v2699_v14 = vpack.c.bf16 %v1520_v9, %v1520_v9  ;;  %v1313_v15 = vadd.f32 %v1312_v13, %v3216_v43  ;;  %v1006_v16 = vpop.f32.mrf.mxu0 }
 0x1bf   :  { %2001 = vst [vmem:[%s3917_s3 + $0x168] sm:$0xff] %v2634_v11  ;;  %v1519_v18 = vmax.f32 %v1005_v12, 0.0  ;;  %v1007_v19 = vadd.f32 %v1006_v16, %v3221_v45  ;;  %v1314_v20 = vpop.f32.mrf.mxu1 }
 0x1c0   :  { %2323 = vst.msk [vmem:[%s3916_s4 + $0xb8] sm:$0xf] %vm2276_vm0, %v2699_v14  ;;  %v1523_v21 = vmax.f32 %v1313_v15, 0.0  ;;  %v1008_v22 = vpop.f32.mrf.mxu0 }
 0x1c1   :  { %v2635_v23 = vpack.c.bf16 %v1519_v18, %v1518_v17  ;;  %v1009_v24 = vadd.f32 %v1008_v22, %v3223_v47  ;;  %v1317_v25 = vpop.f32.mrf.mxu1  ;;  %v1521_v29 = vmax.f32 %v1007_v19, 0.0 }
 0x1c2   :  { %v2700_v26 = vpack.c.bf16 %v1523_v21, %v1523_v21  ;;  %v1318_v27 = vadd.f32 %v1317_v25, %v3216_v43  ;;  %v1012_v28 = vpop.f32.mrf.mxu0 }
 0x1c3   :  { %2002 = vst [vmem:[%s3917_s3 + $0x170] sm:$0xff] %v2635_v23  ;;  %v1522_v30 = vmax.f32 %v1009_v24, 0.0  ;;  %v1013_v31 = vadd.f32 %v1012_v28, %v3221_v45  ;;  %v1319_v32 = vpop.f32.mrf.mxu1 }
 0x1c4   :  { %2324 = vst.msk [vmem:[%s3916_s4 + $0xbc] sm:$0xf] %vm2276_vm0, %v2700_v26  ;;  %v1526_v33 = vmax.f32 %v1318_v27, 0.0  ;;  %v1014_v34 = vpop.f32.mrf.mxu0 }
 0x1c5   :  { %v2636_v35 = vpack.c.bf16 %v1522_v30, %v1521_v29  ;;  %v1015_v36 = vadd.f32 %v1014_v34, %v3223_v47  ;;  %v1320_v37 = vpop.f32.mrf.mxu1  ;;  %v1524_v41 = vmax.f32 %v1013_v31, 0.0 }
 0x1c6   :  { %v2701_v38 = vpack.c.bf16 %v1526_v33, %v1526_v33  ;;  %v1321_v39 = vadd.f32 %v1320_v37, %v3216_v43  ;;  %v1016_v40 = vpop.f32.mrf.mxu0 }
 0x1c7   :  { %2003 = vst [vmem:[%s3917_s3 + $0x178] sm:$0xff] %v2636_v35  ;;  %v1525_v42 = vmax.f32 %v1015_v36, 0.0  ;;  %v1017_v44 = vadd.f32 %v1016_v40, %v3221_v45  ;;  %v1322_v46 = vpop.f32.mrf.mxu1 }
 0x1c8   :  { %2325 = vst.msk [vmem:[%s3916_s4 + $0xc0] sm:$0xf] %vm2276_vm0, %v2701_v38  ;;  %v1529_v48 = vmax.f32 %v1321_v39, 0.0  ;;  %v1018_v49 = vpop.f32.mrf.mxu0 }
 0x1c9   :  { %v2637_v50 = vpack.c.bf16 %v1525_v42, %v1524_v41  ;;  %v1019_v51 = vadd.f32 %v1018_v49, %v3223_v47  ;;  %v1325_v52 = vpop.f32.mrf.mxu1  ;;  %v1527_v56 = vmax.f32 %v1017_v44, 0.0 }
 0x1ca   :  { %v2702_v53 = vpack.c.bf16 %v1529_v48, %v1529_v48  ;;  %v1326_v54 = vadd.f32 %v1325_v52, %v3216_v43  ;;  %v1022_v55 = vpop.f32.mrf.mxu0 }
 0x1cb   :  { %2004 = vst [vmem:[%s3917_s3 + $0x180] sm:$0xff] %v2637_v50  ;;  %v1528_v57 = vmax.f32 %v1019_v51, 0.0  ;;  %v1023_v58 = vadd.f32 %v1022_v55, %v3221_v45  ;;  %v1327_v59 = vpop.f32.mrf.mxu1 }
 0x1cc   :  { %2326 = vst.msk [vmem:[%s3916_s4 + $0xc4] sm:$0xf] %vm2276_vm0, %v2702_v53  ;;  %v1532_v60 = vmax.f32 %v1326_v54, 0.0  ;;  %v1024_v61 = vpop.f32.mrf.mxu0 }
 0x1cd   :  { %v2638_v62 = vpack.c.bf16 %v1528_v57, %v1527_v56  ;;  %v1025_v63 = vadd.f32 %v1024_v61, %v3223_v47  ;;  %v1328_v0 = vpop.f32.mrf.mxu1  ;;  %v1530_v4 = vmax.f32 %v1023_v58, 0.0 }
 0x1ce   :  { %v2703_v1 = vpack.c.bf16 %v1532_v60, %v1532_v60  ;;  %v1329_v2 = vadd.f32 %v1328_v0, %v3216_v43  ;;  %v1026_v3 = vpop.f32.mrf.mxu0 }
 0x1cf   :  { %2005 = vst [vmem:[%s3917_s3 + $0x188] sm:$0xff] %v2638_v62  ;;  %v1531_v5 = vmax.f32 %v1025_v63, 0.0  ;;  %v1027_v6 = vadd.f32 %v1026_v3, %v3221_v45  ;;  %v1330_v7 = vpop.f32.mrf.mxu1 }
 0x1d0   :  { %2327 = vst.msk [vmem:[%s3916_s4 + $0xc8] sm:$0xf] %vm2276_vm0, %v2703_v1  ;;  %v1535_v8 = vmax.f32 %v1329_v2, 0.0  ;;  %v1028_v9 = vpop.f32.mrf.mxu0 }
 0x1d1   :  { %v2639_v10 = vpack.c.bf16 %v1531_v5, %v1530_v4  ;;  %v1029_v11 = vadd.f32 %v1028_v9, %v3223_v47  ;;  %v1333_v12 = vpop.f32.mrf.mxu1  ;;  %v1533_v16 = vmax.f32 %v1027_v6, 0.0 }
 0x1d2   :  { %v2704_v13 = vpack.c.bf16 %v1535_v8, %v1535_v8  ;;  %v1334_v14 = vadd.f32 %v1333_v12, %v3216_v43  ;;  %v1032_v15 = vpop.f32.mrf.mxu0 }
 0x1d3   :  { %2006 = vst [vmem:[%s3917_s3 + $0x190] sm:$0xff] %v2639_v10  ;;  %v1534_v17 = vmax.f32 %v1029_v11, 0.0  ;;  %v1033_v18 = vadd.f32 %v1032_v15, %v3221_v45  ;;  %v1335_v19 = vpop.f32.mrf.mxu1 }
 0x1d4   :  { %2328 = vst.msk [vmem:[%s3916_s4 + $0xcc] sm:$0xf] %vm2276_vm0, %v2704_v13  ;;  %v1538_v20 = vmax.f32 %v1334_v14, 0.0  ;;  %v1034_v21 = vpop.f32.mrf.mxu0 }
 0x1d5   :  { %v2640_v22 = vpack.c.bf16 %v1534_v17, %v1533_v16  ;;  %v1035_v23 = vadd.f32 %v1034_v21, %v3223_v47  ;;  %v1336_v24 = vpop.f32.mrf.mxu1  ;;  %v1536_v28 = vmax.f32 %v1033_v18, 0.0 }
 0x1d6   :  { %v2705_v25 = vpack.c.bf16 %v1538_v20, %v1538_v20  ;;  %v1337_v26 = vadd.f32 %v1336_v24, %v3216_v43  ;;  %v1036_v27 = vpop.f32.mrf.mxu0 }
 0x1d7   :  { %2007 = vst [vmem:[%s3917_s3 + $0x198] sm:$0xff] %v2640_v22  ;;  %v1537_v29 = vmax.f32 %v1035_v23, 0.0  ;;  %v1037_v30 = vadd.f32 %v1036_v27, %v3221_v45  ;;  %v1338_v31 = vpop.f32.mrf.mxu1 }
 0x1d8   :  { %2329 = vst.msk [vmem:[%s3916_s4 + $0xd0] sm:$0xf] %vm2276_vm0, %v2705_v25  ;;  %v1541_v32 = vmax.f32 %v1337_v26, 0.0  ;;  %v1038_v33 = vpop.f32.mrf.mxu0 }
 0x1d9   :  { %v2641_v34 = vpack.c.bf16 %v1537_v29, %v1536_v28  ;;  %v1039_v35 = vadd.f32 %v1038_v33, %v3223_v47  ;;  %v1341_v36 = vpop.f32.mrf.mxu1  ;;  %v1539_v40 = vmax.f32 %v1037_v30, 0.0 }
 0x1da   :  { %v2706_v37 = vpack.c.bf16 %v1541_v32, %v1541_v32  ;;  %v1342_v38 = vadd.f32 %v1341_v36, %v3216_v43  ;;  %v1042_v39 = vpop.f32.mrf.mxu0 }
 0x1db   :  { %2008 = vst [vmem:[%s3917_s3 + $0x1a0] sm:$0xff] %v2641_v34  ;;  %v1540_v41 = vmax.f32 %v1039_v35, 0.0  ;;  %v1043_v42 = vadd.f32 %v1042_v39, %v3221_v45  ;;  %v1343_v44 = vpop.f32.mrf.mxu1 }
 0x1dc   :  { %2330 = vst.msk [vmem:[%s3916_s4 + $0xd4] sm:$0xf] %vm2276_vm0, %v2706_v37  ;;  %v1544_v46 = vmax.f32 %v1342_v38, 0.0  ;;  %v1044_v48 = vpop.f32.mrf.mxu0 }
 0x1dd   :  { %v2642_v49 = vpack.c.bf16 %v1540_v41, %v1539_v40  ;;  %v1045_v50 = vadd.f32 %v1044_v48, %v3223_v47  ;;  %v1344_v51 = vpop.f32.mrf.mxu1  ;;  %v1542_v55 = vmax.f32 %v1043_v42, 0.0 }
 0x1de   :  { %v2707_v52 = vpack.c.bf16 %v1544_v46, %v1544_v46  ;;  %v1345_v53 = vadd.f32 %v1344_v51, %v3216_v43  ;;  %v1046_v54 = vpop.f32.mrf.mxu0 }
 0x1df   :  { %2009 = vst [vmem:[%s3917_s3 + $0x1a8] sm:$0xff] %v2642_v49  ;;  %v1543_v56 = vmax.f32 %v1045_v50, 0.0  ;;  %v1047_v57 = vadd.f32 %v1046_v54, %v3221_v45  ;;  %v1346_v58 = vpop.f32.mrf.mxu1 }
 0x1e0   :  { %2331 = vst.msk [vmem:[%s3916_s4 + $0xd8] sm:$0xf] %vm2276_vm0, %v2707_v52  ;;  %v1547_v59 = vmax.f32 %v1345_v53, 0.0  ;;  %v1048_v60 = vpop.f32.mrf.mxu0 }
 0x1e1   :  { %v2643_v61 = vpack.c.bf16 %v1543_v56, %v1542_v55  ;;  %v1049_v62 = vadd.f32 %v1048_v60, %v3223_v47  ;;  %v1349_v63 = vpop.f32.mrf.mxu1  ;;  %v1545_v3 = vmax.f32 %v1047_v57, 0.0 }
 0x1e2   :  { %v2708_v0 = vpack.c.bf16 %v1547_v59, %v1547_v59  ;;  %v1350_v1 = vadd.f32 %v1349_v63, %v3216_v43  ;;  %v1052_v2 = vpop.f32.mrf.mxu0 }
 0x1e3   :  { %2010 = vst [vmem:[%s3917_s3 + $0x1b0] sm:$0xff] %v2643_v61  ;;  %v1546_v4 = vmax.f32 %v1049_v62, 0.0  ;;  %v1053_v5 = vadd.f32 %v1052_v2, %v3221_v45  ;;  %v1351_v6 = vpop.f32.mrf.mxu1 }
 0x1e4   :  { %2332 = vst.msk [vmem:[%s3916_s4 + $0xdc] sm:$0xf] %vm2276_vm0, %v2708_v0  ;;  %v1550_v7 = vmax.f32 %v1350_v1, 0.0  ;;  %v1054_v8 = vpop.f32.mrf.mxu0 }
 0x1e5   :  { %v2644_v9 = vpack.c.bf16 %v1546_v4, %v1545_v3  ;;  %v1055_v10 = vadd.f32 %v1054_v8, %v3223_v47  ;;  %v1352_v11 = vpop.f32.mrf.mxu1  ;;  %v1548_v15 = vmax.f32 %v1053_v5, 0.0 }
 0x1e6   :  { %v2709_v12 = vpack.c.bf16 %v1550_v7, %v1550_v7  ;;  %v1353_v13 = vadd.f32 %v1352_v11, %v3216_v43  ;;  %v1056_v14 = vpop.f32.mrf.mxu0 }
 0x1e7   :  { %2011 = vst [vmem:[%s3917_s3 + $0x1b8] sm:$0xff] %v2644_v9  ;;  %v1549_v16 = vmax.f32 %v1055_v10, 0.0  ;;  %v1057_v17 = vadd.f32 %v1056_v14, %v3221_v45  ;;  %v1354_v18 = vpop.f32.mrf.mxu1 }
 0x1e8   :  { %2333 = vst.msk [vmem:[%s3916_s4 + $0xe0] sm:$0xf] %vm2276_vm0, %v2709_v12  ;;  %v1553_v19 = vmax.f32 %v1353_v13, 0.0  ;;  %v1058_v20 = vpop.f32.mrf.mxu0 }
 0x1e9   :  { %v2645_v21 = vpack.c.bf16 %v1549_v16, %v1548_v15  ;;  %v1059_v22 = vadd.f32 %v1058_v20, %v3223_v47  ;;  %v1357_v23 = vpop.f32.mrf.mxu1  ;;  %v1551_v27 = vmax.f32 %v1057_v17, 0.0 }
 0x1ea   :  { %v2710_v24 = vpack.c.bf16 %v1553_v19, %v1553_v19  ;;  %v1358_v25 = vadd.f32 %v1357_v23, %v3216_v43  ;;  %v1062_v26 = vpop.f32.mrf.mxu0 }
 0x1eb   :  { %2012 = vst [vmem:[%s3917_s3 + $0x1c0] sm:$0xff] %v2645_v21  ;;  %v1552_v28 = vmax.f32 %v1059_v22, 0.0  ;;  %v1063_v29 = vadd.f32 %v1062_v26, %v3221_v45  ;;  %v1359_v30 = vpop.f32.mrf.mxu1 }
 0x1ec   :  { %2334 = vst.msk [vmem:[%s3916_s4 + $0xe4] sm:$0xf] %vm2276_vm0, %v2710_v24  ;;  %v1556_v31 = vmax.f32 %v1358_v25, 0.0  ;;  %v1064_v32 = vpop.f32.mrf.mxu0 }
 0x1ed   :  { %v2646_v33 = vpack.c.bf16 %v1552_v28, %v1551_v27  ;;  %v1065_v34 = vadd.f32 %v1064_v32, %v3223_v47  ;;  %v1360_v35 = vpop.f32.mrf.mxu1  ;;  %v1554_v39 = vmax.f32 %v1063_v29, 0.0 }
 0x1ee   :  { %v2711_v36 = vpack.c.bf16 %v1556_v31, %v1556_v31  ;;  %v1361_v37 = vadd.f32 %v1360_v35, %v3216_v43  ;;  %v1066_v38 = vpop.f32.mrf.mxu0 }
 0x1ef   :  { %2013 = vst [vmem:[%s3917_s3 + $0x1c8] sm:$0xff] %v2646_v33  ;;  %v1555_v40 = vmax.f32 %v1065_v34, 0.0  ;;  %v1067_v41 = vadd.f32 %v1066_v38, %v3221_v45  ;;  %v1362_v42 = vpop.f32.mrf.mxu1 }
 0x1f0   :  { %2335 = vst.msk [vmem:[%s3916_s4 + $0xe8] sm:$0xf] %vm2276_vm0, %v2711_v36  ;;  %v1559_v44 = vmax.f32 %v1361_v37, 0.0  ;;  %v1068_v46 = vpop.f32.mrf.mxu0 }
 0x1f1   :  { %v2647_v48 = vpack.c.bf16 %v1555_v40, %v1554_v39  ;;  %v1069_v49 = vadd.f32 %v1068_v46, %v3223_v47  ;;  %v1365_v50 = vpop.f32.mrf.mxu1  ;;  %v1557_v54 = vmax.f32 %v1067_v41, 0.0 }
 0x1f2   :  { %v2712_v51 = vpack.c.bf16 %v1559_v44, %v1559_v44  ;;  %v1366_v52 = vadd.f32 %v1365_v50, %v3216_v43  ;;  %v1072_v53 = vpop.f32.mrf.mxu0 }
 0x1f3   :  { %2014 = vst [vmem:[%s3917_s3 + $0x1d0] sm:$0xff] %v2647_v48  ;;  %v1558_v55 = vmax.f32 %v1069_v49, 0.0  ;;  %v1073_v56 = vadd.f32 %v1072_v53, %v3221_v45  ;;  %v1367_v57 = vpop.f32.mrf.mxu1 }
 0x1f4   :  { %2336 = vst.msk [vmem:[%s3916_s4 + $0xec] sm:$0xf] %vm2276_vm0, %v2712_v51  ;;  %v1562_v58 = vmax.f32 %v1366_v52, 0.0  ;;  %v1074_v59 = vpop.f32.mrf.mxu0 }
 0x1f5   :  { %v2648_v60 = vpack.c.bf16 %v1558_v55, %v1557_v54  ;;  %v1075_v61 = vadd.f32 %v1074_v59, %v3223_v47  ;;  %v1368_v62 = vpop.f32.mrf.mxu1  ;;  %v1560_v2 = vmax.f32 %v1073_v56, 0.0 }
 0x1f6   :  { %v2713_v63 = vpack.c.bf16 %v1562_v58, %v1562_v58  ;;  %v1369_v0 = vadd.f32 %v1368_v62, %v3216_v43  ;;  %v1076_v1 = vpop.f32.mrf.mxu0 }
 0x1f7   :  { %2015 = vst [vmem:[%s3917_s3 + $0x1d8] sm:$0xff] %v2648_v60  ;;  %v1561_v3 = vmax.f32 %v1075_v61, 0.0  ;;  %v1077_v4 = vadd.f32 %v1076_v1, %v3221_v45  ;;  %v1370_v5 = vpop.f32.mrf.mxu1 }
 0x1f8   :  { %2337 = vst.msk [vmem:[%s3916_s4 + $0xf0] sm:$0xf] %vm2276_vm0, %v2713_v63  ;;  %v1565_v6 = vmax.f32 %v1369_v0, 0.0  ;;  %v1078_v7 = vpop.f32.mrf.mxu0 }
 0x1f9   :  { %v2649_v8 = vpack.c.bf16 %v1561_v3, %v1560_v2  ;;  %v1079_v9 = vadd.f32 %v1078_v7, %v3223_v47  ;;  %v1373_v10 = vpop.f32.mrf.mxu1  ;;  %v1563_v14 = vmax.f32 %v1077_v4, 0.0 }
 0x1fa   :  { %v2714_v11 = vpack.c.bf16 %v1565_v6, %v1565_v6  ;;  %v1374_v12 = vadd.f32 %v1373_v10, %v3216_v43  ;;  %v1082_v13 = vpop.f32.mrf.mxu0 }
 0x1fb   :  { %2016 = vst [vmem:[%s3917_s3 + $0x1e0] sm:$0xff] %v2649_v8  ;;  %v1564_v15 = vmax.f32 %v1079_v9, 0.0  ;;  %v1083_v16 = vadd.f32 %v1082_v13, %v3221_v45  ;;  %v1375_v17 = vpop.f32.mrf.mxu1 }
 0x1fc   :  { %2338 = vst.msk [vmem:[%s3916_s4 + $0xf4] sm:$0xf] %vm2276_vm0, %v2714_v11  ;;  %v1568_v18 = vmax.f32 %v1374_v12, 0.0  ;;  %v1084_v19 = vpop.f32.mrf.mxu0 }
 0x1fd   :  { %v2650_v20 = vpack.c.bf16 %v1564_v15, %v1563_v14  ;;  %v1085_v21 = vadd.f32 %v1084_v19, %v3223_v47  ;;  %v1376_v22 = vpop.f32.mrf.mxu1  ;;  %v1566_v26 = vmax.f32 %v1083_v16, 0.0 }
 0x1fe   :  { %v2715_v23 = vpack.c.bf16 %v1568_v18, %v1568_v18  ;;  %v1377_v24 = vadd.f32 %v1376_v22, %v3216_v43  ;;  %v1086_v25 = vpop.f32.mrf.mxu0 }
 0x1ff   :  { %2017 = vst [vmem:[%s3917_s3 + $0x1e8] sm:$0xff] %v2650_v20  ;;  %v1567_v27 = vmax.f32 %v1085_v21, 0.0  ;;  %v1087_v28 = vadd.f32 %v1086_v25, %v3221_v45  ;;  %v1378_v29 = vpop.f32.mrf.mxu1 }
 0x200   :  { %2339 = vst.msk [vmem:[%s3916_s4 + $0xf8] sm:$0xf] %vm2276_vm0, %v2715_v23  ;;  %v1571_v30 = vmax.f32 %v1377_v24, 0.0  ;;  %v1088_v31 = vpop.f32.mrf.mxu0 }
 0x201   :  { %v2651_v32 = vpack.c.bf16 %v1567_v27, %v1566_v26  ;;  %v1089_v43 = vadd.f32 %v1088_v31, %v3223_v47  ;;  %v1569_v34 = vmax.f32 %v1087_v28, 0.0 }
 0x202   :  { %v2716_v33 = vpack.c.bf16 %v1571_v30, %v1571_v30 }
 0x203   :  { %2018 = vst [vmem:[%s3917_s3 + $0x1f0] sm:$0xff] %v2651_v32  ;;  %v1570_v35 = vmax.f32 %v1089_v43, 0.0 }
 0x204   :  { %2340 = vst.msk [vmem:[%s3916_s4 + $0xfc] sm:$0xf] %vm2276_vm0, %v2716_v33 }
 0x205   :  { %v2652_v45 = vpack.c.bf16 %v1570_v35, %v1569_v34 }
 0x207   :  { %2019 = vst [vmem:[%s3917_s3 + $0x1f8] sm:$0xff] %v2652_v45 }

// kernel: _lambda_.6
= control target key start
LH: loop header
LB: loop body
LE: loop exit
PB: predicated region body
PF: predicated region fallthrough
CT: control target
= control target key end

     0   :  { %s3623_s18 = smov 0   ;;  %s4440_s0 = inlined_call_operand.vmem [shape: bf16[2,4,8,8,32], index: 0, kind: input, shape index: {}]   ;;  %s4441_s1 = inlined_call_operand.vmem [shape: bf16[288,96], index: 1, kind: input, shape index: {}]   ;;  %s4442_s2 = inlined_call_operand.vmem [shape: f32[1,96], index: 2, kind: input, shape index: {}]   ;;  %s4443_s3 = inlined_call_operand.vmem [shape: bf16[3,96,96], index: 3, kind: input, shape index: {}]   ;;  %s4444_s4 = inlined_call_operand.vmem [shape: f32[1,96], index: 4, kind: input, shape index: {}]   ;;  %s4445_s5 = inlined_call_operand.vmem [shape: bf16[2,4,64,96], index: 5, kind: output, shape index: {}]  }
   0x1 LB: > { %s2888_s19 = sadd.s32 4294967295, %s3583_s18   ;;  %p2892_p0 = scmp.ge.s32.totalorder %s3583_s18, 1  ;;  %s3583_s18 = sphi %s3623_s18, %s15_s18  }
   0x2   : > { %p187_p1 = scmp.lt.s32.totalorder %s3583_s18, 3 }
   0x4   : > { %p188_p2 = pnand %p2892_p0, %p187_p1 }
   0x5   : > { %p3633_p3 = scmp.lt.s32.totalorder (!%p188_p2), %s2888_s19, 1  ;;  %s3717_s7 = smov (!%p188_p2), 0  }
   0x6   : > { %191 = sbr.rel (%p188_p2) target bundleno = 989 (0x3dd), region = 40 }
   0xb   : > { %vm226_vm0 = vcmask 257024   ;;  %vm228_vm1 = vcmask 253952   ;;  %v3640_v0 = vld [vmem:[%s4442_s2] ss:$0 sm:$0xff]  ;;  %v3589_v1 = vmov 0   ;;  %vm248_vm2 = vcmask 781312  }
   0xc   : > { %227 = vst.msk [vmem:[#allocation2] sm:$0xf] %vm226_vm0, %v3589_v1  ;;  %230 = vst.msk [vmem:[#allocation2 + $0x8] sm:$0xf] %vm226_vm0, %v3589_v1  ;;  %v3685_v2 = vld [vmem:[%s4444_s4] sm:$0x1] }
   0xd   : > { %232 = vst.msk [vmem:[#allocation2 + $0x10] sm:$0xf] %vm226_vm0, %v3589_v1  ;;  %234 = vst.msk [vmem:[#allocation2 + $0x18] sm:$0xf] %vm226_vm0, %v3589_v1  ;;  %s4457_s19 = smov (!%p3633_p3, %s2888_s19), 1 }
   0xe   : > { %236 = vst.msk [vmem:[#allocation2 + $0x20] sm:$0xf] %vm226_vm0, %v3589_v1  ;;  %238 = vst.msk [vmem:[#allocation2 + $0x28] sm:$0xf] %vm226_vm0, %v3589_v1  ;;  %s3143_s25 = sshll.u32 %s4457_s19, 7 }
   0xf   : > { %240 = vst.msk [vmem:[#allocation2 + $0x30] sm:$0xf] %vm226_vm0, %v3589_v1  ;;  %242 = vst.msk [vmem:[#allocation2 + $0x38] sm:$0xf] %vm226_vm0, %v3589_v1  ;;  %s3710_s28 = scalar_lea.vmem %s4440_s0, %s3143_s25  ;;  %s3715_s6 = scalar_lea.vmem %s4445_s5, %s3143_s25 }
  0x10   : > { %244 = vst.msk [vmem:[#allocation2 + $0x40] sm:$0xf] %vm226_vm0, %v3589_v1  ;;  %246 = vst.msk [vmem:[#allocation2 + $0x48] sm:$0xf] %vm226_vm0, %v3589_v1 }
  0x11   : > { %229 = vst.msk [vmem:[#allocation2 + $0x4] sm:$0x1] %vm228_vm1, %v3589_v1  ;;  %231 = vst.msk [vmem:[#allocation2 + $0xc] sm:$0x1] %vm228_vm1, %v3589_v1 }
  0x12   : > { %233 = vst.msk [vmem:[#allocation2 + $0x14] sm:$0x1] %vm228_vm1, %v3589_v1  ;;  %235 = vst.msk [vmem:[#allocation2 + $0x1c] sm:$0x1] %vm228_vm1, %v3589_v1 }
  0x13   : > { %237 = vst.msk [vmem:[#allocation2 + $0x24] sm:$0x1] %vm228_vm1, %v3589_v1  ;;  %239 = vst.msk [vmem:[#allocation2 + $0x2c] sm:$0x1] %vm228_vm1, %v3589_v1 }
  0x14   : > { %241 = vst.msk [vmem:[#allocation2 + $0x34] sm:$0x1] %vm228_vm1, %v3589_v1  ;;  %243 = vst.msk [vmem:[#allocation2 + $0x3c] sm:$0x1] %vm228_vm1, %v3589_v1 }
  0x15   : > { %245 = vst.msk [vmem:[#allocation2 + $0x44] sm:$0x1] %vm228_vm1, %v3589_v1  ;;  %247 = vst.msk [vmem:[#allocation2 + $0x4c] sm:$0x1] %vm228_vm1, %v3589_v1 }
  0x16   : > { %249 = vst.msk [vmem:[#allocation4] sm:$0xf] %vm248_vm2, %v3589_v1  ;;  %250 = vst.msk [vmem:[#allocation4 + $0x4] sm:$0xf] %vm248_vm2, %v3589_v1 }
  0x17   : > { %251 = vst.msk [vmem:[#allocation4 + $0x8] sm:$0xf] %vm248_vm2, %v3589_v1  ;;  %252 = vst.msk [vmem:[#allocation4 + $0xc] sm:$0xf] %vm248_vm2, %v3589_v1 }
  0x18   : > { %253 = vst.msk [vmem:[#allocation4 + $0x10] sm:$0xf] %vm248_vm2, %v3589_v1  ;;  %254 = vst.msk [vmem:[#allocation4 + $0x14] sm:$0xf] %vm248_vm2, %v3589_v1 }
  0x19   : > { %255 = vst.msk [vmem:[#allocation4 + $0x18] sm:$0xf] %vm248_vm2, %v3589_v1  ;;  %256 = vst.msk [vmem:[#allocation4 + $0x1c] sm:$0xf] %vm248_vm2, %v3589_v1 }
  0x1a LB: >> { %v591_v3 = vld [vmem:[#allocation2] sm:$0xe]  ;;  %v592_v4 = vld [vmem:[#allocation2 + $0x4] sm:$0x1]  ;;  %vm623_vm3 = vcmask 1042432   ;;  %vm624_vm4 = vcmask 1046532   ;;  %s3587_s7 = sphi %s3717_s7, %s4455_s7  }
  0x1b   : >> { %vm3722_vm5 = vmor %vm623_vm3, %vm624_vm4  ;;  %v2899_v6 = vrot.slane %v591_v3, 9  ;;  %v628_v7 = vrot.slane %v592_v4, 5  ;;  %v427_v8 = vld [vmem:[#allocation2] sm:$0xf]  ;;  %v428_v9 = vld [vmem:[#allocation2 + $0x4] sm:$0x1] }
  0x1c   : >> { %v447_v11 = vshrl.u32 %v427_v8, 16  ;;  %v450_v12 = vshll.u32 %v427_v8, 16  ;;  %v456_v13 = vshll.u32 %v428_v9, 16  ;;  %s3145_s8 = sshll.u32 %s3587_s7, 5  ;;  %s3590_s9 = smov 64   ;;  %v3474_v37 = vld [vmem:[%s4441_s1 + $0x78] sm:$0xff]  }
  0x1d   : >> { %v629_v10 = vsel %vm3722_vm5, %v2899_v6, %v628_v7  ;;  %vm443_vm6 = vsmask.f32 3328  ;;  %vm444_vm7 = vsmask.f32 7440  ;;  %s3731_s10 = scalar_lea.vmem %s3710_s28, %s3145_s8  ;;  %vm358_vm8 = vsmask.f32 7938  ;;  %3174 = vmatprep.subr.bf16.mxu0 %v3474_v37  ;;  %3412 = vmatprep.subr.bf16.mxu1 %v3474_v37 }
  0x1e   : >> { %658 = vrot.lane.b32.xlu0 %v629_v10, %s3590_s9  ;;  %v449_v14 = vrot.slane %v447_v11, 4  ;;  %v452_v15 = vrot.slane %v450_v12, 5  ;;  %v458_v16 = vrot.slane %v456_v13, 5  ;;  %v270_v17 = vld [vmem:[%s3731_s10 + $0x8] sm:$0xf]  ;;  %vm3738_vm9 = vmor %vm443_vm6, %vm444_vm7  ;;  %v3475_v49 = vld [vmem:[%s4441_s1 + $0x38] sm:$0xff]  }
  0x1f   : >> { %v293_v18 = vshrl.u32 %v270_v17, 16  ;;  %v296_v19 = vshll.u32 %v270_v17, 16  ;;  %v269_v20 = vld [vmem:[%s3731_s10 + $0x4] sm:$0xf]  ;;  %v268_v21 = vld [vmem:[%s3731_s10] sm:$0xf]  ;;  %vm3744_vm11 = vmand %vm226_vm0, %vm358_vm8  ;;  %3175 = vmatpush3.bf16.msra.mxu0 %v3475_v49  ;;  %3420 = vmatpush3.bf16.msra.mxu1 %v3475_v49 }
  0x20   : >> { %v453_v22 = vor.u32 %v452_v15, %v449_v14  ;;  %v375_v23 = vld [vmem:[#allocation2 + $0x18] sm:$0xf]  ;;  %v285_v24 = vshrl.u32 %v269_v20, 16  ;;  %v288_v25 = vshll.u32 %v269_v20, 16  ;;  %v277_v26 = vshrl.u32 %v268_v21, 16  ;;  %s3591_s15 = smov 32  }
  0x21   : >> { %v295_v28 = vrot.slane %v293_v18, 7  ;;  %v369_v29 = vld [vmem:[#allocation2 + $0x10] sm:$0xf]  ;;  %v280_v30 = vshll.u32 %v268_v21, 16  ;;  %v360_v31 = vld [vmem:[#allocation2 + $0x8] sm:$0xf] }
  0x22   : >> { %vm364_vm10 = vsmask.f32 256  ;;  %v454_v32 = vrot.slane %v453_v22, 4  ;;  %v287_v34 = vrot.slane %v285_v24, 7  ;;  %v279_v35 = vrot.slane %v277_v26, 7  ;;  %v3476_v61 = vld [vmem:[%s4441_s1 + $0x70] sm:$0xff]  }
  0x23   : >> { %v274_v36 = vld [vmem:[%s3731_s10 + $0x18] sm:$0xf]  ;;  %v298_v38 = vor.u32 %v296_v19, %v295_v28  ;;  %v299_v39 = vrot.slane %v295_v28, 4  ;;  %v366_v40 = vld [vmem:[#allocation2 + $0xc] sm:$0x1]  ;;  %vm3756_vm12 = vmand %vm228_vm1, %vm364_vm10  ;;  %3176 = vmatprep.subr.bf16.mxu0 %v3476_v61  ;;  %3413 = vmatprep.subr.bf16.mxu1 %v3476_v61  ;;  %s3592_s25 = smov 96  }
  0x24   : >> { %v325_v41 = vshrl.u32 %v274_v36, 16  ;;  %v328_v42 = vshll.u32 %v274_v36, 16  ;;  %v459_v43 = vsel %vm3738_vm9, %v454_v32, %v458_v16  ;;  %v290_v44 = vor.u32 %v288_v25, %v287_v34  ;;  %v372_v48 = vld [vmem:[#allocation2 + $0x14] sm:$0x1]  ;;  %v399_v53 = vld [vmem:[#allocation2 + $0x38] sm:$0xf] }
  0x25   : >> { %v291_v45 = vrot.slane %v287_v34, 4  ;;  %v282_v46 = vor.u32 %v280_v30, %v279_v35  ;;  %558 = vrot.lane.b32.xlu0 %v459_v43, %s3591_s15  ;;  %v376_v50 = vsel %vm3744_vm11, %v298_v38, %v375_v23  ;;  %v283_v51 = vrot.slane %v279_v35, 4  ;;  %v275_v54 = vld [vmem:[%s3731_s10 + $0x1c] sm:$0xf]  ;;  %v273_v6 = vld [vmem:[%s3731_s10 + $0x14] sm:$0xf] }
  0x26   : >> { %v327_v52 = vrot.slane %v325_v41, 7  ;;  %377 = vst [vmem:[#allocation2 + $0x18] sm:$0xf] %v376_v50  ;;  %v370_v55 = vsel %vm3744_vm11, %v290_v44, %v369_v29  ;;  %v402_v57 = vld [vmem:[#allocation2 + $0x3c] sm:$0x1]  ;;  %v333_v59 = vshrl.u32 %v275_v54, 16 }
  0x27   : >> { %v361_v56 = vsel %vm3744_vm11, %v282_v46, %v360_v31  ;;  %v373_v58 = vsel %vm3756_vm12, %v291_v45, %v372_v48  ;;  %v378_v60 = vld [vmem:[#allocation2 + $0x1c] sm:$0x1]  ;;  %371 = vst [vmem:[#allocation2 + $0x10] sm:$0xf] %v370_v55  ;;  %v367_v62 = vsel %vm3756_vm12, %v283_v51, %v366_v40  ;;  %v336_v4 = vshll.u32 %v275_v54, 16  ;;  %v3477_v11 = vld [vmem:[%s4441_s1 + $0x30] sm:$0xff]  }
  0x28   : >> { %362 = vst [vmem:[#allocation2 + $0x8] sm:$0xf] %v361_v56  ;;  %v330_v63 = vor.u32 %v328_v42, %v327_v52  ;;  %v331_v3 = vrot.slane %v327_v52, 4  ;;  %374 = vst [vmem:[#allocation2 + $0x14] sm:$0x1] %v373_v58  ;;  %v335_v7 = vrot.slane %v333_v59, 7  ;;  %v379_v8 = vsel %vm3756_vm12, %v299_v39, %v378_v60  ;;  %3177 = vmatpush3.bf16.msra.mxu0 %v3477_v11 }
  0x29   : >> { %368 = vst [vmem:[#allocation2 + $0xc] sm:$0x1] %v367_v62  ;;  %v317_v9 = vshrl.u32 %v273_v6, 16  ;;  %v320_v10 = vshll.u32 %v273_v6, 16  ;;  %v405_v14 = vld [vmem:[#allocation2 + $0x40] sm:$0xf]  ;;  %3421 = vmatpush3.bf16.msra.mxu1 %v3477_v11 }
  0x2a   : >> { %v400_v12 = vsel %vm3744_vm11, %v330_v63, %v399_v53  ;;  %v403_v13 = vsel %vm3756_vm12, %v331_v3, %v402_v57  ;;  %v408_v15 = vld [vmem:[#allocation2 + $0x44] sm:$0x1]  ;;  %380 = vst [vmem:[#allocation2 + $0x1c] sm:$0x1] %v379_v8  ;;  %v338_v16 = vor.u32 %v336_v4, %v335_v7  ;;  %v339_v17 = vrot.slane %v335_v7, 4  ;;  %v3478_v19 = vld [vmem:[%s4441_s1 + $0x68] sm:$0xff]  }
  0x2b   : >> { %401 = vst [vmem:[#allocation2 + $0x38] sm:$0xf] %v400_v12  ;;  %404 = vst [vmem:[#allocation2 + $0x3c] sm:$0x1] %v403_v13  ;;  %v319_v18 = vrot.slane %v317_v9, 7  ;;  %3178 = vmatprep.subr.bf16.mxu0 %v3478_v19  ;;  %v3479_v26 = vld [vmem:[%s4441_s1 + $0x28] sm:$0xff]   ;;  %3414 = vmatprep.subr.bf16.mxu1 %v3478_v19 }
  0x2c   : >> { %v393_v20 = vld [vmem:[#allocation2 + $0x30] sm:$0xf]  ;;  %v396_v21 = vld [vmem:[#allocation2 + $0x34] sm:$0x1]  ;;  %v406_v22 = vsel %vm3744_vm11, %v338_v16, %v405_v14  ;;  %v409_v23 = vsel %vm3756_vm12, %v339_v17, %v408_v15  ;;  %3179 = vmatpush3.bf16.msra.mxu0 %v3479_v26  ;;  %v3804_v39 = vld [vmem:[#allocation2 + $0x48] sm:$0xf] }
  0x2d   : >> { %v322_v24 = vor.u32 %v320_v10, %v319_v18  ;;  %v323_v25 = vrot.slane %v319_v18, 4  ;;  %v982_v28 = vld [vmem:[#allocation2 + $0x18] sm:$0xf]  ;;  %407 = vst [vmem:[#allocation2 + $0x40] sm:$0xf] %v406_v22  ;;  %3422 = vmatpush3.bf16.msra.mxu1 %v3479_v26  ;;  %v3480_v59 = vld [vmem:[%s4441_s1 + $0x60] sm:$0xff]  }
  0x2e   : >> { %410 = vst [vmem:[#allocation2 + $0x44] sm:$0x1] %v409_v23  ;;  %v1031_v29 = vld [vmem:[#allocation2 + $0x18] sm:$0xf]  ;;  %999 = vrot.lane.b32.xlu1 %v982_v28, %s3590_s9  ;;  %v981_v30 = vld [vmem:[#allocation2 + $0x10] sm:$0xf]  ;;  %3180 = vmatprep.subr.bf16.mxu0 %v3480_v59 }
  0x2f   : >> { %v692_v31 = vld [vmem:[#allocation2 + $0x10] sm:$0xf]  ;;  %v691_v32 = vld [vmem:[#allocation2 + $0x8] sm:$0xf]  ;;  %v394_v34 = vsel %vm3744_vm11, %v322_v24, %v393_v20  ;;  %v397_v35 = vsel %vm3756_vm12, %v323_v25, %v396_v21  ;;  %997 = vrot.lane.b32.xlu0 %v981_v30, %s3590_s9  ;;  %v887_v42 = vld [vmem:[#allocation2 + $0x14] sm:$0x1]  ;;  %3415 = vmatprep.subr.bf16.mxu1 %v3480_v59 }
  0x30   : >> { %v884_v36 = vld [vmem:[#allocation2 + $0x8] sm:$0xe]  ;;  %v885_v37 = vld [vmem:[#allocation2 + $0xc] sm:$0x1]  ;;  %v886_v38 = vld [vmem:[#allocation2 + $0x10] sm:$0xe] }
  0x31   : >> { %395 = vst [vmem:[#allocation2 + $0x30] sm:$0xf] %v394_v34  ;;  %398 = vst [vmem:[#allocation2 + $0x34] sm:$0x1] %v397_v35  ;;  %v2907_v40 = vrot.slane %v884_v36, 9  ;;  %v918_v41 = vrot.slane %v885_v37, 5 }
  0x32   : >> { %v2908_v43 = vrot.slane %v886_v38, 9  ;;  %v1060_v44 = vshrl.u32 %v1031_v29, 16  ;;  %v896_v45 = vld [vmem:[#allocation2 + $0x38] sm:$0xe]  ;;  %v897_v46 = vld [vmem:[#allocation2 + $0x3c] sm:$0x1]  ;;  %709 = vrot.lane.b32.xlu1 %v692_v31, %s3592_s25 }
  0x33   : >> { %v922_v48 = vrot.slane %v887_v42, 5  ;;  %v1063_v49 = vshll.u32 %v1031_v29, 16  ;;  %v2913_v50 = vrot.slane %v896_v45, 9  ;;  %v942_v51 = vrot.slane %v897_v46, 5  ;;  %v429_v52 = vld [vmem:[#allocation2 + $0x8] sm:$0xf]  ;;  %707 = vrot.lane.b32.xlu0 %v691_v32, %s3592_s25 }
  0x34   : >> { %v430_v53 = vld [vmem:[#allocation2 + $0xc] sm:$0x1]  ;;  %v919_v54 = vsel %vm3722_vm5, %v2907_v40, %v918_v41  ;;  %v461_v55 = vshrl.u32 %v429_v52, 16  ;;  %v464_v56 = vshll.u32 %v429_v52, 16  ;;  %v593_v58 = vld [vmem:[#allocation2 + $0x8] sm:$0xe] }
  0x35   : >> { %v470_v57 = vshll.u32 %v430_v53, 16  ;;  %v943_v60 = vsel %vm3722_vm5, %v2913_v50, %v942_v51  ;;  %v923_v61 = vsel %vm3722_vm5, %v2908_v43, %v922_v48  ;;  %v594_v62 = vld [vmem:[#allocation2 + $0xc] sm:$0x1]  ;;  %v1029_v63 = vld [vmem:[#allocation2 + $0x10] sm:$0xf]  ;;  %v1144_v3 = vshrl.u32 %v3804_v39, 16 }
  0x36   : >> { %v1147_v4 = vshll.u32 %v3804_v39, 16  ;;  %v463_v6 = vrot.slane %v461_v55, 4  ;;  %v466_v7 = vrot.slane %v464_v56, 5  ;;  %v2900_v8 = vrot.slane %v593_v58, 9  ;;  %v1030_v9 = vld [vmem:[#allocation2 + $0x14] sm:$0x1]  ;;  %948 = vrot.lane.b32.xlu1 %v919_v54, %s3591_s15 }
  0x37   : >> { %v1062_v10 = vrot.slane %v1060_v44, 4  ;;  %v1046_v11 = vshrl.u32 %v1029_v63, 16  ;;  %v1049_v12 = vshll.u32 %v1029_v63, 16  ;;  %v1055_v13 = vshll.u32 %v1030_v9, 16  ;;  %v898_v14 = vld [vmem:[#allocation2 + $0x40] sm:$0xe]  ;;  %960 = vrot.lane.b32.xlu0 %v943_v60, %s3591_s15 }
  0x38   : >> { %v1065_v15 = vrot.slane %v1063_v49, 5  ;;  %v467_v16 = vor.u32 %v466_v7, %v463_v6  ;;  %v472_v17 = vrot.slane %v470_v57, 5  ;;  %v632_v18 = vrot.slane %v594_v62, 5  ;;  %v899_v19 = vld [vmem:[#allocation2 + $0x44] sm:$0x1]  ;;  %v3482_v43 = vld [vmem:[%s4441_s1 + $0x58] sm:$0xff]  }
  0x39   : >> { %v2914_v20 = vrot.slane %v898_v14, 9  ;;  %v1048_v21 = vrot.slane %v1046_v11, 4  ;;  %v1051_v22 = vrot.slane %v1049_v12, 5  ;;  %v1032_v23 = vld [vmem:[#allocation2 + $0x1c] sm:$0x1]  ;;  %v946_v26 = vrot.slane %v899_v19, 5 }
  0x3a   : >> { %v439_v24 = vld [vmem:[#allocation2 + $0x30] sm:$0xf]  ;;  %v468_v25 = vrot.slane %v467_v16, 4  ;;  %v1066_v28 = vor.u32 %v1065_v15, %v1062_v10  ;;  %v440_v29 = vld [vmem:[#allocation2 + $0x34] sm:$0x1]  ;;  %v3481_v31 = vld [vmem:[%s4441_s1 + $0x20] sm:$0xff]   ;;  %950 = vrot.lane.b32.xlu1 %v923_v61, %s3591_s15  ;;  %v633_v39 = vsel %vm3722_vm5, %v2900_v8, %v632_v18 }
  0x3b   : >> { %v531_v30 = vshrl.u32 %v439_v24, 16  ;;  %v1052_v32 = vor.u32 %v1051_v22, %v1048_v21  ;;  %v1057_v34 = vrot.slane %v1055_v13, 5  ;;  %v534_v35 = vshll.u32 %v439_v24, 16  ;;  %v441_v37 = vld [vmem:[#allocation2 + $0x38] sm:$0xf]  ;;  %3181 = vmatpush3.bf16.msra.mxu0 %v3481_v31  ;;  %3423 = vmatpush3.bf16.msra.mxu1 %v3481_v31  ;;  %v3487_v33 = vld [vmem:[%s4441_s1 + $0x8] sm:$0xff]  }
  0x3c   : >> { %v540_v36 = vshll.u32 %v440_v29, 16  ;;  %v473_v38 = vsel %vm3738_vm9, %v468_v25, %v472_v17  ;;  %v1069_v40 = vshll.u32 %v1032_v23, 16  ;;  %v442_v42 = vld [vmem:[#allocation2 + $0x3c] sm:$0x1]  ;;  %v545_v46 = vshrl.u32 %v441_v37, 16  ;;  %3182 = vmatprep.subr.bf16.mxu0 %v3482_v43  ;;  %3416 = vmatprep.subr.bf16.mxu1 %v3482_v43  ;;  %p2971_p6 = scmp.lt.s32.totalorder %s3587_s7, 1 }
  0x3d   : >> { %v533_v41 = vrot.slane %v531_v30, 4  ;;  %560 = vrot.lane.b32.xlu0 %v473_v38, %s3591_s15  ;;  %v1053_v44 = vrot.slane %v1052_v32, 4  ;;  %v536_v45 = vrot.slane %v534_v35, 5  ;;  %v603_v48 = vld [vmem:[#allocation2 + $0x30] sm:$0xe]  ;;  %v3833_v49 = vrot.slane %v1144_v3, 4 }
  0x3e   : >> { %v947_v50 = vsel %vm3722_vm5, %v2914_v20, %v946_v26  ;;  %v1067_v51 = vrot.slane %v1066_v28, 4  ;;  %v548_v52 = vshll.u32 %v441_v37, 16  ;;  %v604_v53 = vld [vmem:[#allocation2 + $0x34] sm:$0x1]  ;;  %v1149_v54 = vrot.slane %v1147_v4, 5  ;;  %v3483_v55 = vld [vmem:[%s4441_s1 + $0x18] sm:$0xff]   ;;  %660 = vrot.lane.b32.xlu1 %v633_v39, %s3590_s9 }
  0x3f   : >> { %v1058_v56 = vsel %vm3738_vm9, %v1053_v44, %v1057_v34  ;;  %v537_v57 = vor.u32 %v536_v45, %v533_v41  ;;  %v542_v58 = vrot.slane %v540_v36, 5  ;;  %v547_v59 = vrot.slane %v545_v46, 4  ;;  %v1044_v60 = vld [vmem:[#allocation2 + $0x4c] sm:$0x1]  ;;  %3183 = vmatpush3.bf16.msra.mxu0 %v3483_v55  ;;  %3424 = vmatpush3.bf16.msra.mxu1 %v3483_v55  ;;  %v605_v8 = vld [vmem:[#allocation2 + $0x38] sm:$0xe] }
  0x40   : >> { %v1071_v61 = vrot.slane %v1069_v40, 5  ;;  %v550_v62 = vrot.slane %v548_v52, 5  ;;  %v554_v63 = vshll.u32 %v442_v42, 16  ;;  %v2905_v3 = vrot.slane %v603_v48, 9  ;;  %v271_v4 = vld [vmem:[%s3731_s10 + $0xc] sm:$0xf] }
  0x41   : >> { %1157 = vrot.lane.b32.xlu0 %v1058_v56, %s3592_s25  ;;  %v538_v6 = vrot.slane %v537_v57, 4  ;;  %v652_v7 = vrot.slane %v604_v53, 5  ;;  %v1041_v9 = vld [vmem:[#allocation2 + $0x40] sm:$0xf]  ;;  %v606_v11 = vld [vmem:[#allocation2 + $0x3c] sm:$0x1]  ;;  %v1150_v26 = vor.u32 %v1149_v54, %v3833_v49 }
  0x42   : >> { %v551_v10 = vor.u32 %v550_v62, %v547_v59  ;;  %v1130_v12 = vshrl.u32 %v1041_v9, 16  ;;  %v1133_v13 = vshll.u32 %v1041_v9, 16  ;;  %v431_v14 = vld [vmem:[#allocation2 + $0x10] sm:$0xf]  ;;  %962 = vrot.lane.b32.xlu1 %v947_v50, %s3591_s15  ;;  %v1042_v16 = vld [vmem:[#allocation2 + $0x44] sm:$0x1]  ;;  %v1072_v19 = vsel %vm3738_vm9, %v1067_v51, %v1071_v61 }
  0x43   : >> { %v543_v15 = vsel %vm3738_vm9, %v538_v6, %v542_v58  ;;  %v1153_v17 = vshll.u32 %v1044_v60, 16  ;;  %v475_v18 = vshrl.u32 %v431_v14, 16  ;;  %v556_v21 = vrot.slane %v554_v63, 5  ;;  %v432_v22 = vld [vmem:[#allocation2 + $0x14] sm:$0x1]  ;;  %v3486_v6 = vld [vmem:[%s4441_s1 + $0x48] sm:$0xff]  }
  0x44   : >> { %v552_v20 = vrot.slane %v551_v10, 4  ;;  %v478_v23 = vshll.u32 %v431_v14, 16  ;;  %v2906_v24 = vrot.slane %v605_v8, 9  ;;  %v656_v25 = vrot.slane %v606_v11, 5  ;;  %v433_v28 = vld [vmem:[#allocation2 + $0x18] sm:$0xf] }
  0x45   : >> { %570 = vrot.lane.b32.xlu0 %v543_v15, %s3591_s15  ;;  %v301_v29 = vshrl.u32 %v271_v4, 16  ;;  %v653_v30 = vsel %vm3722_vm5, %v2905_v3, %v652_v7  ;;  %v1132_v31 = vrot.slane %v1130_v12, 4  ;;  %v1135_v32 = vrot.slane %v1133_v13, 5  ;;  %v434_v40 = vld [vmem:[#allocation2 + $0x1c] sm:$0x1]  ;;  %v3484_v45 = vld [vmem:[%s4441_s1 + $0x50] sm:$0xff]  }
  0x46   : >> { %v1139_v34 = vshll.u32 %v1042_v16, 16  ;;  %1159 = vrot.lane.b32.xlu1 %v1072_v19, %s3592_s25  ;;  %v477_v35 = vrot.slane %v475_v18, 4  ;;  %v484_v36 = vshll.u32 %v432_v22, 16  ;;  %v304_v37 = vshll.u32 %v271_v4, 16  ;;  %v381_v43 = vld [vmem:[#allocation2 + $0x20] sm:$0xf]  ;;  %3184 = vmatprep.subr.bf16.mxu0 %v3484_v45 }
  0x47   : >> { %v557_v38 = vsel %vm3738_vm9, %v552_v20, %v556_v21  ;;  %v480_v39 = vrot.slane %v478_v23, 5  ;;  %v489_v41 = vshrl.u32 %v433_v28, 16  ;;  %v492_v42 = vshll.u32 %v433_v28, 16  ;;  %v384_v44 = vld [vmem:[#allocation2 + $0x24] sm:$0x1]  ;;  %v3485_v56 = vld [vmem:[%s4441_s1 + $0x10] sm:$0xff]   ;;  %3417 = vmatprep.subr.bf16.mxu1 %v3484_v45 }
  0x48   : >> { %v987_v46 = vld [vmem:[#allocation2 + $0x40] sm:$0xf]  ;;  %v3861_v48 = vrot.slane %v1150_v26, 4  ;;  %v303_v49 = vrot.slane %v301_v29, 7  ;;  %v272_v50 = vld [vmem:[%s3731_s10 + $0x10] sm:$0xf]  ;;  %v657_v51 = vsel %vm3722_vm5, %v2906_v24, %v656_v25  ;;  %v1136_v52 = vor.u32 %v1135_v32, %v1132_v31  ;;  %3185 = vmatpush3.bf16.msra.mxu0 %v3485_v56  ;;  %3425 = vmatpush3.bf16.msra.mxu1 %v3485_v56 }
  0x49   : >> { %670 = vrot.lane.b32.xlu0 %v653_v30, %s3590_s9  ;;  %v3866_v53 = vrot.slane %v1139_v34, 5  ;;  %v3868_v54 = vrot.slane %v1153_v17, 5  ;;  %v3870_v55 = vld [vmem:[#allocation2 + $0x18] sm:$0xe]  ;;  %v3876_v57 = vrot.slane %v484_v36, 5  ;;  %v498_v58 = vshll.u32 %v434_v40, 16  ;;  %3186 = vmatprep.subr.bf16.mxu0 %v3486_v6 }
  0x4a   : >> { %572 = vrot.lane.b32.xlu1 %v557_v38, %s3591_s15  ;;  %v306_v59 = vor.u32 %v304_v37, %v303_v49  ;;  %v307_v60 = vrot.slane %v303_v49, 4  ;;  %v481_v61 = vor.u32 %v480_v39, %v477_v35  ;;  %v491_v62 = vrot.slane %v489_v41, 4  ;;  %v3878_v3 = vld [vmem:[#allocation2 + $0x1c] sm:$0x1]  ;;  %v697_v7 = vld [vmem:[#allocation2 + $0x38] sm:$0xf]  ;;  %3418 = vmatprep.subr.bf16.mxu1 %v3486_v6 }
  0x4b   : >> { %v494_v63 = vrot.slane %v492_v42, 5  ;;  %v309_v4 = vshrl.u32 %v272_v50, 16  ;;  %v2909_v8 = vrot.slane %v3870_v55, 9  ;;  %v312_v11 = vshll.u32 %v272_v50, 16  ;;  %v988_v12 = vld [vmem:[#allocation2 + $0x48] sm:$0xf] }
  0x4c   : >> { %v382_v9 = vsel %vm3744_vm11, %v306_v59, %v381_v43  ;;  %v385_v10 = vsel %vm3756_vm12, %v307_v60, %v384_v44  ;;  %v1137_v13 = vrot.slane %v1136_v52, 4  ;;  %v3889_v14 = vld [vmem:[#allocation2 + $0x10] sm:$0xe]  ;;  %v3891_v15 = vld [vmem:[#allocation2 + $0x14] sm:$0x1]  ;;  %v3896_v18 = vrot.slane %v498_v58, 5  ;;  %3187 = vmatpush3.bf16.msra.mxu0 %v3487_v33  ;;  %3426 = vmatpush3.bf16.msra.mxu1 %v3487_v33 }
  0x4d   : >> { %1009 = vrot.lane.b32.xlu0 %v987_v46, %s3590_s9  ;;  %383 = vst [vmem:[#allocation2 + $0x20] sm:$0xf] %v382_v9  ;;  %386 = vst [vmem:[#allocation2 + $0x24] sm:$0x1] %v385_v10  ;;  %v3893_v16 = vld [vmem:[#allocation2 + $0x18] sm:$0xe]  ;;  %v495_v23 = vor.u32 %v494_v63, %v491_v62  ;;  %v1156_v52 = vsel %vm3738_vm9, %v3861_v48, %v3868_v54 }
  0x4e   : >> { %v311_v17 = vrot.slane %v309_v4, 7  ;;  %672 = vrot.lane.b32.xlu1 %v657_v51, %s3590_s9  ;;  %v926_v19 = vrot.slane %v3878_v3, 5  ;;  %v387_v20 = vld [vmem:[#allocation2 + $0x28] sm:$0xf]  ;;  %v390_v21 = vld [vmem:[#allocation2 + $0x2c] sm:$0x1]  ;;  %v1142_v32 = vsel %vm3738_vm9, %v1137_v13, %v3866_v53 }
  0x4f   : >> { %v482_v22 = vrot.slane %v481_v61, 4  ;;  %v3899_v24 = vld [vmem:[#allocation2 + $0x1c] sm:$0x1]  ;;  %v411_v28 = vld [vmem:[#allocation2] sm:$0xf]  ;;  %v2901_v37 = vrot.slane %v3889_v14, 9 }
  0x50   : >> { %v314_v25 = vor.u32 %v312_v11, %v311_v17  ;;  %v315_v26 = vrot.slane %v311_v17, 4  ;;  %v3902_v29 = vld [vmem:[#allocation2 + $0x30] sm:$0xe]  ;;  %419 = vst.msk [vmem:[#allocation3] sm:$0xf] %vm226_vm0, %v411_v28  ;;  %v636_v38 = vrot.slane %v3891_v15, 5  ;;  %v927_v48 = vsel %vm3722_vm5, %v2909_v8, %v926_v19 }
  0x51   : >> { %719 = vrot.lane.b32.xlu0 %v697_v7, %s3592_s25  ;;  %v3904_v30 = vld [vmem:[#allocation2 + $0x30] sm:$0xf]  ;;  %v698_v31 = vld [vmem:[#allocation2 + $0x40] sm:$0xf]  ;;  %v3914_v36 = vld [vmem:[#allocation2 + $0x34] sm:$0x1]  ;;  %v487_v46 = vsel %vm3738_vm9, %v482_v22, %v3876_v57 }
  0x52   : >> { %v388_v34 = vsel %vm3744_vm11, %v314_v25, %v387_v20  ;;  %v391_v35 = vsel %vm3756_vm12, %v315_v26, %v390_v21  ;;  %1011 = vrot.lane.b32.xlu1 %v988_v12, %s3590_s9  ;;  %v2902_v39 = vrot.slane %v3893_v16, 9  ;;  %v3923_v40 = vrot.slane %v495_v23, 4  ;;  %v1038_v44 = vld [vmem:[#allocation2 + $0x34] sm:$0x1]  ;;  %v3936_v51 = vld [vmem:[#allocation2 + $0x38] sm:$0xf] }
  0x53   : >> { %389 = vst [vmem:[#allocation2 + $0x28] sm:$0xf] %v388_v34  ;;  %392 = vst [vmem:[#allocation2 + $0x2c] sm:$0x1] %v391_v35  ;;  %v1102_v47 = vshrl.u32 %v3904_v30, 16  ;;  %v640_v41 = vrot.slane %v3899_v24, 5  ;;  %v637_v55 = vsel %vm3722_vm5, %v2901_v37, %v636_v38 }
  0x54   : >> { %v2912_v42 = vrot.slane %v3902_v29, 9  ;;  %v938_v43 = vrot.slane %v3914_v36, 5  ;;  %v1105_v45 = vshll.u32 %v3904_v30, 16  ;;  %v3934_v49 = vld [vmem:[#allocation2 + $0x20] sm:$0xe]  ;;  %v1111_v62 = vshll.u32 %v1038_v44, 16 }
  0x55   : >> { %1169 = vrot.lane.b32.xlu0 %v1142_v32, %s3592_s25  ;;  %v1033_v50 = vld [vmem:[#allocation2 + $0x20] sm:$0xf]  ;;  %v891_v53 = vld [vmem:[#allocation2 + $0x24] sm:$0x1]  ;;  %v3943_v57 = vrot.slane %v1102_v47, 4  ;;  %v2910_v7 = vrot.slane %v3934_v49, 9  ;;  %v501_v20 = vsel %vm3738_vm9, %v3923_v40, %v3896_v18 }
  0x56   : >> { %721 = vrot.lane.b32.xlu1 %v698_v31, %s3592_s25  ;;  %v1074_v56 = vshrl.u32 %v1033_v50, 16  ;;  %v1077_v58 = vshll.u32 %v1033_v50, 16  ;;  %v435_v59 = vld [vmem:[#allocation2 + $0x20] sm:$0xf]  ;;  %v1034_v54 = vld [vmem:[#allocation2 + $0x24] sm:$0x1] }
  0x57   : >> { %v503_v60 = vshrl.u32 %v435_v59, 16  ;;  %v506_v61 = vshll.u32 %v435_v59, 16  ;;  %v3488_v63 = vld [vmem:[%s4441_s1 + $0x40] sm:$0xff]   ;;  %v930_v9 = vrot.slane %v891_v53, 5  ;;  %v3954_v12 = vld [vmem:[#allocation2 + $0x3c] sm:$0x1] }
  0x58   : >> { %v1076_v3 = vrot.slane %v1074_v56, 4  ;;  %v1079_v4 = vrot.slane %v1077_v58, 5  ;;  %v436_v6 = vld [vmem:[#allocation2 + $0x24] sm:$0x1]  ;;  %v1116_v13 = vshrl.u32 %v3936_v51, 16  ;;  %3188 = vmatprep.subr.bf16.mxu0 %v3488_v63  ;;  %3419 = vmatprep.subr.bf16.mxu1 %v3488_v63  ;;  %v1083_v22 = vshll.u32 %v1034_v54, 16 }
  0x59   : >> { %562 = vrot.lane.b32.xlu0 %v487_v46, %s3591_s15  ;;  %v505_v11 = vrot.slane %v503_v60, 4  ;;  %v508_v17 = vrot.slane %v506_v61, 5  ;;  %v3489_v19 = vld [vmem:[%s4441_s1] sm:$0xff]   ;;  %v512_v23 = vshll.u32 %v436_v6, 16  ;;  %v3971_v34 = vld [vmem:[%s4441_s1 + $0x88] sm:$0xff]   ;;  %v3975_v38 = vrot.slane %v1105_v45, 5 }
  0x5a   : >> { %v1035_v10 = vld [vmem:[#allocation2 + $0x28] sm:$0xf]  ;;  %1171 = vrot.lane.b32.xlu1 %v1156_v52, %s3592_s25  ;;  %v1036_v8 = vld [vmem:[#allocation2 + $0x2c] sm:$0x1]  ;;  %v1080_v21 = vor.u32 %v1079_v4, %v1076_v3  ;;  %3189 = vmatpush3.bf16.msra.mxu0 %v3489_v19  ;;  %v1119_v33 = vshll.u32 %v3936_v51, 16  ;;  %v3979_v47 = vrot.slane %v1111_v62, 5  ;;  %v931_v49 = vsel %vm3722_vm5, %v2910_v7, %v930_v9 }
  0x5b   : >> { %v1088_v14 = vshrl.u32 %v1035_v10, 16  ;;  %v1091_v15 = vshll.u32 %v1035_v10, 16  ;;  %v437_v25 = vld [vmem:[#allocation2 + $0x28] sm:$0xf]  ;;  %v438_v26 = vld [vmem:[#allocation2 + $0x2c] sm:$0x1]  ;;  %v509_v32 = vor.u32 %v508_v17, %v505_v11  ;;  %3427 = vmatpush3.bf16.msra.mxu1 %v3489_v19  ;;  %v641_v6 = vsel %vm3722_vm5, %v2902_v39, %v640_v41 }
  0x5c   : >> { %v1097_v31 = vshll.u32 %v1036_v8, 16  ;;  %v517_v35 = vshrl.u32 %v437_v25, 16  ;;  %v520_v37 = vshll.u32 %v437_v25, 16  ;;  %v3973_v18 = vld [vmem:[#allocation2 + $0x28] sm:$0xe]  ;;  %v526_v40 = vshll.u32 %v438_v26, 16  ;;  %3280 = vmatprep.subr.bf16.mxu1 %v3971_v34 }
  0x5d   : >> { %952 = vrot.lane.b32.xlu0 %v927_v48, %s3591_s15  ;;  %v1090_v28 = vrot.slane %v1088_v14, 4  ;;  %v1093_v30 = vrot.slane %v1091_v15, 5  ;;  %v3981_v44 = vrot.slane %v1116_v13, 4  ;;  %v1125_v46 = vshll.u32 %v3954_v12, 16  ;;  %v983_v50 = vld [vmem:[#allocation2 + $0x20] sm:$0xf] }
  0x5e   : >> { %564 = vrot.lane.b32.xlu1 %v501_v20, %s3591_s15  ;;  %v1085_v45 = vrot.slane %v1083_v22, 5  ;;  %v3987_v53 = vrot.slane %v512_v23, 5  ;;  %v3989_v56 = vld [vmem:[#allocation2 + $0x2c] sm:$0x1]  ;;  %v3991_v58 = vld [vmem:[#allocation2 + $0x20] sm:$0xe] }
  0x5f   : >> { %v1094_v52 = vor.u32 %v1093_v30, %v1090_v28  ;;  %v1081_v59 = vrot.slane %v1080_v21, 4  ;;  %v3994_v60 = vrot.slane %v1097_v31, 5  ;;  %v3996_v61 = vrot.slane %v509_v32, 4  ;;  %v3999_v63 = vld [vmem:[#allocation2 + $0x24] sm:$0x1]  ;;  %s1745_s24 = ssub.s32 (!%p2971_p6), 0, %s3587_s7 }
  0x60   : >> { %v2911_v62 = vrot.slane %v3973_v18, 9  ;;  %v519_v48 = vrot.slane %v517_v35, 4  ;;  %v522_v54 = vrot.slane %v520_v37, 5  ;;  %v741_v3 = vld [vmem:[#allocation2 + $0xc] sm:$0x1]  ;;  %v4008_v7 = vrot.slane %v526_v40, 5  ;;  %s2978_s29 = smin.u32 (!%p2971_p6), %s3587_s7, %s1745_s24 }
  0x61   : >> { %662 = vrot.lane.b32.xlu0 %v637_v55, %s3590_s9  ;;  %v740_v4 = vld [vmem:[#allocation2 + $0x8] sm:$0xf]  ;;  %v934_v9 = vrot.slane %v3989_v56, 5  ;;  %v752_v10 = vld [vmem:[#allocation2 + $0x38] sm:$0xf]  ;;  %v4011_v55 = vrot.slane %v1094_v52, 4  ;;  %v1086_v37 = vsel %vm3738_vm9, %v1081_v59, %v1085_v45  ;;  %v515_v45 = vsel %vm3738_vm9, %v3996_v61, %v3987_v53 }
  0x62   : >> { %954 = vrot.lane.b32.xlu1 %v931_v49, %s3591_s15  ;;  %v753_v11 = vld [vmem:[#allocation2 + $0x3c] sm:$0x1]  ;;  %v693_v13 = vld [vmem:[#allocation2 + $0x18] sm:$0xf]  ;;  %v766_v8 = vshll.u32 %v741_v3, 16  ;;  %v757_v14 = vshrl.u32 %v740_v4, 16  ;;  %v523_v19 = vor.u32 %v522_v54, %v519_v48  ;;  %v939_v18 = vsel %vm3722_vm5, %v2912_v42, %v938_v43 }
  0x63   : >> { %v760_v15 = vshll.u32 %v740_v4, 16  ;;  %v2903_v24 = vrot.slane %v3991_v58, 9  ;;  %v644_v16 = vrot.slane %v3999_v63, 5  ;;  %v841_v17 = vshrl.u32 %v752_v10, 16  ;;  %v984_v41 = vld [vmem:[#allocation2 + $0x28] sm:$0xf] }
  0x64   : >> { %v844_v39 = vshll.u32 %v752_v10, 16  ;;  %v759_v20 = vrot.slane %v757_v14, 4  ;;  %v850_v22 = vshll.u32 %v753_v11, 16  ;;  %v742_v26 = vld [vmem:[#allocation2 + $0x10] sm:$0xf]  ;;  %v768_v28 = vrot.slane %v766_v8, 5 }
  0x65   : >> { %1001 = vrot.lane.b32.xlu0 %v983_v50, %s3590_s9  ;;  %v762_v21 = vrot.slane %v760_v15, 5  ;;  %v843_v23 = vrot.slane %v841_v17, 4  ;;  %v743_v31 = vld [vmem:[#allocation2 + $0x14] sm:$0x1]  ;;  %v771_v32 = vshrl.u32 %v742_v26, 16  ;;  %v774_v35 = vshll.u32 %v742_v26, 16 }
  0x66   : >> { %664 = vrot.lane.b32.xlu1 %v641_v6, %s3590_s9  ;;  %v846_v25 = vrot.slane %v844_v39, 5  ;;  %v852_v49 = vrot.slane %v850_v22, 5  ;;  %v780_v50 = vshll.u32 %v743_v31, 16  ;;  %v412_v52 = vld [vmem:[#allocation2 + $0x8] sm:$0xf]  ;;  %v524_v54 = vrot.slane %v523_v19, 4 }
  0x67   : >> { %v763_v30 = vor.u32 %v762_v21, %v759_v20  ;;  %v694_v48 = vld [vmem:[#allocation2 + $0x20] sm:$0xf]  ;;  %v773_v4 = vrot.slane %v771_v32, 4  ;;  %v776_v6 = vrot.slane %v774_v35, 5  ;;  %420 = vst.msk [vmem:[#allocation3 + $0xc] sm:$0xf] %vm226_vm0, %v412_v52  ;;  %v1100_v53 = vsel %vm3738_vm9, %v4011_v55, %v3994_v60 }
  0x68   : >> { %v847_v40 = vor.u32 %v846_v25, %v843_v23  ;;  %v782_v11 = vrot.slane %v780_v50, 5  ;;  %v754_v14 = vld [vmem:[#allocation2 + $0x40] sm:$0xf]  ;;  %v755_v15 = vld [vmem:[#allocation2 + $0x44] sm:$0x1]  ;;  %v935_v60 = vsel %vm3722_vm5, %v2911_v62, %v934_v9  ;;  %v1108_v56 = vor.u32 %v3975_v38, %v3943_v57  ;;  %p1744_p7 = scmp.lt.s32.totalorder (!%p2971_p6), %s3587_s7, 0 }
  0x69   : >> { %711 = vrot.lane.b32.xlu0 %v693_v13, %s3592_s25  ;;  %v764_v3 = vrot.slane %v763_v30, 4  ;;  %v777_v8 = vor.u32 %v776_v6, %v773_v4  ;;  %v855_v39 = vshrl.u32 %v754_v14, 16  ;;  %v864_v19 = vshll.u32 %v755_v15, 16  ;;  %v601_v61 = vld [vmem:[#allocation2 + $0x28] sm:$0xe] }
  0x6a   : >> { %1003 = vrot.lane.b32.xlu1 %v984_v41, %s3590_s9  ;;  %v848_v10 = vrot.slane %v847_v40, 4  ;;  %v858_v41 = vshll.u32 %v754_v14, 16  ;;  %v417_v25 = vld [vmem:[#allocation2 + $0x30] sm:$0xf]  ;;  %v602_v55 = vld [vmem:[#allocation2 + $0x2c] sm:$0x1]  ;;  %v529_v30 = vsel %vm3738_vm9, %v524_v54, %v4008_v7  ;;  %v645_v7 = vsel %vm3722_vm5, %v2903_v24, %v644_v16 }
  0x6b   : >> { %v769_v13 = vsel %vm3738_vm9, %v764_v3, %v768_v28  ;;  %v778_v17 = vrot.slane %v777_v8, 4  ;;  %v857_v21 = vrot.slane %v855_v39, 4  ;;  %v866_v23 = vrot.slane %v864_v19, 5  ;;  %425 = vst.msk [vmem:[#allocation3 + $0x48] sm:$0xf] %vm226_vm0, %v417_v25 }
  0x6c   : >> { %876 = vst.msk [vmem:[#allocation3 + $0x4] sm:$0xf] %vm226_vm0, %v769_v13  ;;  %v853_v59 = vsel %vm3738_vm9, %v848_v10, %v852_v49  ;;  %v860_v22 = vrot.slane %v858_v41, 5  ;;  %v418_v28 = vld [vmem:[#allocation2 + $0x38] sm:$0xf]  ;;  %v2904_v31 = vrot.slane %v601_v61, 9 }
  0x6d   : >> { %1161 = vrot.lane.b32.xlu0 %v1086_v37, %s3592_s25  ;;  %882 = vst.msk [vmem:[#allocation3 + $0x4c] sm:$0xf] %vm226_vm0, %v853_v59  ;;  %v783_v20 = vsel %vm3738_vm9, %v778_v17, %v782_v11  ;;  %426 = vst.msk [vmem:[#allocation3 + $0x54] sm:$0xf] %vm226_vm0, %v418_v28  ;;  %v413_v62 = vld [vmem:[#allocation2 + $0x10] sm:$0xf] }
  0x6e   : >> { %713 = vrot.lane.b32.xlu1 %v694_v48, %s3592_s25  ;;  %877 = vst.msk [vmem:[#allocation3 + $0x10] sm:$0xf] %vm226_vm0, %v783_v20  ;;  %v861_v26 = vor.u32 %v860_v22, %v857_v21  ;;  %v414_v9 = vld [vmem:[#allocation2 + $0x18] sm:$0xf]  ;;  %421 = vst.msk [vmem:[#allocation3 + $0x18] sm:$0xf] %vm226_vm0, %v413_v62 }
  0x6f   : >> { %v744_v35 = vld [vmem:[#allocation2 + $0x18] sm:$0xf]  ;;  %422 = vst.msk [vmem:[#allocation3 + $0x24] sm:$0xf] %vm226_vm0, %v414_v9  ;;  %v745_v29 = vld [vmem:[#allocation2 + $0x1c] sm:$0x1] }
  0x70   : >> { %v862_v32 = vrot.slane %v861_v26, 4  ;;  %v785_v42 = vshrl.u32 %v744_v35, 16  ;;  %v788_v43 = vshll.u32 %v744_v35, 16  ;;  %v746_v57 = vld [vmem:[#allocation2 + $0x20] sm:$0xf]  ;;  %v648_v38 = vrot.slane %v602_v55, 5 }
  0x71   : >> { %566 = vrot.lane.b32.xlu0 %v515_v45, %s3591_s15  ;;  %v794_v58 = vshll.u32 %v745_v29, 16  ;;  %v747_v63 = vld [vmem:[#allocation2 + $0x24] sm:$0x1]  ;;  %v799_v37 = vshrl.u32 %v746_v57, 16  ;;  %v802_v24 = vshll.u32 %v746_v57, 16  ;;  %v4077_v40 = vrot.slane %v1119_v33, 5 }
  0x72   : >> { %1163 = vrot.lane.b32.xlu1 %v1100_v53, %s3592_s25  ;;  %v867_v36 = vsel %vm3738_vm9, %v862_v32, %v866_v23  ;;  %v985_v16 = vld [vmem:[#allocation2 + $0x30] sm:$0xf]  ;;  %v787_v49 = vrot.slane %v785_v42, 4  ;;  %v790_v50 = vrot.slane %v788_v43, 5  ;;  %v808_v52 = vshll.u32 %v747_v63, 16 }
  0x73   : >> { %883 = vst.msk [vmem:[#allocation3 + $0x58] sm:$0xf] %vm226_vm0, %v867_v36  ;;  %v4080_v48 = vrot.slane %v1108_v56, 4  ;;  %v4084_v54 = vrot.slane %v1125_v46, 5  ;;  %v801_v3 = vrot.slane %v799_v37, 4  ;;  %v804_v4 = vrot.slane %v802_v24, 5 }
  0x74   : >> { %v791_v6 = vor.u32 %v790_v50, %v787_v49  ;;  %v796_v10 = vrot.slane %v794_v58, 5  ;;  %v810_v11 = vrot.slane %v808_v52, 5  ;;  %v649_v51 = vsel %vm3722_vm5, %v2904_v31, %v648_v38  ;;  %v1189_v13 = vld [vmem:[#allocation2 + $0x10] sm:$0xe]  ;;  %v1190_v8 = vld [vmem:[#allocation2 + $0x14] sm:$0x1] }
  0x75   : >> { %956 = vrot.lane.b32.xlu0 %v935_v60, %s3591_s15  ;;  %v805_v33 = vor.u32 %v804_v4, %v801_v3  ;;  %v1191_v45 = vld [vmem:[#allocation2 + $0x18] sm:$0xe]  ;;  %v695_v59 = vld [vmem:[#allocation2 + $0x28] sm:$0xf]  ;;  %v1192_v15 = vld [vmem:[#allocation2 + $0x1c] sm:$0x1]  ;;  %v1122_v39 = vor.u32 %v4077_v40, %v3981_v44  ;;  %v1114_v57 = vsel %vm3738_vm9, %v4080_v48, %v3979_v47 }
  0x76   : >> { %568 = vrot.lane.b32.xlu1 %v529_v30, %s3591_s15  ;;  %v792_v14 = vrot.slane %v791_v6, 4  ;;  %v2915_v12 = vrot.slane %v1189_v13, 9  ;;  %v1223_v46 = vrot.slane %v1190_v8, 5  ;;  %v2916_v17 = vrot.slane %v1191_v45, 9  ;;  %v1193_v53 = vld [vmem:[#allocation2 + $0x20] sm:$0xe] }
  0x77   : >> { %v806_v41 = vrot.slane %v805_v33, 4  ;;  %v1227_v19 = vrot.slane %v1192_v15, 5  ;;  %v1194_v61 = vld [vmem:[#allocation2 + $0x24] sm:$0x1]  ;;  %v986_v20 = vld [vmem:[#allocation2 + $0x38] sm:$0xf] }
  0x78   : >> { %v797_v21 = vsel %vm3738_vm9, %v792_v14, %v796_v10  ;;  %v1224_v22 = vsel %vm3722_vm5, %v2915_v12, %v1223_v46  ;;  %v1195_v23 = vld [vmem:[#allocation2 + $0x28] sm:$0xe]  ;;  %v1196_v25 = vld [vmem:[#allocation2 + $0x2c] sm:$0x1]  ;;  %v2917_v60 = vrot.slane %v1193_v53, 9  ;;  %v1231_v55 = vrot.slane %v1194_v61, 5 }
  0x79   : >> { %666 = vrot.lane.b32.xlu0 %v645_v7, %s3590_s9  ;;  %878 = vst.msk [vmem:[#allocation3 + $0x1c] sm:$0xf] %vm226_vm0, %v797_v21  ;;  %v811_v44 = vsel %vm3738_vm9, %v806_v41, %v810_v11  ;;  %v1228_v26 = vsel %vm3722_vm5, %v2916_v17, %v1227_v19  ;;  %1261 = vst.msk [vmem:[#allocation3 + $0x8] sm:$0xf] %vm226_vm0, %v1224_v22  ;;  %v2918_v28 = vrot.slane %v1195_v23, 9  ;;  %v1235_v30 = vrot.slane %v1196_v25, 5 }
  0x7a   : >> { %958 = vrot.lane.b32.xlu1 %v939_v18, %s3591_s15  ;;  %v415_v31 = vld [vmem:[#allocation2 + $0x20] sm:$0xf]  ;;  %v1197_v32 = vld [vmem:[#allocation2 + $0x30] sm:$0xe]  ;;  %879 = vst.msk [vmem:[#allocation3 + $0x28] sm:$0xf] %vm226_vm0, %v811_v44  ;;  %v1232_v18 = vsel %vm3722_vm5, %v2917_v60, %v1231_v55 }
  0x7b   : >> { %1262 = vst.msk [vmem:[#allocation3 + $0x14] sm:$0xf] %vm226_vm0, %v1228_v26  ;;  %423 = vst.msk [vmem:[#allocation3 + $0x30] sm:$0xf] %vm226_vm0, %v415_v31  ;;  %v1198_v56 = vld [vmem:[#allocation2 + $0x34] sm:$0x1]  ;;  %v1236_v35 = vsel %vm3722_vm5, %v2918_v28, %v1235_v30 }
  0x7c   : >> { %v1199_v62 = vld [vmem:[#allocation2 + $0x38] sm:$0xe]  ;;  %v1200_v9 = vld [vmem:[#allocation2 + $0x3c] sm:$0x1]  ;;  %1263 = vst.msk [vmem:[#allocation3 + $0x20] sm:$0xf] %vm226_vm0, %v1232_v18 }
  0x7d   : >> { %1005 = vrot.lane.b32.xlu0 %v985_v16, %s3590_s9  ;;  %v2919_v7 = vrot.slane %v1197_v32, 9  ;;  %v1239_v36 = vrot.slane %v1198_v56, 5  ;;  %v2920_v29 = vrot.slane %v1199_v62, 9  ;;  %v416_v42 = vld [vmem:[#allocation2 + $0x28] sm:$0xf]  ;;  %v1123_v38 = vrot.slane %v1122_v39, 4 }
  0x7e   : >> { %668 = vrot.lane.b32.xlu1 %v649_v51, %s3590_s9  ;;  %v696_v43 = vld [vmem:[#allocation2 + $0x30] sm:$0xf]  ;;  %1264 = vst.msk [vmem:[#allocation3 + $0x2c] sm:$0xf] %vm226_vm0, %v1236_v35  ;;  %v1243_v58 = vrot.slane %v1200_v9, 5  ;;  %vm582_vm13 = vcmask 519424  }
  0x7f   : >> { %424 = vst.msk [vmem:[#allocation3 + $0x3c] sm:$0xf] %vm226_vm0, %v416_v42  ;;  %v1201_v63 = vld [vmem:[#allocation2 + $0x40] sm:$0xe]  ;;  %v1202_v37 = vld [vmem:[#allocation2 + $0x44] sm:$0x1]  ;;  %v1240_v24 = vsel %vm3722_vm5, %v2919_v7, %v1239_v36  ;;  %v1128_v12 = vsel %vm3738_vm9, %v1123_v38, %v4084_v54 }
  0x80   : >> { %v1203_v16 = vld [vmem:[#allocation2 + $0x48] sm:$0xe]  ;;  %v1204_v40 = vld [vmem:[#allocation2 + $0x4c] sm:$0x1]  ;;  %v2921_v49 = vrot.slane %v1201_v63, 9  ;;  %v1247_v50 = vrot.slane %v1202_v37, 5  ;;  %v1244_v47 = vsel %vm3722_vm5, %v2920_v29, %v1243_v58 }
  0x81   : >> { %715 = vrot.lane.b32.xlu0 %v695_v59, %s3592_s25  ;;  %1265 = vst.msk [vmem:[#allocation3 + $0x38] sm:$0xf] %vm226_vm0, %v1240_v24  ;;  %v2922_v52 = vrot.slane %v1203_v16, 9  ;;  %v1251_v48 = vrot.slane %v1204_v40, 5  ;;  %v748_v3 = vld [vmem:[#allocation2 + $0x28] sm:$0xf] }
  0x82   : >> { %1007 = vrot.lane.b32.xlu1 %v986_v20, %s3590_s9  ;;  %v749_v4 = vld [vmem:[#allocation2 + $0x2c] sm:$0x1]  ;;  %1266 = vst.msk [vmem:[#allocation3 + $0x44] sm:$0xf] %vm226_vm0, %v1244_v47  ;;  %v1248_v6 = vsel %vm3722_vm5, %v2921_v49, %v1247_v50  ;;  %v813_v10 = vshrl.u32 %v748_v3, 16  ;;  %v816_v11 = vshll.u32 %v748_v3, 16 }
  0x83   : >> { %v822_v51 = vshll.u32 %v749_v4, 16  ;;  %v750_v33 = vld [vmem:[#allocation2 + $0x30] sm:$0xf]  ;;  %v1252_v13 = vsel %vm3722_vm5, %v2922_v52, %v1251_v48  ;;  %1267 = vst.msk [vmem:[#allocation3 + $0x50] sm:$0xf] %vm226_vm0, %v1248_v6  ;;  %vm682_vm14 = vcmask 781824  }
  0x84   : >> { %v751_v8 = vld [vmem:[#allocation2 + $0x34] sm:$0x1]  ;;  %v827_v45 = vshrl.u32 %v750_v33, 16  ;;  %v830_v59 = vshll.u32 %v750_v33, 16  ;;  %1268 = vst.msk [vmem:[#allocation3 + $0x5c] sm:$0xf] %vm226_vm0, %v1252_v13 }
  0x85   : >> { %1165 = vrot.lane.b32.xlu0 %v1114_v57, %s3592_s25  ;;  %v815_v14 = vrot.slane %v813_v10, 4  ;;  %v818_v15 = vrot.slane %v816_v11, 5  ;;  %v836_v39 = vshll.u32 %v751_v8, 16  ;;  %v824_v41 = vrot.slane %v822_v51, 5  ;;  %v3498_v49 = vld [vmem:[#allocation3 + $0x8] ss:$12 sps:$4 sm:$0xff]  }
  0x86   : >> { %717 = vrot.lane.b32.xlu1 %v696_v43, %s3592_s25  ;;  %v829_v46 = vrot.slane %v827_v45, 4  ;;  %v832_v17 = vrot.slane %v830_v59, 5  ;;  %vm731_vm15 = vcmask 1044224   ;;  %v3497_v48 = vld [vmem:[%s4441_s1 + $0x80] sm:$0xff]   ;;  %vm1495_vm3 = vcmask 261120   ;;  %s4250_s15 = sadd.s32 (!%p2971_p6), 4294967295, %s3587_s7 }
  0x87   : >> { %v819_v5 = vor.u32 %v818_v15, %v815_v14  ;;  %v838_v53 = vrot.slane %v836_v39, 5  ;;  %v3499_v10 = vld [vmem:[#allocation3 + $0x20] ss:$12 sps:$4 sm:$0xff]   ;;  %p1708_p9 = scmp.lt.s32.totalorder (!%p2971_p6), %s4250_s15, 0 }
  0x88   : >> { %v833_v19 = vor.u32 %v832_v17, %v829_v46 }
  0x89   : >> { %v820_v61 = vrot.slane %v819_v5, 4  ;;  %v3500_v51 = vld [vmem:[#allocation3 + $0x38] ss:$12 sps:$4 sm:$0xff]  }
  0x8a   : >> { %1167 = vrot.lane.b32.xlu1 %v1128_v12, %s3592_s25  ;;  %v834_v20 = vrot.slane %v833_v19, 4  ;;  %s4200_s25 = sadd.s32 1, %s3587_s7  }
  0x8b   : >> { %v825_v21 = vsel %vm3738_vm9, %v820_v61, %v824_v41  ;;  %v3501_v8 = vld [vmem:[#allocation3 + $0x50] ss:$12 sps:$4 sm:$0xff]   ;;  %s1652_s8 = ssub.s32 0, %s4200_s25  ;;  %p1651_p4 = scmp.lt.s32.totalorder %s4200_s25, 0 }
  0x8c   : >> { %880 = vst.msk [vmem:[#allocation3 + $0x34] sm:$0xf] %vm226_vm0, %v825_v21  ;;  %v839_v22 = vsel %vm3738_vm9, %v834_v20, %v838_v53  ;;  %s2958_s11 = smin.u32 %s1652_s8, %s4200_s25 }
  0x8d   : >> { %881 = vst.msk [vmem:[#allocation3 + $0x40] sm:$0xf] %vm226_vm0, %v839_v22  ;;  %3507 = sdivrem.u32 %s2958_s11, 3 }
  0x8e   : >> { %3539 = sdivrem.u32 (!%p2971_p6), %s2978_s29, 3 }
  0x90   : >> { %v659_v54 = vpop.permute.xlu0 %658 }
  0x96   : >> { %s3508_s12 = spop.drf %3507 }
  0x97   : >> { %v559_v23 = vpop.permute.xlu0 %558  ;;  %s1656_s13 = ssub.s32 0, %s3508_s12  ;;  %s3540_s24 = spop.drf (!%p2971_p6), %3539 }
  0x98   : >> { %583 = vst.msk [vmem:[#allocation3] sm:$0xf] %vm582_vm13, %v559_v23  ;;  %s4459_s13 = smov (!%p1651_p4, %s1656_s13), %s3508_s12  ;;  %s1709_s12 = ssub.s32 (!%p2971_p6), 0, %s4250_s15 }
  0x99   : >> { %683 = vst.msk [vmem:[#allocation3] sm:$0xf] %vm682_vm14, %v659_v54  ;;  %p2960_p5 = scmp.lt.s32.totalorder %s4459_s13, 0  ;;  %s1662_s14 = sadd.s32 3, %s4459_s13 }
  0x9a   : >> { %s1749_s26 = ssub.s32 (!%p2971_p6), 0, %s3540_s24 }
  0x9b   : >> { %s4461_s14 = smov (!%p2960_p5, %s1662_s14), %s4459_s13  ;;  %s2973_s13 = smin.u32 (!%p2971_p6), %s4250_s15, %s1709_s12 }
  0x9c   : >> { %s3154_s16 = sshll.u32 %s4461_s14, 5  ;;  %3541 = sdivrem.u32 (!%p2971_p6), %s2973_s13, 3 }
  0x9d   : >> { %s4208_s17 = scalar_lea.vmem [#allocation4], %s3154_s16 }
  0xa0   : >> { %v1000_v25 = vpop.permute.xlu1 %999 }
  0xa1   : >> { %v998_v60 = vpop.permute.xlu0 %997 }
  0xa4   : >> { %v710_v55 = vpop.permute.xlu1 %709 }
  0xa5   : >> { %v708_v44 = vpop.permute.xlu0 %707  ;;  %s3542_s8 = spop.drf (!%p2971_p6), %3541 }
  0xa6   : >> { %732 = vst.msk [vmem:[#allocation3] sm:$0xf] %vm731_vm15, %v708_v44  ;;  %s1713_s11 = ssub.s32 (!%p2971_p6), 0, %s3542_s8 }
  0xa8   : >> { %v949_v26 = vpop.permute.xlu1 %948 }
  0xa9   : >> { %972 = vst.msk [vmem:[#allocation3 + $0x4] sm:$0xf] %vm582_vm13, %v949_v26  ;;  %v961_v27 = vpop.permute.xlu0 %960 }
  0xaa   : >> { %1021 = vst.msk [vmem:[#allocation3 + $0x4] sm:$0xf] %vm682_vm14, %v998_v60 }
  0xab   : >> { %978 = vst.msk [vmem:[#allocation3 + $0x4c] sm:$0xf] %vm582_vm13, %v961_v27 }
  0xac   : >> { %v951_v28 = vpop.permute.xlu1 %950 }
  0xad   : >> { %973 = vst.msk [vmem:[#allocation3 + $0x10] sm:$0xf] %vm582_vm13, %v951_v28 }
  0xae   : >> { %1022 = vst.msk [vmem:[#allocation3 + $0x10] sm:$0xf] %vm682_vm14, %v1000_v25 }
  0xaf   : >> { %v561_v30 = vpop.permute.xlu0 %560 }
  0xb0   : >> { %584 = vst.msk [vmem:[#allocation3 + $0xc] sm:$0xf] %vm582_vm13, %v561_v30  ;;  %v661_v31 = vpop.permute.xlu1 %660 }
  0xb1   : >> { %684 = vst.msk [vmem:[#allocation3 + $0xc] sm:$0xf] %vm682_vm14, %v661_v31 }
  0xb2   : >> { %733 = vst.msk [vmem:[#allocation3 + $0xc] sm:$0xf] %vm731_vm15, %v710_v55 }
  0xb3   : >> { %v1158_v32 = vpop.permute.xlu0 %1157 }
  0xb4   : >> { %1181 = vst.msk [vmem:[#allocation3 + $0x4] sm:$0xf] %vm731_vm15, %v1158_v32  ;;  %v963_v18 = vpop.permute.xlu1 %962 }
  0xb5   : >> { %979 = vst.msk [vmem:[#allocation3 + $0x58] sm:$0xf] %vm582_vm13, %v963_v18 }
  0xb7   : >> { %v571_v56 = vpop.permute.xlu0 %570 }
  0xb8   : >> { %589 = vst.msk [vmem:[#allocation3 + $0x48] sm:$0xf] %vm582_vm13, %v571_v56  ;;  %v1160_v62 = vpop.permute.xlu1 %1159 }
  0xb9   : >> { %1182 = vst.msk [vmem:[#allocation3 + $0x10] sm:$0xf] %vm731_vm15, %v1160_v62  ;;  %v3490_v29 = vld [vmem:[#allocation3] ss:$12 sps:$4 sm:$0xff]  }
  0xbb   : >> { %v671_v9 = vpop.permute.xlu0 %670 }
  0xbc   : >> { %689 = vst.msk [vmem:[#allocation3 + $0x48] sm:$0xf] %vm682_vm14, %v671_v9  ;;  %v573_v35 = vpop.permute.xlu1 %572 }
  0xbd   : >> { %590 = vst.msk [vmem:[#allocation3 + $0x54] sm:$0xf] %vm582_vm13, %v573_v35 }
  0xbf   : >> { %v1010_v7 = vpop.permute.xlu0 %1009 }
  0xc0   : >> { %1027 = vst.msk [vmem:[#allocation3 + $0x4c] sm:$0xf] %vm682_vm14, %v1010_v7  ;;  %v673_v36 = vpop.permute.xlu1 %672  ;;  %v3492_v42 = vld [vmem:[#allocation3 + $0x4] ss:$12 sps:$4 sm:$0xff]  }
  0xc1   : >> { %690 = vst.msk [vmem:[#allocation3 + $0x54] sm:$0xf] %vm682_vm14, %v673_v36  ;;  %1540 = vmatprep.mubr.bf16.mxu0 %v3492_v42 }
  0xc2   : >> { %1541 = vmatmul.mubr.bf16.vlgmr.msra.gmra.mxu0 %v3490_v29 }
  0xc3   : >> { %v720_v43 = vpop.permute.xlu0 %719 }
  0xc4   : >> { %738 = vst.msk [vmem:[#allocation3 + $0x48] sm:$0xf] %vm731_vm15, %v720_v43  ;;  %v1012_v57 = vpop.permute.xlu1 %1011 }
  0xc5   : >> { %1028 = vst.msk [vmem:[#allocation3 + $0x58] sm:$0xf] %vm682_vm14, %v1012_v57 }
  0xc7   : >> { %v1170_v38 = vpop.permute.xlu0 %1169 }
  0xc8   : >> { %1187 = vst.msk [vmem:[#allocation3 + $0x4c] sm:$0xf] %vm731_vm15, %v1170_v38  ;;  %v722_v58 = vpop.permute.xlu1 %721 }
  0xc9   : >> { %739 = vst.msk [vmem:[#allocation3 + $0x54] sm:$0xf] %vm731_vm15, %v722_v58 }
  0xcb   : >> { %v563_v63 = vpop.permute.xlu0 %562 }
  0xcc   : >> { %585 = vst.msk [vmem:[#allocation3 + $0x18] sm:$0xf] %vm582_vm13, %v563_v63  ;;  %v1172_v37 = vpop.permute.xlu1 %1171 }
  0xcd   : >> { %1188 = vst.msk [vmem:[#allocation3 + $0x58] sm:$0xf] %vm731_vm15, %v1172_v37 }
  0xcf   : >> { %v953_v24 = vpop.permute.xlu0 %952 }
  0xd0   : >> { %974 = vst.msk [vmem:[#allocation3 + $0x1c] sm:$0xf] %vm582_vm13, %v953_v24  ;;  %v565_v16 = vpop.permute.xlu1 %564  ;;  %v3493_v47 = vld [vmem:[#allocation3 + $0x48] ss:$12 sps:$4 sm:$0xff]  }
  0xd1   : >> { %586 = vst.msk [vmem:[#allocation3 + $0x24] sm:$0xf] %vm582_vm13, %v565_v16 }
  0xd3   : >> { %v663_v40 = vpop.permute.xlu0 %662 }
  0xd4   : >> { %685 = vst.msk [vmem:[#allocation3 + $0x18] sm:$0xf] %vm682_vm14, %v663_v40  ;;  %v955_v50 = vpop.permute.xlu1 %954  ;;  %v3495_v52 = vld [vmem:[#allocation3 + $0x4c] ss:$12 sps:$4 sm:$0xff]  }
  0xd5   : >> { %975 = vst.msk [vmem:[#allocation3 + $0x28] sm:$0xf] %vm582_vm13, %v955_v50  ;;  %1564 = vmatprep.mubr.bf16.mxu1 %v3495_v52 }
  0xd6   : >> { %1565 = vmatmul.mubr.bf16.vlgmr.msra.gmra.mxu1 %v3493_v47 }
  0xd7   : >> { %v1002_v3 = vpop.permute.xlu0 %1001  ;;  %3281 = vmatpush3.bf16.msra.mxu1 %v3971_v34  ;;  %3284 = vmatprep.mubr.msk.bf16.mxu1 %vm1495_vm3, %v3498_v49 }
  0xd8   : >> { %1023 = vst.msk [vmem:[#allocation3 + $0x1c] sm:$0xf] %vm682_vm14, %v1002_v3  ;;  %v665_v4 = vpop.permute.xlu1 %664  ;;  %3282 = vmatprep.subr.bf16.mxu1 %v3497_v48 }
  0xd9   : >> { %686 = vst.msk [vmem:[#allocation3 + $0x24] sm:$0xf] %vm682_vm14, %v665_v4 }
  0xdb   : >> { %v712_v6 = vpop.permute.xlu0 %711  ;;  %3283 = vmatpush3.bf16.msra.mxu1 %v3497_v48 }
  0xdc   : >> { %734 = vst.msk [vmem:[#allocation3 + $0x18] sm:$0xf] %vm731_vm15, %v712_v6  ;;  %v1004_v11 = vpop.permute.xlu1 %1003 }
  0xdd   : >> { %1024 = vst.msk [vmem:[#allocation3 + $0x28] sm:$0xf] %vm682_vm14, %v1004_v11 }
  0xde   : >> { %3285 = vmatmul.mubr.msk.bf16.vlgmr.msra.gmra.mxu1 %vm1495_vm3, %v3499_v10 }
  0xdf   : >> { %v1162_v33 = vpop.permute.xlu0 %1161  ;;  %3288 = vmatprep.mubr.msk.bf16.mxu1 %vm1495_vm3, %v3500_v51 }
  0xe0   : >> { %1183 = vst.msk [vmem:[#allocation3 + $0x1c] sm:$0xf] %vm731_vm15, %v1162_v33  ;;  %v714_v34 = vpop.permute.xlu1 %713 }
  0xe1   : >> { %735 = vst.msk [vmem:[#allocation3 + $0x24] sm:$0xf] %vm731_vm15, %v714_v34 }
  0xe3   : >> { %v567_v13 = vpop.permute.xlu0 %566 }
  0xe4   : >> { %587 = vst.msk [vmem:[#allocation3 + $0x30] sm:$0xf] %vm582_vm13, %v567_v13  ;;  %v1164_v45 = vpop.permute.xlu1 %1163 }
  0xe5   : >> { %1184 = vst.msk [vmem:[#allocation3 + $0x28] sm:$0xf] %vm731_vm15, %v1164_v45 }
  0xe6   : >> { %3289 = vmatmul.mubr.msk.bf16.gmra.mxu1 %vm1495_vm3, %v3501_v8 }
  0xe7   : >> { %v957_v59 = vpop.permute.xlu0 %956  ;;  %v1273_v46 = vld [vmem:[#allocation3 + $0x18] sm:$0xff] }
  0xe8   : >> { %976 = vst.msk [vmem:[#allocation3 + $0x34] sm:$0xf] %vm582_vm13, %v957_v59  ;;  %v569_v14 = vpop.permute.xlu1 %568 }
  0xe9   : >> { %588 = vst.msk [vmem:[#allocation3 + $0x3c] sm:$0xf] %vm582_vm13, %v569_v14 }
  0xeb   : >> { %v667_v15 = vpop.permute.xlu0 %666 }
  0xec   : >> { %687 = vst.msk [vmem:[#allocation3 + $0x30] sm:$0xf] %vm682_vm14, %v667_v15  ;;  %v959_v12 = vpop.permute.xlu1 %958  ;;  %v1275_v17 = vld [vmem:[#allocation3 + $0x24] sm:$0xff] }
  0xed   : >> { %v3502_v39 = vld [vmem:[#allocation3 + $0x1c] ss:$12 sps:$4 sm:$0xff]   ;;  %977 = vst.msk [vmem:[#allocation3 + $0x40] sm:$0xf] %vm582_vm13, %v959_v12  ;;  %v2927_v5 = vcombine.low %v1273_v46, %v1275_v17 }
  0xee   : >> { %1548 = vmatprep.mubr.bf16.mxu0 %v3502_v39 }
  0xef   : >> { %v1006_v41 = vpop.permute.xlu0 %1005  ;;  %1549 = vmatmul.mubr.bf16.gmra.mxu0 %v2927_v5 }
  0xf0   : >> { %1025 = vst.msk [vmem:[#allocation3 + $0x34] sm:$0xf] %vm682_vm14, %v1006_v41  ;;  %v669_v19 = vpop.permute.xlu1 %668 }
  0xf1   : >> { %688 = vst.msk [vmem:[#allocation3 + $0x3c] sm:$0xf] %vm682_vm14, %v669_v19 }
  0xf3   : >> { %v716_v53 = vpop.permute.xlu0 %715 }
  0xf4   : >> { %736 = vst.msk [vmem:[#allocation3 + $0x30] sm:$0xf] %vm731_vm15, %v716_v53  ;;  %v1008_v61 = vpop.permute.xlu1 %1007 }
  0xf5   : >> { %1026 = vst.msk [vmem:[#allocation3 + $0x40] sm:$0xf] %vm682_vm14, %v1008_v61 }
  0xf7   : >> { %v1166_v20 = vpop.permute.xlu0 %1165 }
  0xf8   : >> { %1185 = vst.msk [vmem:[#allocation3 + $0x34] sm:$0xf] %vm731_vm15, %v1166_v20  ;;  %v718_v21 = vpop.permute.xlu1 %717 }
  0xf9   : >> { %737 = vst.msk [vmem:[#allocation3 + $0x3c] sm:$0xf] %vm731_vm15, %v718_v21 }
  0xfc   : >> { %v1168_v22 = vpop.permute.xlu1 %1167 }
  0xfd   : >> { %1186 = vst.msk [vmem:[#allocation3 + $0x40] sm:$0xf] %vm731_vm15, %v1168_v22 }
 0x100   : >> { %v3506_v23 = vld [vmem:[#allocation3 + $0x30] ss:$12 sps:$4 sm:$0xff]  }
 0x104   : >> { %v3504_v54 = vld [vmem:[#allocation3 + $0x34] ss:$12 sps:$4 sm:$0xff]  }
 0x105   : >> { %1556 = vmatprep.mubr.bf16.mxu0 %v3504_v54 }
 0x106   : >> { %1557 = vmatmul.mubr.bf16.gmra.mxu0 %v3506_v23 }
 0x182   : >> { %v3190_v25 = vpop.f32.mrf.mxu0 }
 0x184   : >> { %v3191_v60 = vpop.f32.mrf.mxu0 }
 0x185   : >> { %v3192_v28 = vadd.f32 %v3191_v60, %v3190_v25 }
 0x186   : >> { %v3193_v44 = vpop.f32.mrf.mxu0 }
 0x187   : >> { %v1543_v18 = vadd.f32 %v3192_v28, %v3640_v0 }
 0x188   : >> { %v3194_v30 = vpop.f32.mrf.mxu0 }
 0x189   : >> { %v3195_v56 = vadd.f32 %v3194_v30, %v3193_v44 }
 0x18b   : >> { %v1546_v36 = vadd.f32 %v3195_v56, %v3640_v0 }
 0x196   : >> { %v3208_v55 = vpop.f32.mrf.mxu1 }
 0x198   : >> { %v3209_v26 = vpop.f32.mrf.mxu1 }
 0x199   : >> { %v3210_v9 = vadd.f32 %v3209_v26, %v3208_v55 }
 0x19a   : >> { %v3211_v27 = vpop.f32.mrf.mxu1 }
 0x19b   : >> { %v1567_v43 = vadd.f32 %v3210_v9, %v3640_v0 }
 0x19c   : >> { %v3212_v31 = vpop.f32.mrf.mxu1 }
 0x19d   : >> { %v3213_v57 = vadd.f32 %v3212_v31, %v3211_v27 }
 0x19e   : >> { %v3286_v32 = vpop.f32.mrf.mxu1 }
 0x19f   : >> { %v1570_v40 = vadd.f32 %v3213_v57, %v3640_v0 }
 0x1a0   : >> { %v1607_v62 = vpop.f32.mrf.mxu1 }
 0x1a1   : >> { %v1608_v35 = vadd.f32 %v1607_v62, %v1543_v18 }
 0x1a2   : >> { %v3287_v7 = vpop.f32.mrf.mxu1 }
 0x1a3   : >> { %v1638_v29 = vmax.f32 %v1608_v35, 0.0 }
 0x1a4   : >> { %v1610_v42 = vpop.f32.mrf.mxu1 }
 0x1a5   : >> { %v3146_v38 = vpack.c.bf16 %v1638_v29, %v1638_v29  ;;  %v1611_v58 = vadd.f32 %v1610_v42, %v1546_v36 }
 0x1a6   : >> { %v3290_v63 = vpop.f32.mrf.mxu1 }
 0x1a7   : >> { %1695 = vst.msk [vmem:[%s4208_s17] sm:$0xf] %vm248_vm2, %v3146_v38  ;;  %v1639_v37 = vmax.f32 %v1611_v58, 0.0  ;;  %v1632_v24 = vadd.f32 %v3290_v63, %v1567_v43 }
 0x1a8   : >> { %v1623_v16 = vpop.f32.mrf.mxu1 }
 0x1a9   : >> { %v3147_v49 = vpack.c.bf16 %v1639_v37, %v1639_v37  ;;  %v1644_v50 = vmax.f32 %v1632_v24, 0.0 }
 0x1aa   : >> { %v3291_v47 = vpop.f32.mrf.mxu1 }
 0x1ab   : >> { %1696 = vst.msk [vmem:[%s4208_s17 + $0x4] sm:$0xf] %vm248_vm2, %v3147_v49  ;;  %v3152_v52 = vpack.c.bf16 %v1644_v50, %v1644_v50  ;;  %v1635_v48 = vadd.f32 %v3291_v47, %v1570_v40 }
 0x1ac   : >> { %v1626_v54 = vpop.f32.mrf.mxu1 }
 0x1ad   : >> { %1701 = vst.msk [vmem:[%s4208_s17 + $0x18] sm:$0xf] %vm248_vm2, %v3152_v52  ;;  %v1645_v3 = vmax.f32 %v1635_v48, 0.0 }
 0x1af   : >> { %v3196_v4 = vpop.f32.mrf.mxu0  ;;  %v3153_v6 = vpack.c.bf16 %v1645_v3, %v1645_v3 }
 0x1b1   : >> { %v3197_v10 = vpop.f32.mrf.mxu0  ;;  %1702 = vst.msk [vmem:[%s4208_s17 + $0x1c] sm:$0xf] %vm248_vm2, %v3153_v6 }
 0x1b2   : >> { %v3198_v11 = vadd.f32 %v3197_v10, %v3196_v4 }
 0x1b3   : >> { %v3199_v51 = vpop.f32.mrf.mxu0 }
 0x1b4   : >> { %v1551_v33 = vadd.f32 %v3198_v11, %v3640_v0 }
 0x1b5   : >> { %v3200_v34 = vpop.f32.mrf.mxu0 }
 0x1b6   : >> { %v1616_v13 = vadd.f32 %v3286_v32, %v1551_v33  ;;  %v3201_v8 = vadd.f32 %v3200_v34, %v3199_v51 }
 0x1b8   : >> { %v1640_v45 = vmax.f32 %v1616_v13, 0.0  ;;  %v1554_v59 = vadd.f32 %v3201_v8, %v3640_v0 }
 0x1ba   : >> { %v3148_v14 = vpack.c.bf16 %v1640_v45, %v1640_v45  ;;  %v1619_v15 = vadd.f32 %v3287_v7, %v1554_v59 }
 0x1bc   : >> { %1697 = vst.msk [vmem:[%s4208_s17 + $0x8] sm:$0xf] %vm248_vm2, %v3148_v14  ;;  %v1641_v12 = vmax.f32 %v1619_v15, 0.0 }
 0x1be   : >> { %v3149_v46 = vpack.c.bf16 %v1641_v12, %v1641_v12 }
 0x1c0   : >> { %1698 = vst.msk [vmem:[%s4208_s17 + $0xc] sm:$0xf] %vm248_vm2, %v3149_v46 }
 0x1c6   : >> { %v3202_v17 = vpop.f32.mrf.mxu0 }
 0x1c8   : >> { %v3203_v39 = vpop.f32.mrf.mxu0 }
 0x1c9   : >> { %v3204_v5 = vadd.f32 %v3203_v39, %v3202_v17 }
 0x1ca   : >> { %v3205_v41 = vpop.f32.mrf.mxu0 }
 0x1cb   : >> { %v1559_v19 = vadd.f32 %v3204_v5, %v3640_v0 }
 0x1cc   : >> { %v3206_v53 = vpop.f32.mrf.mxu0 }
 0x1cd   : >> { %v1624_v61 = vadd.f32 %v1623_v16, %v1559_v19  ;;  %v3207_v20 = vadd.f32 %v3206_v53, %v3205_v41 }
 0x1cf   : >> { %v1642_v21 = vmax.f32 %v1624_v61, 0.0  ;;  %v1562_v22 = vadd.f32 %v3207_v20, %v3640_v0 }
 0x1d1   : >> { %v3150_v23 = vpack.c.bf16 %v1642_v21, %v1642_v21  ;;  %v1627_v25 = vadd.f32 %v1626_v54, %v1562_v22 }
 0x1d3   : >> { %1699 = vst.msk [vmem:[%s4208_s17 + $0x10] sm:$0xf] %vm248_vm2, %v3150_v23  ;;  %v1643_v60 = vmax.f32 %v1627_v25, 0.0  ;;  %1706 = sbr.rel (%p2971_p6) target bundleno = 730 (0x2da), region = 51 }
 0x1d5   : >> { %v3151_v55 = vpack.c.bf16 %v1643_v60, %v1643_v60 }
 0x1d7   : >> { %1700 = vst.msk [vmem:[%s4208_s17 + $0x14] sm:$0xf] %vm248_vm2, %v3151_v55 }
 0x1d8   : >> { %v3509_v44 = vld [vmem:[%s4443_s3 + $0x58] sm:$0xff]   ;;  %v3510_v26 = vld [vmem:[%s4443_s3 + $0x28] sm:$0xff]   ;;  %v3511_v27 = vld [vmem:[%s4443_s3 + $0x50] sm:$0xff]   ;;  %s4463_s26 = smov (!%p1744_p7, %s1749_s26), %s3540_s24  ;;  %vm1837_vm4 = vcmask 785408   ;;  %s4467_s11 = smov (!%p1708_p9, %s1713_s11), %s3542_s8  ;;  %v2211_v13 = vlaneseq }
 0x1d9   : >> { %3292 = vmatprep.subr.bf16.mxu0 %v3509_v44  ;;  %3312 = vmatprep.subr.bf16.mxu1 %v3510_v26  ;;  %v3512_v28 = vld [vmem:[%s4443_s3 + $0x20] sm:$0xff]   ;;  %v3513_v30 = vld [vmem:[%s4443_s3 + $0x48] sm:$0xff]   ;;  %v3514_v31 = vld [vmem:[%s4443_s3 + $0x18] sm:$0xff]   ;;  %p2980_p8 = scmp.lt.s32.totalorder %s4463_s26, 0  ;;  %s1755_s9 = sadd.s32 3, %s4463_s26 }
 0x1da   : >> { %3293 = vmatpush3.bf16.msra.mxu0 %v3509_v44  ;;  %3313 = vmatpush3.bf16.msra.mxu1 %v3510_v26  ;;  %v3515_v32 = vld [vmem:[%s4443_s3 + $0x40] sm:$0xff]   ;;  %v3516_v18 = vld [vmem:[%s4443_s3 + $0x10] sm:$0xff]   ;;  %v3517_v56 = vld [vmem:[%s4443_s3 + $0x38] sm:$0xff]   ;;  %p2975_p10 = scmp.lt.s32.totalorder %s4467_s11, 0  ;;  %s1719_s20 = sadd.s32 3, %s4467_s11  ;;  %v2212_v59 = vshrl.u32 %v2211_v13, 7 }
 0x1db   : >> { %3294 = vmatprep.subr.bf16.mxu0 %v3511_v27  ;;  %3314 = vmatprep.subr.bf16.mxu1 %v3512_v28  ;;  %v3518_v62 = vld [vmem:[%s4443_s3 + $0x8] sm:$0xff]   ;;  %v3519_v9 = vld [vmem:[%s4443_s3 + $0x30] sm:$0xff]   ;;  %v3520_v35 = vld [vmem:[%s4443_s3] sm:$0xff]   ;;  %s4465_s9 = smov (!%p2980_p8, %s1755_s9), %s4463_s26 }
 0x1dc   : >> { %v3525_v7 = vld [vmem:[%s4443_s3 + $0x88] sm:$0xff]   ;;  %s3156_s14 = sshll.u32 %s4465_s9, 5  ;;  %v3526_v36 = vld [vmem:[%s4443_s3 + $0x80] sm:$0xff]   ;;  %s4469_s20 = smov (!%p2975_p10, %s1719_s20), %s4467_s11  ;;  %v3527_v57 = vld [vmem:[%s4443_s3 + $0x78] sm:$0xff]   ;;  %v2213_v12 = vsub.s32 0, %v2212_v59 }
 0x1dd   : >> { %s1759_s10 = scalar_lea.vmem [#allocation4], %s3156_s14  ;;  %s3155_s23 = sshll.u32 %s4469_s20, 5  ;;  %v3532_v63 = vld [vmem:[%s4443_s3 + $0x70] sm:$0xff]   ;;  %v3535_v37 = vld [vmem:[%s4208_s17] sm:$0xff]   ;;  %v3533_v40 = vld [vmem:[%s4443_s3 + $0x68] sm:$0xff]  }
 0x1de   : >> { %3295 = vmatpush3.bf16.msra.mxu0 %v3511_v27  ;;  %3315 = vmatpush3.bf16.msra.mxu1 %v3512_v28  ;;  %v3521_v29 = vld [vmem:[%s1759_s10] sm:$0xff]   ;;  %v3523_v42 = vld [vmem:[%s1759_s10 + $0x8] sm:$0xff]   ;;  %v3528_v43 = vld [vmem:[%s1759_s10 + $0x10] sm:$0xff]   ;;  %s1723_s24 = scalar_lea.vmem [#allocation4], %s3155_s23  ;;  %v2214_v5 = vrot.slane %v3685_v2, %v2213_v12 }
 0x1df   : >> { %3296 = vmatprep.subr.bf16.mxu0 %v3513_v30  ;;  %3316 = vmatprep.subr.bf16.mxu1 %v3514_v31  ;;  %v3530_v38 = vld [vmem:[%s1759_s10 + $0x18] sm:$0xff]   ;;  %v3522_v58 = vld [vmem:[%s1723_s24] sm:$0xff]   ;;  %v3524_v24 = vld [vmem:[%s1723_s24 + $0x8] sm:$0xff]  }
 0x1e0   : >> { %3304 = vmatprep.mubr.msk.bf16.mxu0 %vm1837_vm4, %v3521_v29  ;;  %3324 = vmatprep.mubr.msk.bf16.mxu1 %vm1837_vm4, %v3522_v58  ;;  %v3529_v16 = vld [vmem:[%s1723_s24 + $0x10] sm:$0xff]   ;;  %v3531_v50 = vld [vmem:[%s1723_s24 + $0x18] sm:$0xff]   ;;  %v3534_v47 = vld [vmem:[%s4443_s3 + $0x60] sm:$0xff]  }
 0x1e1   : >> { %v3536_v49 = vld [vmem:[%s4208_s17 + $0x10] sm:$0xff]   ;;  %v3537_v52 = vld [vmem:[%s4208_s17 + $0x8] sm:$0xff]   ;;  %v3538_v48 = vld [vmem:[%s4208_s17 + $0x18] sm:$0xff]   ;;  %s3165_s17 = sshll.u32 %s4250_s15, 5 }
 0x1e2   : >> { %3297 = vmatpush3.bf16.msra.mxu0 %v3513_v30  ;;  %3317 = vmatpush3.bf16.msra.mxu1 %v3514_v31  ;;  %s4316_s8 = scalar_lea.vmem %s3715_s6, %s3165_s17 }
 0x1e3   : >> { %3298 = vmatprep.subr.bf16.mxu0 %v3515_v32  ;;  %3318 = vmatprep.subr.bf16.mxu1 %v3516_v18 }
 0x1e6   : >> { %3299 = vmatpush3.bf16.msra.mxu0 %v3515_v32  ;;  %3319 = vmatpush3.bf16.msra.mxu1 %v3516_v18 }
 0x1e7   : >> { %3300 = vmatprep.subr.bf16.mxu0 %v3517_v56  ;;  %3320 = vmatprep.subr.bf16.mxu1 %v3518_v62 }
 0x1ea   : >> { %3301 = vmatpush3.bf16.msra.mxu0 %v3517_v56  ;;  %3321 = vmatpush3.bf16.msra.mxu1 %v3518_v62 }
 0x1eb   : >> { %3302 = vmatprep.subr.bf16.mxu0 %v3519_v9  ;;  %3322 = vmatprep.subr.bf16.mxu1 %v3520_v35 }
 0x1ee   : >> { %3303 = vmatpush3.bf16.msra.mxu0 %v3519_v9  ;;  %3323 = vmatpush3.bf16.msra.mxu1 %v3520_v35 }
 0x1ef   : >> { %3332 = vmatprep.subr.bf16.mxu0 %v3525_v7  ;;  %3428 = vmatprep.subr.bf16.mxu1 %v3525_v7 }
 0x1f1   : >> { %3305 = vmatmul.mubr.msk.bf16.vlgmr.msra.gmra.mxu0 %vm1837_vm4, %v3523_v42  ;;  %3325 = vmatmul.mubr.msk.bf16.vlgmr.msra.gmra.mxu1 %vm1837_vm4, %v3524_v24 }
 0x1f2   : >> { %3333 = vmatpush3.bf16.msra.mxu0 %v3525_v7  ;;  %3308 = vmatprep.mubr.msk.bf16.mxu0 %vm1837_vm4, %v3528_v43 }
 0x1f3   : >> { %3334 = vmatprep.subr.bf16.mxu0 %v3526_v36  ;;  %3434 = vmatpush3.bf16.msra.mxu1 %v3525_v7 }
 0x1f4   : >> { %3328 = vmatprep.mubr.msk.bf16.mxu1 %vm1837_vm4, %v3529_v16  ;;  %3429 = vmatprep.subr.bf16.mxu1 %v3526_v36 }
 0x1f6   : >> { %3335 = vmatpush3.bf16.msra.mxu0 %v3526_v36 }
 0x1f7   : >> { %3336 = vmatprep.subr.bf16.mxu0 %v3527_v57  ;;  %3435 = vmatpush3.bf16.msra.mxu1 %v3526_v36 }
 0x1f8   : >> { %3430 = vmatprep.subr.bf16.mxu1 %v3527_v57 }
 0x1f9   : >> { %3309 = vmatmul.mubr.msk.bf16.gmra.mxu0 %vm1837_vm4, %v3530_v38  ;;  %3329 = vmatmul.mubr.msk.bf16.gmra.mxu1 %vm1837_vm4, %v3531_v50 }
 0x1fa   : >> { %3337 = vmatpush3.bf16.msra.mxu0 %v3527_v57  ;;  %3344 = vmatprep.mubr.msk.bf16.mxu0 %vm1837_vm4, %v3535_v37 }
 0x1fb   : >> { %3338 = vmatprep.subr.bf16.mxu0 %v3532_v63  ;;  %3436 = vmatpush3.bf16.msra.mxu1 %v3527_v57 }
 0x1fc   : >> { %3348 = vmatprep.mubr.msk.bf16.mxu1 %vm1837_vm4, %v3536_v49  ;;  %3431 = vmatprep.subr.bf16.mxu1 %v3532_v63 }
 0x1fe   : >> { %3339 = vmatpush3.bf16.msra.mxu0 %v3532_v63 }
 0x1ff   : >> { %3340 = vmatprep.subr.bf16.mxu0 %v3533_v40  ;;  %3437 = vmatpush3.bf16.msra.mxu1 %v3532_v63 }
 0x200   : >> { %3432 = vmatprep.subr.bf16.mxu1 %v3533_v40 }
 0x202   : >> { %3341 = vmatpush3.bf16.msra.mxu0 %v3533_v40 }
 0x203   : >> { %3342 = vmatprep.subr.bf16.mxu0 %v3534_v47  ;;  %3438 = vmatpush3.bf16.msra.mxu1 %v3533_v40 }
 0x204   : >> { %3433 = vmatprep.subr.bf16.mxu1 %v3534_v47 }
 0x206   : >> { %3343 = vmatpush3.bf16.msra.mxu0 %v3534_v47 }
 0x207   : >> { %3439 = vmatpush3.bf16.msra.mxu1 %v3534_v47 }
 0x209   : >> { %3345 = vmatmul.mubr.msk.bf16.vlgmr.msra.gmra.mxu0 %vm1837_vm4, %v3537_v52 }
 0x20a   : >> { %3349 = vmatmul.mubr.msk.bf16.vlgmr.msra.gmra.mxu1 %vm1837_vm4, %v3538_v48 }
 0x2b1   : >> { %v3306_v3 = vpop.f32.mrf.mxu0  ;;  %v3326_v11 = vpop.f32.mrf.mxu1 }
 0x2b2   : >> { %v2026_v39 = vadd.f32 %v3326_v11, %v3306_v3 }
 0x2b3   : >> { %v1884_v4 = vpop.f32.mrf.mxu0  ;;  %v2017_v51 = vpop.f32.mrf.mxu1 }
 0x2b4   : >> { %v2018_v19 = vadd.f32 %v2017_v51, %v1884_v4 }
 0x2b5   : >> { %v3307_v6 = vpop.f32.mrf.mxu0  ;;  %v3327_v34 = vpop.f32.mrf.mxu1 }
 0x2b6   : >> { %v2029_v21 = vadd.f32 %v3327_v34, %v3307_v6 }
 0x2b7   : >> { %v1887_v10 = vpop.f32.mrf.mxu0  ;;  %v2020_v8 = vpop.f32.mrf.mxu1 }
 0x2b8   : >> { %v2021_v25 = vadd.f32 %v2020_v8, %v1887_v10 }
 0x2b9   : >> { %v3310_v33 = vpop.f32.mrf.mxu0  ;;  %v3330_v14 = vpop.f32.mrf.mxu1 }
 0x2ba   : >> { %v2042_v27 = vadd.f32 %v3330_v14, %v3310_v33 }
 0x2bb   : >> { %v1900_v45 = vpop.f32.mrf.mxu0  ;;  %v2033_v46 = vpop.f32.mrf.mxu1 }
 0x2bc   : >> { %v2034_v62 = vadd.f32 %v2033_v46, %v1900_v45 }
 0x2bd   : >> { %v3311_v15 = vpop.f32.mrf.mxu0  ;;  %v3331_v53 = vpop.f32.mrf.mxu1 }
 0x2be   : >> { %v2045_v42 = vadd.f32 %v3331_v53, %v3311_v15 }
 0x2bf   : >> { %v1903_v17 = vpop.f32.mrf.mxu0  ;;  %v2036_v60 = vpop.f32.mrf.mxu1 }
 0x2c0   : >> { %v2037_v37 = vadd.f32 %v2036_v60, %v1903_v17 }
 0x2c9   : >> { %v3346_v41 = vpop.f32.mrf.mxu0 }
 0x2ca   : >> { %v2204_v61 = vadd.f32 %v3346_v41, %v2026_v39  ;;  %v3350_v31 = vpop.f32.mrf.mxu1 }
 0x2cb   : >> { %v2171_v20 = vpop.f32.mrf.mxu0  ;;  %v2208_v9 = vadd.f32 %v3350_v31, %v2042_v27 }
 0x2cc   : >> { %v2218_v22 = vadd.f32 %v2214_v5, %v2204_v61  ;;  %v2202_v54 = vadd.f32 %v2171_v20, %v2018_v19  ;;  %v2187_v7 = vpop.f32.mrf.mxu1 }
 0x2cd   : >> { %v3347_v23 = vpop.f32.mrf.mxu0  ;;  %v2222_v43 = vadd.f32 %v2214_v5, %v2208_v9  ;;  %v2206_v57 = vadd.f32 %v2187_v7, %v2034_v62 }
 0x2ce   : >> { %v2226_v55 = vmax.f32 %v2218_v22, 0.0  ;;  %v2216_v44 = vadd.f32 %v2214_v5, %v2202_v54  ;;  %v2205_v26 = vadd.f32 %v3347_v23, %v2029_v21  ;;  %v3351_v58 = vpop.f32.mrf.mxu1 }
 0x2cf   : >> { %v2174_v28 = vpop.f32.mrf.mxu0  ;;  %v2230_v24 = vmax.f32 %v2222_v43, 0.0  ;;  %v2220_v16 = vadd.f32 %v2214_v5, %v2206_v57  ;;  %v2209_v40 = vadd.f32 %v3351_v58, %v2045_v42 }
 0x2d0   : >> { %v3159_v30 = vpack.c.bf16 %v2226_v55, %v2226_v55  ;;  %v2224_v32 = vmax.f32 %v2216_v44, 0.0  ;;  %v2219_v18 = vadd.f32 %v2214_v5, %v2205_v26  ;;  %v2203_v56 = vadd.f32 %v2174_v28, %v2021_v25  ;;  %v2190_v50 = vpop.f32.mrf.mxu1 }
 0x2d1   : >> { %v3163_v47 = vpack.c.bf16 %v2230_v24, %v2230_v24  ;;  %v2228_v52 = vmax.f32 %v2220_v16, 0.0  ;;  %v2223_v48 = vadd.f32 %v2214_v5, %v2209_v40  ;;  %v2207_v3 = vadd.f32 %v2190_v50, %v2037_v37 }
 0x2d2   : >> { %2269 = vst.msk [vmem:[%s4316_s8 + $0x8] sm:$0xf] %vm248_vm2, %v3159_v30  ;;  %v3157_v35 = vpack.c.bf16 %v2224_v32, %v2224_v32  ;;  %v2227_v36 = vmax.f32 %v2219_v18, 0.0  ;;  %v2217_v29 = vadd.f32 %v2214_v5, %v2203_v56 }
 0x2d3   : >> { %2273 = vst.msk [vmem:[%s4316_s8 + $0x18] sm:$0xf] %vm248_vm2, %v3163_v47  ;;  %v3161_v4 = vpack.c.bf16 %v2228_v52, %v2228_v52  ;;  %v2231_v6 = vmax.f32 %v2223_v48, 0.0  ;;  %v2221_v10 = vadd.f32 %v2214_v5, %v2207_v3 }
 0x2d4   : >> { %2267 = vst.msk [vmem:[%s4316_s8] sm:$0xf] %vm248_vm2, %v3157_v35  ;;  %v3160_v38 = vpack.c.bf16 %v2227_v36, %v2227_v36  ;;  %v2225_v63 = vmax.f32 %v2217_v29, 0.0 }
 0x2d5   : >> { %2271 = vst.msk [vmem:[%s4316_s8 + $0x10] sm:$0xf] %vm248_vm2, %v3161_v4  ;;  %v3164_v11 = vpack.c.bf16 %v2231_v6, %v2231_v6  ;;  %v2229_v51 = vmax.f32 %v2221_v10, 0.0 }
 0x2d6   : >> { %2270 = vst.msk [vmem:[%s4316_s8 + $0xc] sm:$0xf] %vm248_vm2, %v3160_v38  ;;  %v3158_v49 = vpack.c.bf16 %v2225_v63, %v2225_v63 }
 0x2d7   : >> { %2274 = vst.msk [vmem:[%s4316_s8 + $0x1c] sm:$0xf] %vm248_vm2, %v3164_v11  ;;  %v3162_v33 = vpack.c.bf16 %v2229_v51, %v2229_v51 }
 0x2d8   : >> { %2268 = vst.msk [vmem:[%s4316_s8 + $0x4] sm:$0xf] %vm248_vm2, %v3158_v49 }
 0x2d9   : >> { %2272 = vst.msk [vmem:[%s4316_s8 + $0x14] sm:$0xf] %vm248_vm2, %v3162_v33 }
 0x2da PF: >> { %p261_p11 = scmp.ge.s32.totalorder %s4200_s25, 4   ;;  %s4455_s7 = smov %s4200_s25 }
 0x2db   : > { %v3543_v34 = vld [vmem:[%s4443_s3 + $0x58] sm:$0xff] (%p261_p11)   ;;  %2276 = vst.msk [vmem:[#allocation4 + $0x40] sm:$0xf] (%p261_p11), %vm248_vm2, %v3589_v1  ;;  %2277 = vst.msk [vmem:[#allocation4 + $0x44] sm:$0xf] (%p261_p11), %vm248_vm2, %v3589_v1  ;;  %v3544_v0 = vld [vmem:[%s4443_s3 + $0x28] sm:$0xff] (%p261_p11)   ;;  %v2756_v29 = vlaneseq (%p261_p11) }
 0x2dc   : > { %263 = sbr.rel (!%p261_p11) target bundleno = 26 (0x1a), region = 95  ;;  %2280 = vst.msk [vmem:[#allocation4 + $0x50] sm:$0xf] (%p261_p11), %vm248_vm2, %v3589_v1  ;;  %2281 = vst.msk [vmem:[#allocation4 + $0x54] sm:$0xf] (%p261_p11), %vm248_vm2, %v3589_v1  ;;  %3352 = vmatprep.subr.bf16.mxu0 (%p261_p11), %v3543_v34  ;;  %v3545_v13 = vld [vmem:[%s4443_s3 + $0x50] sm:$0xff] (%p261_p11)   ;;  %3372 = vmatprep.subr.bf16.mxu1 (%p261_p11), %v3544_v0 }
 0x2dd   : > { %2278 = vst.msk [vmem:[#allocation4 + $0x48] sm:$0xf] (%p261_p11), %vm248_vm2, %v3589_v1  ;;  %2279 = vst.msk [vmem:[#allocation4 + $0x4c] sm:$0xf] (%p261_p11), %vm248_vm2, %v3589_v1  ;;  %3353 = vmatpush3.bf16.msra.mxu0 (%p261_p11), %v3543_v34  ;;  %v3546_v8 = vld [vmem:[%s4443_s3 + $0x20] sm:$0xff] (%p261_p11)   ;;  %3373 = vmatpush3.bf16.msra.mxu1 (%p261_p11), %v3544_v0  ;;  %v3548_v45 = vld [vmem:[%s4443_s3 + $0x18] sm:$0xff] (%p261_p11)  }
 0x2de   : > { %2282 = vst.msk [vmem:[#allocation4 + $0x58] sm:$0xf] (%p261_p11), %vm248_vm2, %v3589_v1  ;;  %2283 = vst.msk [vmem:[#allocation4 + $0x5c] sm:$0xf] (%p261_p11), %vm248_vm2, %v3589_v1  ;;  %3354 = vmatprep.subr.bf16.mxu0 (%p261_p11), %v3545_v13  ;;  %v3547_v1 = vld [vmem:[%s4443_s3 + $0x48] sm:$0xff] (%p261_p11)   ;;  %3374 = vmatprep.subr.bf16.mxu1 (%p261_p11), %v3546_v8  ;;  %v3549_v59 = vld [vmem:[%s4443_s3 + $0x40] sm:$0xff] (%p261_p11)  }
 0x2df   : > { %v3550_v14 = vld [vmem:[%s4443_s3 + $0x10] sm:$0xff] (%p261_p11)   ;;  %v3551_v15 = vld [vmem:[%s4443_s3 + $0x38] sm:$0xff] (%p261_p11)   ;;  %v3552_v12 = vld [vmem:[%s4443_s3 + $0x8] sm:$0xff] (%p261_p11)   ;;  %vm2382_vm0 = vcmask (%p261_p11), 785408   ;;  %v2757_v57 = vshrl.u32 (%p261_p11), %v2756_v29, 7 }
 0x2e0   : > { %v3555_v46 = vld [vmem:[#allocation4 + $0x20] sm:$0xff] (%p261_p11)   ;;  %v3554_v5 = vld [vmem:[%s4443_s3] sm:$0xff] (%p261_p11)   ;;  %v3559_v41 = vld [vmem:[%s4443_s3 + $0x88] sm:$0xff] (%p261_p11)  }
 0x2e1   : > { %3355 = vmatpush3.bf16.msra.mxu0 %v3545_v13  ;;  %3375 = vmatpush3.bf16.msra.mxu1 %v3546_v8  ;;  %v3556_v17 = vld [vmem:[#allocation4] sm:$0xff]   ;;  %v3557_v19 = vld [vmem:[#allocation4 + $0x28] sm:$0xff]   ;;  %v3560_v61 = vld [vmem:[%s4443_s3 + $0x80] sm:$0xff]   ;;  %v2758_v63 = vsub.s32 0, %v2757_v57 }
 0x2e2   : > { %3356 = vmatprep.subr.bf16.mxu0 %v3547_v1  ;;  %3376 = vmatprep.subr.bf16.mxu1 %v3548_v45  ;;  %v3553_v39 = vld [vmem:[%s4443_s3 + $0x30] sm:$0xff]   ;;  %v3558_v53 = vld [vmem:[#allocation4 + $0x8] sm:$0xff]   ;;  %v3562_v20 = vld [vmem:[#allocation4 + $0x30] sm:$0xff]  }
 0x2e3   : > { %3364 = vmatprep.mubr.msk.bf16.mxu0 %vm2382_vm0, %v3555_v46  ;;  %3384 = vmatprep.mubr.msk.bf16.mxu1 %vm2382_vm0, %v3556_v17  ;;  %v3563_v21 = vld [vmem:[#allocation4 + $0x10] sm:$0xff]   ;;  %v3561_v22 = vld [vmem:[%s4443_s3 + $0x78] sm:$0xff]   ;;  %v3564_v54 = vld [vmem:[#allocation4 + $0x38] sm:$0xff]   ;;  %v2759_v40 = vrot.slane %v3685_v2, %v2758_v63 }
 0x2e4   : > { %v3565_v23 = vld [vmem:[#allocation4 + $0x18] sm:$0xff]   ;;  %v3566_v25 = vld [vmem:[%s4443_s3 + $0x70] sm:$0xff]   ;;  %v3570_v55 = vld [vmem:[#allocation4 + $0x50] sm:$0xff]  }
 0x2e5   : > { %3357 = vmatpush3.bf16.msra.mxu0 %v3547_v1  ;;  %3377 = vmatpush3.bf16.msra.mxu1 %v3548_v45  ;;  %v3569_v60 = vld [vmem:[#allocation4 + $0x40] sm:$0xff]   ;;  %v3567_v44 = vld [vmem:[%s4443_s3 + $0x68] sm:$0xff]   ;;  %v3568_v26 = vld [vmem:[%s4443_s3 + $0x60] sm:$0xff]  }
 0x2e6   : > { %3358 = vmatprep.subr.bf16.mxu0 %v3549_v59  ;;  %3378 = vmatprep.subr.bf16.mxu1 %v3550_v14  ;;  %v3571_v27 = vld [vmem:[#allocation4 + $0x48] sm:$0xff]   ;;  %v3572_v28 = vld [vmem:[#allocation4 + $0x58] sm:$0xff]  }
 0x2e9   : > { %3359 = vmatpush3.bf16.msra.mxu0 %v3549_v59  ;;  %3379 = vmatpush3.bf16.msra.mxu1 %v3550_v14 }
 0x2ea   : > { %3360 = vmatprep.subr.bf16.mxu0 %v3551_v15  ;;  %3380 = vmatprep.subr.bf16.mxu1 %v3552_v12 }
 0x2ed   : > { %3361 = vmatpush3.bf16.msra.mxu0 %v3551_v15  ;;  %3381 = vmatpush3.bf16.msra.mxu1 %v3552_v12 }
 0x2ee   : > { %3362 = vmatprep.subr.bf16.mxu0 %v3553_v39  ;;  %3382 = vmatprep.subr.bf16.mxu1 %v3554_v5 }
 0x2f1   : > { %3363 = vmatpush3.bf16.msra.mxu0 %v3553_v39  ;;  %3383 = vmatpush3.bf16.msra.mxu1 %v3554_v5 }
 0x2f2   : > { %3392 = vmatprep.subr.bf16.mxu0 %v3559_v41  ;;  %3440 = vmatprep.subr.bf16.mxu1 %v3559_v41 }
 0x2f4   : > { %3365 = vmatmul.mubr.msk.bf16.vlgmr.msra.gmra.mxu0 %vm2382_vm0, %v3557_v19  ;;  %3385 = vmatmul.mubr.msk.bf16.vlgmr.msra.gmra.mxu1 %vm2382_vm0, %v3558_v53 }
 0x2f5   : > { %3393 = vmatpush3.bf16.msra.mxu0 %v3559_v41  ;;  %3446 = vmatpush3.bf16.msra.mxu1 %v3559_v41 }
 0x2f6   : > { %3394 = vmatprep.subr.bf16.mxu0 %v3560_v61  ;;  %3441 = vmatprep.subr.bf16.mxu1 %v3560_v61 }
 0x2f7   : > { %3368 = vmatprep.mubr.msk.bf16.mxu0 %vm2382_vm0, %v3562_v20  ;;  %3388 = vmatprep.mubr.msk.bf16.mxu1 %vm2382_vm0, %v3563_v21 }
 0x2f9   : > { %3395 = vmatpush3.bf16.msra.mxu0 %v3560_v61  ;;  %3447 = vmatpush3.bf16.msra.mxu1 %v3560_v61 }
 0x2fa   : > { %3396 = vmatprep.subr.bf16.mxu0 %v3561_v22  ;;  %3442 = vmatprep.subr.bf16.mxu1 %v3561_v22 }
 0x2fc   : > { %3369 = vmatmul.mubr.msk.bf16.gmra.mxu0 %vm2382_vm0, %v3564_v54  ;;  %3389 = vmatmul.mubr.msk.bf16.gmra.mxu1 %vm2382_vm0, %v3565_v23 }
 0x2fd   : > { %3397 = vmatpush3.bf16.msra.mxu0 %v3561_v22  ;;  %3448 = vmatpush3.bf16.msra.mxu1 %v3561_v22 }
 0x2fe   : > { %3398 = vmatprep.subr.bf16.mxu0 %v3566_v25  ;;  %3443 = vmatprep.subr.bf16.mxu1 %v3566_v25 }
 0x2ff   : > { %3404 = vmatprep.mubr.msk.bf16.mxu0 %vm2382_vm0, %v3569_v60  ;;  %3408 = vmatprep.mubr.msk.bf16.mxu1 %vm2382_vm0, %v3570_v55 }
 0x301   : > { %3399 = vmatpush3.bf16.msra.mxu0 %v3566_v25  ;;  %3449 = vmatpush3.bf16.msra.mxu1 %v3566_v25 }
 0x302   : > { %3400 = vmatprep.subr.bf16.mxu0 %v3567_v44  ;;  %3444 = vmatprep.subr.bf16.mxu1 %v3567_v44 }
 0x305   : > { %3401 = vmatpush3.bf16.msra.mxu0 %v3567_v44  ;;  %3450 = vmatpush3.bf16.msra.mxu1 %v3567_v44 }
 0x306   : > { %3402 = vmatprep.subr.bf16.mxu0 %v3568_v26  ;;  %3445 = vmatprep.subr.bf16.mxu1 %v3568_v26 }
 0x309   : > { %3403 = vmatpush3.bf16.msra.mxu0 %v3568_v26  ;;  %3451 = vmatpush3.bf16.msra.mxu1 %v3568_v26 }
 0x30c   : > { %3405 = vmatmul.mubr.msk.bf16.vlgmr.msra.gmra.mxu0 %vm2382_vm0, %v3571_v27  ;;  %3409 = vmatmul.mubr.msk.bf16.vlgmr.msra.gmra.mxu1 %vm2382_vm0, %v3572_v28 }
 0x3b4   : > { %v3366_v30 = vpop.f32.mrf.mxu0  ;;  %v3386_v31 = vpop.f32.mrf.mxu1 }
 0x3b5   : > { %v2571_v24 = vadd.f32 %v3386_v31, %v3366_v30 }
 0x3b6   : > { %v2429_v32 = vpop.f32.mrf.mxu0  ;;  %v2562_v18 = vpop.f32.mrf.mxu1 }
 0x3b7   : > { %v2563_v47 = vadd.f32 %v2562_v18, %v2429_v32 }
 0x3b8   : > { %v3367_v56 = vpop.f32.mrf.mxu0  ;;  %v3387_v62 = vpop.f32.mrf.mxu1 }
 0x3b9   : > { %v2574_v10 = vadd.f32 %v3387_v62, %v3367_v56 }
 0x3ba   : > { %v2432_v9 = vpop.f32.mrf.mxu0  ;;  %v2565_v35 = vpop.f32.mrf.mxu1 }
 0x3bb   : > { %v2566_v1 = vadd.f32 %v2565_v35, %v2432_v9 }
 0x3bc   : > { %v3370_v7 = vpop.f32.mrf.mxu0  ;;  %v3390_v36 = vpop.f32.mrf.mxu1 }
 0x3bd   : > { %v2587_v49 = vadd.f32 %v3390_v36, %v3370_v7 }
 0x3be   : > { %v2445_v42 = vpop.f32.mrf.mxu0  ;;  %v2578_v43 = vpop.f32.mrf.mxu1 }
 0x3bf   : > { %v2579_v3 = vadd.f32 %v2578_v43, %v2445_v42 }
 0x3c0   : > { %v3371_v38 = vpop.f32.mrf.mxu0  ;;  %v3391_v58 = vpop.f32.mrf.mxu1 }
 0x3c1   : > { %v2590_v34 = vadd.f32 %v3391_v58, %v3371_v38 }
 0x3c2   : > { %v2448_v37 = vpop.f32.mrf.mxu0  ;;  %v2581_v16 = vpop.f32.mrf.mxu1 }
 0x3c3   : > { %v2582_v15 = vadd.f32 %v2581_v16, %v2448_v37 }
 0x3cc   : > { %v3406_v50 = vpop.f32.mrf.mxu0  ;;  %v3410_v48 = vpop.f32.mrf.mxu1 }
 0x3cd   : > { %v2749_v52 = vadd.f32 %v3406_v50, %v2571_v24  ;;  %v2753_v4 = vadd.f32 %v3410_v48, %v2587_v49 }
 0x3ce   : > { %v2716_v6 = vpop.f32.mrf.mxu0  ;;  %v2732_v33 = vpop.f32.mrf.mxu1 }
 0x3cf   : > { %v2763_v11 = vadd.f32 %v2759_v40, %v2749_v52  ;;  %v2747_v51 = vadd.f32 %v2716_v6, %v2563_v47  ;;  %v2767_v0 = vadd.f32 %v2759_v40, %v2753_v4  ;;  %v2751_v13 = vadd.f32 %v2732_v33, %v2579_v3 }
 0x3d0   : > { %v3407_v8 = vpop.f32.mrf.mxu0  ;;  %v3411_v14 = vpop.f32.mrf.mxu1 }
 0x3d1   : > { %v2771_v45 = vmax.f32 %v2763_v11, 0.0  ;;  %v2761_v59 = vadd.f32 %v2759_v40, %v2747_v51  ;;  %v2750_v2 = vadd.f32 %v3407_v8, %v2574_v10  ;;  %v2775_v12 = vmax.f32 %v2767_v0, 0.0 }
 0x3d2   : > { %v2765_v46 = vadd.f32 %v2759_v40, %v2751_v13  ;;  %v2754_v17 = vadd.f32 %v3411_v14, %v2590_v34  ;;  %v2719_v39 = vpop.f32.mrf.mxu0  ;;  %v2735_v61 = vpop.f32.mrf.mxu1 }
 0x3d3   : > { %v3168_v5 = vpack.c.bf16 %v2771_v45, %v2771_v45  ;;  %v2769_v41 = vmax.f32 %v2761_v59, 0.0  ;;  %v2764_v19 = vadd.f32 %v2759_v40, %v2750_v2  ;;  %v2748_v53 = vadd.f32 %v2719_v39, %v2566_v1 }
 0x3d4   : > { %v3172_v20 = vpack.c.bf16 %v2775_v12, %v2775_v12  ;;  %v2773_v21 = vmax.f32 %v2765_v46, 0.0  ;;  %v2768_v22 = vadd.f32 %v2759_v40, %v2754_v17  ;;  %v2752_v54 = vadd.f32 %v2735_v61, %v2582_v15 }
 0x3d5   : > { %3135 = vst.msk [vmem:[%s3715_s6 + $0x68] sm:$0xf] %vm248_vm2, %v3168_v5  ;;  %v3166_v23 = vpack.c.bf16 %v2769_v41, %v2769_v41  ;;  %v2772_v25 = vmax.f32 %v2764_v19, 0.0  ;;  %v2762_v60 = vadd.f32 %v2759_v40, %v2748_v53 }
 0x3d6   : > { %3139 = vst.msk [vmem:[%s3715_s6 + $0x78] sm:$0xf] %vm248_vm2, %v3172_v20  ;;  %v3170_v55 = vpack.c.bf16 %v2773_v21, %v2773_v21  ;;  %v2776_v44 = vmax.f32 %v2768_v22, 0.0  ;;  %v2766_v26 = vadd.f32 %v2759_v40, %v2752_v54 }
 0x3d7   : > { %3133 = vst.msk [vmem:[%s3715_s6 + $0x60] sm:$0xf] %vm248_vm2, %v3166_v23  ;;  %v3169_v27 = vpack.c.bf16 %v2772_v25, %v2772_v25  ;;  %v2770_v28 = vmax.f32 %v2762_v60, 0.0 }
 0x3d8   : > { %3137 = vst.msk [vmem:[%s3715_s6 + $0x70] sm:$0xf] %vm248_vm2, %v3170_v55  ;;  %v3173_v30 = vpack.c.bf16 %v2776_v44, %v2776_v44  ;;  %v2774_v31 = vmax.f32 %v2766_v26, 0.0 }
 0x3d9   : > { %3136 = vst.msk [vmem:[%s3715_s6 + $0x6c] sm:$0xf] %vm248_vm2, %v3169_v27  ;;  %v3167_v32 = vpack.c.bf16 %v2770_v28, %v2770_v28 }
 0x3da   : > { %3140 = vst.msk [vmem:[%s3715_s6 + $0x7c] sm:$0xf] %vm248_vm2, %v3173_v30  ;;  %v3171_v18 = vpack.c.bf16 %v2774_v31, %v2774_v31 }
 0x3db   : > { %3134 = vst.msk [vmem:[%s3715_s6 + $0x64] sm:$0xf] %vm248_vm2, %v3167_v32 }
 0x3dc   : > { %3138 = vst.msk [vmem:[%s3715_s6 + $0x74] sm:$0xf] %vm248_vm2, %v3171_v18 }
 0x3dd PF: > { %s15_s18 = sadd.s32 1, %s3583_s18  }
 0x3de   : > { %p12_p12 = scmp.ge.s32.totalorder %s15_s18, 4  }
 0x3e0   :  { %14 = sbr.rel (!%p12_p12) target bundleno = 1 (0x1), region = 106 }

// kernel: _lambda_.5
= control target key start
LH: loop header
LB: loop body
LE: loop exit
PB: predicated region body
PF: predicated region fallthrough
CT: control target
= control target key end

     0   :  { %s6230_s18 = smov 0   ;;  %s6232_s19 = smov 0   ;;  %s7935_s0 = inlined_call_operand.vmem [shape: bf16[2,4,8,8,256], index: 0, kind: input, shape index: {}]   ;;  %s7936_s1 = inlined_call_operand.vmem [shape: bf16[1152,192], index: 1, kind: input, shape index: {}]   ;;  %s7937_s2 = inlined_call_operand.vmem [shape: f32[1,192], index: 2, kind: input, shape index: {}]   ;;  %s7938_s3 = inlined_call_operand.vmem [shape: bf16[3,192,192], index: 3, kind: input, shape index: {}]   ;;  %s7939_s4 = inlined_call_operand.vmem [shape: f32[1,192], index: 4, kind: input, shape index: {}]   ;;  %s7940_s5 = inlined_call_operand.vmem [shape: bf16[2,4,64,192], index: 5, kind: output, shape index: {}]  }
   0x1   :  { %s6234_s20 = smov 0  }
   0x2 LB: > { %s4863_s21 = sadd.s32 4294967295, %s6192_s20   ;;  %s6247_s22 = sadd.s32 1, %s6192_s20   ;;  %s6192_s20 = sphi %s6234_s20, %s7994_s20   ;;  %s6188_s19 = sphi %s6232_s19, %s7993_s19   ;;  %s6184_s18 = sphi %s6230_s18, %s7992_s18  }
   0x3   : > { %s19_s23 = ssub.s32 %s6192_s20, %s6247_s22  ;;  %s22_s24 = sadd.s32 1, %s6188_s19 }
   0x4   : > { %p20_p0 = scmp.eq.s32.totalorder %s19_s23, 0  ;;  %p29_p1 = scmp.ne.s32.totalorder %s6188_s19, %s6184_s18 }
   0x5   : > { %p30_p2 = scmp.eq.s32.totalorder %s6192_s20, 0  ;;  %p4866_p4 = scmp.ge.s32.totalorder %s6192_s20, 2 }
   0x6   : > { %s6256_s25 = scalar_select %p20_p0, %s6188_s19, %s22_s24  }
   0x7   : > { %p31_p3 = por %p30_p2, %p29_p1  ;;  %177 = sbr.rel (%p4866_p4) target bundleno = 37 (0x25), region = 32 }
   0xc   : > { %180 = sbr.rel (!%p31_p3) target bundleno = 37 (0x25), region = 36  ;;  %s182_s26 = sand.u32 (%p31_p3), 1, %s6188_s19  }
   0xd   : > { %s5477_s27 = sshll.u32 (%p31_p3), %s6192_s20, 8  ;;  %s4867_s28 = sshll.u32 (%p31_p3), %s182_s26, 7 }
   0xe   : > { %s6264_s6 = scalar_lea.vmem (%p31_p3), %s7935_s0, %s5477_s27  ;;  %s6268_s7 = scalar_lea.vmem (%p31_p3), [#allocation5], %s4867_s28 }
   0xf   : > { %v4870_v0 = vld [vmem:[%s6264_s6 + $0x4] sm:$0xf] (%p31_p3)  ;;  %v4871_v1 = vld [vmem:[%s6264_s6 + $0xc] sm:$0xf] (%p31_p3)  ;;  %v4872_v2 = vld [vmem:[%s6264_s6 + $0x14] sm:$0xf] (%p31_p3) }
  0x10   : > { %206 = vst [vmem:[%s6268_s7] sm:$0xf] (%p31_p3), %v4870_v0  ;;  %208 = vst [vmem:[%s6268_s7 + $0x4] sm:$0xf] (%p31_p3), %v4871_v1  ;;  %v4873_v3 = vld [vmem:[%s6264_s6 + $0x1c] sm:$0xf] (%p31_p3) }
  0x11   : > { %v4874_v4 = vld [vmem:[%s6264_s6 + $0x24] sm:$0xf]  ;;  %210 = vst [vmem:[%s6268_s7 + $0x8] sm:$0xf] %v4872_v2  ;;  %212 = vst [vmem:[%s6268_s7 + $0xc] sm:$0xf] %v4873_v3 }
  0x12   : > { %214 = vst [vmem:[%s6268_s7 + $0x10] sm:$0xf] %v4874_v4  ;;  %v4875_v5 = vld [vmem:[%s6264_s6 + $0x2c] sm:$0xf]  ;;  %v4876_v6 = vld [vmem:[%s6264_s6 + $0x34] sm:$0xf] }
  0x13   : > { %v4877_v7 = vld [vmem:[%s6264_s6 + $0x3c] sm:$0xf]  ;;  %216 = vst [vmem:[%s6268_s7 + $0x14] sm:$0xf] %v4875_v5  ;;  %218 = vst [vmem:[%s6268_s7 + $0x18] sm:$0xf] %v4876_v6 }
  0x14   : > { %220 = vst [vmem:[%s6268_s7 + $0x1c] sm:$0xf] %v4877_v7  ;;  %v4878_v8 = vld [vmem:[%s6264_s6 + $0x44] sm:$0xf]  ;;  %v4879_v9 = vld [vmem:[%s6264_s6 + $0x4c] sm:$0xf] }
  0x15   : > { %v4880_v10 = vld [vmem:[%s6264_s6 + $0x54] sm:$0xf]  ;;  %222 = vst [vmem:[%s6268_s7 + $0x20] sm:$0xf] %v4878_v8  ;;  %224 = vst [vmem:[%s6268_s7 + $0x24] sm:$0xf] %v4879_v9 }
  0x16   : > { %226 = vst [vmem:[%s6268_s7 + $0x28] sm:$0xf] %v4880_v10  ;;  %v4881_v11 = vld [vmem:[%s6264_s6 + $0x5c] sm:$0xf]  ;;  %v4882_v12 = vld [vmem:[%s6264_s6 + $0x64] sm:$0xf] }
  0x17   : > { %v4883_v13 = vld [vmem:[%s6264_s6 + $0x6c] sm:$0xf]  ;;  %228 = vst [vmem:[%s6268_s7 + $0x2c] sm:$0xf] %v4881_v11  ;;  %230 = vst [vmem:[%s6268_s7 + $0x30] sm:$0xf] %v4882_v12 }
  0x18   : > { %232 = vst [vmem:[%s6268_s7 + $0x34] sm:$0xf] %v4883_v13  ;;  %v4884_v14 = vld [vmem:[%s6264_s6 + $0x74] sm:$0xf]  ;;  %v4885_v15 = vld [vmem:[%s6264_s6 + $0x7c] sm:$0xf] }
  0x19   : > { %v4886_v16 = vld [vmem:[%s6264_s6 + $0x84] sm:$0xf]  ;;  %234 = vst [vmem:[%s6268_s7 + $0x38] sm:$0xf] %v4884_v14  ;;  %236 = vst [vmem:[%s6268_s7 + $0x3c] sm:$0xf] %v4885_v15 }
  0x1a   : > { %238 = vst [vmem:[%s6268_s7 + $0x40] sm:$0xf] %v4886_v16  ;;  %v4887_v17 = vld [vmem:[%s6264_s6 + $0x8c] sm:$0xf]  ;;  %v4888_v18 = vld [vmem:[%s6264_s6 + $0x94] sm:$0xf] }
  0x1b   : > { %v4889_v19 = vld [vmem:[%s6264_s6 + $0x9c] sm:$0xf]  ;;  %240 = vst [vmem:[%s6268_s7 + $0x44] sm:$0xf] %v4887_v17  ;;  %242 = vst [vmem:[%s6268_s7 + $0x48] sm:$0xf] %v4888_v18 }
  0x1c   : > { %244 = vst [vmem:[%s6268_s7 + $0x4c] sm:$0xf] %v4889_v19  ;;  %v4890_v20 = vld [vmem:[%s6264_s6 + $0xa4] sm:$0xf]  ;;  %v4891_v21 = vld [vmem:[%s6264_s6 + $0xac] sm:$0xf] }
  0x1d   : > { %v4892_v22 = vld [vmem:[%s6264_s6 + $0xb4] sm:$0xf]  ;;  %246 = vst [vmem:[%s6268_s7 + $0x50] sm:$0xf] %v4890_v20  ;;  %248 = vst [vmem:[%s6268_s7 + $0x54] sm:$0xf] %v4891_v21 }
  0x1e   : > { %250 = vst [vmem:[%s6268_s7 + $0x58] sm:$0xf] %v4892_v22  ;;  %v4893_v23 = vld [vmem:[%s6264_s6 + $0xbc] sm:$0xf]  ;;  %v4894_v24 = vld [vmem:[%s6264_s6 + $0xc4] sm:$0xf] }
  0x1f   : > { %v4895_v25 = vld [vmem:[%s6264_s6 + $0xcc] sm:$0xf]  ;;  %252 = vst [vmem:[%s6268_s7 + $0x5c] sm:$0xf] %v4893_v23  ;;  %254 = vst [vmem:[%s6268_s7 + $0x60] sm:$0xf] %v4894_v24 }
  0x20   : > { %256 = vst [vmem:[%s6268_s7 + $0x64] sm:$0xf] %v4895_v25  ;;  %v4896_v26 = vld [vmem:[%s6264_s6 + $0xd4] sm:$0xf]  ;;  %v4897_v27 = vld [vmem:[%s6264_s6 + $0xdc] sm:$0xf] }
  0x21   : > { %v4898_v28 = vld [vmem:[%s6264_s6 + $0xe4] sm:$0xf]  ;;  %258 = vst [vmem:[%s6268_s7 + $0x68] sm:$0xf] %v4896_v26  ;;  %260 = vst [vmem:[%s6268_s7 + $0x6c] sm:$0xf] %v4897_v27 }
  0x22   : > { %262 = vst [vmem:[%s6268_s7 + $0x70] sm:$0xf] %v4898_v28  ;;  %v4899_v29 = vld [vmem:[%s6264_s6 + $0xec] sm:$0xf]  ;;  %v4900_v30 = vld [vmem:[%s6264_s6 + $0xf4] sm:$0xf] }
  0x23   : > { %v4901_v31 = vld [vmem:[%s6264_s6 + $0xfc] sm:$0xf]  ;;  %264 = vst [vmem:[%s6268_s7 + $0x74] sm:$0xf] %v4899_v29  ;;  %266 = vst [vmem:[%s6268_s7 + $0x78] sm:$0xf] %v4900_v30 }
  0x24   : > { %268 = vst [vmem:[%s6268_s7 + $0x7c] sm:$0xf] %v4901_v31 }
  0x25 PF: > { %p4902_p5 = scmp.ge.s32.totalorder %s6192_s20, 1  ;;  %p355_p6 = scmp.lt.s32.totalorder %s6192_s20, 3 }
  0x27   : > { %p356_p7 = pnand %p4902_p5, %p355_p6 }
  0x29   : > { %359 = sbr.rel (%p356_p7) target bundleno = 1111 (0x457), region = 77 }
  0x2e   : > { %s362_s8 = sand.u32 1, %s6184_s18   ;;  %p6337_p8 = scmp.lt.s32.totalorder %s4863_s21, 1  ;;  %v6344_v32 = vld [vmem:[%s7937_s2] sm:$0x3]  ;;  %vm415_vm0 = vcmask 1043456   ;;  %v7941_v33 = vmov 0  }
  0x2f   : > { %7953 = vst [vmem:[#allocation6_spill] sm:$0xff] %v6344_v32  ;;  %s6346_s12 = sshll.u32 %s362_s8, 7  ;;  %395 = vst [vmem:[#allocation2] sm:$0xf] %v7941_v33  ;;  %v6371_v34 = vld [vmem:[%s7939_s4] sm:$0x3] }
  0x30   : > { %396 = vst [vmem:[#allocation2 + $0x4] sm:$0x1] %v7941_v33  ;;  %397 = vst [vmem:[#allocation2 + $0x8] sm:$0xf] %v7941_v33  ;;  %vm416_vm1 = vcmask 523268   ;;  %v7955_v35 = vmov 0 }
  0x31   : > { %398 = vst [vmem:[#allocation2 + $0xc] sm:$0x1] %v7941_v33  ;;  %399 = vst [vmem:[#allocation2 + $0x10] sm:$0xf] %v7941_v33  ;;  %s7996_s21 = smov (!%p6337_p8, %s4863_s21), 1  ;;  %s364_s20 = scalar_lea.vmem [#allocation5], %s6346_s12 }
  0x32   : > { %400 = vst [vmem:[#allocation2 + $0x14] sm:$0x1] %v7941_v33  ;;  %401 = vst [vmem:[#allocation2 + $0x18] sm:$0xf] %v7941_v33  ;;  %s5478_s15 = sshll.u32 %s7996_s21, 8  ;;  %s6412_s23 = smov 0  }
  0x33   : > { %402 = vst [vmem:[#allocation2 + $0x1c] sm:$0x1] %v7941_v33  ;;  %403 = vst [vmem:[#allocation2 + $0x20] sm:$0xf] %v7941_v33  ;;  %s6409_s18 = scalar_lea.vmem %s7940_s5, %s5478_s15 }
  0x34   : > { %404 = vst [vmem:[#allocation2 + $0x24] sm:$0x1] %v7941_v33  ;;  %405 = vst [vmem:[#allocation2 + $0x28] sm:$0xf] %v7941_v33 }
  0x35   : > { %406 = vst [vmem:[#allocation2 + $0x2c] sm:$0x1] %v7941_v33  ;;  %407 = vst [vmem:[#allocation2 + $0x30] sm:$0xf] %v7941_v33 }
  0x36   : > { %408 = vst [vmem:[#allocation2 + $0x34] sm:$0x1] %v7941_v33  ;;  %409 = vst [vmem:[#allocation2 + $0x38] sm:$0xf] %v7941_v33 }
  0x37   : > { %410 = vst [vmem:[#allocation2 + $0x3c] sm:$0x1] %v7941_v33  ;;  %411 = vst [vmem:[#allocation2 + $0x40] sm:$0xf] %v7941_v33 }
  0x38   : > { %412 = vst [vmem:[#allocation2 + $0x44] sm:$0x1] %v7941_v33  ;;  %413 = vst [vmem:[#allocation2 + $0x48] sm:$0xf] %v7941_v33 }
  0x39   : > { %414 = vst [vmem:[#allocation2 + $0x4c] sm:$0x1] %v7941_v33  ;;  %7954 = vst [vmem:[#allocation7_spill] sm:$0xff] %v6371_v34 }
  0x3a   : > { %vm6374_vm2 = vmor %vm416_vm1, %vm415_vm0 }
  0x3b   : > { %v7956_v35 = vsel %vm6374_vm2, 4294967295, %v7955_v35  ;;  %418 = vst.msk [vmem:[#allocation4] sm:$0xff] %vm6374_vm2, %v7941_v33  ;;  %419 = vst.msk [vmem:[#allocation4 + $0x8] sm:$0xff] %vm6374_vm2, %v7941_v33 }
  0x3c   : > { %7957 = vst [vmem:[#allocation8_spill] sm:$0xff] %v7956_v35  ;;  %420 = vst.msk [vmem:[#allocation4 + $0x10] sm:$0xff] %vm6374_vm2, %v7941_v33 }
  0x3d   : > { %421 = vst.msk [vmem:[#allocation4 + $0x18] sm:$0xff] %vm6374_vm2, %v7941_v33  ;;  %422 = vst.msk [vmem:[#allocation4 + $0x20] sm:$0xff] %vm6374_vm2, %v7941_v33 }
  0x3e   : > { %423 = vst.msk [vmem:[#allocation4 + $0x28] sm:$0xff] %vm6374_vm2, %v7941_v33  ;;  %424 = vst.msk [vmem:[#allocation4 + $0x30] sm:$0xff] %vm6374_vm2, %v7941_v33 }
  0x3f   : > { %425 = vst.msk [vmem:[#allocation4 + $0x38] sm:$0xff] %vm6374_vm2, %v7941_v33 }
  0x40 LB: >> { %v7958_v32 = vld [vmem:[#allocation6_spill] sm:$0xff]  ;;  %v5614_v40 = vld [vmem:[%s7936_s1 + $0x64] ss:$8 sps:$4 sm:$0xff]   ;;  %v5618_v42 = vld [vmem:[%s7936_s1 + $0x60] ss:$8 sps:$4 sm:$0xff]   ;;  %s5479_s9 = sshll.u32 %s6196_s23, 5  ;;  %s6196_s23 = sphi %s6412_s23, %s7986_s23  }
  0x41   : >> { %v5608_v36 = vld [vmem:[%s7936_s1 + $0x74] ss:$8 sps:$4 sm:$0xff]   ;;  %v5612_v38 = vld [vmem:[%s7936_s1 + $0x70] ss:$8 sps:$4 sm:$0xff]   ;;  %v5616_v41 = vld [vmem:[%s7936_s1 + $0x164] ss:$8 sps:$4 sm:$0xff]   ;;  %s6552_s17 = scalar_lea.vmem %s364_s20, %s5479_s9 [#allocation5] }
  0x42   : >> { %v5610_v37 = vld [vmem:[%s7936_s1 + $0x174] ss:$8 sps:$4 sm:$0xff]   ;;  %2406 = vmatprep.subr.bf16.mxu0 %v5608_v36  ;;  %v5613_v39 = vld [vmem:[%s7936_s1 + $0x170] ss:$8 sps:$4 sm:$0xff]   ;;  %v5619_v43 = vld [vmem:[%s7936_s1 + $0x160] ss:$8 sps:$4 sm:$0xff]  }
  0x43   : >> { %2479 = vmatprep.subr.bf16.mxu1 %v5610_v37  ;;  %2407 = vmatpush1.bf16.msra.mxu0 %v5612_v38  ;;  %v5620_v44 = vld [vmem:[%s7936_s1 + $0x54] ss:$8 sps:$4 sm:$0xff]   ;;  %v5624_v46 = vld [vmem:[%s7936_s1 + $0x50] ss:$8 sps:$4 sm:$0xff]   ;;  %v5626_v48 = vld [vmem:[%s7936_s1 + $0x44] ss:$8 sps:$4 sm:$0xff]  }
  0x44   : >> { %2480 = vmatpush1.bf16.msra.mxu1 %v5613_v39  ;;  %2408 = vmatprep.subr.bf16.mxu0 %v5614_v40  ;;  %v5622_v45 = vld [vmem:[%s7936_s1 + $0x154] ss:$8 sps:$4 sm:$0xff]   ;;  %v5625_v47 = vld [vmem:[%s7936_s1 + $0x150] ss:$8 sps:$4 sm:$0xff]   ;;  %v5628_v49 = vld [vmem:[%s7936_s1 + $0x144] ss:$8 sps:$4 sm:$0xff]  }
  0x45   : >> { %2481 = vmatprep.subr.bf16.mxu1 %v5616_v41  ;;  %v5630_v50 = vld [vmem:[%s7936_s1 + $0x40] ss:$8 sps:$4 sm:$0xff]   ;;  %v5632_v52 = vld [vmem:[%s7936_s1 + $0x34] ss:$8 sps:$4 sm:$0xff]   ;;  %v5636_v54 = vld [vmem:[%s7936_s1 + $0x30] ss:$8 sps:$4 sm:$0xff]  }
  0x46   : >> { %v5631_v51 = vld [vmem:[%s7936_s1 + $0x140] ss:$8 sps:$4 sm:$0xff]   ;;  %v5634_v53 = vld [vmem:[%s7936_s1 + $0x134] ss:$8 sps:$4 sm:$0xff]   ;;  %v5637_v55 = vld [vmem:[%s7936_s1 + $0x130] ss:$8 sps:$4 sm:$0xff]  }
  0x47   : >> { %2409 = vmatpush1.bf16.msra.mxu0 %v5618_v42  ;;  %v5638_v56 = vld [vmem:[%s7936_s1 + $0x24] ss:$8 sps:$4 sm:$0xff]   ;;  %v5642_v58 = vld [vmem:[%s7936_s1 + $0x20] ss:$8 sps:$4 sm:$0xff]   ;;  %v5644_v60 = vld [vmem:[%s7936_s1 + $0x14] ss:$8 sps:$4 sm:$0xff]  }
  0x48   : >> { %2482 = vmatpush1.bf16.msra.mxu1 %v5619_v43  ;;  %2410 = vmatprep.subr.bf16.mxu0 %v5620_v44  ;;  %v5640_v57 = vld [vmem:[%s7936_s1 + $0x124] ss:$8 sps:$4 sm:$0xff]   ;;  %v5643_v59 = vld [vmem:[%s7936_s1 + $0x120] ss:$8 sps:$4 sm:$0xff]   ;;  %v5646_v61 = vld [vmem:[%s7936_s1 + $0x114] ss:$8 sps:$4 sm:$0xff]  }
  0x49   : >> { %2483 = vmatprep.subr.bf16.mxu1 %v5622_v45  ;;  %v5648_v62 = vld [vmem:[%s7936_s1 + $0x10] ss:$8 sps:$4 sm:$0xff]   ;;  %v5650_v0 = vld [vmem:[%s7936_s1 + $0x4] ss:$8 sps:$4 sm:$0xff]   ;;  %v5654_v2 = vld [vmem:[%s7936_s1] ss:$8 sps:$4 sm:$0xff]  }
  0x4a   : >> { %v5649_v63 = vld [vmem:[%s7936_s1 + $0x110] ss:$8 sps:$4 sm:$0xff]   ;;  %v5652_v1 = vld [vmem:[%s7936_s1 + $0x104] ss:$8 sps:$4 sm:$0xff]   ;;  %v5655_v3 = vld [vmem:[%s7936_s1 + $0x100] ss:$8 sps:$4 sm:$0xff]  }
  0x4b   : >> { %2411 = vmatpush1.bf16.msra.mxu0 %v5624_v46  ;;  %v5656_v4 = vld [vmem:[%s7936_s1 + $0xf4] ss:$8 sps:$4 sm:$0xff]   ;;  %v5660_v6 = vld [vmem:[%s7936_s1 + $0xf0] ss:$8 sps:$4 sm:$0xff]   ;;  %v5662_v8 = vld [vmem:[%s7936_s1 + $0xe4] ss:$8 sps:$4 sm:$0xff]  }
  0x4c   : >> { %2484 = vmatpush1.bf16.msra.mxu1 %v5625_v47  ;;  %2412 = vmatprep.subr.bf16.mxu0 %v5626_v48  ;;  %v5658_v5 = vld [vmem:[%s7936_s1 + $0x1f4] ss:$8 sps:$4 sm:$0xff]   ;;  %v5661_v7 = vld [vmem:[%s7936_s1 + $0x1f0] ss:$8 sps:$4 sm:$0xff]   ;;  %v5664_v9 = vld [vmem:[%s7936_s1 + $0x1e4] ss:$8 sps:$4 sm:$0xff]  }
  0x4d   : >> { %2485 = vmatprep.subr.bf16.mxu1 %v5628_v49  ;;  %v5666_v10 = vld [vmem:[%s7936_s1 + $0xe0] ss:$8 sps:$4 sm:$0xff]   ;;  %v5668_v12 = vld [vmem:[%s7936_s1 + $0xd4] ss:$8 sps:$4 sm:$0xff]   ;;  %vm527_vm3 = vsmask.f32 7938 }
  0x4e   : >> { %v5667_v11 = vld [vmem:[%s7936_s1 + $0x1e0] ss:$8 sps:$4 sm:$0xff]   ;;  %v5670_v13 = vld [vmem:[%s7936_s1 + $0x1d4] ss:$8 sps:$4 sm:$0xff]   ;;  %vm532_vm4 = vcmask 1040384   ;;  %vm775_vm6 = vcmask 1042432   ;;  %vm6575_vm10 = vmand %vm415_vm0, %vm527_vm3 }
  0x4f   : >> { %2413 = vmatpush1.bf16.msra.mxu0 %v5630_v50  ;;  %vm533_vm5 = vsmask.f32 256  ;;  %v5672_v14 = vld [vmem:[%s7936_s1 + $0xd0] ss:$8 sps:$4 sm:$0xff]   ;;  %vm776_vm7 = vcmask 1046532   ;;  %s7065_s8 = sadd.s32 1, %s6196_s23  }
  0x50   : >> { %2486 = vmatpush1.bf16.msra.mxu1 %v5631_v51  ;;  %2414 = vmatprep.subr.bf16.mxu0 %v5632_v52  ;;  %v5673_v15 = vld [vmem:[%s7936_s1 + $0x1d0] ss:$8 sps:$4 sm:$0xff]   ;;  %v5674_v16 = vld [vmem:[%s7936_s1 + $0xc4] ss:$8 sps:$4 sm:$0xff]   ;;  %vm612_vm8 = vsmask.f32 3328  ;;  %vm6587_vm11 = vmand %vm532_vm4, %vm533_vm5 }
  0x51   : >> { %2487 = vmatprep.subr.bf16.mxu1 %v5634_v53  ;;  %v5676_v17 = vld [vmem:[%s7936_s1 + $0x1c4] ss:$8 sps:$4 sm:$0xff]   ;;  %vm613_vm9 = vsmask.f32 7440  ;;  %v5678_v18 = vld [vmem:[%s7936_s1 + $0xc0] ss:$8 sps:$4 sm:$0xff]   ;;  %vm6594_vm12 = vmor %vm775_vm6, %vm776_vm7 }
  0x52   : >> { %v5679_v19 = vld [vmem:[%s7936_s1 + $0x1c0] ss:$8 sps:$4 sm:$0xff]   ;;  %v5680_v21 = vld [vmem:[%s7936_s1 + $0xb4] ss:$8 sps:$4 sm:$0xff]   ;;  %v597_v30 = vld [vmem:[#allocation2 + $0x4] sm:$0x1] }
  0x53   : >> { %2415 = vmatpush1.bf16.msra.mxu0 %v5636_v54  ;;  %v437_v20 = vld [vmem:[%s6552_s17] sm:$0xf]  ;;  %v5682_v22 = vld [vmem:[%s7936_s1 + $0x1b4] ss:$8 sps:$4 sm:$0xff]   ;;  %v529_v25 = vld [vmem:[#allocation2 + $0x8] sm:$0xf] }
  0x54   : >> { %2488 = vmatpush1.bf16.msra.mxu1 %v5637_v55  ;;  %2416 = vmatprep.subr.bf16.mxu0 %v5638_v56  ;;  %v446_v23 = vshrl.u32 %v437_v20, 16  ;;  %v449_v24 = vshll.u32 %v437_v20, 16  ;;  %v580_v26 = vld [vmem:[#allocation2] sm:$0xf]  ;;  %v5684_v37 = vld [vmem:[%s7936_s1 + $0xb0] ss:$8 sps:$4 sm:$0xff]   ;;  %vm6613_vm13 = vmor %vm612_vm8, %vm613_vm9 }
  0x55   : >> { %2489 = vmatprep.subr.bf16.mxu1 %v5640_v57  ;;  %v596_v27 = vld [vmem:[#allocation2] sm:$0xf]  ;;  %588 = vst [vmem:[#allocation3] sm:$0xf] %v580_v26  ;;  %v5685_v38 = vld [vmem:[%s7936_s1 + $0x1b0] ss:$8 sps:$4 sm:$0xff]  }
  0x56   : >> { %v448_v28 = vrot.slane %v446_v23, 7  ;;  %v616_v31 = vshrl.u32 %v596_v27, 16  ;;  %v619_v36 = vshll.u32 %v596_v27, 16  ;;  %v535_v40 = vld [vmem:[#allocation2 + $0xc] sm:$0x1]  ;;  %v625_v41 = vshll.u32 %v597_v30, 16 }
  0x57   : >> { %2417 = vmatpush1.bf16.msra.mxu0 %v5642_v58  ;;  %v438_v42 = vld [vmem:[%s6552_s17 + $0x4] sm:$0xf]  ;;  %v743_v47 = vld [vmem:[#allocation2] sm:$0xe]  ;;  %v5712_v27 = vld [vmem:[%s7936_s1 + $0x274] ss:$8 sps:$4 sm:$0xff]  }
  0x58   : >> { %2490 = vmatpush1.bf16.msra.mxu1 %v5643_v59  ;;  %2418 = vmatprep.subr.bf16.mxu0 %v5644_v60  ;;  %v451_v43 = vor.u32 %v449_v24, %v448_v28  ;;  %v452_v44 = vrot.slane %v448_v28, 4  ;;  %v618_v45 = vrot.slane %v616_v31, 4  ;;  %v621_v46 = vrot.slane %v619_v36, 5  ;;  %v744_v51 = vld [vmem:[#allocation2 + $0x4] sm:$0x1]  ;;  %s2797_s9 = ssub.s32 0, %s7065_s8 }
  0x59   : >> { %2491 = vmatprep.subr.bf16.mxu1 %v5646_v61  ;;  %v627_v48 = vrot.slane %v625_v41, 5  ;;  %v454_v49 = vshrl.u32 %v438_v42, 16  ;;  %v457_v50 = vshll.u32 %v438_v42, 16  ;;  %v4908_v53 = vrot.slane %v743_v47, 9  ;;  %v5686_v54 = vld [vmem:[%s7936_s1 + $0xa4] ss:$8 sps:$4 sm:$0xff]   ;;  %s5112_s10 = smin.u32 %s2797_s9, %s7065_s8 }
  0x5a   : >> { %v5688_v55 = vld [vmem:[%s7936_s1 + $0x1a4] ss:$8 sps:$4 sm:$0xff]   ;;  %v530_v56 = vsel %vm6575_vm10, %v451_v43, %v529_v25  ;;  %v536_v57 = vsel %vm6587_vm11, %v452_v44, %v535_v40  ;;  %v622_v58 = vor.u32 %v621_v46, %v618_v45  ;;  %v780_v59 = vrot.slane %v744_v51, 5  ;;  %v5690_v60 = vld [vmem:[%s7936_s1 + $0xa0] ss:$8 sps:$4 sm:$0xff]   ;;  %5873 = sdivrem.u32 %s5112_s10, 3 }
  0x5b   : >> { %2419 = vmatpush1.bf16.msra.mxu0 %v5648_v62  ;;  %531 = vst [vmem:[#allocation2 + $0x8] sm:$0xf] %v530_v56  ;;  %537 = vst [vmem:[#allocation2 + $0xc] sm:$0x1] %v536_v57  ;;  %v6617_v62 = vrot.slane %v454_v49, 7  ;;  %p2796_p9 = scmp.lt.s32.totalorder %s7065_s8, 0 }
  0x5c   : >> { %2492 = vmatpush1.bf16.msra.mxu1 %v5649_v63  ;;  %2420 = vmatprep.subr.bf16.mxu0 %v5650_v0  ;;  %v623_v63 = vrot.slane %v622_v58, 4  ;;  %v538_v0 = vld [vmem:[#allocation2 + $0x10] sm:$0xf]  ;;  %v5703_v23 = vld [vmem:[%s7936_s1 + $0x180] ss:$8 sps:$4 sm:$0xff]   ;;  %p5125_p11 = scmp.lt.s32.totalorder %s6196_s23, 1 }
  0x5d   : >> { %2493 = vmatprep.subr.bf16.mxu1 %v5652_v1  ;;  %v781_v1 = vsel %vm6594_vm12, %v4908_v53, %v780_v59  ;;  %v5715_v28 = vld [vmem:[%s7936_s1 + $0x374] ss:$8 sps:$4 sm:$0xff]   ;;  %v5713_v41 = vld [vmem:[%s7936_s1 + $0x370] ss:$8 sps:$4 sm:$0xff]   ;;  %v5721_v44 = vld [vmem:[%s7936_s1 + $0x364] ss:$8 sps:$4 sm:$0xff]  }
  0x5e   : >> { %818 = vst [vmem:[#allocation3 + $0x8] sm:$0xf] %v781_v1  ;;  %v5710_v45 = vld [vmem:[%s7936_s1 + $0x270] ss:$8 sps:$4 sm:$0xff]   ;;  %v460_v46 = vrot.slane %v6617_v62, 4  ;;  %s2914_s28 = ssub.s32 (!%p5125_p11), 0, %s6196_s23 }
  0x5f   : >> { %2421 = vmatpush1.bf16.msra.mxu0 %v5654_v2  ;;  %v5691_v2 = vld [vmem:[%s7936_s1 + $0x1a0] ss:$8 sps:$4 sm:$0xff]   ;;  %v5727_v51 = vld [vmem:[%s7936_s1 + $0x354] ss:$8 sps:$4 sm:$0xff]   ;;  %s5132_s7 = smin.u32 (!%p5125_p11), %s6196_s23, %s2914_s28  ;;  %s7295_s9 = sadd.s32 (!%p5125_p11), 4294967295, %s6196_s23 }
  0x60   : >> { %2494 = vmatpush1.bf16.msra.mxu1 %v5655_v3  ;;  %2422 = vmatprep.subr.bf16.mxu0 %v5656_v4  ;;  %v459_v3 = vor.u32 %v457_v50, %v6617_v62  ;;  %v5692_v4 = vld [vmem:[%s7936_s1 + $0x94] ss:$8 sps:$4 sm:$0xff]   ;;  %v5719_v47 = vld [vmem:[%s7936_s1 + $0x360] ss:$8 sps:$4 sm:$0xff]   ;;  %v5718_v50 = vld [vmem:[%s7936_s1 + $0x264] ss:$8 sps:$4 sm:$0xff]  }
  0x61   : >> { %2495 = vmatprep.subr.bf16.mxu1 %v5658_v5  ;;  %v5694_v5 = vld [vmem:[%s7936_s1 + $0x194] ss:$8 sps:$4 sm:$0xff]   ;;  %v439_v53 = vld [vmem:[%s6552_s17 + $0x8] sm:$0xf]  ;;  %6019 = sdivrem.u32 (!%p5125_p11), %s5132_s7, 3  ;;  %s2866_s24 = ssub.s32 (!%p5125_p11), 0, %s7295_s9 }
  0x62   : >> { %v746_v20 = vld [vmem:[#allocation2 + $0xc] sm:$0x1]  ;;  %v462_v56 = vshrl.u32 %v439_v53, 16  ;;  %v465_v57 = vshll.u32 %v439_v53, 16  ;;  %v541_v58 = vld [vmem:[#allocation2 + $0x14] sm:$0x1]  ;;  %s5127_s28 = smin.u32 (!%p5125_p11), %s7295_s9, %s2866_s24 }
  0x63   : >> { %2423 = vmatpush2.bf16.msra.mxu0 %v5660_v6  ;;  %v628_v6 = vsel %vm6613_vm13, %v623_v63, %v627_v48  ;;  %v784_v26 = vrot.slane %v746_v20, 5  ;;  %v5724_v59 = vld [vmem:[%s7936_s1 + $0x254] ss:$8 sps:$4 sm:$0xff]   ;;  %v542_v62 = vsel %vm6587_vm11, %v460_v46, %v541_v58  ;;  %v5743_v46 = vld [vmem:[%s7936_s1 + $0x320] ss:$8 sps:$4 sm:$0xff]   ;;  %s5874_s11 = spop.drf %5873  ;;  %6021 = sdivrem.u32 (!%p5125_p11), %s5127_s28, 3 }
  0x64   : >> { %2496 = vmatpush2.bf16.msra.mxu1 %v5661_v7  ;;  %2424 = vmatprep.subr.bf16.mxu0 %v5662_v8  ;;  %v5696_v7 = vld [vmem:[%s7936_s1 + $0x90] ss:$8 sps:$4 sm:$0xff]   ;;  %735 = vst [vmem:[#allocation3 + $0x4] sm:$0xf] %v628_v6  ;;  %v464_v1 = vrot.slane %v462_v56, 7  ;;  %s2801_s13 = ssub.s32 0, %s5874_s11 }
  0x65   : >> { %2497 = vmatprep.subr.bf16.mxu1 %v5664_v9  ;;  %v5697_v8 = vld [vmem:[%s7936_s1 + $0x190] ss:$8 sps:$4 sm:$0xff]   ;;  %v539_v9 = vsel %vm6575_vm10, %v459_v3, %v538_v0  ;;  %543 = vst [vmem:[#allocation2 + $0x14] sm:$0x1] %v542_v62  ;;  %v5751_v53 = vld [vmem:[%s7936_s1 + $0x314] ss:$8 sps:$4 sm:$0xff]   ;;  %s7998_s13 = smov (!%p2796_p9, %s2801_s13), %s5874_s11 }
  0x66   : >> { %540 = vst [vmem:[#allocation2 + $0x10] sm:$0xf] %v539_v9  ;;  %v467_v6 = vor.u32 %v465_v57, %v464_v1  ;;  %v559_v56 = vld [vmem:[#allocation2 + $0x2c] sm:$0x1]  ;;  %p5114_p10 = scmp.lt.s32.totalorder %s7998_s13, 0  ;;  %s2807_s14 = sadd.s32 3, %s7998_s13 }
  0x67   : >> { %2425 = vmatpush2.bf16.msra.mxu0 %v5666_v10  ;;  %v5698_v10 = vld [vmem:[%s7936_s1 + $0x84] ss:$8 sps:$4 sm:$0xff]   ;;  %p2913_p12 = scmp.lt.s32.totalorder (!%p5125_p11), %s6196_s23, 0  ;;  %p2865_p13 = scmp.lt.s32.totalorder (!%p5125_p11), %s7295_s9, 0 }
  0x68   : >> { %2498 = vmatpush2.bf16.msra.mxu1 %v5667_v11  ;;  %2426 = vmatprep.subr.bf16.mxu0 %v5668_v12  ;;  %v5700_v11 = vld [vmem:[%s7936_s1 + $0x184] ss:$8 sps:$4 sm:$0xff]   ;;  %v581_v12 = vld [vmem:[#allocation2 + $0x8] sm:$0xf]  ;;  %s8000_s14 = smov (!%p5114_p10, %s2807_s14), %s7998_s13 }
  0x69   : >> { %2499 = vmatprep.subr.bf16.mxu1 %v5670_v13  ;;  %v598_v13 = vld [vmem:[#allocation2 + $0x8] sm:$0xf]  ;;  %589 = vst [vmem:[#allocation3 + $0x24] sm:$0xf] %v581_v12  ;;  %v440_v12 = vld [vmem:[%s6552_s17 + $0xc] sm:$0xf] }
  0x6a   : >> { %v473_v20 = vshll.u32 %v440_v12, 16  ;;  %s5488_s15 = sshll.u32 %s8000_s14, 6  ;;  %s6020_s6 = spop.drf (!%p5125_p11), %6019 }
  0x6b   : >> { %2427 = vmatpush2.bf16.msra.mxu0 %v5672_v14  ;;  %v599_v14 = vld [vmem:[#allocation2 + $0xc] sm:$0x1]  ;;  %s7245_s16 = scalar_lea.vmem [#allocation4], %s5488_s15  ;;  %s2918_s23 = ssub.s32 (!%p5125_p11), 0, %s6020_s6 }
  0x6c   : >> { %2500 = vmatpush2.bf16.msra.mxu1 %v5673_v15  ;;  %2428 = vmatprep.subr.bf16.mxu0 %v5674_v16  ;;  %v5702_v15 = vld [vmem:[%s7936_s1 + $0x80] ss:$8 sps:$4 sm:$0xff]   ;;  %v630_v16 = vshrl.u32 %v598_v13, 16 }
  0x6d   : >> { %2501 = vmatprep.subr.bf16.mxu1 %v5676_v17  ;;  %v633_v17 = vshll.u32 %v598_v13, 16  ;;  %v582_v63 = vld [vmem:[#allocation2 + $0x10] sm:$0xf]  ;;  %v5731_v13 = vld [vmem:[%s7936_s1 + $0x340] ss:$8 sps:$4 sm:$0xff]  }
  0x6e   : >> { %v632_v24 = vrot.slane %v630_v16, 4  ;;  %v600_v0 = vld [vmem:[#allocation2 + $0x10] sm:$0xf]  ;;  %590 = vst [vmem:[#allocation3 + $0x48] sm:$0xf] %v582_v63 }
  0x6f   : >> { %2429 = vmatpush2.bf16.msra.mxu0 %v5678_v18  ;;  %v639_v18 = vshll.u32 %v599_v14, 16  ;;  %v635_v25 = vrot.slane %v633_v17, 5  ;;  %v647_v3 = vshll.u32 %v600_v0, 16  ;;  %v470_v17 = vshrl.u32 %v440_v12, 16 }
  0x70   : >> { %2502 = vmatpush2.bf16.msra.mxu1 %v5679_v19  ;;  %2430 = vmatprep.subr.bf16.mxu0 %v5680_v21  ;;  %v745_v19 = vld [vmem:[#allocation2 + $0x8] sm:$0xe]  ;;  %v5704_v48 = vld [vmem:[#allocation3] ss:$36 sps:$4 sm:$0xff]  }
  0x71   : >> { %2503 = vmatprep.subr.bf16.mxu1 %v5682_v22  ;;  %v4909_v21 = vrot.slane %v745_v19, 9  ;;  %v826_v22 = vld [vmem:[#allocation2 + $0x8] sm:$0xf]  ;;  %v636_v30 = vor.u32 %v635_v25, %v632_v24  ;;  %v641_v31 = vrot.slane %v639_v18, 5  ;;  %v649_v9 = vrot.slane %v647_v3, 5 }
  0x72   : >> { %834 = vst [vmem:[#allocation3 + $0xc] sm:$0xf] %v826_v22  ;;  %v747_v18 = vld [vmem:[#allocation2 + $0x10] sm:$0xe]  ;;  %v5739_v19 = vld [vmem:[%s7936_s1 + $0x334] ss:$8 sps:$4 sm:$0xff]  }
  0x73   : >> { %2431 = vmatpush2.bf16.msra.mxu0 %v5684_v37  ;;  %v785_v36 = vsel %vm6594_vm12, %v4909_v21, %v784_v26  ;;  %v827_v37 = vld [vmem:[#allocation2 + $0x10] sm:$0xf]  ;;  %v5728_v21 = vld [vmem:[%s7936_s1 + $0x240] ss:$8 sps:$4 sm:$0xff]   ;;  %v472_v24 = vrot.slane %v470_v17, 7  ;;  %v4910_v26 = vrot.slane %v747_v18, 9 }
  0x74   : >> { %2504 = vmatpush2.bf16.msra.mxu1 %v5685_v38  ;;  %2432 = vmatprep.subr.bf16.mxu0 %v5686_v54  ;;  %819 = vst [vmem:[#allocation3 + $0x2c] sm:$0xf] %v785_v36  ;;  %835 = vst [vmem:[#allocation3 + $0x30] sm:$0xf] %v827_v37  ;;  %v637_v38 = vrot.slane %v636_v30, 4 }
  0x75   : >> { %2505 = vmatprep.subr.bf16.mxu1 %v5688_v55  ;;  %v5716_v54 = vld [vmem:[%s7936_s1 + $0x260] ss:$8 sps:$4 sm:$0xff]   ;;  %v5725_v55 = vld [vmem:[%s7936_s1 + $0x350] ss:$8 sps:$4 sm:$0xff]   ;;  %v475_v36 = vor.u32 %v473_v20, %v472_v24  ;;  %v476_v37 = vrot.slane %v472_v24, 4 }
  0x76   : >> { %v642_v40 = vsel %vm6613_vm13, %v637_v38, %v641_v31  ;;  %v5737_v22 = vld [vmem:[%s7936_s1 + $0x330] ss:$8 sps:$4 sm:$0xff]   ;;  %v550_v25 = vld [vmem:[#allocation2 + $0x20] sm:$0xf]  ;;  %v5757_v17 = vld [vmem:[%s7936_s1 + $0x304] ss:$8 sps:$4 sm:$0xff]  }
  0x77   : >> { %2433 = vmatpush2.bf16.msra.mxu0 %v5690_v60  ;;  %736 = vst [vmem:[#allocation3 + $0x28] sm:$0xf] %v642_v40  ;;  %v5733_v60 = vld [vmem:[%s7936_s1 + $0x344] ss:$8 sps:$4 sm:$0xff]   ;;  %v441_v30 = vld [vmem:[%s6552_s17 + $0x10] sm:$0xf] }
  0x78   : >> { %2506 = vmatpush2.bf16.msra.mxu1 %v5691_v2  ;;  %2434 = vmatprep.subr.bf16.mxu0 %v5692_v4  ;;  %v644_v2 = vshrl.u32 %v600_v0, 16  ;;  %v544_v4 = vld [vmem:[#allocation2 + $0x18] sm:$0xf]  ;;  %v553_v40 = vld [vmem:[#allocation2 + $0x24] sm:$0x1] }
  0x79   : >> { %2507 = vmatprep.subr.bf16.mxu1 %v5694_v5  ;;  %v547_v5 = vld [vmem:[#allocation2 + $0x1c] sm:$0x1]  ;;  %v545_v14 = vsel %vm6575_vm10, %v467_v6, %v544_v4 }
  0x7a   : >> { %546 = vst [vmem:[#allocation2 + $0x18] sm:$0xf] %v545_v14 }
  0x7b   : >> { %2435 = vmatpush2.bf16.msra.mxu0 %v5696_v7  ;;  %v5707_v42 = vld [vmem:[#allocation3 + $0x8] ss:$36 sps:$4 sm:$0xff]   ;;  %v468_v7 = vrot.slane %v464_v1, 4 }
  0x7c   : >> { %2508 = vmatpush2.bf16.msra.mxu1 %v5697_v8  ;;  %2436 = vmatprep.subr.bf16.mxu0 %v5698_v10  ;;  %v5709_v43 = vld [vmem:[#allocation3 + $0xc] ss:$36 sps:$4 sm:$0xff]   ;;  %v646_v8 = vrot.slane %v644_v2, 4  ;;  %v5722_v10 = vld [vmem:[%s7936_s1 + $0x250] ss:$8 sps:$4 sm:$0xff]  }
  0x7d   : >> { %2509 = vmatprep.subr.bf16.mxu1 %v5700_v11  ;;  %2511 = vmatprep.mubr.bf16.mxu1 %v5709_v43  ;;  %v5730_v11 = vld [vmem:[%s7936_s1 + $0x244] ss:$8 sps:$4 sm:$0xff]   ;;  %v478_v43 = vshrl.u32 %v441_v30, 16 }
  0x7e   : >> { %v5706_v49 = vld [vmem:[#allocation3 + $0x4] ss:$36 sps:$4 sm:$0xff]   ;;  %v650_v16 = vor.u32 %v649_v9, %v646_v8 }
  0x7f   : >> { %2437 = vmatpush2.bf16.msra.mxu0 %v5702_v15  ;;  %2438 = vmatprep.mubr.bf16.mxu0 %v5706_v49  ;;  %v548_v15 = vsel %vm6587_vm11, %v468_v7, %v547_v5  ;;  %v5740_v7 = vld [vmem:[%s7936_s1 + $0x220] ss:$8 sps:$4 sm:$0xff]  }
  0x80   : >> { %2510 = vmatpush2.bf16.msra.mxu1 %v5703_v23  ;;  %2552 = vmatprep.subr.bf16.mxu0 %v5712_v27  ;;  %549 = vst [vmem:[#allocation2 + $0x1c] sm:$0x1] %v548_v15  ;;  %v651_v23 = vrot.slane %v650_v16, 4  ;;  %v601_v27 = vld [vmem:[#allocation2 + $0x14] sm:$0x1] }
  0x81   : >> { %2625 = vmatprep.subr.bf16.mxu1 %v5715_v28  ;;  %v748_v28 = vld [vmem:[#allocation2 + $0x14] sm:$0x1]  ;;  %v653_v31 = vshll.u32 %v601_v27, 16  ;;  %v583_v57 = vld [vmem:[#allocation2 + $0x18] sm:$0xf] }
  0x82   : >> { %2439 = vmatmul.mubr.bf16.vlgmr.msra.gmra.mxu0 %v5704_v48  ;;  %v788_v38 = vrot.slane %v748_v28, 5  ;;  %v551_v48 = vsel %vm6575_vm10, %v475_v36, %v550_v25  ;;  %v602_v58 = vld [vmem:[#allocation2 + $0x18] sm:$0xf]  ;;  %591 = vst [vmem:[#allocation3 + $0x6c] sm:$0xf] %v583_v57 }
  0x83   : >> { %2512 = vmatmul.mubr.bf16.vlgmr.msra.gmra.mxu1 %v5707_v42  ;;  %2553 = vmatpush1.bf16.msra.mxu0 %v5710_v45  ;;  %v5745_v42 = vld [vmem:[%s7936_s1 + $0x324] ss:$8 sps:$4 sm:$0xff]   ;;  %v5734_v45 = vld [vmem:[%s7936_s1 + $0x230] ss:$8 sps:$4 sm:$0xff]   ;;  %552 = vst [vmem:[#allocation2 + $0x20] sm:$0xf] %v551_v48 }
  0x84   : >> { %2626 = vmatpush1.bf16.msra.mxu1 %v5713_v41  ;;  %2554 = vmatprep.subr.bf16.mxu0 %v5718_v50  ;;  %v5736_v41 = vld [vmem:[%s7936_s1 + $0x234] ss:$8 sps:$4 sm:$0xff]   ;;  %v789_v49 = vsel %vm6594_vm12, %v4910_v26, %v788_v38  ;;  %v554_v50 = vsel %vm6587_vm11, %v476_v37, %v553_v40  ;;  %v658_v62 = vshrl.u32 %v602_v58, 16  ;;  %v661_v63 = vshll.u32 %v602_v58, 16  ;;  %v749_v1 = vld [vmem:[#allocation2 + $0x18] sm:$0xe] }
  0x85   : >> { %2627 = vmatprep.subr.bf16.mxu1 %v5721_v44  ;;  %v481_v44 = vshll.u32 %v441_v30, 16  ;;  %820 = vst [vmem:[#allocation3 + $0x50] sm:$0xf] %v789_v49  ;;  %555 = vst [vmem:[#allocation2 + $0x24] sm:$0x1] %v554_v50  ;;  %v4911_v4 = vrot.slane %v749_v1, 9 }
  0x86   : >> { %v828_v5 = vld [vmem:[#allocation2 + $0x18] sm:$0xf]  ;;  %v660_v8 = vrot.slane %v658_v62, 4  ;;  %v663_v9 = vrot.slane %v661_v63, 5  ;;  %v442_v15 = vld [vmem:[%s6552_s17 + $0x14] sm:$0xf] }
  0x87   : >> { %2555 = vmatpush1.bf16.msra.mxu0 %v5716_v54  ;;  %v480_v54 = vrot.slane %v478_v43, 7  ;;  %v750_v3 = vld [vmem:[#allocation2 + $0x1c] sm:$0x1]  ;;  %836 = vst [vmem:[#allocation3 + $0x54] sm:$0xf] %v828_v5  ;;  %v486_v20 = vshrl.u32 %v442_v15, 16 }
  0x88   : >> { %2628 = vmatpush1.bf16.msra.mxu1 %v5719_v47  ;;  %2556 = vmatprep.subr.bf16.mxu0 %v5724_v59  ;;  %v655_v47 = vrot.slane %v653_v31, 5  ;;  %v603_v59 = vld [vmem:[#allocation2 + $0x1c] sm:$0x1]  ;;  %v664_v18 = vor.u32 %v663_v9, %v660_v8  ;;  %v562_v27 = vld [vmem:[#allocation2 + $0x30] sm:$0xf] }
  0x89   : >> { %2629 = vmatprep.subr.bf16.mxu1 %v5727_v51  ;;  %v5742_v51 = vld [vmem:[%s7936_s1 + $0x224] ss:$8 sps:$4 sm:$0xff]   ;;  %v667_v0 = vshll.u32 %v603_v59, 16  ;;  %v483_v2 = vor.u32 %v481_v44, %v480_v54  ;;  %v484_v6 = vrot.slane %v480_v54, 4  ;;  %v5748_v16 = vld [vmem:[%s7936_s1 + $0x214] ss:$8 sps:$4 sm:$0xff]  }
  0x8a   : >> { %v829_v24 = vld [vmem:[#allocation2 + $0x20] sm:$0xf]  ;;  %v5754_v28 = vld [vmem:[%s7936_s1 + $0x204] ss:$8 sps:$4 sm:$0xff]   ;;  %v665_v30 = vrot.slane %v664_v18, 4  ;;  %v488_v38 = vrot.slane %v486_v20, 7 }
  0x8b   : >> { %2557 = vmatpush1.bf16.msra.mxu0 %v5722_v10  ;;  %v792_v10 = vrot.slane %v750_v3, 5  ;;  %v669_v12 = vrot.slane %v667_v0, 5  ;;  %v560_v14 = vsel %vm6587_vm11, %v484_v6, %v559_v56  ;;  %v584_v25 = vld [vmem:[#allocation2 + $0x20] sm:$0xf]  ;;  %837 = vst [vmem:[#allocation3 + $0x78] sm:$0xf] %v829_v24 }
  0x8c   : >> { %2630 = vmatpush1.bf16.msra.mxu1 %v5725_v55  ;;  %2558 = vmatprep.subr.bf16.mxu0 %v5730_v11  ;;  %v556_v55 = vld [vmem:[#allocation2 + $0x28] sm:$0xf]  ;;  %v5749_v11 = vld [vmem:[%s7936_s1 + $0x310] ss:$8 sps:$4 sm:$0xff]   ;;  %561 = vst [vmem:[#allocation2 + $0x2c] sm:$0x1] %v560_v14 }
  0x8d   : >> { %2631 = vmatprep.subr.bf16.mxu1 %v5733_v60  ;;  %v656_v60 = vsel %vm6613_vm13, %v651_v23, %v655_v47  ;;  %v5755_v23 = vld [vmem:[%s7936_s1 + $0x300] ss:$8 sps:$4 sm:$0xff]   ;;  %592 = vst [vmem:[#allocation3 + $0x90] sm:$0xf] %v584_v25  ;;  %v605_v31 = vld [vmem:[#allocation2 + $0x24] sm:$0x1]  ;;  %v670_v43 = vsel %vm6613_vm13, %v665_v30, %v669_v12 }
  0x8e   : >> { %737 = vst [vmem:[#allocation3 + $0x4c] sm:$0xf] %v656_v60  ;;  %v604_v26 = vld [vmem:[#allocation2 + $0x20] sm:$0xf]  ;;  %v681_v40 = vshll.u32 %v605_v31, 16  ;;  %v492_v50 = vrot.slane %v488_v38, 4 }
  0x8f   : >> { %2559 = vmatpush1.bf16.msra.mxu0 %v5728_v21  ;;  %v489_v21 = vshll.u32 %v442_v15, 16  ;;  %v672_v36 = vshrl.u32 %v604_v26, 16  ;;  %v675_v37 = vshll.u32 %v604_v26, 16  ;;  %v5765_v44 = vld [vmem:[%s7936_s1 + $0x3f4] ss:$8 sps:$4 sm:$0xff]  }
  0x90   : >> { %2632 = vmatpush1.bf16.msra.mxu1 %v5731_v13  ;;  %2560 = vmatprep.subr.bf16.mxu0 %v5736_v41  ;;  %v557_v13 = vsel %vm6575_vm10, %v483_v2, %v556_v55  ;;  %v751_v41 = vld [vmem:[#allocation2 + $0x20] sm:$0xe]  ;;  %738 = vst [vmem:[#allocation3 + $0x70] sm:$0xf] %v670_v43  ;;  %v5763_v49 = vld [vmem:[%s7936_s1 + $0x3f0] ss:$8 sps:$4 sm:$0xff]  }
  0x91   : >> { %2633 = vmatprep.subr.bf16.mxu1 %v5739_v19  ;;  %v793_v19 = vsel %vm6594_vm12, %v4911_v4, %v792_v10  ;;  %558 = vst [vmem:[#allocation2 + $0x28] sm:$0xf] %v557_v13  ;;  %v491_v47 = vor.u32 %v489_v21, %v488_v38  ;;  %v5752_v48 = vld [vmem:[%s7936_s1 + $0x200] ss:$8 sps:$4 sm:$0xff]   ;;  %v5762_v54 = vld [vmem:[%s7936_s1 + $0x2f4] ss:$8 sps:$4 sm:$0xff]  }
  0x92   : >> { %821 = vst [vmem:[#allocation3 + $0x74] sm:$0xf] %v793_v19  ;;  %v683_v56 = vrot.slane %v681_v40, 5  ;;  %v6792_v58 = vld [vmem:[%s6552_s17 + $0x18] sm:$0xf] }
  0x93   : >> { %2561 = vmatpush1.bf16.msra.mxu0 %v5734_v45  ;;  %v674_v45 = vrot.slane %v672_v36, 4  ;;  %v563_v57 = vsel %vm6575_vm10, %v491_v47, %v562_v27  ;;  %v565_v59 = vld [vmem:[#allocation2 + $0x34] sm:$0x1]  ;;  %v5775_v60 = vld [vmem:[%s7936_s1 + $0x3e4] ss:$8 sps:$4 sm:$0xff]   ;;  %v494_v21 = vshrl.u32 %v6792_v58, 16 }
  0x94   : >> { %2634 = vmatpush1.bf16.msra.mxu1 %v5737_v22  ;;  %2562 = vmatprep.subr.bf16.mxu0 %v5742_v51  ;;  %v5746_v22 = vld [vmem:[%s7936_s1 + $0x210] ss:$8 sps:$4 sm:$0xff]   ;;  %v4912_v51 = vrot.slane %v751_v41, 9  ;;  %v607_v0 = vld [vmem:[#allocation2 + $0x2c] sm:$0x1]  ;;  %v566_v2 = vsel %vm6587_vm11, %v492_v50, %v565_v59 }
  0x95   : >> { %2635 = vmatprep.subr.bf16.mxu1 %v5745_v42  ;;  %v752_v42 = vld [vmem:[#allocation2 + $0x24] sm:$0x1]  ;;  %564 = vst [vmem:[#allocation2 + $0x30] sm:$0xf] %v563_v57  ;;  %v695_v6 = vshll.u32 %v607_v0, 16  ;;  %v496_v30 = vrot.slane %v494_v21, 7 }
  0x96   : >> { %567 = vst [vmem:[#allocation2 + $0x34] sm:$0x1] %v566_v2  ;;  %v5767_v8 = vld [vmem:[#allocation3 + $0x54] ss:$36 sps:$4 sm:$0xff]   ;;  %v5760_v12 = vld [vmem:[%s7936_s1 + $0x2f0] ss:$8 sps:$4 sm:$0xff]  }
  0x97   : >> { %2563 = vmatpush1.bf16.msra.mxu0 %v5740_v7  ;;  %v5773_v10 = vld [vmem:[%s7936_s1 + $0x3e0] ss:$8 sps:$4 sm:$0xff]   ;;  %v5772_v18 = vld [vmem:[%s7936_s1 + $0x2e4] ss:$8 sps:$4 sm:$0xff]   ;;  %v5766_v24 = vld [vmem:[#allocation3 + $0x48] ss:$36 sps:$4 sm:$0xff]   ;;  %2521 = vmatprep.mubr.bf16.mxu1 %v5767_v8 }
  0x98   : >> { %2636 = vmatpush1.bf16.msra.mxu1 %v5743_v46  ;;  %2564 = vmatprep.subr.bf16.mxu0 %v5748_v16  ;;  %v677_v46 = vrot.slane %v675_v37, 5  ;;  %v585_v62 = vld [vmem:[#allocation2 + $0x28] sm:$0xf]  ;;  %v5783_v16 = vld [vmem:[%s7936_s1 + $0x3d4] ss:$8 sps:$4 sm:$0xff]   ;;  %v697_v26 = vrot.slane %v695_v6, 5 }
  0x99   : >> { %2637 = vmatprep.subr.bf16.mxu1 %v5751_v53  ;;  %v796_v53 = vrot.slane %v752_v42, 5  ;;  %v606_v63 = vld [vmem:[#allocation2 + $0x28] sm:$0xf]  ;;  %593 = vst [vmem:[#allocation3 + $0xb4] sm:$0xf] %v585_v62  ;;  %v500_v43 = vrot.slane %v496_v30, 4 }
  0x9a   : >> { %v678_v55 = vor.u32 %v677_v46, %v674_v45  ;;  %v686_v4 = vshrl.u32 %v606_v63, 16  ;;  %v689_v5 = vshll.u32 %v606_v63, 16  ;;  %v753_v7 = vld [vmem:[#allocation2 + $0x28] sm:$0xe]  ;;  %v5769_v9 = vld [vmem:[#allocation3 + $0x50] ss:$36 sps:$4 sm:$0xff]  }
  0x9b   : >> { %2565 = vmatpush1.bf16.msra.mxu0 %v5746_v22  ;;  %v797_v1 = vsel %vm6594_vm12, %v4912_v51, %v796_v53  ;;  %v830_v20 = vld [vmem:[#allocation2 + $0x28] sm:$0xf]  ;;  %v497_v22 = vshll.u32 %v6792_v58, 16  ;;  %2522 = vmatmul.mubr.bf16.gmra.mxu1 %v5769_v9  ;;  %v5781_v27 = vld [vmem:[%s7936_s1 + $0x3d0] ss:$8 sps:$4 sm:$0xff]  }
  0x9c   : >> { %2638 = vmatpush1.bf16.msra.mxu1 %v5749_v11  ;;  %2566 = vmatprep.subr.bf16.mxu0 %v5754_v28  ;;  %v679_v3 = vrot.slane %v678_v55, 4  ;;  %822 = vst [vmem:[#allocation3 + $0x98] sm:$0xf] %v797_v1  ;;  %v4913_v11 = vrot.slane %v753_v7, 9  ;;  %v688_v14 = vrot.slane %v686_v4, 4  ;;  %v691_v15 = vrot.slane %v689_v5, 5 }
  0x9d   : >> { %2639 = vmatprep.subr.bf16.mxu1 %v5757_v17  ;;  %v754_v17 = vld [vmem:[#allocation2 + $0x2c] sm:$0x1]  ;;  %838 = vst [vmem:[#allocation3 + $0x9c] sm:$0xf] %v830_v20  ;;  %v568_v31 = vld [vmem:[#allocation2 + $0x38] sm:$0xf]  ;;  %v499_v42 = vor.u32 %v497_v22, %v496_v30 }
  0x9e   : >> { %v684_v13 = vsel %vm6613_vm13, %v679_v3, %v683_v56  ;;  %v800_v19 = vrot.slane %v754_v17, 5  ;;  %v692_v25 = vor.u32 %v691_v15, %v688_v14  ;;  %v571_v36 = vld [vmem:[#allocation2 + $0x3c] sm:$0x1]  ;;  %v5770_v37 = vld [vmem:[%s7936_s1 + $0x2e0] ss:$8 sps:$4 sm:$0xff]  }
  0x9f   : >> { %2567 = vmatpush1.bf16.msra.mxu0 %v5752_v48  ;;  %739 = vst [vmem:[#allocation3 + $0x94] sm:$0xf] %v684_v13  ;;  %v831_v40 = vld [vmem:[#allocation2 + $0x30] sm:$0xf]  ;;  %v609_v45 = vld [vmem:[#allocation2 + $0x34] sm:$0x1]  ;;  %v569_v53 = vsel %vm6575_vm10, %v499_v42, %v568_v31 }
  0xa0   : >> { %2640 = vmatpush1.bf16.msra.mxu1 %v5755_v23  ;;  %v5758_v23 = vld [vmem:[#allocation3 + $0x4c] ss:$36 sps:$4 sm:$0xff]   ;;  %2568 = vmatprep.subr.bf16.mxu0 %v5762_v54  ;;  %v801_v28 = vsel %vm6594_vm12, %v4913_v11, %v800_v19  ;;  %v693_v38 = vrot.slane %v692_v25, 4  ;;  %v586_v41 = vld [vmem:[#allocation2 + $0x30] sm:$0xf]  ;;  %v709_v50 = vshll.u32 %v609_v45, 16  ;;  %v572_v54 = vsel %vm6587_vm11, %v500_v43, %v571_v36 }
  0xa1   : >> { %2641 = vmatprep.subr.bf16.mxu1 %v5765_v44  ;;  %2448 = vmatprep.mubr.bf16.mxu0 %v5758_v23  ;;  %823 = vst [vmem:[#allocation3 + $0xbc] sm:$0xf] %v801_v28  ;;  %839 = vst [vmem:[#allocation3 + $0xc0] sm:$0xf] %v831_v40  ;;  %v608_v44 = vld [vmem:[#allocation2 + $0x30] sm:$0xf] }
  0xa2   : >> { %2449 = vmatmul.mubr.bf16.gmra.mxu0 %v5766_v24  ;;  %594 = vst [vmem:[#allocation3 + $0xd8] sm:$0xf] %v586_v41  ;;  %v698_v46 = vsel %vm6613_vm13, %v693_v38, %v697_v26  ;;  %v5793_v47 = vld [vmem:[%s7936_s1 + $0x3c4] ss:$8 sps:$4 sm:$0xff]   ;;  %v700_v48 = vshrl.u32 %v608_v44, 16  ;;  %v711_v1 = vrot.slane %v709_v50, 5 }
  0xa3   : >> { %2569 = vmatpush2.bf16.msra.mxu0 %v5760_v12  ;;  %740 = vst [vmem:[#allocation3 + $0xb8] sm:$0xf] %v698_v46  ;;  %v5780_v51 = vld [vmem:[%s7936_s1 + $0x2d4] ss:$8 sps:$4 sm:$0xff]   ;;  %v5778_v55 = vld [vmem:[%s7936_s1 + $0x2d0] ss:$8 sps:$4 sm:$0xff]  }
  0xa4   : >> { %2642 = vmatpush2.bf16.msra.mxu1 %v5763_v49  ;;  %v703_v49 = vshll.u32 %v608_v44, 16  ;;  %2570 = vmatprep.subr.bf16.mxu0 %v5772_v18  ;;  %570 = vst [vmem:[#allocation2 + $0x38] sm:$0xf] %v569_v53  ;;  %573 = vst [vmem:[#allocation2 + $0x3c] sm:$0x1] %v572_v54  ;;  %v702_v56 = vrot.slane %v700_v48, 4 }
  0xa5   : >> { %2643 = vmatprep.subr.bf16.mxu1 %v5775_v60  ;;  %v444_v58 = vld [vmem:[%s6552_s17 + $0x1c] sm:$0xf]  ;;  %v5790_v59 = vld [vmem:[%s7936_s1 + $0x2c4] ss:$8 sps:$4 sm:$0xff]   ;;  %v5791_v60 = vld [vmem:[%s7936_s1 + $0x3c0] ss:$8 sps:$4 sm:$0xff]   ;;  %s6022_s17 = spop.drf (!%p5125_p11), %6021 }
  0xa6   : >> { %v705_v57 = vrot.slane %v703_v49, 5  ;;  %v502_v62 = vshrl.u32 %v444_v58, 16  ;;  %v505_v63 = vshll.u32 %v444_v58, 16  ;;  %v5801_v2 = vld [vmem:[%s7936_s1 + $0x3b4] ss:$8 sps:$4 sm:$0xff]   ;;  %s2870_s29 = ssub.s32 (!%p5125_p11), 0, %s6022_s17 }
  0xa7   : >> { %2571 = vmatpush2.bf16.msra.mxu0 %v5770_v37  ;;  %v755_v3 = vld [vmem:[#allocation2 + $0x30] sm:$0xe]  ;;  %v756_v4 = vld [vmem:[#allocation2 + $0x34] sm:$0x1]  ;;  %v574_v6 = vld [vmem:[#allocation2 + $0x40] sm:$0xf] }
  0xa8   : >> { %2644 = vmatpush2.bf16.msra.mxu1 %v5773_v10  ;;  %v706_v0 = vor.u32 %v705_v57, %v702_v56  ;;  %2572 = vmatprep.subr.bf16.mxu0 %v5780_v51  ;;  %v6850_v5 = vrot.slane %v502_v62, 7  ;;  %v4914_v7 = vrot.slane %v755_v3, 9  ;;  %v804_v8 = vrot.slane %v756_v4, 5  ;;  %v5785_v9 = vld [vmem:[#allocation3 + $0x9c] ss:$36 sps:$4 sm:$0xff]  }
  0xa9   : >> { %2645 = vmatprep.subr.bf16.mxu1 %v5783_v16  ;;  %v5787_v10 = vld [vmem:[#allocation3 + $0x98] ss:$36 sps:$4 sm:$0xff]   ;;  %v5798_v13 = vld [vmem:[%s7936_s1 + $0x2b4] ss:$8 sps:$4 sm:$0xff]   ;;  %v5799_v14 = vld [vmem:[%s7936_s1 + $0x3b0] ss:$8 sps:$4 sm:$0xff]   ;;  %2531 = vmatprep.mubr.bf16.mxu1 %v5785_v9 }
  0xaa   : >> { %v5788_v11 = vld [vmem:[%s7936_s1 + $0x2c0] ss:$8 sps:$4 sm:$0xff]   ;;  %v707_v12 = vrot.slane %v706_v0, 4  ;;  %v507_v15 = vor.u32 %v505_v63, %v6850_v5  ;;  %v805_v16 = vsel %vm6594_vm12, %v4914_v7, %v804_v8  ;;  %v5811_v17 = vld [vmem:[%s7936_s1 + $0x3a4] ss:$8 sps:$4 sm:$0xff]   ;;  %2532 = vmatmul.mubr.bf16.gmra.mxu1 %v5787_v10 }
  0xab   : >> { %v5776_v18 = vld [vmem:[#allocation3 + $0x94] ss:$36 sps:$4 sm:$0xff]   ;;  %2573 = vmatpush2.bf16.msra.mxu0 %v5778_v55  ;;  %824 = vst [vmem:[#allocation3 + $0xe0] sm:$0xf] %v805_v16  ;;  %v587_v21 = vld [vmem:[#allocation2 + $0x38] sm:$0xf] }
  0xac   : >> { %2646 = vmatpush2.bf16.msra.mxu1 %v5781_v27  ;;  %v5784_v19 = vld [vmem:[#allocation3 + $0x90] ss:$36 sps:$4 sm:$0xff]   ;;  %v712_v20 = vsel %vm6613_vm13, %v707_v12, %v711_v1  ;;  %2574 = vmatprep.subr.bf16.mxu0 %v5790_v59  ;;  %v610_v22 = vld [vmem:[#allocation2 + $0x38] sm:$0xf]  ;;  %v611_v23 = vld [vmem:[#allocation2 + $0x3c] sm:$0x1]  ;;  %v575_v24 = vsel %vm6575_vm10, %v507_v15, %v574_v6 }
  0xad   : >> { %2647 = vmatprep.subr.bf16.mxu1 %v5793_v47  ;;  %741 = vst [vmem:[#allocation3 + $0xdc] sm:$0xf] %v712_v20  ;;  %v5809_v25 = vld [vmem:[%s7936_s1 + $0x3a0] ss:$8 sps:$4 sm:$0xff]   ;;  %2458 = vmatprep.mubr.bf16.mxu0 %v5776_v18  ;;  %595 = vst [vmem:[#allocation3 + $0xfc] sm:$0xf] %v587_v21 }
  0xae   : >> { %v714_v26 = vshrl.u32 %v610_v22, 16  ;;  %v717_v27 = vshll.u32 %v610_v22, 16  ;;  %v723_v28 = vshll.u32 %v611_v23, 16  ;;  %576 = vst [vmem:[#allocation2 + $0x40] sm:$0xf] %v575_v24  ;;  %2459 = vmatmul.mubr.bf16.gmra.mxu0 %v5784_v19 }
  0xaf   : >> { %v757_v30 = vld [vmem:[#allocation2 + $0x38] sm:$0xe]  ;;  %v758_v31 = vld [vmem:[#allocation2 + $0x3c] sm:$0x1]  ;;  %2575 = vmatpush2.bf16.msra.mxu0 %v5788_v11  ;;  %v5808_v42 = vld [vmem:[%s7936_s1 + $0x2a4] ss:$8 sps:$4 sm:$0xff]  }
  0xb0   : >> { %2648 = vmatpush2.bf16.msra.mxu1 %v5791_v60  ;;  %v4915_v36 = vrot.slane %v757_v30, 9  ;;  %v832_v37 = vld [vmem:[#allocation2 + $0x38] sm:$0xf]  ;;  %v716_v29 = vrot.slane %v714_v26, 4  ;;  %v719_v38 = vrot.slane %v717_v27, 5  ;;  %v808_v41 = vrot.slane %v758_v31, 5  ;;  %2576 = vmatprep.subr.bf16.mxu0 %v5798_v13 }
  0xb1   : >> { %2649 = vmatprep.subr.bf16.mxu1 %v5801_v2  ;;  %v5796_v40 = vld [vmem:[%s7936_s1 + $0x2b0] ss:$8 sps:$4 sm:$0xff]   ;;  %840 = vst [vmem:[#allocation3 + $0xe4] sm:$0xf] %v832_v37  ;;  %v5817_v43 = vld [vmem:[%s7936_s1 + $0x394] ss:$8 sps:$4 sm:$0xff]  }
  0xb2   : >> { %v720_v44 = vor.u32 %v719_v38, %v716_v29  ;;  %v725_v45 = vrot.slane %v723_v28, 5  ;;  %v809_v46 = vsel %vm6594_vm12, %v4915_v36, %v808_v41  ;;  %v5806_v47 = vld [vmem:[%s7936_s1 + $0x2a0] ss:$8 sps:$4 sm:$0xff]   ;;  %v5815_v48 = vld [vmem:[%s7936_s1 + $0x390] ss:$8 sps:$4 sm:$0xff]  }
  0xb3   : >> { %825 = vst [vmem:[#allocation3 + $0x104] sm:$0xf] %v809_v46  ;;  %2577 = vmatpush2.bf16.msra.mxu0 %v5796_v40  ;;  %v5814_v50 = vld [vmem:[%s7936_s1 + $0x294] ss:$8 sps:$4 sm:$0xff]   ;;  %v5823_v51 = vld [vmem:[%s7936_s1 + $0x384] ss:$8 sps:$4 sm:$0xff]  }
  0xb4   : >> { %2650 = vmatpush2.bf16.msra.mxu1 %v5799_v14  ;;  %v721_v49 = vrot.slane %v720_v44, 4  ;;  %2578 = vmatprep.subr.bf16.mxu0 %v5808_v42  ;;  %v5821_v54 = vld [vmem:[%s7936_s1 + $0x380] ss:$8 sps:$4 sm:$0xff]   ;;  %v843_v56 = vld [vmem:[#allocation2 + $0xc] sm:$0x1] }
  0xb5   : >> { %2651 = vmatprep.subr.bf16.mxu1 %v5811_v17  ;;  %v833_v53 = vld [vmem:[#allocation2 + $0x40] sm:$0xf]  ;;  %v842_v55 = vld [vmem:[#allocation2 + $0x8] sm:$0xf]  ;;  %v5812_v58 = vld [vmem:[%s7936_s1 + $0x290] ss:$8 sps:$4 sm:$0xff]  }
  0xb6   : >> { %v726_v57 = vsel %vm6613_vm13, %v721_v49, %v725_v45  ;;  %841 = vst [vmem:[#allocation3 + $0x108] sm:$0xf] %v833_v53  ;;  %v844_v59 = vld [vmem:[#allocation2 + $0x10] sm:$0xf]  ;;  %v845_v60 = vld [vmem:[#allocation2 + $0x14] sm:$0x1] }
  0xb7   : >> { %v859_v62 = vshrl.u32 %v842_v55, 16  ;;  %v862_v63 = vshll.u32 %v842_v55, 16  ;;  %742 = vst [vmem:[#allocation3 + $0x100] sm:$0xf] %v726_v57  ;;  %v5820_v0 = vld [vmem:[%s7936_s1 + $0x284] ss:$8 sps:$4 sm:$0xff]   ;;  %2579 = vmatpush2.bf16.msra.mxu0 %v5806_v47 }
  0xb8   : >> { %2652 = vmatpush2.bf16.msra.mxu1 %v5809_v25  ;;  %v868_v1 = vshll.u32 %v843_v56, 16  ;;  %v873_v2 = vshrl.u32 %v844_v59, 16  ;;  %v876_v3 = vshll.u32 %v844_v59, 16  ;;  %v882_v4 = vshll.u32 %v845_v60, 16  ;;  %v986_v8 = vld [vmem:[#allocation2 + $0x8] sm:$0xe]  ;;  %2580 = vmatprep.subr.bf16.mxu0 %v5814_v50 }
  0xb9   : >> { %2653 = vmatprep.subr.bf16.mxu1 %v5817_v43  ;;  %v861_v6 = vrot.slane %v859_v62, 4  ;;  %v864_v7 = vrot.slane %v862_v63, 5  ;;  %v987_v9 = vld [vmem:[#allocation2 + $0xc] sm:$0x1]  ;;  %v988_v14 = vld [vmem:[#allocation2 + $0x10] sm:$0xe] }
  0xba   : >> { %v870_v10 = vrot.slane %v868_v1, 5  ;;  %v875_v11 = vrot.slane %v873_v2, 4  ;;  %v878_v12 = vrot.slane %v876_v3, 5  ;;  %v884_v13 = vrot.slane %v882_v4, 5  ;;  %v989_v16 = vld [vmem:[#allocation2 + $0x14] sm:$0x1] }
  0xbb   : >> { %v865_v15 = vor.u32 %v864_v7, %v861_v6  ;;  %v4916_v17 = vrot.slane %v986_v8, 9  ;;  %v1020_v18 = vrot.slane %v987_v9, 5  ;;  %v4917_v19 = vrot.slane %v988_v14, 9  ;;  %v1067_v22 = vld [vmem:[#allocation2 + $0x10] sm:$0xf]  ;;  %2581 = vmatpush2.bf16.msra.mxu0 %v5812_v58 }
  0xbc   : >> { %2654 = vmatpush2.bf16.msra.mxu1 %v5815_v48  ;;  %v879_v20 = vor.u32 %v878_v12, %v875_v11  ;;  %v1024_v21 = vrot.slane %v989_v16, 5  ;;  %v1068_v23 = vld [vmem:[#allocation2 + $0x18] sm:$0xf]  ;;  %v5818_v24 = vld [vmem:[%s7936_s1 + $0x280] ss:$8 sps:$4 sm:$0xff]   ;;  %2582 = vmatprep.subr.bf16.mxu0 %v5820_v0 }
  0xbd   : >> { %2655 = vmatprep.subr.bf16.mxu1 %v5823_v51  ;;  %v866_v25 = vrot.slane %v865_v15, 4  ;;  %v1021_v26 = vsel %vm6594_vm12, %v4916_v17, %v1020_v18  ;;  %1075 = vst [vmem:[#allocation3 + $0x18] sm:$0xf] %v1067_v22  ;;  %1076 = vst [vmem:[#allocation3 + $0x3c] sm:$0xf] %v1068_v23  ;;  %v508_v51 = vrot.slane %v6850_v5, 4 }
  0xbe   : >> { %v1083_v27 = vld [vmem:[#allocation2 + $0x10] sm:$0xf]  ;;  %v1084_v28 = vld [vmem:[#allocation2 + $0x14] sm:$0x1]  ;;  %v880_v36 = vrot.slane %v879_v20, 4  ;;  %v1025_v37 = vsel %vm6594_vm12, %v4917_v19, %v1024_v21 }
  0xbf   : >> { %v5803_v30 = vld [vmem:[#allocation3 + $0xe4] ss:$36 sps:$4 sm:$0xff]   ;;  %1058 = vst [vmem:[#allocation3 + $0x14] sm:$0xf] %v1021_v26  ;;  %v5794_v29 = vld [vmem:[#allocation3 + $0xdc] ss:$36 sps:$4 sm:$0xff]   ;;  %v871_v40 = vsel %vm6613_vm13, %v866_v25, %v870_v10  ;;  %2583 = vmatpush2.bf16.msra.mxu0 %v5818_v24 }
  0xc0   : >> { %2656 = vmatpush2.bf16.msra.mxu1 %v5821_v54  ;;  %v5805_v31 = vld [vmem:[#allocation3 + $0xe0] ss:$36 sps:$4 sm:$0xff]   ;;  %v5802_v38 = vld [vmem:[#allocation3 + $0xd8] ss:$36 sps:$4 sm:$0xff]   ;;  %1059 = vst [vmem:[#allocation3 + $0x38] sm:$0xf] %v1025_v37  ;;  %2541 = vmatprep.mubr.bf16.mxu1 %v5803_v30  ;;  %v885_v42 = vsel %vm6613_vm13, %v880_v36, %v884_v13 }
  0xc1   : >> { %v1100_v41 = vshrl.u32 %v1083_v27, 16  ;;  %978 = vst [vmem:[#allocation3 + $0x10] sm:$0xf] %v871_v40  ;;  %v1085_v43 = vld [vmem:[#allocation2 + $0x18] sm:$0xf]  ;;  %v1103_v45 = vshll.u32 %v1083_v27, 16  ;;  %2468 = vmatprep.mubr.bf16.mxu0 %v5794_v29  ;;  %2542 = vmatmul.mubr.bf16.gmra.mxu1 %v5805_v31 }
  0xc2   : >> { %v1086_v44 = vld [vmem:[#allocation2 + $0x1c] sm:$0x1]  ;;  %v1109_v46 = vshll.u32 %v1084_v28, 16  ;;  %979 = vst [vmem:[#allocation3 + $0x34] sm:$0xf] %v885_v42  ;;  %v1114_v48 = vshrl.u32 %v1085_v43, 16  ;;  %2469 = vmatmul.mubr.bf16.gmra.mxu0 %v5802_v38 }
  0xc3   : >> { %v1102_v47 = vrot.slane %v1100_v41, 4  ;;  %v1117_v49 = vshll.u32 %v1085_v43, 16  ;;  %v1123_v50 = vshll.u32 %v1086_v44, 16  ;;  %v1105_v53 = vrot.slane %v1103_v45, 5  ;;  %v5832_v54 = vld [vmem:[%s7936_s1 + $0x474] ss:$8 sps:$4 sm:$0xff]  }
  0xc4   : >> { %v1111_v55 = vrot.slane %v1109_v46, 5  ;;  %v1116_v56 = vrot.slane %v1114_v48, 4  ;;  %2698 = vmatprep.subr.bf16.mxu0 %v5832_v54  ;;  %5508 = vmatprep.subr.bf16.mxu1 %v5832_v54  ;;  %v846_v60 = vld [vmem:[#allocation2 + $0x18] sm:$0xf]  ;;  %v847_v62 = vld [vmem:[#allocation2 + $0x1c] sm:$0x1] }
  0xc5   : >> { %v1119_v57 = vrot.slane %v1117_v49, 5  ;;  %v1125_v58 = vrot.slane %v1123_v50, 5  ;;  %v1106_v59 = vor.u32 %v1105_v53, %v1102_v47  ;;  %v848_v63 = vld [vmem:[#allocation2 + $0x20] sm:$0xf]  ;;  %v849_v1 = vld [vmem:[#allocation2 + $0x24] sm:$0x1] }
  0xc6   : >> { %v887_v2 = vshrl.u32 %v846_v60, 16  ;;  %v890_v3 = vshll.u32 %v846_v60, 16  ;;  %v896_v4 = vshll.u32 %v847_v62, 16  ;;  %v6926_v7 = vld [vmem:[%s7936_s1 + $0x470] ss:$8 sps:$4 sm:$0xff]   ;;  %v901_v8 = vshrl.u32 %v848_v63, 16 }
  0xc7   : >> { %v1120_v0 = vor.u32 %v1119_v57, %v1116_v56  ;;  %v1107_v6 = vrot.slane %v1106_v59, 4  ;;  %v904_v9 = vshll.u32 %v848_v63, 16  ;;  %v910_v10 = vshll.u32 %v849_v1, 16  ;;  %v990_v11 = vld [vmem:[#allocation2 + $0x18] sm:$0xe] }
  0xc8   : >> { %v6931_v13 = vld [vmem:[%s7936_s1 + $0x464] ss:$8 sps:$4 sm:$0xff]   ;;  %v889_v14 = vrot.slane %v887_v2, 4  ;;  %v892_v15 = vrot.slane %v890_v3, 5  ;;  %v898_v16 = vrot.slane %v896_v4, 5  ;;  %v903_v20 = vrot.slane %v901_v8, 4 }
  0xc9   : >> { %v1121_v12 = vrot.slane %v1120_v0, 4  ;;  %v5824_v17 = vld [vmem:[#allocation3 + $0x10] ss:$36 sps:$4 sm:$0xff]   ;;  %v1112_v19 = vsel %vm6613_vm13, %v1107_v6, %v1111_v55  ;;  %v906_v23 = vrot.slane %v904_v9, 5  ;;  %v912_v24 = vrot.slane %v910_v10, 5 }
  0xca   : >> { %v5826_v18 = vld [vmem:[#allocation3 + $0x14] ss:$36 sps:$4 sm:$0xff]   ;;  %1219 = vst [vmem:[#allocation3 + $0x1c] sm:$0xf] %v1112_v19  ;;  %v893_v22 = vor.u32 %v892_v15, %v889_v14  ;;  %v991_v25 = vld [vmem:[#allocation2 + $0x1c] sm:$0x1] }
  0xcb   : >> { %v1126_v21 = vsel %vm6613_vm13, %v1121_v12, %v1125_v58  ;;  %v992_v26 = vld [vmem:[#allocation2 + $0x20] sm:$0xe]  ;;  %2584 = vmatprep.mubr.bf16.mxu0 %v5826_v18  ;;  %v993_v28 = vld [vmem:[#allocation2 + $0x24] sm:$0x1]  ;;  %v4918_v30 = vrot.slane %v990_v11, 9  ;;  %v1028_v31 = vrot.slane %v991_v25, 5  ;;  %v907_v29 = vor.u32 %v906_v23, %v903_v20 }
  0xcc   : >> { %1220 = vst [vmem:[#allocation3 + $0x40] sm:$0xf] %v1126_v21  ;;  %v6940_v27 = vld [vmem:[%s7936_s1 + $0x460] ss:$8 sps:$4 sm:$0xff]   ;;  %v4919_v36 = vrot.slane %v992_v26, 9  ;;  %2585 = vmatmul.mubr.bf16.vlgmr.msra.gmra.mxu0 %v5824_v17  ;;  %v894_v37 = vrot.slane %v893_v22, 4 }
  0xcd   : >> { %v1032_v38 = vrot.slane %v993_v28, 5  ;;  %v1069_v40 = vld [vmem:[#allocation2 + $0x20] sm:$0xf]  ;;  %v1070_v41 = vld [vmem:[#allocation2 + $0x28] sm:$0xf]  ;;  %2699 = vmatpush1.bf16.msra.mxu0 %v6926_v7  ;;  %v1029_v42 = vsel %vm6594_vm12, %v4918_v30, %v1028_v31  ;;  %v908_v47 = vrot.slane %v907_v29, 4 }
  0xce   : >> { %1077 = vst [vmem:[#allocation3 + $0x60] sm:$0xf] %v1069_v40  ;;  %1078 = vst [vmem:[#allocation3 + $0x84] sm:$0xf] %v1070_v41  ;;  %v1087_v43 = vld [vmem:[#allocation2 + $0x20] sm:$0xf]  ;;  %2700 = vmatprep.subr.bf16.mxu0 %v6931_v13  ;;  %v899_v46 = vsel %vm6613_vm13, %v894_v37, %v898_v16 }
  0xcf   : >> { %v1088_v44 = vld [vmem:[#allocation2 + $0x24] sm:$0x1]  ;;  %v1089_v45 = vld [vmem:[#allocation2 + $0x28] sm:$0xf]  ;;  %v1033_v48 = vsel %vm6594_vm12, %v4919_v36, %v1032_v38  ;;  %1060 = vst [vmem:[#allocation3 + $0x5c] sm:$0xf] %v1029_v42  ;;  %v913_v58 = vsel %vm6613_vm13, %v908_v47, %v912_v24 }
  0xd0   : >> { %v1090_v49 = vld [vmem:[#allocation2 + $0x2c] sm:$0x1]  ;;  %v1128_v50 = vshrl.u32 %v1087_v43, 16  ;;  %980 = vst [vmem:[#allocation3 + $0x58] sm:$0xf] %v899_v46  ;;  %v1131_v53 = vshll.u32 %v1087_v43, 16 }
  0xd1   : >> { %1061 = vst [vmem:[#allocation3 + $0x80] sm:$0xf] %v1033_v48  ;;  %v1137_v54 = vshll.u32 %v1088_v44, 16  ;;  %v1142_v55 = vshrl.u32 %v1089_v45, 16  ;;  %v1145_v56 = vshll.u32 %v1089_v45, 16  ;;  %v1151_v60 = vshll.u32 %v1090_v49, 16  ;;  %2701 = vmatpush1.bf16.msra.mxu0 %v6940_v27 }
  0xd2   : >> { %v6953_v57 = vld [vmem:[%s7936_s1 + $0x454] ss:$8 sps:$4 sm:$0xff]   ;;  %v1130_v59 = vrot.slane %v1128_v50, 4  ;;  %v6960_v62 = vld [vmem:[%s7936_s1 + $0x450] ss:$8 sps:$4 sm:$0xff]   ;;  %v1133_v0 = vrot.slane %v1131_v53, 5 }
  0xd3   : >> { %v6965_v63 = vld [vmem:[%s7936_s1 + $0x444] ss:$8 sps:$4 sm:$0xff]   ;;  %981 = vst [vmem:[#allocation3 + $0x7c] sm:$0xf] %v913_v58  ;;  %v1139_v1 = vrot.slane %v1137_v54, 5  ;;  %v1144_v2 = vrot.slane %v1142_v55, 4  ;;  %2702 = vmatprep.subr.bf16.mxu0 %v6953_v57 }
  0xd4   : >> { %v1147_v3 = vrot.slane %v1145_v56, 5  ;;  %v5827_v4 = vld [vmem:[#allocation3 + $0x18] ss:$36 sps:$4 sm:$0xff]   ;;  %v1153_v8 = vrot.slane %v1151_v60, 5  ;;  %v1134_v9 = vor.u32 %v1133_v0, %v1130_v59  ;;  %v852_v15 = vld [vmem:[#allocation2 + $0x30] sm:$0xf] }
  0xd5   : >> { %v5829_v6 = vld [vmem:[#allocation3 + $0x1c] ss:$36 sps:$4 sm:$0xff]   ;;  %v6972_v11 = vld [vmem:[%s7936_s1 + $0x440] ss:$8 sps:$4 sm:$0xff]   ;;  %v853_v16 = vld [vmem:[#allocation2 + $0x34] sm:$0x1]  ;;  %2703 = vmatpush1.bf16.msra.mxu0 %v6960_v62 }
  0xd6   : >> { %v1148_v10 = vor.u32 %v1147_v3, %v1144_v2  ;;  %v850_v12 = vld [vmem:[#allocation2 + $0x28] sm:$0xf]  ;;  %v851_v14 = vld [vmem:[#allocation2 + $0x2c] sm:$0x1]  ;;  %2657 = vmatprep.mubr.bf16.mxu1 %v5829_v6  ;;  %v929_v20 = vshrl.u32 %v852_v15, 16  ;;  %v1135_v21 = vrot.slane %v1134_v9, 4  ;;  %2704 = vmatprep.subr.bf16.mxu0 %v6965_v63 }
  0xd7   : >> { %v915_v17 = vshrl.u32 %v850_v12, 16  ;;  %v918_v18 = vshll.u32 %v850_v12, 16  ;;  %v924_v19 = vshll.u32 %v851_v14, 16  ;;  %2658 = vmatmul.mubr.bf16.vlgmr.msra.gmra.mxu1 %v5827_v4  ;;  %v932_v23 = vshll.u32 %v852_v15, 16  ;;  %v994_v25 = vld [vmem:[#allocation2 + $0x28] sm:$0xe] }
  0xd8   : >> { %v1149_v22 = vrot.slane %v1148_v10, 4  ;;  %v938_v24 = vshll.u32 %v853_v16, 16  ;;  %5516 = vmatpush1.bf16.msra.mxu1 %v6926_v7  ;;  %v1319_v26 = vld [vmem:[#allocation3 + $0x58] sm:$0xff]  ;;  %v931_v36 = vrot.slane %v929_v20, 4  ;;  %v1140_v37 = vsel %vm6613_vm13, %v1135_v21, %v1139_v1  ;;  %v996_v42 = vld [vmem:[#allocation2 + $0x30] sm:$0xe] }
  0xd9   : >> { %v917_v28 = vrot.slane %v915_v17, 4  ;;  %v920_v30 = vrot.slane %v918_v18, 5  ;;  %v926_v31 = vrot.slane %v924_v19, 5  ;;  %5509 = vmatprep.subr.bf16.mxu1 %v6931_v13  ;;  %v934_v38 = vrot.slane %v932_v23, 5  ;;  %v995_v41 = vld [vmem:[#allocation2 + $0x2c] sm:$0x1]  ;;  %2705 = vmatpush1.bf16.msra.mxu0 %v6972_v11 }
  0xda   : >> { %v1154_v29 = vsel %vm6613_vm13, %v1149_v22, %v1153_v8  ;;  %v940_v40 = vrot.slane %v938_v24, 5  ;;  %v1324_v7 = vld [vmem:[#allocation3 + $0x7c] sm:$0xff]  ;;  %1221 = vst [vmem:[#allocation3 + $0x64] sm:$0xf] %v1140_v37  ;;  %v997_v45 = vld [vmem:[#allocation2 + $0x34] sm:$0x1] }
  0xdb   : >> { %v5836_v43 = vld [vmem:[#allocation3 + $0x5c] ss:$36 sps:$4 sm:$0xff]   ;;  %1222 = vst [vmem:[#allocation3 + $0x88] sm:$0xf] %v1154_v29  ;;  %v921_v44 = vor.u32 %v920_v30, %v917_v28  ;;  %v4920_v46 = vrot.slane %v994_v25, 9  ;;  %v4945_v47 = vcombine.low %v1319_v26, %v1324_v7  ;;  %v935_v13 = vor.u32 %v934_v38, %v931_v36 }
  0xdc   : >> { %v1036_v48 = vrot.slane %v995_v41, 5  ;;  %v4921_v49 = vrot.slane %v996_v42, 9  ;;  %v1071_v50 = vld [vmem:[#allocation2 + $0x30] sm:$0xf]  ;;  %v1072_v53 = vld [vmem:[#allocation2 + $0x38] sm:$0xf]  ;;  %5517 = vmatpush1.bf16.msra.mxu1 %v6940_v27  ;;  %2594 = vmatprep.mubr.bf16.mxu0 %v5836_v43 }
  0xdd   : >> { %v922_v54 = vrot.slane %v921_v44, 4  ;;  %v1040_v55 = vrot.slane %v997_v45, 5  ;;  %1079 = vst [vmem:[#allocation3 + $0xa8] sm:$0xf] %v1071_v50  ;;  %1080 = vst [vmem:[#allocation3 + $0xcc] sm:$0xf] %v1072_v53  ;;  %2595 = vmatmul.mubr.bf16.gmra.mxu0 %v4945_v47  ;;  %5510 = vmatprep.subr.bf16.mxu1 %v6953_v57 }
  0xde   : >> { %v1091_v56 = vld [vmem:[#allocation2 + $0x30] sm:$0xf]  ;;  %v1092_v58 = vld [vmem:[#allocation2 + $0x34] sm:$0x1]  ;;  %v936_v59 = vrot.slane %v935_v13, 4  ;;  %v1037_v60 = vsel %vm6594_vm12, %v4920_v46, %v1036_v48 }
  0xdf   : >> { %v1093_v0 = vld [vmem:[#allocation2 + $0x38] sm:$0xf]  ;;  %v1094_v1 = vld [vmem:[#allocation2 + $0x3c] sm:$0x1]  ;;  %v1156_v2 = vshrl.u32 %v1091_v56, 16  ;;  %v927_v27 = vsel %vm6613_vm13, %v922_v54, %v926_v31  ;;  %v1041_v3 = vsel %vm6594_vm12, %v4921_v49, %v1040_v55  ;;  %v1159_v4 = vshll.u32 %v1091_v56, 16 }
  0xe0   : >> { %1062 = vst [vmem:[#allocation3 + $0xa4] sm:$0xf] %v1037_v60  ;;  %v1165_v6 = vshll.u32 %v1092_v58, 16  ;;  %v6994_v57 = vld [vmem:[%s7936_s1 + $0x430] ss:$8 sps:$4 sm:$0xff]   ;;  %v941_v9 = vsel %vm6613_vm13, %v936_v59, %v940_v40  ;;  %v1170_v12 = vshrl.u32 %v1093_v0, 16  ;;  %5518 = vmatpush1.bf16.msra.mxu1 %v6960_v62 }
  0xe1   : >> { %v5854_v8 = vld [vmem:[%s7936_s1 + $0x434] ss:$8 sps:$4 sm:$0xff]   ;;  %982 = vst [vmem:[#allocation3 + $0xa0] sm:$0xf] %v927_v27  ;;  %1063 = vst [vmem:[#allocation3 + $0xc8] sm:$0xf] %v1041_v3  ;;  %5511 = vmatprep.subr.bf16.mxu1 %v6965_v63 }
  0xe2   : >> { %v1158_v10 = vrot.slane %v1156_v2, 4  ;;  %v1173_v14 = vshll.u32 %v1093_v0, 16  ;;  %983 = vst [vmem:[#allocation3 + $0xc4] sm:$0xf] %v941_v9  ;;  %v1161_v15 = vrot.slane %v1159_v4, 5  ;;  %v1167_v16 = vrot.slane %v1165_v6, 5  ;;  %2706 = vmatprep.subr.bf16.mxu0 %v5854_v8 }
  0xe3   : >> { %v1179_v17 = vshll.u32 %v1094_v1, 16  ;;  %v7005_v18 = vld [vmem:[%s7936_s1 + $0x420] ss:$8 sps:$4 sm:$0xff]   ;;  %v5838_v19 = vld [vmem:[#allocation3 + $0x64] ss:$36 sps:$4 sm:$0xff]   ;;  %v1172_v20 = vrot.slane %v1170_v12, 4  ;;  %2707 = vmatpush1.bf16.msra.mxu0 %v6994_v57 }
  0xe4   : >> { %v1175_v21 = vrot.slane %v1173_v14, 5  ;;  %v5840_v22 = vld [vmem:[#allocation3 + $0x60] ss:$36 sps:$4 sm:$0xff]   ;;  %v1162_v23 = vor.u32 %v1161_v15, %v1158_v10  ;;  %v5857_v24 = vld [vmem:[%s7936_s1 + $0x424] ss:$8 sps:$4 sm:$0xff]   ;;  %2667 = vmatprep.mubr.bf16.mxu1 %v5838_v19  ;;  %5519 = vmatpush1.bf16.msra.mxu1 %v6972_v11 }
  0xe5   : >> { %v1181_v62 = vrot.slane %v1179_v17, 5  ;;  %v577_v26 = vld [vmem:[#allocation2 + $0x44] sm:$0x1]  ;;  %v854_v28 = vld [vmem:[#allocation2 + $0x38] sm:$0xf]  ;;  %2668 = vmatmul.mubr.bf16.gmra.mxu1 %v5840_v22  ;;  %2708 = vmatprep.subr.bf16.mxu0 %v5857_v24 }
  0xe6   : >> { %v1176_v25 = vor.u32 %v1175_v21, %v1172_v20  ;;  %v855_v30 = vld [vmem:[#allocation2 + $0x3c] sm:$0x1]  ;;  %v1163_v31 = vrot.slane %v1162_v23, 4  ;;  %v578_v63 = vsel %vm6587_vm11, %v508_v51, %v577_v26  ;;  %v856_v36 = vld [vmem:[#allocation2 + $0x40] sm:$0xf]  ;;  %v943_v37 = vshrl.u32 %v854_v28, 16  ;;  %5512 = vmatprep.subr.bf16.mxu1 %v5854_v8 }
  0xe7   : >> { %v946_v29 = vshll.u32 %v854_v28, 16  ;;  %2709 = vmatpush1.bf16.msra.mxu0 %v7005_v18  ;;  %579 = vst [vmem:[#allocation2 + $0x44] sm:$0x1] %v578_v63  ;;  %v952_v40 = vshll.u32 %v855_v30, 16  ;;  %v957_v41 = vshrl.u32 %v856_v36, 16  ;;  %v960_v42 = vshll.u32 %v856_v36, 16 }
  0xe8   : >> { %v1177_v38 = vrot.slane %v1176_v25, 4  ;;  %v998_v7 = vld [vmem:[#allocation2 + $0x38] sm:$0xe]  ;;  %v1329_v43 = vld [vmem:[#allocation3 + $0xa0] sm:$0xff]  ;;  %v1168_v5 = vsel %vm6613_vm13, %v1163_v31, %v1167_v16  ;;  %v945_v39 = vrot.slane %v943_v37, 4  ;;  %5520 = vmatpush1.bf16.msra.mxu1 %v6994_v57 }
  0xe9   : >> { %v948_v51 = vrot.slane %v946_v29, 5  ;;  %v999_v44 = vld [vmem:[#allocation2 + $0x3c] sm:$0x1]  ;;  %v4922_v45 = vrot.slane %v998_v7, 9  ;;  %v1334_v46 = vld [vmem:[#allocation3 + $0xc4] sm:$0xff]  ;;  %v959_v13 = vrot.slane %v957_v41, 4  ;;  %5513 = vmatprep.subr.bf16.mxu1 %v5857_v24 }
  0xea   : >> { %v5847_v47 = vld [vmem:[#allocation3 + $0xa4] ss:$36 sps:$4 sm:$0xff]   ;;  %v1182_v11 = vsel %vm6613_vm13, %v1177_v38, %v1181_v62  ;;  %1223 = vst [vmem:[#allocation3 + $0xac] sm:$0xf] %v1168_v5  ;;  %v962_v48 = vrot.slane %v960_v42, 5  ;;  %v4954_v49 = vcombine.low %v1329_v43, %v1334_v46  ;;  %v954_v53 = vrot.slane %v952_v40, 5 }
  0xeb   : >> { %1224 = vst [vmem:[#allocation3 + $0xd0] sm:$0xf] %v1182_v11  ;;  %v949_v50 = vor.u32 %v948_v51, %v945_v39  ;;  %v1000_v54 = vld [vmem:[#allocation2 + $0x40] sm:$0xe]  ;;  %v1044_v55 = vrot.slane %v999_v44, 5  ;;  %2604 = vmatprep.mubr.bf16.mxu0 %v5847_v47 }
  0xec   : >> { %v1073_v56 = vld [vmem:[#allocation2 + $0x40] sm:$0xf]  ;;  %v963_v58 = vor.u32 %v962_v48, %v959_v13  ;;  %v4923_v59 = vrot.slane %v1000_v54, 9  ;;  %v1074_v60 = vld [vmem:[#allocation2 + $0x48] sm:$0xf]  ;;  %2605 = vmatmul.mubr.bf16.gmra.mxu0 %v4954_v49  ;;  %5521 = vmatpush1.bf16.msra.mxu1 %v7005_v18 }
  0xed   : >> { %1081 = vst [vmem:[#allocation3 + $0xf0] sm:$0xf] %v1073_v56  ;;  %v1095_v0 = vld [vmem:[#allocation2 + $0x40] sm:$0xf]  ;;  %v950_v1 = vrot.slane %v949_v50, 4  ;;  %v1045_v2 = vsel %vm6594_vm12, %v4922_v45, %v1044_v55 }
  0xee   : >> { %1082 = vst [vmem:[#allocation3 + $0x114] sm:$0xf] %v1074_v60  ;;  %v1097_v27 = vld [vmem:[#allocation2 + $0x48] sm:$0xf]  ;;  %v1098_v3 = vld [vmem:[#allocation2 + $0x4c] sm:$0x1] }
  0xef   : >> { %v1184_v4 = vshrl.u32 %v1095_v0, 16  ;;  %v964_v6 = vrot.slane %v963_v58, 4  ;;  %1064 = vst [vmem:[#allocation3 + $0xec] sm:$0xf] %v1045_v2  ;;  %v1187_v8 = vshll.u32 %v1095_v0, 16  ;;  %v1198_v9 = vshrl.u32 %v1097_v27, 16 }
  0xf0   : >> { %v1201_v57 = vshll.u32 %v1097_v27, 16  ;;  %v5863_v10 = vld [vmem:[%s7936_s1 + $0x410] ss:$8 sps:$4 sm:$0xff]   ;;  %v857_v12 = vld [vmem:[#allocation2 + $0x44] sm:$0x1]  ;;  %v955_v14 = vsel %vm6613_vm13, %v950_v1, %v954_v53  ;;  %v1207_v25 = vshll.u32 %v1098_v3, 16 }
  0xf1   : >> { %v1001_v15 = vld [vmem:[#allocation2 + $0x44] sm:$0x1]  ;;  %v966_v17 = vshll.u32 %v857_v12, 16  ;;  %984 = vst [vmem:[#allocation3 + $0xe8] sm:$0xf] %v955_v14  ;;  %v1186_v20 = vrot.slane %v1184_v4, 4 }
  0xf2   : >> { %v1096_v16 = vld [vmem:[#allocation2 + $0x44] sm:$0x1]  ;;  %v1048_v19 = vrot.slane %v1001_v15, 5  ;;  %v1189_v21 = vrot.slane %v1187_v8, 5  ;;  %v5865_v22 = vld [vmem:[%s7936_s1 + $0x414] ss:$8 sps:$4 sm:$0xff]  }
  0xf3   : >> { %v1193_v23 = vshll.u32 %v1096_v16, 16  ;;  %v1200_v62 = vrot.slane %v1198_v9, 4  ;;  %v1203_v24 = vrot.slane %v1201_v57, 5  ;;  %v5849_v26 = vld [vmem:[#allocation3 + $0xac] ss:$36 sps:$4 sm:$0xff]   ;;  %v968_v30 = vrot.slane %v966_v17, 5  ;;  %2710 = vmatprep.subr.bf16.mxu0 %v5865_v22  ;;  %5514 = vmatprep.subr.bf16.mxu1 %v5865_v22 }
  0xf4   : >> { %v5851_v28 = vld [vmem:[#allocation3 + $0xa8] ss:$36 sps:$4 sm:$0xff]   ;;  %v1049_v31 = vsel %vm6594_vm12, %v4923_v59, %v1048_v19  ;;  %v1190_v18 = vor.u32 %v1189_v21, %v1186_v20  ;;  %v1209_v37 = vrot.slane %v1207_v25, 5  ;;  %2711 = vmatpush1.bf16.msra.mxu0 %v5863_v10  ;;  %v5866_v29 = vld [vmem:[%s7936_s1 + $0x400] ss:$8 sps:$4 sm:$0xff]   ;;  %2677 = vmatprep.mubr.bf16.mxu1 %v5849_v26 }
  0xf5   : >> { %1065 = vst [vmem:[#allocation3 + $0x110] sm:$0xf] %v1049_v31  ;;  %v1195_v63 = vrot.slane %v1193_v23, 5  ;;  %v1204_v36 = vor.u32 %v1203_v24, %v1200_v62  ;;  %v5868_v38 = vld [vmem:[%s7936_s1 + $0x404] ss:$8 sps:$4 sm:$0xff]   ;;  %v969_v40 = vsel %vm6613_vm13, %v964_v6, %v968_v30  ;;  %5522 = vmatpush1.bf16.msra.mxu1 %v5863_v10  ;;  %v6199_v30 = vmov 0  }
  0xf6   : >> { %v1191_v41 = vrot.slane %v1190_v18, 4  ;;  %v1227_v42 = vld [vmem:[#allocation2 + $0x10] sm:$0xe]  ;;  %v1228_v7 = vld [vmem:[#allocation2 + $0x14] sm:$0x1]  ;;  %2678 = vmatmul.mubr.bf16.gmra.mxu1 %v5851_v28  ;;  %2712 = vmatprep.subr.bf16.mxu0 %v5868_v38 }
  0xf7   : >> { %985 = vst [vmem:[#allocation3 + $0x10c] sm:$0xf] %v969_v40  ;;  %v1205_v43 = vrot.slane %v1204_v36, 4  ;;  %v1229_v5 = vld [vmem:[#allocation2 + $0x18] sm:$0xe]  ;;  %v4924_v51 = vrot.slane %v1227_v42, 9  ;;  %5515 = vmatprep.subr.bf16.mxu1 %v5868_v38 }
  0xf8   : >> { %v1230_v39 = vld [vmem:[#allocation2 + $0x1c] sm:$0x1]  ;;  %v1196_v44 = vsel %vm6613_vm13, %v1191_v41, %v1195_v63  ;;  %v1261_v45 = vrot.slane %v1228_v7, 5  ;;  %v4925_v46 = vrot.slane %v1229_v5, 9  ;;  %v1235_v11 = vld [vmem:[#allocation2 + $0x30] sm:$0xe]  ;;  %2713 = vmatpush1.bf16.msra.mxu0 %v5866_v29 }
  0xf9   : >> { %v1265_v47 = vrot.slane %v1230_v39, 5  ;;  %v1210_v13 = vsel %vm6613_vm13, %v1205_v43, %v1209_v37  ;;  %1225 = vst [vmem:[#allocation3 + $0xf4] sm:$0xf] %v1196_v44  ;;  %v1236_v48 = vld [vmem:[#allocation2 + $0x34] sm:$0x1]  ;;  %v4928_v50 = vrot.slane %v1235_v11, 9  ;;  %5523 = vmatpush1.bf16.msra.mxu1 %v5866_v29 }
  0xfa   : >> { %v1237_v49 = vld [vmem:[#allocation2 + $0x38] sm:$0xe]  ;;  %1226 = vst [vmem:[#allocation3 + $0x118] sm:$0xf] %v1210_v13  ;;  %v1262_v54 = vsel %vm6594_vm12, %v4924_v51, %v1261_v45  ;;  %v1238_v56 = vld [vmem:[#allocation2 + $0x3c] sm:$0x1] }
  0xfb   : >> { %v1339_v53 = vld [vmem:[#allocation3 + $0xe8] sm:$0xff]  ;;  %v1266_v55 = vsel %vm6594_vm12, %v4925_v46, %v1265_v47  ;;  %v1277_v58 = vrot.slane %v1236_v48, 5  ;;  %v4929_v59 = vrot.slane %v1237_v49, 9  ;;  %v1231_v60 = vld [vmem:[#allocation2 + $0x20] sm:$0xe]  ;;  %v1281_v61 = vrot.slane %v1238_v56, 5 }
  0xfc   : >> { %1299 = vst [vmem:[#allocation3 + $0x20] sm:$0xf] %v1262_v54  ;;  %1300 = vst [vmem:[#allocation3 + $0x44] sm:$0xf] %v1266_v55  ;;  %v1232_v0 = vld [vmem:[#allocation2 + $0x24] sm:$0x1] }
  0xfd   : >> { %v1233_v1 = vld [vmem:[#allocation2 + $0x28] sm:$0xe]  ;;  %v4926_v2 = vrot.slane %v1231_v60, 9  ;;  %v1278_v27 = vsel %vm6594_vm12, %v4928_v50, %v1277_v58  ;;  %v1234_v3 = vld [vmem:[#allocation2 + $0x2c] sm:$0x1]  ;;  %v1269_v4 = vrot.slane %v1232_v0, 5  ;;  %v1282_v9 = vsel %vm6594_vm12, %v4929_v59, %v1281_v61 }
  0xfe   : >> { %v4927_v6 = vrot.slane %v1233_v1, 9  ;;  %v1239_v8 = vld [vmem:[#allocation2 + $0x40] sm:$0xe]  ;;  %1303 = vst [vmem:[#allocation3 + $0xb0] sm:$0xf] %v1278_v27  ;;  %v1273_v57 = vrot.slane %v1234_v3, 5 }
  0xff   : >> { %v1240_v10 = vld [vmem:[#allocation2 + $0x44] sm:$0x1]  ;;  %v1241_v12 = vld [vmem:[#allocation2 + $0x48] sm:$0xe]  ;;  %v4930_v14 = vrot.slane %v1239_v8, 9  ;;  %v1344_v15 = vld [vmem:[#allocation3 + $0x10c] sm:$0xff]  ;;  %v1270_v17 = vsel %vm6594_vm12, %v4926_v2, %v1269_v4 }
 0x100   : >> { %v5858_v16 = vld [vmem:[#allocation3 + $0xec] ss:$36 sps:$4 sm:$0xff]   ;;  %1304 = vst [vmem:[#allocation3 + $0xd4] sm:$0xf] %v1282_v9  ;;  %v1242_v19 = vld [vmem:[#allocation2 + $0x4c] sm:$0x1]  ;;  %v4963_v21 = vcombine.low %v1339_v53, %v1344_v15  ;;  %v1274_v22 = vsel %vm6594_vm12, %v4927_v6, %v1273_v57 }
 0x101   : >> { %v1285_v20 = vrot.slane %v1240_v10, 5  ;;  %1301 = vst [vmem:[#allocation3 + $0x68] sm:$0xf] %v1270_v17  ;;  %v4931_v23 = vrot.slane %v1241_v12, 9  ;;  %v1289_v62 = vrot.slane %v1242_v19, 5  ;;  %2614 = vmatprep.mubr.bf16.mxu0 %v5858_v16 }
 0x102   : >> { %1302 = vst [vmem:[#allocation3 + $0x8c] sm:$0xf] %v1274_v22  ;;  %v5860_v25 = vld [vmem:[#allocation3 + $0xf4] ss:$36 sps:$4 sm:$0xff]   ;;  %2615 = vmatmul.mubr.bf16.gmra.mxu0 %v4963_v21 }
 0x103   : >> { %v1286_v24 = vsel %vm6594_vm12, %v4930_v14, %v1285_v20  ;;  %v5862_v26 = vld [vmem:[#allocation3 + $0xf0] ss:$36 sps:$4 sm:$0xff]   ;;  %v1290_v28 = vsel %vm6594_vm12, %v4931_v23, %v1289_v62  ;;  %2730 = vmatprep.mubr.bf16.mxu0 %v6199_v30  ;;  %2687 = vmatprep.mubr.bf16.mxu1 %v5860_v25  ;;  %v5869_v31 = vld [vmem:[#allocation3 + $0x20] ss:$36 sps:$4 sm:$0xff]   ;;  %v1492_v20 = vlaneseq }
 0x104   : >> { %1305 = vst [vmem:[#allocation3 + $0xf8] sm:$0xf] %v1286_v24  ;;  %1306 = vst [vmem:[#allocation3 + $0x11c] sm:$0xf] %v1290_v28  ;;  %2688 = vmatmul.mubr.bf16.gmra.mxu1 %v5862_v26 }
 0x105   : >> { %2750 = vmatprep.mubr.bf16.mxu1 %v6199_v30  ;;  %v1493_v23 = vshrl.u32 %v1492_v20, 7 }
 0x107   : >> { %v5870_v18 = vld [vmem:[#allocation3 + $0xb0] ss:$36 sps:$4 sm:$0xff]   ;;  %v7151_v25 = vsub.s32 0, %v1493_v23  ;;  %v7153_v26 = vsub.s32 1, %v1493_v23 }
 0x109   : >> { %v5871_v63 = vld [vmem:[#allocation3 + $0x68] ss:$36 sps:$4 sm:$0xff]   ;;  %7971 = vst [vmem:[#allocation13_spill] sm:$0xff] %v7151_v25  ;;  %7972 = vst [vmem:[#allocation14_spill] sm:$0xff] %v7153_v26 }
 0x10a   : >> { %2731 = vmatmul.mubr.bf16.vlgmr.msra.gmra.mxu0 %v5869_v31 }
 0x10b   : >> { %2740 = vmatprep.mubr.bf16.mxu0 %v6199_v30  ;;  %v5872_v36 = vld [vmem:[#allocation3 + $0xf8] ss:$36 sps:$4 sm:$0xff]  }
 0x10c   : >> { %2751 = vmatmul.mubr.bf16.vlgmr.msra.gmra.mxu1 %v5870_v18  ;;  %v1495_v18 = vrot.slane %v7958_v32, %v7151_v25 }
 0x10d   : >> { %2760 = vmatprep.mubr.bf16.mxu1 %v6199_v30 }
 0x112   : >> { %2741 = vmatmul.mubr.bf16.gmra.mxu0 %v5871_v63  ;;  %v1499_v63 = vrot.slane %v7958_v32, %v7153_v26 }
 0x114   : >> { %2761 = vmatmul.mubr.bf16.gmra.mxu1 %v5872_v36 }
 0x142   : >> { %v7069_v52 = vpop.f32.mrf.mxu0 }
 0x143   : >> { %v7071_v37 = vpop.f32.mrf.mxu1  ;;  %v2441_v23 = vadd.f32 %v7069_v52, %v1495_v18 }
 0x144   : >> { %v7073_v29 = vpop.f32.mrf.mxu0 }
 0x145   : >> { %v7075_v38 = vpop.f32.mrf.mxu1  ;;  %v2443_v33 = vadd.f32 %v7073_v29, %v1499_v63  ;;  %v2514_v26 = vadd.f32 %v7071_v37, %v2441_v23 }
 0x146   : >> { %v2444_v40 = vpop.f32.mrf.mxu0 }
 0x147   : >> { %v7077_v41 = vpop.f32.mrf.mxu1  ;;  %v2445_v34 = vadd.f32 %v2444_v40, %v1495_v18  ;;  %v2516_v52 = vadd.f32 %v7075_v38, %v2443_v33 }
 0x148   : >> { %v2446_v42 = vpop.f32.mrf.mxu0 }
 0x149   : >> { %v7079_v7 = vpop.f32.mrf.mxu1  ;;  %v2518_v29 = vadd.f32 %v7077_v41, %v2445_v34 }
 0x15b   : >> { %v7083_v39 = vpop.f32.mrf.mxu1 }
 0x15d   : >> { %v7087_v44 = vpop.f32.mrf.mxu1 }
 0x15f   : >> { %v7091_v46 = vpop.f32.mrf.mxu1 }
 0x161   : >> { %v7093_v11 = vpop.f32.mrf.mxu1 }
 0x162   : >> { %v2450_v43 = vpop.f32.mrf.mxu0 }
 0x164   : >> { %v7081_v5 = vpop.f32.mrf.mxu0 }
 0x166   : >> { %v7085_v51 = vpop.f32.mrf.mxu0 }
 0x168   : >> { %v7089_v45 = vpop.f32.mrf.mxu0 }
 0x169   : >> { %v2457_v37 = vadd.f32 %v7089_v45, %v1499_v63 }
 0x16a   : >> { %v7095_v48 = vpop.f32.mrf.mxu1 }
 0x16c   : >> { %v7099_v50 = vpop.f32.mrf.mxu1 }
 0x16e   : >> { %v2460_v47 = vpop.f32.mrf.mxu0  ;;  %v7103_v54 = vpop.f32.mrf.mxu1 }
 0x16f   : >> { %v2461_v25 = vadd.f32 %v2460_v47, %v1495_v18  ;;  %v2455_v47 = vadd.f32 %v7085_v51, %v1495_v18 }
 0x170   : >> { %v2462_v13 = vpop.f32.mrf.mxu0  ;;  %v7107_v56 = vpop.f32.mrf.mxu1 }
 0x171   : >> { %v2463_v40 = vadd.f32 %v2462_v13, %v1499_v63 }
 0x172   : >> { %v7097_v49 = vpop.f32.mrf.mxu0 }
 0x173   : >> { %v2465_v33 = vadd.f32 %v7097_v49, %v1495_v18  ;;  %v2536_v45 = vadd.f32 %v7099_v50, %v2463_v40  ;;  %v2530_v50 = vadd.f32 %v7093_v11, %v2457_v37 }
 0x174   : >> { %v7101_v53 = vpop.f32.mrf.mxu0 }
 0x175   : >> { %v2467_v34 = vadd.f32 %v7101_v53, %v1499_v63 }
 0x181   : >> { %v7111_v59 = vpop.f32.mrf.mxu1 }
 0x182   : >> { %v7105_v55 = vpop.f32.mrf.mxu0 }
 0x183   : >> { %v7117_v0 = vpop.f32.mrf.mxu1 }
 0x184   : >> { %v7109_v58 = vpop.f32.mrf.mxu0 }
 0x185   : >> { %v7119_v2 = vpop.f32.mrf.mxu1 }
 0x186   : >> { %v7113_v60 = vpop.f32.mrf.mxu0 }
 0x187   : >> { %v7121_v3 = vpop.f32.mrf.mxu1 }
 0x188   : >> { %v7115_v61 = vpop.f32.mrf.mxu0 }
 0x189   : >> { %v2477_v49 = vadd.f32 %v7115_v61, %v1499_v63  ;;  %v2540_v61 = vadd.f32 %v7107_v56, %v2467_v34 }
 0x18b   : >> { %v2550_v11 = vadd.f32 %v7121_v3, %v2477_v49 }
 0x18c   : >> { %v2586_v1 = vpop.f32.mrf.mxu0 }
 0x18e   : >> { %v2588_v27 = vpop.f32.mrf.mxu0 }
 0x18f   : >> { %v2589_v51 = vadd.f32 %v2588_v27, %v2516_v52 }
 0x190   : >> { %v7123_v4 = vpop.f32.mrf.mxu0 }
 0x192   : >> { %v7129_v9 = vpop.f32.mrf.mxu0 }
 0x197   : >> { %v7125_v6 = vpop.f32.mrf.mxu1 }
 0x199   : >> { %v7127_v8 = vpop.f32.mrf.mxu1 }
 0x19b   : >> { %v7131_v57 = vpop.f32.mrf.mxu1 }
 0x19d   : >> { %v7133_v10 = vpop.f32.mrf.mxu0  ;;  %v7135_v12 = vpop.f32.mrf.mxu1 }
 0x19f   : >> { %v7137_v14 = vpop.f32.mrf.mxu0 }
 0x1a1   : >> { %v7141_v16 = vpop.f32.mrf.mxu0 }
 0x1a3   : >> { %v7145_v19 = vpop.f32.mrf.mxu0 }
 0x1a5   : >> { %v7139_v15 = vpop.f32.mrf.mxu1 }
 0x1a6   : >> { %7967 = vst [vmem:[#allocation9_spill] sm:$0xff] %v7139_v15  ;;  %v2587_v15 = vadd.f32 %v2586_v1, %v2514_v26 }
 0x1a7   : >> { %v7143_v17 = vpop.f32.mrf.mxu1 }
 0x1a8   : >> { %7968 = vst [vmem:[#allocation10_spill] sm:$0xff] %v7143_v17  ;;  %v2453_v17 = vadd.f32 %v7081_v5, %v1499_v63  ;;  %v2534_v5 = vadd.f32 %v7095_v48, %v2461_v25  ;;  %v2475_v48 = vadd.f32 %v7113_v60, %v1495_v18  ;;  %v2538_v60 = vadd.f32 %v7103_v54, %v2465_v33 }
 0x1a9   : >> { %v7147_v21 = vpop.f32.mrf.mxu1 }
 0x1aa   : >> { %7969 = vst [vmem:[#allocation11_spill] sm:$0xff] %v7147_v21  ;;  %v2451_v21 = vadd.f32 %v2450_v43, %v1495_v18  ;;  %v2526_v41 = vadd.f32 %v7087_v44, %v2453_v17  ;;  %v2660_v44 = vadd.f32 %v7125_v6, %v2587_v15  ;;  %v2662_v6 = vadd.f32 %v7127_v8, %v2589_v51 }
 0x1ab   : >> { %v7149_v62 = vpop.f32.mrf.mxu1 }
 0x1ac   : >> { %v2606_v22 = vpop.f32.mrf.mxu0  ;;  %7970 = vst [vmem:[#allocation12_spill] sm:$0xff] %v7149_v62  ;;  %v2447_v62 = vadd.f32 %v2446_v42, %v1499_v63 }
 0x1ad   : >> { %v2607_v53 = vadd.f32 %v2606_v22, %v2534_v5 }
 0x1ae   : >> { %v2608_v24 = vpop.f32.mrf.mxu0  ;;  %v2520_v43 = vadd.f32 %v7079_v7, %v2447_v62  ;;  %v2471_v7 = vadd.f32 %v7105_v55, %v1495_v18  ;;  %v2591_v55 = vadd.f32 %v7123_v4, %v2518_v29  ;;  %v2548_v62 = vadd.f32 %v7119_v2, %v2475_v48 }
 0x1af   : >> { %v2609_v17 = vadd.f32 %v2608_v24, %v2536_v45  ;;  %v2599_v18 = vadd.f32 %v7137_v14, %v2526_v41 }
 0x1b0   : >> { %v7159_v31 = vpop.f32.mrf.mxu0  ;;  %v2664_v25 = vadd.f32 %v7131_v57, %v2591_v55 }
 0x1b1   : >> { %v2611_v56 = vadd.f32 %v7159_v31, %v2538_v60  ;;  %v7980_v60 = vld [vmem:[#allocation11_spill] sm:$0xff] }
 0x1b2   : >> { %v7168_v20 = vpop.f32.mrf.mxu0 }
 0x1b3   : >> { %v2613_v3 = vadd.f32 %v7168_v20, %v2540_v61 }
 0x1b6   : >> { %v7155_v28 = vpop.f32.mrf.mxu1 }
 0x1b7   : >> { %v2680_v54 = vadd.f32 %v7155_v28, %v2607_v53 }
 0x1b8   : >> { %v7157_v30 = vpop.f32.mrf.mxu1 }
 0x1b9   : >> { %v2682_v2 = vadd.f32 %v7157_v30, %v2609_v17 }
 0x1ba   : >> { %v7165_v36 = vpop.f32.mrf.mxu1 }
 0x1bc   : >> { %v7172_v35 = vpop.f32.mrf.mxu1 }
 0x1bd   : >> { %7973 = vst [vmem:[#allocation15_spill] sm:$0xff] %v7172_v35  ;;  %v2524_v35 = vadd.f32 %v7083_v39, %v2451_v21  ;;  %v2473_v39 = vadd.f32 %v7109_v58, %v1499_v63  ;;  %v2528_v21 = vadd.f32 %v7091_v46, %v2455_v47  ;;  %v2593_v58 = vadd.f32 %v7129_v9, %v2520_v43  ;;  %v7976_v47 = vld [vmem:[#allocation9_spill] sm:$0xff] }
 0x1be   : >> { %v2544_v46 = vadd.f32 %v7111_v59, %v2471_v7 }
 0x1bf   : >> { %v2546_v4 = vadd.f32 %v7117_v0, %v2473_v39  ;;  %v2666_v59 = vadd.f32 %v7135_v12, %v2593_v58  ;;  %v2597_v0 = vadd.f32 %v7133_v10, %v2524_v35  ;;  %v2601_v31 = vadd.f32 %v7141_v16, %v2528_v21 }
 0x1c0   : >> { %v2603_v12 = vadd.f32 %v7145_v19, %v2530_v50  ;;  %v2684_v35 = vadd.f32 %v7165_v36, %v2611_v56  ;;  %v7978_v19 = vld [vmem:[#allocation10_spill] sm:$0xff] }
 0x1c1   : >> { %v2670_v30 = vadd.f32 %v7976_v47, %v2597_v0  ;;  %v2672_v45 = vadd.f32 %v7978_v19, %v2599_v18  ;;  %v2674_v61 = vadd.f32 %v7980_v60, %v2601_v31 }
 0x1c2   : >> { %v7176_v32 = vpop.f32.mrf.mxu0 }
 0x1c3   : >> { %7974 = vst [vmem:[#allocation16_spill] sm:$0xff] %v7176_v32 }
 0x1c4   : >> { %v7182_v42 = vpop.f32.mrf.mxu0  ;;  %v7187_v32 = vpop.f32.mrf.mxu1  ;;  %v7977_v16 = vld [vmem:[#allocation15_spill] sm:$0xff] }
 0x1c5   : >> { %v2619_v20 = vadd.f32 %v7182_v42, %v2546_v4  ;;  %v2686_v34 = vadd.f32 %v7977_v16, %v2613_v3 }
 0x1c6   : >> { %v7194_v38 = vpop.f32.mrf.mxu0  ;;  %v7200_v13 = vpop.f32.mrf.mxu1 }
 0x1c7   : >> { %v2692_v17 = vadd.f32 %v7200_v13, %v2619_v20 }
 0x1c8   : >> { %v7205_v1 = vpop.f32.mrf.mxu0  ;;  %v7211_v27 = vpop.f32.mrf.mxu1 }
 0x1ca   : >> { %v2732_v22 = vpop.f32.mrf.mxu0  ;;  %v7224_v9 = vpop.f32.mrf.mxu1  ;;  %v7975_v10 = vld [vmem:[#allocation16_spill] sm:$0xff] }
 0x1cb   : >> { %v2733_v15 = vadd.f32 %v2732_v22, %v2660_v44  ;;  %v2617_v40 = vadd.f32 %v7975_v10, %v2544_v46  ;;  %v2621_v44 = vadd.f32 %v7194_v38, %v2548_v62  ;;  %v7981_v62 = vld [vmem:[#allocation12_spill] sm:$0xff] }
 0x1cc   : >> { %v2734_v24 = vpop.f32.mrf.mxu0  ;;  %v2752_v26 = vpop.f32.mrf.mxu1  ;;  %v2676_v56 = vadd.f32 %v7981_v62, %v2603_v12 }
 0x1cd   : >> { %v2735_v8 = vadd.f32 %v2734_v24, %v2662_v6  ;;  %v2753_v63 = vadd.f32 %v2752_v26, %v2680_v54  ;;  %v2771_v23 = vmax.f32 %v2733_v15, 0.0  ;;  %v2690_v21 = vadd.f32 %v7187_v32, %v2617_v40 }
 0x1ce   : >> { %v2736_v28 = vpop.f32.mrf.mxu0  ;;  %v2754_v57 = vpop.f32.mrf.mxu1  ;;  %v2623_v6 = vadd.f32 %v7205_v1, %v2550_v11  ;;  %v2694_v1 = vadd.f32 %v7211_v27, %v2621_v44 }
 0x1cf   : >> { %v2772_v52 = vmax.f32 %v2735_v8, 0.0  ;;  %v2737_v29 = vadd.f32 %v2736_v28, %v2664_v25  ;;  %v2755_v43 = vadd.f32 %v2754_v57, %v2682_v2  ;;  %v2779_v41 = vmax.f32 %v2753_v63, 0.0 }
 0x1d0   : >> { %v2738_v14 = vpop.f32.mrf.mxu0  ;;  %v2756_v5 = vpop.f32.mrf.mxu1  ;;  %v2696_v3 = vadd.f32 %v7224_v9, %v2623_v6 }
 0x1d1   : >> { %v5480_v37 = vpack.c.bf16 %v2772_v52, %v2771_v23  ;;  %v2739_v33 = vadd.f32 %v2738_v14, %v2666_v59  ;;  %v2780_v7 = vmax.f32 %v2755_v43, 0.0  ;;  %v2757_v39 = vadd.f32 %v2756_v5, %v2684_v35 }
 0x1d2   : >> { %v2742_v51 = vpop.f32.mrf.mxu0  ;;  %v2773_v48 = vmax.f32 %v2737_v29, 0.0  ;;  %v2758_v49 = vpop.f32.mrf.mxu1 }
 0x1d3   : >> { %2852 = vst.msk [vmem:[%s7245_s16] sm:$0xff] %vm6374_vm2, %v5480_v37  ;;  %v2774_v42 = vmax.f32 %v2739_v33, 0.0  ;;  %v2743_v53 = vadd.f32 %v2742_v51, %v2670_v30  ;;  %v5484_v55 = vpack.c.bf16 %v2780_v7, %v2779_v41  ;;  %v2759_v58 = vadd.f32 %v2758_v49, %v2686_v34 }
 0x1d4   : >> { %v2744_v50 = vpop.f32.mrf.mxu0  ;;  %v2762_v46 = vpop.f32.mrf.mxu1  ;;  %v2781_v15 = vmax.f32 %v2757_v39, 0.0 }
 0x1d5   : >> { %v5481_v22 = vpack.c.bf16 %v2774_v42, %v2773_v48  ;;  %v2745_v4 = vadd.f32 %v2744_v50, %v2672_v45  ;;  %2856 = vst.msk [vmem:[%s7245_s16 + $0x20] sm:$0xff] %vm6374_vm2, %v5484_v55  ;;  %v2782_v32 = vmax.f32 %v2759_v58, 0.0  ;;  %v2763_v54 = vadd.f32 %v2762_v46, %v2690_v21 }
 0x1d6   : >> { %v2746_v38 = vpop.f32.mrf.mxu0  ;;  %v2775_v24 = vmax.f32 %v2743_v53, 0.0  ;;  %v2764_v25 = vpop.f32.mrf.mxu1 }
 0x1d7   : >> { %2853 = vst.msk [vmem:[%s7245_s16 + $0x8] sm:$0xff] %vm6374_vm2, %v5481_v22  ;;  %v2776_v13 = vmax.f32 %v2745_v4, 0.0  ;;  %v2747_v59 = vadd.f32 %v2746_v38, %v2674_v61  ;;  %v5485_v11 = vpack.c.bf16 %v2782_v32, %v2781_v15  ;;  %v2765_v0 = vadd.f32 %v2764_v25, %v2692_v17 }
 0x1d8   : >> { %v2748_v26 = vpop.f32.mrf.mxu0  ;;  %v2766_v18 = vpop.f32.mrf.mxu1  ;;  %v2783_v63 = vmax.f32 %v2763_v54, 0.0 }
 0x1d9   : >> { %v5482_v8 = vpack.c.bf16 %v2776_v13, %v2775_v24  ;;  %v2749_v2 = vadd.f32 %v2748_v26, %v2676_v56  ;;  %2857 = vst.msk [vmem:[%s7245_s16 + $0x28] sm:$0xff] %vm6374_vm2, %v5485_v11  ;;  %v2784_v28 = vmax.f32 %v2765_v0, 0.0  ;;  %v2767_v31 = vadd.f32 %v2766_v18, %v2694_v1 }
 0x1da   : >> { %v2777_v27 = vmax.f32 %v2747_v59, 0.0  ;;  %v2768_v52 = vpop.f32.mrf.mxu1 }
 0x1db   : >> { %2854 = vst.msk [vmem:[%s7245_s16 + $0x10] sm:$0xff] %vm6374_vm2, %v5482_v8  ;;  %v2778_v23 = vmax.f32 %v2749_v2, 0.0  ;;  %v5486_v57 = vpack.c.bf16 %v2784_v28, %v2783_v63  ;;  %v2769_v29 = vadd.f32 %v2768_v52, %v2696_v3  ;;  %v2785_v9 = vmax.f32 %v2767_v31, 0.0 }
 0x1dd   : >> { %v5483_v12 = vpack.c.bf16 %v2778_v23, %v2777_v27  ;;  %2858 = vst.msk [vmem:[%s7245_s16 + $0x30] sm:$0xff] %vm6374_vm2, %v5486_v57  ;;  %v2786_v35 = vmax.f32 %v2769_v29, 0.0  ;;  %2863 = sbr.rel (%p5125_p11) target bundleno = 796 (0x31c), region = 92 }
 0x1df   : >> { %2855 = vst.msk [vmem:[%s7245_s16 + $0x18] sm:$0xff] %vm6374_vm2, %v5483_v12  ;;  %v5487_v10 = vpack.c.bf16 %v2786_v35, %v2785_v9 }
 0x1e1   : >> { %2859 = vst.msk [vmem:[%s7245_s16 + $0x38] sm:$0xff] %vm6374_vm2, %v5487_v10 }
 0x1e2   : >> { %v5875_v40 = vld [vmem:[%s7938_s3 + $0x134] ss:$8 sps:$4 sm:$0xff]   ;;  %v5879_v14 = vld [vmem:[%s7938_s3 + $0x130] ss:$8 sps:$4 sm:$0xff]   ;;  %v5881_v30 = vld [vmem:[%s7938_s3 + $0x124] ss:$8 sps:$4 sm:$0xff]   ;;  %s8002_s23 = smov (!%p2913_p12, %s2918_s23), %s6020_s6  ;;  %s8004_s29 = smov (!%p2865_p13, %s2870_s29), %s6022_s17 }
 0x1e3   : >> { %v5877_v43 = vld [vmem:[%s7938_s3 + $0x74] ss:$8 sps:$4 sm:$0xff]   ;;  %3131 = vmatprep.subr.bf16.mxu0 %v5875_v40  ;;  %v5880_v47 = vld [vmem:[%s7938_s3 + $0x70] ss:$8 sps:$4 sm:$0xff]   ;;  %v5883_v20 = vld [vmem:[%s7938_s3 + $0x64] ss:$8 sps:$4 sm:$0xff]  }
 0x1e4   : >> { %3372 = vmatprep.subr.bf16.mxu1 %v5877_v43  ;;  %3132 = vmatpush1.bf16.msra.mxu0 %v5879_v14  ;;  %v5885_v37 = vld [vmem:[%s7938_s3 + $0x120] ss:$8 sps:$4 sm:$0xff]   ;;  %v5887_v33 = vld [vmem:[%s7938_s3 + $0x114] ss:$8 sps:$4 sm:$0xff]   ;;  %v5891_v34 = vld [vmem:[%s7938_s3 + $0x110] ss:$8 sps:$4 sm:$0xff]  }
 0x1e5   : >> { %3373 = vmatpush1.bf16.msra.mxu1 %v5880_v47  ;;  %3133 = vmatprep.subr.bf16.mxu0 %v5881_v30  ;;  %v5886_v5 = vld [vmem:[%s7938_s3 + $0x60] ss:$8 sps:$4 sm:$0xff]   ;;  %v5889_v16 = vld [vmem:[%s7938_s3 + $0x54] ss:$8 sps:$4 sm:$0xff]   ;;  %v5892_v41 = vld [vmem:[%s7938_s3 + $0x50] ss:$8 sps:$4 sm:$0xff]  }
 0x1e6   : >> { %3374 = vmatprep.subr.bf16.mxu1 %v5883_v20  ;;  %v5893_v7 = vld [vmem:[%s7938_s3 + $0x104] ss:$8 sps:$4 sm:$0xff]   ;;  %v5897_v51 = vld [vmem:[%s7938_s3 + $0x100] ss:$8 sps:$4 sm:$0xff]   ;;  %v5899_v45 = vld [vmem:[%s7938_s3 + $0xf4] ss:$8 sps:$4 sm:$0xff]  }
 0x1e7   : >> { %v5895_v39 = vld [vmem:[%s7938_s3 + $0x44] ss:$8 sps:$4 sm:$0xff]   ;;  %v5898_v19 = vld [vmem:[%s7938_s3 + $0x40] ss:$8 sps:$4 sm:$0xff]   ;;  %v5901_v36 = vld [vmem:[%s7938_s3 + $0x34] ss:$8 sps:$4 sm:$0xff]  }
 0x1e8   : >> { %3134 = vmatpush1.bf16.msra.mxu0 %v5885_v37  ;;  %v5903_v48 = vld [vmem:[%s7938_s3 + $0xf0] ss:$8 sps:$4 sm:$0xff]   ;;  %v5905_v49 = vld [vmem:[%s7938_s3 + $0xe4] ss:$8 sps:$4 sm:$0xff]   ;;  %p5134_p0 = scmp.lt.s32.totalorder %s8002_s23, 0  ;;  %s2924_s21 = sadd.s32 3, %s8002_s23 }
 0x1e9   : >> { %3375 = vmatpush1.bf16.msra.mxu1 %v5886_v5  ;;  %3135 = vmatprep.subr.bf16.mxu0 %v5887_v33  ;;  %v5904_v42 = vld [vmem:[%s7938_s3 + $0x30] ss:$8 sps:$4 sm:$0xff]   ;;  %v5907_v53 = vld [vmem:[%s7938_s3 + $0x24] ss:$8 sps:$4 sm:$0xff]   ;;  %v5909_v21 = vld [vmem:[%s7938_s3 + $0xe0] ss:$8 sps:$4 sm:$0xff]  }
 0x1ea   : >> { %3376 = vmatprep.subr.bf16.mxu1 %v5889_v16  ;;  %v5910_v44 = vld [vmem:[%s7938_s3 + $0x20] ss:$8 sps:$4 sm:$0xff]   ;;  %v5911_v55 = vld [vmem:[%s7938_s3 + $0xd4] ss:$8 sps:$4 sm:$0xff]   ;;  %s8006_s21 = smov (!%p5134_p0, %s2924_s21), %s8002_s23  ;;  %p5129_p1 = scmp.lt.s32.totalorder %s8004_s29, 0  ;;  %vm3118_vm14 = vcmask 523264  }
 0x1eb   : >> { %v5913_v58 = vld [vmem:[%s7938_s3 + $0x14] ss:$8 sps:$4 sm:$0xff]   ;;  %s2876_s17 = sadd.s32 3, %s8004_s29  ;;  %v5915_v50 = vld [vmem:[%s7938_s3 + $0xd0] ss:$8 sps:$4 sm:$0xff]   ;;  %s5490_s10 = sshll.u32 %s8006_s21, 6 }
 0x1ec   : >> { %3136 = vmatpush1.bf16.msra.mxu0 %v5891_v34  ;;  %v5916_v60 = vld [vmem:[%s7938_s3 + $0x10] ss:$8 sps:$4 sm:$0xff]   ;;  %s8008_s17 = smov (!%p5129_p1, %s2876_s17), %s8004_s29  ;;  %v5917_v61 = vld [vmem:[%s7938_s3 + $0xc4] ss:$8 sps:$4 sm:$0xff]   ;;  %v5921_v22 = vld [vmem:[%s7938_s3 + $0xc0] ss:$8 sps:$4 sm:$0xff]  }
 0x1ed   : >> { %3377 = vmatpush1.bf16.msra.mxu1 %v5892_v41  ;;  %3137 = vmatprep.subr.bf16.mxu0 %v5893_v7  ;;  %v5919_v17 = vld [vmem:[%s7938_s3 + $0x4] ss:$8 sps:$4 sm:$0xff]   ;;  %s5489_s14 = sshll.u32 %s8008_s17, 6  ;;  %v5922_v46 = vld [vmem:[%s7938_s3] ss:$8 sps:$4 sm:$0xff]   ;;  %s7406_s29 = scalar_lea.vmem [#allocation4], %s5490_s10 }
 0x1ee   : >> { %3378 = vmatprep.subr.bf16.mxu1 %v5895_v39  ;;  %v5923_v4 = vld [vmem:[%s7938_s3 + $0x174] ss:$8 sps:$4 sm:$0xff]   ;;  %v5927_v15 = vld [vmem:[%s7938_s3 + $0x170] ss:$8 sps:$4 sm:$0xff]   ;;  %v5929_v54 = vld [vmem:[%s7938_s3 + $0x164] ss:$8 sps:$4 sm:$0xff]  }
 0x1ef   : >> { %v5925_v6 = vld [vmem:[%s7938_s3 + $0xb4] ss:$8 sps:$4 sm:$0xff]   ;;  %v5928_v32 = vld [vmem:[%s7938_s3 + $0xb0] ss:$8 sps:$4 sm:$0xff]   ;;  %v5931_v38 = vld [vmem:[%s7938_s3 + $0xa4] ss:$8 sps:$4 sm:$0xff]  }
 0x1f0   : >> { %3138 = vmatpush1.bf16.msra.mxu0 %v5897_v51  ;;  %v5949_v62 = vld [vmem:[%s7406_s29 + $0x4] ss:$8 sps:$4 sm:$0xff]   ;;  %s7409_s15 = scalar_lea.vmem [#allocation4], %s5489_s14  ;;  %v5933_v24 = vld [vmem:[%s7938_s3 + $0x160] ss:$8 sps:$4 sm:$0xff]  }
 0x1f1   : >> { %3379 = vmatpush1.bf16.msra.mxu1 %v5898_v19  ;;  %3139 = vmatprep.subr.bf16.mxu0 %v5899_v45  ;;  %v5952_v56 = vld [vmem:[%s7409_s15 + $0x4] ss:$8 sps:$4 sm:$0xff]   ;;  %v5934_v13 = vld [vmem:[%s7938_s3 + $0xa0] ss:$8 sps:$4 sm:$0xff]   ;;  %v5935_v25 = vld [vmem:[%s7938_s3 + $0x154] ss:$8 sps:$4 sm:$0xff]  }
 0x1f2   : >> { %3380 = vmatprep.subr.bf16.mxu1 %v5901_v36  ;;  %5193 = vmatprep.mubr.msk.bf16.mxu0 %vm3118_vm14, %v5949_v62  ;;  %v5937_v59 = vld [vmem:[%s7938_s3 + $0x94] ss:$8 sps:$4 sm:$0xff]   ;;  %v5939_v1 = vld [vmem:[%s7938_s3 + $0x150] ss:$8 sps:$4 sm:$0xff]   ;;  %v5941_v0 = vld [vmem:[%s7938_s3 + $0x144] ss:$8 sps:$4 sm:$0xff]  }
 0x1f3   : >> { %5229 = vmatprep.mubr.msk.bf16.mxu1 %vm3118_vm14, %v5952_v56  ;;  %v5940_v11 = vld [vmem:[%s7938_s3 + $0x90] ss:$8 sps:$4 sm:$0xff]   ;;  %v5943_v26 = vld [vmem:[%s7938_s3 + $0x84] ss:$8 sps:$4 sm:$0xff]   ;;  %v5945_v8 = vld [vmem:[%s7938_s3 + $0x140] ss:$8 sps:$4 sm:$0xff]  }
 0x1f4   : >> { %3140 = vmatpush1.bf16.msra.mxu0 %v5903_v48  ;;  %v5946_v18 = vld [vmem:[%s7938_s3 + $0x80] ss:$8 sps:$4 sm:$0xff]   ;;  %v5955_v2 = vld [vmem:[%s7938_s3 + $0x1f4] ss:$8 sps:$4 sm:$0xff]   ;;  %v5953_v28 = vld [vmem:[%s7938_s3 + $0x1f0] ss:$8 sps:$4 sm:$0xff]  }
 0x1f5   : >> { %3381 = vmatpush1.bf16.msra.mxu1 %v5904_v42  ;;  %3141 = vmatprep.subr.bf16.mxu0 %v5905_v49  ;;  %v5947_v3 = vld [vmem:[%s7406_s29] ss:$8 sps:$4 sm:$0xff]   ;;  %v5958_v31 = vld [vmem:[%s7938_s3 + $0x1e4] ss:$8 sps:$4 sm:$0xff]   ;;  %v5968_v23 = vld [vmem:[%s7406_s29 + $0x14] ss:$8 sps:$4 sm:$0xff]  }
 0x1f6   : >> { %3382 = vmatprep.subr.bf16.mxu1 %v5907_v53  ;;  %v5950_v63 = vld [vmem:[%s7409_s15] ss:$8 sps:$4 sm:$0xff]   ;;  %v5970_v52 = vld [vmem:[%s7409_s15 + $0x14] ss:$8 sps:$4 sm:$0xff]   ;;  %v5959_v29 = vld [vmem:[%s7938_s3 + $0x1d0] ss:$8 sps:$4 sm:$0xff]  }
 0x1f7   : >> { %v5956_v27 = vld [vmem:[%s7938_s3 + $0x1e0] ss:$8 sps:$4 sm:$0xff]   ;;  %v5961_v57 = vld [vmem:[%s7938_s3 + $0x1d4] ss:$8 sps:$4 sm:$0xff]   ;;  %v5964_v12 = vld [vmem:[%s7938_s3 + $0x1c4] ss:$8 sps:$4 sm:$0xff]  }
 0x1f8   : >> { %3142 = vmatpush1.bf16.msra.mxu0 %v5909_v21  ;;  %v5972_v9 = vld [vmem:[%s7406_s29 + $0x10] ss:$8 sps:$4 sm:$0xff]   ;;  %v5962_v10 = vld [vmem:[%s7938_s3 + $0x1c0] ss:$8 sps:$4 sm:$0xff]   ;;  %v5980_v40 = vld [vmem:[%s7406_s29 + $0x24] ss:$8 sps:$4 sm:$0xff]  }
 0x1f9   : >> { %3383 = vmatpush1.bf16.msra.mxu1 %v5910_v44  ;;  %3143 = vmatprep.subr.bf16.mxu0 %v5911_v55  ;;  %v5973_v35 = vld [vmem:[%s7409_s15 + $0x10] ss:$8 sps:$4 sm:$0xff]   ;;  %v5982_v43 = vld [vmem:[%s7409_s15 + $0x24] ss:$8 sps:$4 sm:$0xff]   ;;  %v5967_v14 = vld [vmem:[%s7938_s3 + $0x1b4] ss:$8 sps:$4 sm:$0xff]  }
 0x1fa   : >> { %3384 = vmatprep.subr.bf16.mxu1 %v5913_v58  ;;  %v5965_v47 = vld [vmem:[%s7938_s3 + $0x1b0] ss:$8 sps:$4 sm:$0xff]   ;;  %v5976_v30 = vld [vmem:[%s7938_s3 + $0x1a4] ss:$8 sps:$4 sm:$0xff]   ;;  %v5984_v20 = vld [vmem:[%s7406_s29 + $0x20] ss:$8 sps:$4 sm:$0xff]  }
 0x1fb   : >> { %v5985_v37 = vld [vmem:[%s7409_s15 + $0x20] ss:$8 sps:$4 sm:$0xff]   ;;  %v5992_v33 = vld [vmem:[%s7406_s29 + $0x34] ss:$8 sps:$4 sm:$0xff]   ;;  %v5977_v41 = vld [vmem:[%s7938_s3 + $0x190] ss:$8 sps:$4 sm:$0xff]  }
 0x1fc   : >> { %3144 = vmatpush1.bf16.msra.mxu0 %v5915_v50  ;;  %v5974_v5 = vld [vmem:[%s7938_s3 + $0x1a0] ss:$8 sps:$4 sm:$0xff]   ;;  %v5994_v16 = vld [vmem:[%s7409_s15 + $0x34] ss:$8 sps:$4 sm:$0xff]   ;;  %v5988_v7 = vld [vmem:[%s7938_s3 + $0x184] ss:$8 sps:$4 sm:$0xff]  }
 0x1fd   : >> { %3385 = vmatpush1.bf16.msra.mxu1 %v5916_v60  ;;  %3145 = vmatprep.subr.bf16.mxu0 %v5917_v61  ;;  %v5979_v34 = vld [vmem:[%s7938_s3 + $0x194] ss:$8 sps:$4 sm:$0xff]   ;;  %v5996_v39 = vld [vmem:[%s7406_s29 + $0x30] ss:$8 sps:$4 sm:$0xff]   ;;  %v6009_v19 = vld [vmem:[%s7245_s16 + $0x4] ss:$8 sps:$4 sm:$0xff]  }
 0x1fe   : >> { %3386 = vmatprep.subr.bf16.mxu1 %v5919_v17  ;;  %v5997_v51 = vld [vmem:[%s7409_s15 + $0x30] ss:$8 sps:$4 sm:$0xff]   ;;  %v6012_v45 = vld [vmem:[%s7245_s16 + $0x24] ss:$8 sps:$4 sm:$0xff]   ;;  %v5986_v36 = vld [vmem:[%s7938_s3 + $0x180] ss:$8 sps:$4 sm:$0xff]  }
 0x1ff   : >> { %v5991_v48 = vld [vmem:[%s7938_s3 + $0x234] ss:$8 sps:$4 sm:$0xff]   ;;  %v5989_v42 = vld [vmem:[%s7938_s3 + $0x230] ss:$8 sps:$4 sm:$0xff]   ;;  %v6000_v49 = vld [vmem:[%s7938_s3 + $0x224] ss:$8 sps:$4 sm:$0xff]  }
 0x200   : >> { %3146 = vmatpush1.bf16.msra.mxu0 %v5921_v22  ;;  %v5998_v53 = vld [vmem:[%s7938_s3 + $0x220] ss:$8 sps:$4 sm:$0xff]   ;;  %v6003_v21 = vld [vmem:[%s7938_s3 + $0x214] ss:$8 sps:$4 sm:$0xff]   ;;  %v6001_v44 = vld [vmem:[%s7938_s3 + $0x210] ss:$8 sps:$4 sm:$0xff]  }
 0x201   : >> { %3387 = vmatpush1.bf16.msra.mxu1 %v5922_v46  ;;  %3155 = vmatprep.subr.bf16.mxu0 %v5923_v4  ;;  %v6006_v55 = vld [vmem:[%s7938_s3 + $0x204] ss:$8 sps:$4 sm:$0xff]   ;;  %v6004_v58 = vld [vmem:[%s7938_s3 + $0x200] ss:$8 sps:$4 sm:$0xff]   ;;  %v6013_v61 = vld [vmem:[%s7245_s16 + $0x14] ss:$8 sps:$4 sm:$0xff]  }
 0x202   : >> { %3396 = vmatprep.subr.bf16.mxu1 %v5925_v6  ;;  %v6007_v50 = vld [vmem:[%s7245_s16] ss:$8 sps:$4 sm:$0xff]   ;;  %v6015_v17 = vld [vmem:[%s7245_s16 + $0x34] ss:$8 sps:$4 sm:$0xff]   ;;  %v6017_v22 = vld [vmem:[%s7245_s16 + $0x10] ss:$8 sps:$4 sm:$0xff]  }
 0x203   : >> { %v6010_v60 = vld [vmem:[%s7245_s16 + $0x20] ss:$8 sps:$4 sm:$0xff]   ;;  %v6018_v46 = vld [vmem:[%s7245_s16 + $0x30] ss:$8 sps:$4 sm:$0xff]   ;;  %s5499_s16 = sshll.u32 %s7295_s9, 6 }
 0x204   : >> { %3156 = vmatpush2.bf16.msra.mxu0 %v5927_v15  ;;  %s7570_s6 = scalar_lea.vmem %s6409_s18, %s5499_s16 }
 0x205   : >> { %3397 = vmatpush2.bf16.msra.mxu1 %v5928_v32  ;;  %3157 = vmatprep.subr.bf16.mxu0 %v5929_v54 }
 0x206   : >> { %3398 = vmatprep.subr.bf16.mxu1 %v5931_v38 }
 0x208   : >> { %3158 = vmatpush2.bf16.msra.mxu0 %v5933_v24 }
 0x209   : >> { %3399 = vmatpush2.bf16.msra.mxu1 %v5934_v13  ;;  %3159 = vmatprep.subr.bf16.mxu0 %v5935_v25 }
 0x20a   : >> { %3400 = vmatprep.subr.bf16.mxu1 %v5937_v59 }
 0x20c   : >> { %3160 = vmatpush2.bf16.msra.mxu0 %v5939_v1 }
 0x20d   : >> { %3401 = vmatpush2.bf16.msra.mxu1 %v5940_v11  ;;  %3161 = vmatprep.subr.bf16.mxu0 %v5941_v0 }
 0x20e   : >> { %3402 = vmatprep.subr.bf16.mxu1 %v5943_v26 }
 0x210   : >> { %3162 = vmatpush2.bf16.msra.mxu0 %v5945_v8 }
 0x211   : >> { %3403 = vmatpush2.bf16.msra.mxu1 %v5946_v18  ;;  %3646 = vmatprep.subr.bf16.mxu0 %v5955_v2 }
 0x212   : >> { %5524 = vmatprep.subr.bf16.mxu1 %v5955_v2 }
 0x213   : >> { %3164 = vmatmul.mubr.bf16.vlgmr.msra.gmra.mxu0 %v5947_v3 }
 0x214   : >> { %3405 = vmatmul.mubr.bf16.vlgmr.msra.gmra.mxu1 %v5950_v63  ;;  %3647 = vmatpush1.bf16.msra.mxu0 %v5953_v28 }
 0x215   : >> { %5536 = vmatpush1.bf16.msra.mxu1 %v5953_v28  ;;  %3648 = vmatprep.subr.bf16.mxu0 %v5958_v31 }
 0x216   : >> { %5525 = vmatprep.subr.bf16.mxu1 %v5958_v31  ;;  %5194 = vmatprep.mubr.msk.bf16.mxu0 %vm3118_vm14, %v5968_v23 }
 0x217   : >> { %5230 = vmatprep.mubr.msk.bf16.mxu1 %vm3118_vm14, %v5970_v52 }
 0x218   : >> { %3649 = vmatpush1.bf16.msra.mxu0 %v5956_v27 }
 0x219   : >> { %5537 = vmatpush1.bf16.msra.mxu1 %v5956_v27  ;;  %3650 = vmatprep.subr.bf16.mxu0 %v5961_v57 }
 0x21a   : >> { %5526 = vmatprep.subr.bf16.mxu1 %v5961_v57 }
 0x21b   : >> { %3174 = vmatmul.mubr.bf16.gmra.mxu0 %v5972_v9 }
 0x21c   : >> { %3415 = vmatmul.mubr.bf16.gmra.mxu1 %v5973_v35  ;;  %3651 = vmatpush1.bf16.msra.mxu0 %v5959_v29 }
 0x21d   : >> { %5538 = vmatpush1.bf16.msra.mxu1 %v5959_v29  ;;  %3652 = vmatprep.subr.bf16.mxu0 %v5964_v12 }
 0x21e   : >> { %5527 = vmatprep.subr.bf16.mxu1 %v5964_v12  ;;  %5195 = vmatprep.mubr.msk.bf16.mxu0 %vm3118_vm14, %v5980_v40 }
 0x21f   : >> { %5231 = vmatprep.mubr.msk.bf16.mxu1 %vm3118_vm14, %v5982_v43 }
 0x220   : >> { %3653 = vmatpush1.bf16.msra.mxu0 %v5962_v10 }
 0x221   : >> { %5539 = vmatpush1.bf16.msra.mxu1 %v5962_v10  ;;  %3654 = vmatprep.subr.bf16.mxu0 %v5967_v14 }
 0x222   : >> { %5528 = vmatprep.subr.bf16.mxu1 %v5967_v14  ;;  %v7982_v14 = vld [vmem:[#allocation13_spill] sm:$0xff] }
 0x223   : >> { %3184 = vmatmul.mubr.bf16.gmra.mxu0 %v5984_v20 }
 0x224   : >> { %3425 = vmatmul.mubr.bf16.gmra.mxu1 %v5985_v37  ;;  %3655 = vmatpush1.bf16.msra.mxu0 %v5965_v47 }
 0x225   : >> { %5540 = vmatpush1.bf16.msra.mxu1 %v5965_v47  ;;  %3656 = vmatprep.subr.bf16.mxu0 %v5976_v30  ;;  %v7983_v47 = vld [vmem:[#allocation7_spill] sm:$0xff] }
 0x226   : >> { %5529 = vmatprep.subr.bf16.mxu1 %v5976_v30  ;;  %5196 = vmatprep.mubr.msk.bf16.mxu0 %vm3118_vm14, %v5992_v33  ;;  %v7558_v30 = vrot.slane %v7983_v47, %v7982_v14 }
 0x227   : >> { %5232 = vmatprep.mubr.msk.bf16.mxu1 %vm3118_vm14, %v5994_v16 }
 0x228   : >> { %3657 = vmatpush1.bf16.msra.mxu0 %v5974_v5 }
 0x229   : >> { %5541 = vmatpush1.bf16.msra.mxu1 %v5974_v5  ;;  %3658 = vmatprep.subr.bf16.mxu0 %v5979_v34  ;;  %v7984_v5 = vld [vmem:[#allocation14_spill] sm:$0xff] }
 0x22a   : >> { %5530 = vmatprep.subr.bf16.mxu1 %v5979_v34  ;;  %v7562_v33 = vrot.slane %v7983_v47, %v7984_v5 }
 0x22b   : >> { %3194 = vmatmul.mubr.bf16.gmra.mxu0 %v5996_v39 }
 0x22c   : >> { %3435 = vmatmul.mubr.bf16.gmra.mxu1 %v5997_v51  ;;  %3659 = vmatpush1.bf16.msra.mxu0 %v5977_v41 }
 0x22d   : >> { %5542 = vmatpush1.bf16.msra.mxu1 %v5977_v41  ;;  %3660 = vmatprep.subr.bf16.mxu0 %v5988_v7 }
 0x22e   : >> { %5531 = vmatprep.subr.bf16.mxu1 %v5988_v7  ;;  %5289 = vmatprep.mubr.msk.bf16.mxu0 %vm3118_vm14, %v6009_v19 }
 0x22f   : >> { %5291 = vmatprep.mubr.msk.bf16.mxu1 %vm3118_vm14, %v6012_v45 }
 0x230   : >> { %3661 = vmatpush1.bf16.msra.mxu0 %v5986_v36 }
 0x231   : >> { %5543 = vmatpush1.bf16.msra.mxu1 %v5986_v36  ;;  %3670 = vmatprep.subr.bf16.mxu0 %v5991_v48 }
 0x232   : >> { %5532 = vmatprep.subr.bf16.mxu1 %v5991_v48 }
 0x234   : >> { %3671 = vmatpush2.bf16.msra.mxu0 %v5989_v42 }
 0x235   : >> { %5544 = vmatpush2.bf16.msra.mxu1 %v5989_v42  ;;  %3672 = vmatprep.subr.bf16.mxu0 %v6000_v49 }
 0x236   : >> { %5533 = vmatprep.subr.bf16.mxu1 %v6000_v49 }
 0x238   : >> { %3673 = vmatpush2.bf16.msra.mxu0 %v5998_v53 }
 0x239   : >> { %5545 = vmatpush2.bf16.msra.mxu1 %v5998_v53  ;;  %3674 = vmatprep.subr.bf16.mxu0 %v6003_v21 }
 0x23a   : >> { %5534 = vmatprep.subr.bf16.mxu1 %v6003_v21 }
 0x23c   : >> { %3675 = vmatpush2.bf16.msra.mxu0 %v6001_v44 }
 0x23d   : >> { %5546 = vmatpush2.bf16.msra.mxu1 %v6001_v44  ;;  %3676 = vmatprep.subr.bf16.mxu0 %v6006_v55 }
 0x23e   : >> { %5535 = vmatprep.subr.bf16.mxu1 %v6006_v55 }
 0x240   : >> { %3677 = vmatpush2.bf16.msra.mxu0 %v6004_v58 }
 0x241   : >> { %5547 = vmatpush2.bf16.msra.mxu1 %v6004_v58 }
 0x243   : >> { %3679 = vmatmul.mubr.bf16.vlgmr.msra.gmra.mxu0 %v6007_v50 }
 0x244   : >> { %3699 = vmatmul.mubr.bf16.vlgmr.msra.gmra.mxu1 %v6010_v60  ;;  %5290 = vmatprep.mubr.msk.bf16.mxu0 %vm3118_vm14, %v6013_v61 }
 0x245   : >> { %5292 = vmatprep.mubr.msk.bf16.mxu1 %vm3118_vm14, %v6015_v17 }
 0x24b   : >> { %3689 = vmatmul.mubr.bf16.gmra.mxu0 %v6017_v22 }
 0x24c   : >> { %3709 = vmatmul.mubr.bf16.gmra.mxu1 %v6018_v46 }
 0x2d3   : >> { %v3165_v4 = vpop.f32.mrf.mxu0 }
 0x2d4   : >> { %v3406_v6 = vpop.f32.mrf.mxu1 }
 0x2d5   : >> { %v3167_v15 = vpop.f32.mrf.mxu0  ;;  %v3407_v40 = vadd.f32 %v3406_v6, %v3165_v4 }
 0x2d6   : >> { %v3408_v32 = vpop.f32.mrf.mxu1 }
 0x2d7   : >> { %v3169_v54 = vpop.f32.mrf.mxu0  ;;  %v3409_v16 = vadd.f32 %v3408_v32, %v3167_v15 }
 0x2d8   : >> { %v3410_v38 = vpop.f32.mrf.mxu1 }
 0x2d9   : >> { %v3171_v62 = vpop.f32.mrf.mxu0  ;;  %v3411_v39 = vadd.f32 %v3410_v38, %v3169_v54 }
 0x2da   : >> { %v3412_v56 = vpop.f32.mrf.mxu1 }
 0x2db   : >> { %v3175_v24 = vpop.f32.mrf.mxu0  ;;  %v3413_v51 = vadd.f32 %v3412_v56, %v3171_v62 }
 0x2dc   : >> { %v3416_v13 = vpop.f32.mrf.mxu1 }
 0x2dd   : >> { %v3177_v25 = vpop.f32.mrf.mxu0  ;;  %v3417_v53 = vadd.f32 %v3416_v13, %v3175_v24 }
 0x2de   : >> { %v3418_v59 = vpop.f32.mrf.mxu1 }
 0x2df   : >> { %v3179_v1 = vpop.f32.mrf.mxu0  ;;  %v3419_v21 = vadd.f32 %v3418_v59, %v3177_v25 }
 0x2e0   : >> { %v3420_v11 = vpop.f32.mrf.mxu1 }
 0x2e1   : >> { %v3181_v0 = vpop.f32.mrf.mxu0  ;;  %v3421_v44 = vadd.f32 %v3420_v11, %v3179_v1 }
 0x2e2   : >> { %v3422_v26 = vpop.f32.mrf.mxu1 }
 0x2e3   : >> { %v3185_v8 = vpop.f32.mrf.mxu0  ;;  %v3423_v60 = vadd.f32 %v3422_v26, %v3181_v0 }
 0x2e4   : >> { %v3426_v18 = vpop.f32.mrf.mxu1 }
 0x2e5   : >> { %v3187_v2 = vpop.f32.mrf.mxu0  ;;  %v3427_v43 = vadd.f32 %v3426_v18, %v3185_v8 }
 0x2e6   : >> { %v3428_v3 = vpop.f32.mrf.mxu1 }
 0x2e7   : >> { %v3189_v63 = vpop.f32.mrf.mxu0  ;;  %v3429_v34 = vadd.f32 %v3428_v3, %v3187_v2 }
 0x2e8   : >> { %v3430_v28 = vpop.f32.mrf.mxu1 }
 0x2e9   : >> { %v3191_v31 = vpop.f32.mrf.mxu0  ;;  %v3431_v55 = vadd.f32 %v3430_v28, %v3189_v63 }
 0x2ea   : >> { %v3432_v27 = vpop.f32.mrf.mxu1 }
 0x2eb   : >> { %v3195_v23 = vpop.f32.mrf.mxu0  ;;  %v3433_v61 = vadd.f32 %v3432_v27, %v3191_v31 }
 0x2ec   : >> { %v3436_v52 = vpop.f32.mrf.mxu1 }
 0x2ed   : >> { %v3197_v57 = vpop.f32.mrf.mxu0  ;;  %v3437_v13 = vadd.f32 %v3436_v52, %v3195_v23 }
 0x2ee   : >> { %v3438_v29 = vpop.f32.mrf.mxu1 }
 0x2ef   : >> { %v7548_v12 = vpop.f32.mrf.mxu0  ;;  %v3439_v25 = vadd.f32 %v3438_v29, %v3197_v57 }
 0x2f0   : >> { %v7550_v9 = vpop.f32.mrf.mxu1 }
 0x2f1   : >> { %v7552_v35 = vpop.f32.mrf.mxu0  ;;  %v3441_v14 = vadd.f32 %v7550_v9, %v7548_v12 }
 0x2f2   : >> { %v7554_v10 = vpop.f32.mrf.mxu1 }
 0x2f3   : >> { %v3443_v47 = vadd.f32 %v7554_v10, %v7552_v35 }
 0x303   : >> { %v3680_v20 = vpop.f32.mrf.mxu0 }
 0x304   : >> { %v3700_v37 = vpop.f32.mrf.mxu1  ;;  %v3719_v41 = vadd.f32 %v3680_v20, %v3407_v40 }
 0x305   : >> { %v3727_v7 = vadd.f32 %v3700_v37, %v3427_v43  ;;  %v3682_v19 = vpop.f32.mrf.mxu0 }
 0x306   : >> { %v3702_v45 = vpop.f32.mrf.mxu1  ;;  %v3746_v36 = vadd.f32 %v7558_v30, %v3719_v41  ;;  %v3720_v42 = vadd.f32 %v3682_v19, %v3409_v16 }
 0x307   : >> { %v3754_v48 = vadd.f32 %v7558_v30, %v3727_v7  ;;  %v3728_v49 = vadd.f32 %v3702_v45, %v3429_v34  ;;  %v3684_v58 = vpop.f32.mrf.mxu0 }
 0x308   : >> { %v3704_v50 = vpop.f32.mrf.mxu1  ;;  %v3747_v17 = vadd.f32 %v7562_v33, %v3720_v42  ;;  %v3762_v46 = vmax.f32 %v3746_v36, 0.0  ;;  %v3721_v6 = vadd.f32 %v3684_v58, %v3411_v39 }
 0x309   : >> { %v3755_v22 = vadd.f32 %v7562_v33, %v3728_v49  ;;  %v3770_v4 = vmax.f32 %v3754_v48, 0.0  ;;  %v3729_v15 = vadd.f32 %v3704_v50, %v3431_v55  ;;  %v3686_v32 = vpop.f32.mrf.mxu0 }
 0x30a   : >> { %v3706_v54 = vpop.f32.mrf.mxu1  ;;  %v3763_v38 = vmax.f32 %v3747_v17, 0.0  ;;  %v3722_v56 = vadd.f32 %v3686_v32, %v3413_v51  ;;  %v3748_v59 = vadd.f32 %v7558_v30, %v3721_v6 }
 0x30b   : >> { %v3771_v62 = vmax.f32 %v3755_v22, 0.0  ;;  %v3730_v24 = vadd.f32 %v3706_v54, %v3433_v61  ;;  %v3756_v1 = vadd.f32 %v7558_v30, %v3729_v15  ;;  %v3690_v11 = vpop.f32.mrf.mxu0 }
 0x30c   : >> { %v3710_v0 = vpop.f32.mrf.mxu1  ;;  %v5491_v26 = vpack.c.bf16 %v3763_v38, %v3762_v46  ;;  %v3749_v18 = vadd.f32 %v7562_v33, %v3722_v56  ;;  %v3764_v3 = vmax.f32 %v3748_v59, 0.0  ;;  %v3723_v28 = vadd.f32 %v3690_v11, %v3417_v53 }
 0x30d   : >> { %v5495_v8 = vpack.c.bf16 %v3771_v62, %v3770_v4  ;;  %v3757_v2 = vadd.f32 %v7562_v33, %v3730_v24  ;;  %v3772_v63 = vmax.f32 %v3756_v1, 0.0  ;;  %v3731_v31 = vadd.f32 %v3710_v0, %v3437_v13  ;;  %v3692_v27 = vpop.f32.mrf.mxu0 }
 0x30e   : >> { %v3712_v23 = vpop.f32.mrf.mxu1  ;;  %3829 = vst.msk [vmem:[%s7570_s6] sm:$0xff] %vm6374_vm2, %v5491_v26  ;;  %v3765_v57 = vmax.f32 %v3749_v18, 0.0  ;;  %v3724_v40 = vadd.f32 %v3692_v27, %v3419_v21  ;;  %v3750_v20 = vadd.f32 %v7558_v30, %v3723_v28 }
 0x30f   : >> { %3833 = vst.msk [vmem:[%s7570_s6 + $0x20] sm:$0xff] %vm6374_vm2, %v5495_v8  ;;  %v3773_v29 = vmax.f32 %v3757_v2, 0.0  ;;  %v3732_v43 = vadd.f32 %v3712_v23, %v3439_v25  ;;  %v3758_v37 = vadd.f32 %v7558_v30, %v3731_v31  ;;  %v3694_v5 = vpop.f32.mrf.mxu0 }
 0x310   : >> { %v3714_v16 = vpop.f32.mrf.mxu1  ;;  %v5492_v34 = vpack.c.bf16 %v3765_v57, %v3764_v3  ;;  %v3751_v7 = vadd.f32 %v7562_v33, %v3724_v40  ;;  %v3766_v51 = vmax.f32 %v3750_v20, 0.0  ;;  %v3725_v12 = vadd.f32 %v3694_v5, %v3421_v44 }
 0x311   : >> { %v5496_v41 = vpack.c.bf16 %v3773_v29, %v3772_v63  ;;  %v3759_v39 = vadd.f32 %v7562_v33, %v3732_v43  ;;  %v3774_v19 = vmax.f32 %v3758_v37, 0.0  ;;  %v3733_v9 = vadd.f32 %v3714_v16, %v3441_v14  ;;  %v3696_v35 = vpop.f32.mrf.mxu0 }
 0x312   : >> { %v3716_v10 = vpop.f32.mrf.mxu1  ;;  %3830 = vst.msk [vmem:[%s7570_s6 + $0x8] sm:$0xff] %vm6374_vm2, %v5492_v34  ;;  %v3767_v45 = vmax.f32 %v3751_v7, 0.0  ;;  %v3726_v48 = vadd.f32 %v3696_v35, %v3423_v60  ;;  %v3752_v49 = vadd.f32 %v7558_v30, %v3725_v12 }
 0x313   : >> { %3834 = vst.msk [vmem:[%s7570_s6 + $0x28] sm:$0xff] %vm6374_vm2, %v5496_v41  ;;  %v3775_v36 = vmax.f32 %v3759_v39, 0.0  ;;  %v3734_v42 = vadd.f32 %v3716_v10, %v3443_v47  ;;  %v3760_v53 = vadd.f32 %v7558_v30, %v3733_v9 }
 0x314   : >> { %v5493_v21 = vpack.c.bf16 %v3767_v45, %v3766_v51  ;;  %v3753_v55 = vadd.f32 %v7562_v33, %v3726_v48  ;;  %v3768_v50 = vmax.f32 %v3752_v49, 0.0 }
 0x315   : >> { %v5497_v44 = vpack.c.bf16 %v3775_v36, %v3774_v19  ;;  %v3761_v58 = vadd.f32 %v7562_v33, %v3734_v42  ;;  %v3776_v60 = vmax.f32 %v3760_v53, 0.0 }
 0x316   : >> { %3831 = vst.msk [vmem:[%s7570_s6 + $0x10] sm:$0xff] %vm6374_vm2, %v5493_v21  ;;  %v3769_v61 = vmax.f32 %v3753_v55, 0.0 }
 0x317   : >> { %3835 = vst.msk [vmem:[%s7570_s6 + $0x30] sm:$0xff] %vm6374_vm2, %v5497_v44  ;;  %v3777_v17 = vmax.f32 %v3761_v58, 0.0 }
 0x318   : >> { %v5494_v22 = vpack.c.bf16 %v3769_v61, %v3768_v50 }
 0x319   : >> { %v5498_v46 = vpack.c.bf16 %v3777_v17, %v3776_v60 }
 0x31a   : >> { %3832 = vst.msk [vmem:[%s7570_s6 + $0x18] sm:$0xff] %vm6374_vm2, %v5494_v22 }
 0x31b   : >> { %3836 = vst.msk [vmem:[%s7570_s6 + $0x38] sm:$0xff] %vm6374_vm2, %v5498_v46 }
 0x31c PF: >> { %p430_p2 = scmp.ge.s32.totalorder %s7065_s8, 4   ;;  %s7986_s23 = smov %s7065_s8 }
 0x31d   : > { %v6023_v30 = vld [vmem:[%s7938_s3 + $0x134] ss:$8 sps:$4 sm:$0xff] (%p430_p2)   ;;  %v7987_v33 = vmov (%p430_p2), 0   ;;  %v6027_v15 = vld [vmem:[%s7938_s3 + $0x130] ss:$8 sps:$4 sm:$0xff] (%p430_p2)   ;;  %vm4068_vm15 = vcmask (%p430_p2), 523264  }
 0x31e   : > { %432 = sbr.rel (!%p430_p2) target bundleno = 64 (0x40), region = 141  ;;  %3838 = vst.msk [vmem:[#allocation4 + $0x80] sm:$0xff] (%p430_p2), %vm6374_vm2, %v7987_v33  ;;  %3839 = vst.msk [vmem:[#allocation4 + $0x88] sm:$0xff] (%p430_p2), %vm6374_vm2, %v7987_v33  ;;  %v6025_v6 = vld [vmem:[%s7938_s3 + $0x74] ss:$8 sps:$4 sm:$0xff] (%p430_p2)   ;;  %4081 = vmatprep.subr.bf16.mxu0 (%p430_p2), %v6023_v30 }
 0x31f   : > { %3842 = vst.msk [vmem:[#allocation4 + $0xa0] sm:$0xff] (%p430_p2), %vm6374_vm2, %v7987_v33  ;;  %3843 = vst.msk [vmem:[#allocation4 + $0xa8] sm:$0xff] (%p430_p2), %vm6374_vm2, %v7987_v33  ;;  %v6028_v32 = vld [vmem:[%s7938_s3 + $0x70] ss:$8 sps:$4 sm:$0xff] (%p430_p2)   ;;  %4322 = vmatprep.subr.bf16.mxu1 (%p430_p2), %v6025_v6  ;;  %v6029_v54 = vld [vmem:[%s7938_s3 + $0x124] ss:$8 sps:$4 sm:$0xff] (%p430_p2)   ;;  %4082 = vmatpush1.bf16.msra.mxu0 (%p430_p2), %v6027_v15 }
 0x320   : > { %3840 = vst.msk [vmem:[#allocation4 + $0x90] sm:$0xff] (%p430_p2), %vm6374_vm2, %v7987_v33  ;;  %3841 = vst.msk [vmem:[#allocation4 + $0x98] sm:$0xff] (%p430_p2), %vm6374_vm2, %v7987_v33  ;;  %4323 = vmatpush1.bf16.msra.mxu1 (%p430_p2), %v6028_v32  ;;  %v6031_v38 = vld [vmem:[%s7938_s3 + $0x64] ss:$8 sps:$4 sm:$0xff] (%p430_p2)   ;;  %v6033_v62 = vld [vmem:[%s7938_s3 + $0x120] ss:$8 sps:$4 sm:$0xff] (%p430_p2)   ;;  %4083 = vmatprep.subr.bf16.mxu0 (%p430_p2), %v6029_v54 }
 0x321   : > { %3844 = vst.msk [vmem:[#allocation4 + $0xb0] sm:$0xff] (%p430_p2), %vm6374_vm2, %v7987_v33  ;;  %3845 = vst.msk [vmem:[#allocation4 + $0xb8] sm:$0xff] (%p430_p2), %vm6374_vm2, %v7987_v33  ;;  %v6034_v56 = vld [vmem:[%s7938_s3 + $0x60] ss:$8 sps:$4 sm:$0xff] (%p430_p2)   ;;  %4324 = vmatprep.subr.bf16.mxu1 (%p430_p2), %v6031_v38  ;;  %v6035_v24 = vld [vmem:[%s7938_s3 + $0x114] ss:$8 sps:$4 sm:$0xff] (%p430_p2)  }
 0x322   : > { %v6037_v13 = vld [vmem:[%s7938_s3 + $0x54] ss:$8 sps:$4 sm:$0xff] (%p430_p2)   ;;  %v6039_v25 = vld [vmem:[%s7938_s3 + $0x110] ss:$8 sps:$4 sm:$0xff] (%p430_p2)   ;;  %v6041_v1 = vld [vmem:[%s7938_s3 + $0x104] ss:$8 sps:$4 sm:$0xff] (%p430_p2)  }
 0x323   : > { %v6040_v59 = vld [vmem:[%s7938_s3 + $0x50] ss:$8 sps:$4 sm:$0xff]   ;;  %4084 = vmatpush1.bf16.msra.mxu0 %v6033_v62  ;;  %v6043_v11 = vld [vmem:[%s7938_s3 + $0x44] ss:$8 sps:$4 sm:$0xff]   ;;  %v6045_v0 = vld [vmem:[%s7938_s3 + $0x100] ss:$8 sps:$4 sm:$0xff]  }
 0x324   : > { %4325 = vmatpush1.bf16.msra.mxu1 %v6034_v56  ;;  %4085 = vmatprep.subr.bf16.mxu0 %v6035_v24  ;;  %v6046_v26 = vld [vmem:[%s7938_s3 + $0x40] ss:$8 sps:$4 sm:$0xff]   ;;  %v6047_v8 = vld [vmem:[%s7938_s3 + $0xf4] ss:$8 sps:$4 sm:$0xff]   ;;  %v6051_v2 = vld [vmem:[%s7938_s3 + $0xf0] ss:$8 sps:$4 sm:$0xff]  }
 0x325   : > { %4326 = vmatprep.subr.bf16.mxu1 %v6037_v13  ;;  %v6049_v18 = vld [vmem:[%s7938_s3 + $0x34] ss:$8 sps:$4 sm:$0xff]   ;;  %v6052_v3 = vld [vmem:[%s7938_s3 + $0x30] ss:$8 sps:$4 sm:$0xff]   ;;  %v6053_v63 = vld [vmem:[%s7938_s3 + $0xe4] ss:$8 sps:$4 sm:$0xff]  }
 0x326   : > { %v6055_v28 = vld [vmem:[%s7938_s3 + $0x24] ss:$8 sps:$4 sm:$0xff]   ;;  %v6057_v31 = vld [vmem:[%s7938_s3 + $0xe0] ss:$8 sps:$4 sm:$0xff]   ;;  %v6059_v23 = vld [vmem:[%s7938_s3 + $0xd4] ss:$8 sps:$4 sm:$0xff]  }
 0x327   : > { %4086 = vmatpush1.bf16.msra.mxu0 %v6039_v25  ;;  %v6058_v27 = vld [vmem:[%s7938_s3 + $0x20] ss:$8 sps:$4 sm:$0xff]   ;;  %v6061_v52 = vld [vmem:[%s7938_s3 + $0x14] ss:$8 sps:$4 sm:$0xff]   ;;  %v6063_v57 = vld [vmem:[%s7938_s3 + $0xd0] ss:$8 sps:$4 sm:$0xff]  }
 0x328   : > { %4327 = vmatpush1.bf16.msra.mxu1 %v6040_v59  ;;  %4087 = vmatprep.subr.bf16.mxu0 %v6041_v1  ;;  %v6064_v29 = vld [vmem:[%s7938_s3 + $0x10] ss:$8 sps:$4 sm:$0xff]   ;;  %v6065_v40 = vld [vmem:[%s7938_s3 + $0xc4] ss:$8 sps:$4 sm:$0xff]   ;;  %v6069_v14 = vld [vmem:[%s7938_s3 + $0xc0] ss:$8 sps:$4 sm:$0xff]  }
 0x329   : > { %4328 = vmatprep.subr.bf16.mxu1 %v6043_v11  ;;  %v6067_v43 = vld [vmem:[%s7938_s3 + $0x4] ss:$8 sps:$4 sm:$0xff]   ;;  %v6070_v47 = vld [vmem:[%s7938_s3] ss:$8 sps:$4 sm:$0xff]   ;;  %v6071_v20 = vld [vmem:[%s7938_s3 + $0x174] ss:$8 sps:$4 sm:$0xff]  }
 0x32a   : > { %v6073_v37 = vld [vmem:[%s7938_s3 + $0xb4] ss:$8 sps:$4 sm:$0xff]   ;;  %v6075_v5 = vld [vmem:[%s7938_s3 + $0x170] ss:$8 sps:$4 sm:$0xff]   ;;  %v6077_v34 = vld [vmem:[%s7938_s3 + $0x164] ss:$8 sps:$4 sm:$0xff]  }
 0x32b   : > { %4088 = vmatpush1.bf16.msra.mxu0 %v6045_v0  ;;  %v6076_v16 = vld [vmem:[%s7938_s3 + $0xb0] ss:$8 sps:$4 sm:$0xff]   ;;  %v6079_v41 = vld [vmem:[%s7938_s3 + $0xa4] ss:$8 sps:$4 sm:$0xff]   ;;  %v6097_v7 = vld [vmem:[#allocation4 + $0x44] ss:$8 sps:$4 sm:$0xff]  }
 0x32c   : > { %4329 = vmatpush1.bf16.msra.mxu1 %v6046_v26  ;;  %4089 = vmatprep.subr.bf16.mxu0 %v6047_v8  ;;  %v6100_v39 = vld [vmem:[#allocation4 + $0x4] ss:$8 sps:$4 sm:$0xff]   ;;  %v6081_v51 = vld [vmem:[%s7938_s3 + $0x160] ss:$8 sps:$4 sm:$0xff]   ;;  %v6087_v35 = vld [vmem:[%s7938_s3 + $0x150] ss:$8 sps:$4 sm:$0xff]  }
 0x32d   : > { %4330 = vmatprep.subr.bf16.mxu1 %v6049_v18  ;;  %v6082_v19 = vld [vmem:[%s7938_s3 + $0xa0] ss:$8 sps:$4 sm:$0xff]   ;;  %5359 = vmatprep.mubr.msk.bf16.mxu0 %vm4068_vm15, %v6097_v7  ;;  %v6083_v12 = vld [vmem:[%s7938_s3 + $0x154] ss:$8 sps:$4 sm:$0xff]   ;;  %v6088_v10 = vld [vmem:[%s7938_s3 + $0x90] ss:$8 sps:$4 sm:$0xff]  }
 0x32e   : > { %v6085_v9 = vld [vmem:[%s7938_s3 + $0x94] ss:$8 sps:$4 sm:$0xff]   ;;  %5395 = vmatprep.mubr.msk.bf16.mxu1 %vm4068_vm15, %v6100_v39  ;;  %v6089_v45 = vld [vmem:[%s7938_s3 + $0x144] ss:$8 sps:$4 sm:$0xff]   ;;  %v6093_v48 = vld [vmem:[%s7938_s3 + $0x140] ss:$8 sps:$4 sm:$0xff]  }
 0x32f   : > { %4090 = vmatpush1.bf16.msra.mxu0 %v6051_v2  ;;  %v6091_v36 = vld [vmem:[%s7938_s3 + $0x84] ss:$8 sps:$4 sm:$0xff]   ;;  %v6094_v42 = vld [vmem:[%s7938_s3 + $0x80] ss:$8 sps:$4 sm:$0xff]   ;;  %v6103_v49 = vld [vmem:[%s7938_s3 + $0x1f4] ss:$8 sps:$4 sm:$0xff]  }
 0x330   : > { %4331 = vmatpush1.bf16.msra.mxu1 %v6052_v3  ;;  %4091 = vmatprep.subr.bf16.mxu0 %v6053_v63  ;;  %v6095_v53 = vld [vmem:[#allocation4 + $0x40] ss:$8 sps:$4 sm:$0xff]   ;;  %v6106_v55 = vld [vmem:[%s7938_s3 + $0x1e4] ss:$8 sps:$4 sm:$0xff]   ;;  %v6104_v60 = vld [vmem:[%s7938_s3 + $0x1e0] ss:$8 sps:$4 sm:$0xff]  }
 0x331   : > { %4332 = vmatprep.subr.bf16.mxu1 %v6055_v28  ;;  %v6098_v21 = vld [vmem:[#allocation4] ss:$8 sps:$4 sm:$0xff]   ;;  %v6116_v58 = vld [vmem:[#allocation4 + $0x54] ss:$8 sps:$4 sm:$0xff]   ;;  %v6109_v61 = vld [vmem:[%s7938_s3 + $0x1d4] ss:$8 sps:$4 sm:$0xff]  }
 0x332   : > { %v6101_v44 = vld [vmem:[%s7938_s3 + $0x1f0] ss:$8 sps:$4 sm:$0xff]   ;;  %v6118_v50 = vld [vmem:[#allocation4 + $0x14] ss:$8 sps:$4 sm:$0xff]   ;;  %v6120_v17 = vld [vmem:[#allocation4 + $0x50] ss:$8 sps:$4 sm:$0xff]  }
 0x333   : > { %4092 = vmatpush1.bf16.msra.mxu0 %v6057_v31  ;;  %v6121_v22 = vld [vmem:[#allocation4 + $0x10] ss:$8 sps:$4 sm:$0xff]   ;;  %v6107_v46 = vld [vmem:[%s7938_s3 + $0x1d0] ss:$8 sps:$4 sm:$0xff]   ;;  %v6112_v30 = vld [vmem:[%s7938_s3 + $0x1c4] ss:$8 sps:$4 sm:$0xff]  }
 0x334   : > { %4333 = vmatpush1.bf16.msra.mxu1 %v6058_v27  ;;  %4093 = vmatprep.subr.bf16.mxu0 %v6059_v23  ;;  %v6128_v33 = vld [vmem:[#allocation4 + $0x64] ss:$8 sps:$4 sm:$0xff]   ;;  %v6110_v15 = vld [vmem:[%s7938_s3 + $0x1c0] ss:$8 sps:$4 sm:$0xff]   ;;  %v6132_v54 = vld [vmem:[#allocation4 + $0x60] ss:$8 sps:$4 sm:$0xff]  }
 0x335   : > { %4334 = vmatprep.subr.bf16.mxu1 %v6061_v52  ;;  %v6130_v6 = vld [vmem:[#allocation4 + $0x24] ss:$8 sps:$4 sm:$0xff]   ;;  %v6133_v38 = vld [vmem:[#allocation4 + $0x20] ss:$8 sps:$4 sm:$0xff]   ;;  %v6124_v56 = vld [vmem:[%s7938_s3 + $0x1a4] ss:$8 sps:$4 sm:$0xff]  }
 0x336   : > { %v6115_v32 = vld [vmem:[%s7938_s3 + $0x1b4] ss:$8 sps:$4 sm:$0xff]   ;;  %v6113_v62 = vld [vmem:[%s7938_s3 + $0x1b0] ss:$8 sps:$4 sm:$0xff]   ;;  %v6140_v24 = vld [vmem:[#allocation4 + $0x74] ss:$8 sps:$4 sm:$0xff]  }
 0x337   : > { %4094 = vmatpush1.bf16.msra.mxu0 %v6063_v57  ;;  %v6142_v13 = vld [vmem:[#allocation4 + $0x34] ss:$8 sps:$4 sm:$0xff]   ;;  %v6122_v25 = vld [vmem:[%s7938_s3 + $0x1a0] ss:$8 sps:$4 sm:$0xff]   ;;  %v6127_v59 = vld [vmem:[%s7938_s3 + $0x194] ss:$8 sps:$4 sm:$0xff]  }
 0x338   : > { %4335 = vmatpush1.bf16.msra.mxu1 %v6064_v29  ;;  %4095 = vmatprep.subr.bf16.mxu0 %v6065_v40  ;;  %v6144_v1 = vld [vmem:[#allocation4 + $0x70] ss:$8 sps:$4 sm:$0xff]   ;;  %v6125_v0 = vld [vmem:[%s7938_s3 + $0x190] ss:$8 sps:$4 sm:$0xff]   ;;  %v6136_v26 = vld [vmem:[%s7938_s3 + $0x184] ss:$8 sps:$4 sm:$0xff]  }
 0x339   : > { %4336 = vmatprep.subr.bf16.mxu1 %v6067_v43  ;;  %v6145_v11 = vld [vmem:[#allocation4 + $0x30] ss:$8 sps:$4 sm:$0xff]   ;;  %v6157_v8 = vld [vmem:[#allocation4 + $0x84] ss:$8 sps:$4 sm:$0xff]   ;;  %v6137_v63 = vld [vmem:[%s7938_s3 + $0x230] ss:$8 sps:$4 sm:$0xff]  }
 0x33a   : > { %v6160_v18 = vld [vmem:[#allocation4 + $0xa4] ss:$8 sps:$4 sm:$0xff]   ;;  %v6134_v2 = vld [vmem:[%s7938_s3 + $0x180] ss:$8 sps:$4 sm:$0xff]   ;;  %v6148_v28 = vld [vmem:[%s7938_s3 + $0x224] ss:$8 sps:$4 sm:$0xff]  }
 0x33b   : > { %4096 = vmatpush1.bf16.msra.mxu0 %v6069_v14  ;;  %v6139_v3 = vld [vmem:[%s7938_s3 + $0x234] ss:$8 sps:$4 sm:$0xff]   ;;  %v6146_v31 = vld [vmem:[%s7938_s3 + $0x220] ss:$8 sps:$4 sm:$0xff]   ;;  %v6149_v23 = vld [vmem:[%s7938_s3 + $0x210] ss:$8 sps:$4 sm:$0xff]  }
 0x33c   : > { %4337 = vmatpush1.bf16.msra.mxu1 %v6070_v47  ;;  %4105 = vmatprep.subr.bf16.mxu0 %v6071_v20  ;;  %v6151_v27 = vld [vmem:[%s7938_s3 + $0x214] ss:$8 sps:$4 sm:$0xff]   ;;  %v6154_v52 = vld [vmem:[%s7938_s3 + $0x204] ss:$8 sps:$4 sm:$0xff]   ;;  %v6152_v57 = vld [vmem:[%s7938_s3 + $0x200] ss:$8 sps:$4 sm:$0xff]  }
 0x33d   : > { %4346 = vmatprep.subr.bf16.mxu1 %v6073_v37  ;;  %v6155_v29 = vld [vmem:[#allocation4 + $0x80] ss:$8 sps:$4 sm:$0xff]   ;;  %v6161_v43 = vld [vmem:[#allocation4 + $0x94] ss:$8 sps:$4 sm:$0xff]  }
 0x33e   : > { %v6158_v40 = vld [vmem:[#allocation4 + $0xa0] ss:$8 sps:$4 sm:$0xff]   ;;  %v6163_v14 = vld [vmem:[#allocation4 + $0xb4] ss:$8 sps:$4 sm:$0xff]  }
 0x33f   : > { %4106 = vmatpush2.bf16.msra.mxu0 %v6075_v5  ;;  %v4397_v47 = vld [vmem:[#allocation4 + $0x90] sm:$0xff]  ;;  %v4398_v20 = vld [vmem:[#allocation4 + $0x98] sm:$0xff] }
 0x340   : > { %4347 = vmatpush2.bf16.msra.mxu1 %v6076_v16  ;;  %4107 = vmatprep.subr.bf16.mxu0 %v6077_v34  ;;  %v5425_v37 = vcombine.low %v4397_v47, %v4398_v20  ;;  %v6165_v5 = vld [vmem:[#allocation4 + $0xb0] ss:$8 sps:$4 sm:$0xff]  }
 0x341   : > { %4348 = vmatprep.subr.bf16.mxu1 %v6079_v41 }
 0x343   : > { %4108 = vmatpush2.bf16.msra.mxu0 %v6081_v51 }
 0x344   : > { %4349 = vmatpush2.bf16.msra.mxu1 %v6082_v19  ;;  %4109 = vmatprep.subr.bf16.mxu0 %v6083_v12 }
 0x345   : > { %4350 = vmatprep.subr.bf16.mxu1 %v6085_v9 }
 0x347   : > { %4110 = vmatpush2.bf16.msra.mxu0 %v6087_v35 }
 0x348   : > { %4351 = vmatpush2.bf16.msra.mxu1 %v6088_v10  ;;  %4111 = vmatprep.subr.bf16.mxu0 %v6089_v45 }
 0x349   : > { %4352 = vmatprep.subr.bf16.mxu1 %v6091_v36 }
 0x34b   : > { %4112 = vmatpush2.bf16.msra.mxu0 %v6093_v48 }
 0x34c   : > { %4353 = vmatpush2.bf16.msra.mxu1 %v6094_v42  ;;  %4596 = vmatprep.subr.bf16.mxu0 %v6103_v49 }
 0x34d   : > { %5548 = vmatprep.subr.bf16.mxu1 %v6103_v49 }
 0x34e   : > { %4114 = vmatmul.mubr.bf16.vlgmr.msra.gmra.mxu0 %v6095_v53 }
 0x34f   : > { %4355 = vmatmul.mubr.bf16.vlgmr.msra.gmra.mxu1 %v6098_v21  ;;  %4597 = vmatpush1.bf16.msra.mxu0 %v6101_v44 }
 0x350   : > { %5560 = vmatpush1.bf16.msra.mxu1 %v6101_v44  ;;  %4598 = vmatprep.subr.bf16.mxu0 %v6106_v55 }
 0x351   : > { %5549 = vmatprep.subr.bf16.mxu1 %v6106_v55  ;;  %5360 = vmatprep.mubr.msk.bf16.mxu0 %vm4068_vm15, %v6116_v58 }
 0x352   : > { %5396 = vmatprep.mubr.msk.bf16.mxu1 %vm4068_vm15, %v6118_v50 }
 0x353   : > { %4599 = vmatpush1.bf16.msra.mxu0 %v6104_v60 }
 0x354   : > { %5561 = vmatpush1.bf16.msra.mxu1 %v6104_v60  ;;  %4600 = vmatprep.subr.bf16.mxu0 %v6109_v61 }
 0x355   : > { %5550 = vmatprep.subr.bf16.mxu1 %v6109_v61 }
 0x356   : > { %4124 = vmatmul.mubr.bf16.gmra.mxu0 %v6120_v17 }
 0x357   : > { %4365 = vmatmul.mubr.bf16.gmra.mxu1 %v6121_v22  ;;  %4601 = vmatpush1.bf16.msra.mxu0 %v6107_v46 }
 0x358   : > { %5562 = vmatpush1.bf16.msra.mxu1 %v6107_v46  ;;  %4602 = vmatprep.subr.bf16.mxu0 %v6112_v30 }
 0x359   : > { %5551 = vmatprep.subr.bf16.mxu1 %v6112_v30  ;;  %5361 = vmatprep.mubr.msk.bf16.mxu0 %vm4068_vm15, %v6128_v33 }
 0x35a   : > { %5397 = vmatprep.mubr.msk.bf16.mxu1 %vm4068_vm15, %v6130_v6 }
 0x35b   : > { %4603 = vmatpush1.bf16.msra.mxu0 %v6110_v15 }
 0x35c   : > { %5563 = vmatpush1.bf16.msra.mxu1 %v6110_v15  ;;  %4604 = vmatprep.subr.bf16.mxu0 %v6115_v32 }
 0x35d   : > { %5552 = vmatprep.subr.bf16.mxu1 %v6115_v32 }
 0x35e   : > { %4134 = vmatmul.mubr.bf16.gmra.mxu0 %v6132_v54 }
 0x35f   : > { %4375 = vmatmul.mubr.bf16.gmra.mxu1 %v6133_v38  ;;  %4605 = vmatpush1.bf16.msra.mxu0 %v6113_v62 }
 0x360   : > { %5564 = vmatpush1.bf16.msra.mxu1 %v6113_v62  ;;  %4606 = vmatprep.subr.bf16.mxu0 %v6124_v56  ;;  %v7989_v62 = vld [vmem:[#allocation13_spill] sm:$0xff] }
 0x361   : > { %5553 = vmatprep.subr.bf16.mxu1 %v6124_v56  ;;  %5362 = vmatprep.mubr.msk.bf16.mxu0 %vm4068_vm15, %v6140_v24  ;;  %v7990_v56 = vld [vmem:[#allocation7_spill] sm:$0xff] }
 0x362   : > { %5398 = vmatprep.mubr.msk.bf16.mxu1 %vm4068_vm15, %v6142_v13  ;;  %v7876_v24 = vrot.slane %v7990_v56, %v7989_v62 }
 0x363   : > { %4607 = vmatpush1.bf16.msra.mxu0 %v6122_v25 }
 0x364   : > { %5565 = vmatpush1.bf16.msra.mxu1 %v6122_v25  ;;  %4608 = vmatprep.subr.bf16.mxu0 %v6127_v59 }
 0x365   : > { %5554 = vmatprep.subr.bf16.mxu1 %v6127_v59  ;;  %v7991_v59 = vld [vmem:[#allocation14_spill] sm:$0xff] }
 0x366   : > { %4144 = vmatmul.mubr.bf16.gmra.mxu0 %v6144_v1  ;;  %v7880_v1 = vrot.slane %v7990_v56, %v7991_v59 }
 0x367   : > { %4385 = vmatmul.mubr.bf16.gmra.mxu1 %v6145_v11  ;;  %4609 = vmatpush1.bf16.msra.mxu0 %v6125_v0 }
 0x368   : > { %5566 = vmatpush1.bf16.msra.mxu1 %v6125_v0  ;;  %4610 = vmatprep.subr.bf16.mxu0 %v6136_v26 }
 0x369   : > { %5555 = vmatprep.subr.bf16.mxu1 %v6136_v26  ;;  %5455 = vmatprep.mubr.msk.bf16.mxu0 %vm4068_vm15, %v6157_v8 }
 0x36a   : > { %5457 = vmatprep.mubr.msk.bf16.mxu1 %vm4068_vm15, %v6160_v18 }
 0x36b   : > { %4611 = vmatpush1.bf16.msra.mxu0 %v6134_v2 }
 0x36c   : > { %5567 = vmatpush1.bf16.msra.mxu1 %v6134_v2  ;;  %4620 = vmatprep.subr.bf16.mxu0 %v6139_v3 }
 0x36d   : > { %5556 = vmatprep.subr.bf16.mxu1 %v6139_v3 }
 0x36f   : > { %4621 = vmatpush2.bf16.msra.mxu0 %v6137_v63 }
 0x370   : > { %5568 = vmatpush2.bf16.msra.mxu1 %v6137_v63  ;;  %4622 = vmatprep.subr.bf16.mxu0 %v6148_v28 }
 0x371   : > { %5557 = vmatprep.subr.bf16.mxu1 %v6148_v28 }
 0x373   : > { %4623 = vmatpush2.bf16.msra.mxu0 %v6146_v31 }
 0x374   : > { %5569 = vmatpush2.bf16.msra.mxu1 %v6146_v31  ;;  %4624 = vmatprep.subr.bf16.mxu0 %v6151_v27 }
 0x375   : > { %5558 = vmatprep.subr.bf16.mxu1 %v6151_v27 }
 0x377   : > { %4625 = vmatpush2.bf16.msra.mxu0 %v6149_v23 }
 0x378   : > { %5570 = vmatpush2.bf16.msra.mxu1 %v6149_v23  ;;  %4626 = vmatprep.subr.bf16.mxu0 %v6154_v52 }
 0x379   : > { %5559 = vmatprep.subr.bf16.mxu1 %v6154_v52 }
 0x37b   : > { %4627 = vmatpush2.bf16.msra.mxu0 %v6152_v57 }
 0x37c   : > { %5571 = vmatpush2.bf16.msra.mxu1 %v6152_v57 }
 0x37e   : > { %4629 = vmatmul.mubr.bf16.vlgmr.msra.gmra.mxu0 %v6155_v29 }
 0x37f   : > { %4649 = vmatmul.mubr.bf16.vlgmr.msra.gmra.mxu1 %v6158_v40  ;;  %5456 = vmatprep.mubr.msk.bf16.mxu0 %vm4068_vm15, %v6161_v43 }
 0x380   : > { %5458 = vmatprep.mubr.msk.bf16.mxu1 %vm4068_vm15, %v6163_v14 }
 0x386   : > { %4639 = vmatmul.mubr.bf16.gmra.mxu0 %v5425_v37 }
 0x387   : > { %4659 = vmatmul.mubr.bf16.gmra.mxu1 %v6165_v5 }
 0x40e   : > { %v4115_v16 = vpop.f32.mrf.mxu0 }
 0x40f   : > { %v4356_v34 = vpop.f32.mrf.mxu1 }
 0x410   : > { %v4117_v41 = vpop.f32.mrf.mxu0  ;;  %v4357_v54 = vadd.f32 %v4356_v34, %v4115_v16 }
 0x411   : > { %v4358_v7 = vpop.f32.mrf.mxu1 }
 0x412   : > { %v4119_v39 = vpop.f32.mrf.mxu0  ;;  %v4359_v11 = vadd.f32 %v4358_v7, %v4117_v41 }
 0x413   : > { %v4360_v51 = vpop.f32.mrf.mxu1 }
 0x414   : > { %v4121_v19 = vpop.f32.mrf.mxu0  ;;  %v4361_v18 = vadd.f32 %v4360_v51, %v4119_v39 }
 0x415   : > { %v4362_v12 = vpop.f32.mrf.mxu1 }
 0x416   : > { %v4125_v9 = vpop.f32.mrf.mxu0  ;;  %v4363_v2 = vadd.f32 %v4362_v12, %v4121_v19 }
 0x417   : > { %v4366_v35 = vpop.f32.mrf.mxu1 }
 0x418   : > { %v4127_v10 = vpop.f32.mrf.mxu0  ;;  %v4367_v52 = vadd.f32 %v4366_v35, %v4125_v9 }
 0x419   : > { %v4368_v45 = vpop.f32.mrf.mxu1 }
 0x41a   : > { %v4129_v36 = vpop.f32.mrf.mxu0  ;;  %v4369_v57 = vadd.f32 %v4368_v45, %v4127_v10 }
 0x41b   : > { %v4370_v48 = vpop.f32.mrf.mxu1 }
 0x41c   : > { %v4131_v42 = vpop.f32.mrf.mxu0  ;;  %v4371_v29 = vadd.f32 %v4370_v48, %v4129_v36 }
 0x41d   : > { %v4372_v49 = vpop.f32.mrf.mxu1 }
 0x41e   : > { %v4135_v53 = vpop.f32.mrf.mxu0  ;;  %v4373_v47 = vadd.f32 %v4372_v49, %v4131_v42 }
 0x41f   : > { %v4376_v21 = vpop.f32.mrf.mxu1 }
 0x420   : > { %v4137_v44 = vpop.f32.mrf.mxu0  ;;  %v4377_v38 = vadd.f32 %v4376_v21, %v4135_v53 }
 0x421   : > { %v4378_v55 = vpop.f32.mrf.mxu1 }
 0x422   : > { %v4139_v58 = vpop.f32.mrf.mxu0  ;;  %v4379_v0 = vadd.f32 %v4378_v55, %v4137_v44 }
 0x423   : > { %v4380_v50 = vpop.f32.mrf.mxu1 }
 0x424   : > { %v4141_v60 = vpop.f32.mrf.mxu0  ;;  %v4381_v40 = vadd.f32 %v4380_v50, %v4139_v58 }
 0x425   : > { %v4382_v61 = vpop.f32.mrf.mxu1 }
 0x426   : > { %v4145_v17 = vpop.f32.mrf.mxu0  ;;  %v4383_v20 = vadd.f32 %v4382_v61, %v4141_v60 }
 0x427   : > { %v4386_v22 = vpop.f32.mrf.mxu1 }
 0x428   : > { %v4147_v46 = vpop.f32.mrf.mxu0  ;;  %v4387_v10 = vadd.f32 %v4386_v22, %v4145_v17 }
 0x429   : > { %v4388_v30 = vpop.f32.mrf.mxu1 }
 0x42a   : > { %v7868_v33 = vpop.f32.mrf.mxu0  ;;  %v4389_v45 = vadd.f32 %v4388_v30, %v4147_v46 }
 0x42b   : > { %v7870_v6 = vpop.f32.mrf.mxu1 }
 0x42c   : > { %v7872_v15 = vpop.f32.mrf.mxu0  ;;  %v4391_v62 = vadd.f32 %v7870_v6, %v7868_v33 }
 0x42d   : > { %v4392_v32 = vpop.f32.mrf.mxu1 }
 0x42e   : > { %v4393_v56 = vadd.f32 %v4392_v32, %v7872_v15 }
 0x43e   : > { %v4630_v13 = vpop.f32.mrf.mxu0 }
 0x43f   : > { %v4650_v25 = vpop.f32.mrf.mxu1  ;;  %v4669_v26 = vadd.f32 %v4630_v13, %v4357_v54 }
 0x440   : > { %v4677_v8 = vadd.f32 %v4650_v25, %v4377_v38  ;;  %v4632_v3 = vpop.f32.mrf.mxu0 }
 0x441   : > { %v4652_v63 = vpop.f32.mrf.mxu1  ;;  %v4696_v28 = vadd.f32 %v7876_v24, %v4669_v26  ;;  %v4670_v27 = vadd.f32 %v4632_v3, %v4359_v11 }
 0x442   : > { %v4704_v31 = vadd.f32 %v7876_v24, %v4677_v8  ;;  %v4678_v23 = vadd.f32 %v4652_v63, %v4379_v0  ;;  %v4634_v43 = vpop.f32.mrf.mxu0 }
 0x443   : > { %v4654_v14 = vpop.f32.mrf.mxu1  ;;  %v4697_v37 = vadd.f32 %v7880_v1, %v4670_v27  ;;  %v4712_v16 = vmax.f32 %v4696_v28, 0.0  ;;  %v4671_v41 = vadd.f32 %v4634_v43, %v4361_v18 }
 0x444   : > { %v4705_v5 = vadd.f32 %v7880_v1, %v4678_v23  ;;  %v4720_v34 = vmax.f32 %v4704_v31, 0.0  ;;  %v4679_v7 = vadd.f32 %v4654_v14, %v4381_v40  ;;  %v4636_v39 = vpop.f32.mrf.mxu0 }
 0x445   : > { %v4656_v51 = vpop.f32.mrf.mxu1  ;;  %v4713_v19 = vmax.f32 %v4697_v37, 0.0  ;;  %v4672_v9 = vadd.f32 %v4636_v39, %v4363_v2  ;;  %v4698_v36 = vadd.f32 %v7876_v24, %v4671_v41 }
 0x446   : > { %v4721_v12 = vmax.f32 %v4705_v5, 0.0  ;;  %v4680_v35 = vadd.f32 %v4656_v51, %v4383_v20  ;;  %v4706_v48 = vadd.f32 %v7876_v24, %v4679_v7  ;;  %v4640_v42 = vpop.f32.mrf.mxu0 }
 0x447   : > { %v4660_v49 = vpop.f32.mrf.mxu1  ;;  %v5500_v53 = vpack.c.bf16 %v4713_v19, %v4712_v16  ;;  %v4699_v44 = vadd.f32 %v7880_v1, %v4672_v9  ;;  %v4714_v58 = vmax.f32 %v4698_v36, 0.0  ;;  %v4673_v60 = vadd.f32 %v4640_v42, %v4367_v52 }
 0x448   : > { %v5504_v21 = vpack.c.bf16 %v4721_v12, %v4720_v34  ;;  %v4707_v55 = vadd.f32 %v7880_v1, %v4680_v35  ;;  %v4722_v50 = vmax.f32 %v4706_v48, 0.0  ;;  %v4681_v61 = vadd.f32 %v4660_v49, %v4387_v10  ;;  %v4642_v17 = vpop.f32.mrf.mxu0 }
 0x449   : > { %v4662_v22 = vpop.f32.mrf.mxu1  ;;  %5467 = vst.msk [vmem:[%s6409_s18 + $0xc0] sm:$0xff] %vm6374_vm2, %v5500_v53  ;;  %v4715_v46 = vmax.f32 %v4699_v44, 0.0  ;;  %v4674_v54 = vadd.f32 %v4642_v17, %v4369_v57  ;;  %v4700_v13 = vadd.f32 %v7876_v24, %v4673_v60 }
 0x44a   : > { %5471 = vst.msk [vmem:[%s6409_s18 + $0xe0] sm:$0xff] %vm6374_vm2, %v5504_v21  ;;  %v4723_v30 = vmax.f32 %v4707_v55, 0.0  ;;  %v4682_v38 = vadd.f32 %v4662_v22, %v4389_v45  ;;  %v4708_v25 = vadd.f32 %v7876_v24, %v4681_v61  ;;  %v4644_v59 = vpop.f32.mrf.mxu0 }
 0x44b   : > { %v4664_v11 = vpop.f32.mrf.mxu1  ;;  %v5501_v0 = vpack.c.bf16 %v4715_v46, %v4714_v58  ;;  %v4701_v8 = vadd.f32 %v7880_v1, %v4674_v54  ;;  %v4716_v2 = vmax.f32 %v4700_v13, 0.0  ;;  %v4675_v63 = vadd.f32 %v4644_v59, %v4371_v29 }
 0x44c   : > { %v5505_v26 = vpack.c.bf16 %v4723_v30, %v4722_v50  ;;  %v4709_v18 = vadd.f32 %v7880_v1, %v4682_v38  ;;  %v4724_v3 = vmax.f32 %v4708_v25, 0.0  ;;  %v4683_v33 = vadd.f32 %v4664_v11, %v4391_v62  ;;  %v4646_v6 = vpop.f32.mrf.mxu0 }
 0x44d   : > { %v4666_v15 = vpop.f32.mrf.mxu1  ;;  %5468 = vst.msk [vmem:[%s6409_s18 + $0xc8] sm:$0xff] %vm6374_vm2, %v5501_v0  ;;  %v4717_v32 = vmax.f32 %v4701_v8, 0.0  ;;  %v4676_v31 = vadd.f32 %v4646_v6, %v4373_v47  ;;  %v4702_v23 = vadd.f32 %v7876_v24, %v4675_v63 }
 0x44e   : > { %5472 = vst.msk [vmem:[%s6409_s18 + $0xe8] sm:$0xff] %vm6374_vm2, %v5505_v26  ;;  %v4725_v28 = vmax.f32 %v4709_v18, 0.0  ;;  %v4684_v27 = vadd.f32 %v4666_v15, %v4393_v56  ;;  %v4710_v52 = vadd.f32 %v7876_v24, %v4683_v33 }
 0x44f   : > { %v5502_v57 = vpack.c.bf16 %v4717_v32, %v4716_v2  ;;  %v4703_v40 = vadd.f32 %v7880_v1, %v4676_v31  ;;  %v4718_v14 = vmax.f32 %v4702_v23, 0.0 }
 0x450   : > { %v5506_v29 = vpack.c.bf16 %v4725_v28, %v4724_v3  ;;  %v4711_v43 = vadd.f32 %v7880_v1, %v4684_v27  ;;  %v4726_v47 = vmax.f32 %v4710_v52, 0.0 }
 0x451   : > { %5469 = vst.msk [vmem:[%s6409_s18 + $0xd0] sm:$0xff] %vm6374_vm2, %v5502_v57  ;;  %v4719_v20 = vmax.f32 %v4703_v40, 0.0 }
 0x452   : > { %5473 = vst.msk [vmem:[%s6409_s18 + $0xf0] sm:$0xff] %vm6374_vm2, %v5506_v29  ;;  %v4727_v37 = vmax.f32 %v4711_v43, 0.0 }
 0x453   : > { %v5503_v5 = vpack.c.bf16 %v4719_v20, %v4718_v14 }
 0x454   : > { %v5507_v16 = vpack.c.bf16 %v4727_v37, %v4726_v47 }
 0x455   : > { %5470 = vst.msk [vmem:[%s6409_s18 + $0xd8] sm:$0xff] %vm6374_vm2, %v5503_v5 }
 0x456   : > { %5474 = vst.msk [vmem:[%s6409_s18 + $0xf8] sm:$0xff] %vm6374_vm2, %v5507_v16 }
 0x457 PF: > { %p12_p3 = scmp.ge.s32.totalorder %s6247_s22, 4   ;;  %s7992_s18 = smov %s6188_s19 }
 0x458   : > { %s7993_s19 = smov %s6256_s25  ;;  %s7994_s20 = smov %s6247_s22 }
 0x459   :  { %14 = sbr.rel (!%p12_p3) target bundleno = 2 (0x2), region = 152 }

</bundles_post_ra>
